<compile_context>
chip_gen: v7x
topology: tpu7x:2x2x1
jax: 0.10.0
libtpu: 0.0.40
codegen_flags: <defaults>
</compile_context>

<pallas_src>
import functools

import numpy as np

import jax
import jax.numpy as jnp
from jax.experimental import pallas as pl
from jax.experimental.pallas import tpu as pltpu


HP = 128          # lane-padded per-gate width for the encoder LSTM (real H = 64)
ENC_H = 64        # encoder LSTM hidden size
DEC_H = 128       # decoder LSTM hidden size
DEC_T = 25        # decoder output length

WEIGHT_DTYPE = jnp.bfloat16   # set to jnp.float32 for exact-f32 parity


def _round_up(x, m):
    return ((x + m - 1) // m) * m


def _full_spec(shape):
    nd = len(shape)
    return pl.BlockSpec(shape, lambda i, _nd=nd: (0,) * _nd)


def _leaky(v):
    return jnp.where(v >= 0.0, v, 0.1 * v)      # nn.LeakyReLU(0.1)


def _softmax(v):
    v = v - jnp.max(v, axis=-1, keepdims=True)
    e = jnp.exp(v)
    return e / jnp.sum(e, axis=-1, keepdims=True)


def _mm(a, w):
    """MXU matmul against a stored weight (possibly bf16), f32 accumulate."""
    return jnp.dot(a.astype(w.dtype), w, preferred_element_type=jnp.float32)


# ----------------------------- fused kernel ---------------------------------
def _generator_kernel(x_ref, scat_ref, sh1_ref, sh2_ref, selA_ref, selB_ref,
                      latlon_ref,
                      l1w_ref, l1b_ref,
                      ewih_ref, ewhh_ref, eb_ref,
                      l2w_ref, l2b_ref,
                      c1w_ref, c1b_ref, c2w_ref, c2b_ref,
                      llw_ref, llb_ref,
                      dwe_ref, dwl_ref, dwhh_ref, db_ref,
                      dlw_ref, dlb_ref,
                      out_ref, lat_ref, lon_ref,
                      hseq_sc,
                      *, T, B, HB, NB):
    f32 = jnp.float32
    Bnp = HB + NB                       # encoder batch rows: [hist|pad | nbrs|pad]

    # ---- VAE5f: linear1 + LeakyReLU, shared encoder LSTM over hist & nbrs ----
    # input-gate projection hoisted out of the recurrence; per-step slices are
    # 8-sublane aligned because Bnp is a multiple of 8.
    x1 = _leaky(_mm(x_ref[...], l1w_ref[...]) + l1b_ref[...])            # (T*Bnp, 32)
    gx = _mm(x1, ewih_ref[...]) + eb_ref[...]                            # (T*Bnp, 4*HP)

    h = jnp.zeros((Bnp, HP), f32)
    c = jnp.zeros((Bnp, HP), f32)
    for t in range(T):                                  # short serial chain, fully unrolled
        g = gx[t * Bnp:(t + 1) * Bnp, :] + _mm(h, ewhh_ref[...])
        i_g = jax.nn.sigmoid(g[:, 0 * HP:1 * HP])
        f_g = jax.nn.sigmoid(g[:, 1 * HP:2 * HP])
        g_g = jnp.tanh(g[:, 2 * HP:3 * HP])
        o_g = jax.nn.sigmoid(g[:, 3 * HP:4 * HP])
        c = f_g * c + i_g * g_g
        h = o_g * jnp.tanh(c)
    # padded lanes [ENC_H:HP] of h/c stay exactly zero by construction.

    hist_enc = _leaky(_mm(h[0:HB, :], l2w_ref[...]) + l2b_ref[...])      # (HB, 32)
    nbrs_enc = h[HB:HB + NB, 0:ENC_H]                                    # (NB, 64) aligned slice

    # ---- masked_scatter_ as a one-hot matmul; rows (b, h13), lanes (w3, c64) ----
    s = jnp.concatenate(
        [jnp.dot(scat_ref[w], nbrs_enc, preferred_element_type=f32) for w in range(3)],
        axis=-1)                                                         # (B*13, 192)

    # ---- soc_conv (3x3 valid, width collapses to 1), batched over B ----
    # kh row-shifts are wrapper-built 0/1 matrices -> 3 aligned matmul pairs.
    y1 = jnp.dot(sh1_ref[0], _mm(s, c1w_ref[0]), preferred_element_type=f32)
    for kh in (1, 2):
        y1 = y1 + jnp.dot(sh1_ref[kh], _mm(s, c1w_ref[kh]),
                          preferred_element_type=f32)                    # (R1, 64)
    y1 = _leaky(y1 + c1b_ref[...])

    # ---- conv_3x1, batched over B ----
    y2 = jnp.dot(sh2_ref[0], _mm(y1, c2w_ref[0]), preferred_element_type=f32)
    for kh in (1, 2):
        y2 = y2 + jnp.dot(sh2_ref[kh], _mm(y1, c2w_ref[kh]),
                          preferred_element_type=f32)                    # (R2, 32)
    y2 = _leaky(y2 + c2b_ref[...])

    # ---- MaxPool2d((2,1), stride (2,1), pad (1,0)), batched: two row-gather
    # matmuls + elementwise max; rows ordered (h_pool, b) with stride HB (aligned).
    pooled = jnp.maximum(
        jnp.dot(selA_ref[...], y2, preferred_element_type=f32),
        jnp.dot(selB_ref[...], y2, preferred_element_type=f32))          # (5*HB, 32)

    # enc lanes: (h_pool, c) for the soc part (weight rows pre-permuted to match
    # PyTorch's (c, h) flatten order), then hist_enc.  All row slices aligned.
    enc = jnp.concatenate(
        [pooled[hp * HB:(hp + 1) * HB, :] for hp in range(5)] + [hist_enc],
        axis=1)                                                          # (HB, 192)

    # ---- fused lat/lon heads (one matmul, two exact softmaxes) ----
    ll = _mm(enc, llw_ref[...]) + llb_ref[...]                           # (HB, 5)
    llv = ll[0:B, :]
    lat_ref[...] = _softmax(llv[:, 0:3])
    lon_ref[...] = _softmax(llv[:, 3:5])

    # ---- Decoder LSTM: constant input per step -> hoist & split the input
    # projection (no 197-lane concat); runs on the HB-padded batch (same MXU cost).
    gxd = (_mm(enc, dwe_ref[...]) + _mm(latlon_ref[...], dwl_ref[...])
           + db_ref[...])                                                # (HB, 512)

    hd = jnp.zeros((HB, DEC_H), f32)
    cd = jnp.zeros((HB, DEC_H), f32)
    for t in range(DEC_T):                              # fully unrolled serial chain
        g = gxd + _mm(hd, dwhh_ref[...])
        i_g = jax.nn.sigmoid(g[:, 0 * DEC_H:1 * DEC_H])
        f_g = jax.nn.sigmoid(g[:, 1 * DEC_H:2 * DEC_H])
        g_g = jnp.tanh(g[:, 2 * DEC_H:3 * DEC_H])
        o_g = jax.nn.sigmoid(g[:, 3 * DEC_H:4 * DEC_H])
        cd = f_g * cd + i_g * g_g
        hd = o_g * jnp.tanh(cd)
        hseq_sc[t * HB:(t + 1) * HB, :] = hd            # static, 8-aligned store

    # final 128 -> 2 head folded into the epilogue as one batched matmul
    out_ref[...] = _mm(hseq_sc[...], dlw_ref[...]) + dlb_ref[...]        # (25*HB, 2)


# ------------------------------ parameters ----------------------------------
def init_params(key):
    ks = jax.random.split(key, 22)
    wd = WEIGHT_DTYPE

    def u(k, shape, fan_in):
        lim = 1.0 / (fan_in ** 0.5)
        return jax.random.uniform(k, shape, jnp.float32, -lim, lim)

    def pad_gates(w, hreal):
        # (rows, 4*hreal) -> (rows, 4*HP): each gate block zero-padded to HP lanes
        return jnp.concatenate(
            [jnp.pad(w[:, g * hreal:(g + 1) * hreal], ((0, 0), (0, HP - hreal)))
             for g in range(4)], axis=1)

    def perm_soc_rows(w):
        # kernel flattens the pooled social tensor in (h, c) lane order; PyTorch's
        # .view(-1, 5*32) uses (c, h).  Permute weight rows so semantics match.
        idx = (jnp.arange(160) % 32) * 5 + (jnp.arange(160) // 32)
        return jnp.concatenate([w[idx], w[160:]], axis=0)

    p = {}
    # VAE5f.linear1: 11 -> 32
    p["l1_w"] = u(ks[0], (11, 32), 11).astype(wd)
    p["l1_b"] = u(ks[1], (1, 32), 11)
    # VAE5f.lstm: 32 -> 64 (gate order i,f,g,o), lane-padded to 128 lanes/gate
    e_wih = u(ks[2], (32, 4 * ENC_H), ENC_H)
    e_whh = u(ks[3], (ENC_H, 4 * ENC_H), ENC_H)
    e_b = u(ks[4], (1, 4 * ENC_H), ENC_H) + u(ks[5], (1, 4 * ENC_H), ENC_H)
    p["e_wih"] = pad_gates(e_wih, ENC_H).astype(wd)                                   # (32, 512)
    p["e_whh"] = jnp.pad(pad_gates(e_whh, ENC_H),
                         ((0, HP - ENC_H), (0, 0))).astype(wd)                        # (128, 512)
    p["e_b"] = pad_gates(e_b, ENC_H)                                                  # (1, 512)
    # VAE5f.linear2: 64 -> 32 (rows padded to HP; padded h-lanes are zero anyway)
    p["l2_w"] = jnp.pad(u(ks[6], (ENC_H, 32), ENC_H),
                        ((0, HP - ENC_H), (0, 0))).astype(wd)                         # (128, 32)
    p["l2_b"] = u(ks[7], (1, 32), ENC_H)
    # soc_conv Conv2d(64, 64, 3x3): PyTorch (OC,IC,KH,KW) -> kernel layout (KH, KW*IC, OC)
    c1 = u(ks[8], (64, 64, 3, 3), 64 * 9)
    p["c1_w"] = jnp.transpose(c1, (2, 3, 1, 0)).reshape(3, 3 * 64, 64).astype(wd)
    p["c1_b"] = u(ks[9], (1, 64), 64 * 9)
    # conv_3x1 Conv2d(64, 32, (3,1)): -> (KH, IC, OC)
    c2 = u(ks[10], (32, 64, 3, 1), 64 * 3)
    p["c2_w"] = jnp.transpose(c2, (2, 3, 1, 0)).reshape(3, 64, 32).astype(wd)
    p["c2_b"] = u(ks[11], (1, 32), 64 * 3)
    # lat_linear (192->3) and lon_linear (192->2), fused column-wise
    lat_w = perm_soc_rows(u(ks[12], (192, 3), 192))
    lon_w = perm_soc_rows(u(ks[14], (192, 2), 192))
    p["ll_w"] = jnp.concatenate([lat_w, lon_w], axis=1).astype(wd)                    # (192, 5)
    p["ll_b"] = jnp.concatenate([u(ks[13], (1, 3), 192), u(ks[15], (1, 2), 192)], axis=1)
    # Decoder.lstm: 197 -> 128; input projection split into enc-part / latlon-part
    d_wih = perm_soc_rows(u(ks[16], (197, 4 * DEC_H), DEC_H))
    p["d_we"] = d_wih[:192].astype(wd)                                                # (192, 512)
    p["d_wl"] = d_wih[192:].astype(wd)                                                # (5, 512)
    p["d_whh"] = u(ks[17], (DEC_H, 4 * DEC_H), DEC_H).astype(wd)                      # (128, 512)
    p["d_b"] = u(ks[18], (1, 4 * DEC_H), DEC_H) + u(ks[19], (1, 4 * DEC_H), DEC_H)
    # Decoder.linear1: 128 -> 2
    p["dl_w"] = u(ks[20], (128, 2), 128).astype(wd)
    p["dl_b"] = u(ks[21], (1, 2), 128)
    return p


# -------------------- wrapper-built constant gather matrices -----------------
def _conv_shift_mats(B, HB):
    """0/1 matrices implementing the conv kh row-shifts and the maxpool row gathers."""
    R1 = _round_up(B * 11, 8)
    R2 = _round_up(B * 9, 8)
    sh1 = np.zeros((3, R1, B * 13), np.float32)   # soc_conv:  (b,h11) <- (b,h13+kh)
    sh2 = np.zeros((3, R2, R1), np.float32)       # conv_3x1:  (b,h9)  <- (b,h11+kh)
    for kh in range(3):
        for b in range(B):
            for h in range(11):
                sh1[kh, b * 11 + h, b * 13 + h + kh] = 1.0
            for h in range(9):
                sh2[kh, b * 9 + h, b * 11 + h + kh] = 1.0
    # MaxPool2d((2,1), pad (1,0)): out rows per b = [y0, max(y1,y2), ..., max(y7,y8)]
    selA = np.zeros((5 * HB, R2), np.float32)     # pooled rows ordered (h_pool, b)
    selB = np.zeros((5 * HB, R2), np.float32)
    rowA = (0, 1, 3, 5, 7)
    rowB = (0, 2, 4, 6, 8)
    for hp in range(5):
        for b in range(B):
            selA[hp * HB + b, b * 9 + rowA[hp]] = 1.0
            selB[hp * HB + b, b * 9 + rowB[hp]] = 1.0
    return (jnp.asarray(sh1), jnp.asarray(sh2), jnp.asarray(selA), jnp.asarray(selB))


# ------------------------------ full forward --------------------------------
def generator_forward(params, hist, nbrs, mask, lat_enc, lon_enc,
                      va, nbrsva, lane, nbrslane):
    p = params
    T, B, _ = hist.shape
    Tn, N, _ = nbrs.shape
    assert T == Tn  # hist & nbrs share the encoder LSTM; batched through one recurrence

    HB = _round_up(B, 8)          # hist / decoder rows, sublane-aligned
    NB = _round_up(N, 8)          # nbrs rows, sublane-aligned
    Bnp = HB + NB

    # --- cheap XLA glue: concat + pad to the aligned encoder row layout ---
    hist5f = jnp.concatenate([hist, va, lane], axis=2).astype(jnp.float32)      # (T, B, 11)
    nbrs5f = jnp.concatenate([nbrs, nbrsva, nbrslane], axis=2).astype(jnp.float32)
    histp = jnp.pad(hist5f, ((0, 0), (0, HB - B), (0, 0)))
    nbrsp = jnp.pad(nbrs5f, ((0, 0), (0, NB - N), (0, 0)))
    x2d = jnp.concatenate([histp, nbrsp], axis=1).reshape(T * Bnp, 11)

    # masked_scatter_: per-cell one-hot (B*3*13 cells), broadcast over the 64 channels,
    # neighbor columns zero-padded to NB.
    # TODO(synk): assumes every occupied cell has all 64 channels set (standard
    # social-grid mask); fully general element-wise masked_scatter not expressed.
    cm = mask[:, :, :, 0]                                          # (B, 3, 13) bool
    order = jnp.cumsum(cm.reshape(-1).astype(jnp.int32)) - 1
    onehot = ((order[:, None] == jnp.arange(NB, dtype=jnp.int32)[None, :])
              & cm.reshape(-1)[:, None]).astype(jnp.float32)       # (B*3*13, NB)
    scat = onehot.reshape(B, 3, 13, NB).transpose(1, 0, 2, 3).reshape(3, B * 13, NB)

    sh1, sh2, selA, selB = _conv_shift_mats(B, HB)

    latlon = jnp.pad(
        jnp.concatenate([lat_enc, lon_enc], axis=1).astype(jnp.float32),
        ((0, HB - B), (0, 0)))                                     # (HB, 5)

    inputs = (x2d, scat, sh1, sh2, selA, selB, latlon,
              p["l1_w"], p["l1_b"],
              p["e_wih"], p["e_whh"], p["e_b"],
              p["l2_w"], p["l2_b"],
              p["c1_w"], p["c1_b"], p["c2_w"], p["c2_b"],
              p["ll_w"], p["ll_b"],
              p["d_we"], p["d_wl"], p["d_whh"], p["d_b"],
              p["dl_w"], p["dl_b"])

    out2d, lat_pred, lon_pred = pl.pallas_call(
        functools.partial(_generator_kernel, T=T, B=B, HB=HB, NB=NB),
        grid=(1,),
        in_specs=[_full_spec(a.shape) for a in inputs],
        out_specs=(_full_spec((DEC_T * HB, 2)),
                   _full_spec((B, 3)),
                   _full_spec((B, 2))),
        out_shape=(jax.ShapeDtypeStruct((DEC_T * HB, 2), jnp.float32),
                   jax.ShapeDtypeStruct((B, 3), jnp.float32),
                   jax.ShapeDtypeStruct((B, 2), jnp.float32)),
        scratch_shapes=[pltpu.VMEM((DEC_T * HB, DEC_H), jnp.float32)],
        compiler_params=pltpu.CompilerParams(dimension_semantics=("arbitrary",)),
    )(*inputs)

    out = out2d.reshape(DEC_T, HB, 2)[:, :B, :]                    # (25, B, 2)
    return out, lat_pred, lon_pred


# ---------------------------------- main -------------------------------------
if __name__ == "__main__":
    T, B, N = 8, 2, 4

    key = jax.random.PRNGKey(0)
    k1, k2, k3, k4, k5, k6 = jax.random.split(key, 6)
    hist = jax.random.normal(k1, (T, B, 2), jnp.float32)
    nbrs = jax.random.normal(k2, (T, N, 2), jnp.float32)
    va = jax.random.normal(k3, (T, B, 2), jnp.float32)
    nbrsva = jax.random.normal(k4, (T, N, 2), jnp.float32)
    lane = jax.random.normal(k5, (T, B, 7), jnp.float32)
    nbrslane = jax.random.normal(k6, (T, N, 7), jnp.float32)

    # social grid mask (B, 3, 13, 64): N occupied cells, all 64 channels True.
    mask = jnp.zeros((B, 3, 13, 64), dtype=bool)
    for (b_, h_, w_) in [(0, 0, 2), (0, 1, 5), (1, 0, 10), (1, 2, 7)]:
        mask = mask.at[b_, h_, w_, :].set(True)

    lat_enc = jnp.array([[1.0, 0.0, 0.0], [0.0, 1.0, 0.0]], jnp.float32)  # (B, 3)
    lon_enc = jnp.array([[1.0, 0.0], [0.0, 1.0]], jnp.float32)            # (B, 2)

    params = init_params(jax.random.PRNGKey(1))

    fwd = jax.jit(functools.partial(generator_forward, params))
    out, lat_pred, lon_pred = fwd(hist, nbrs, mask, lat_enc, lon_enc,
                                  va, nbrsva, lane, nbrslane)
    jax.block_until_ready((out, lat_pred, lon_pred))

    assert out.shape == (25, B, 2)
    assert lat_pred.shape == (B, 3) and lon_pred.shape == (B, 2)
    assert bool(jnp.all(jnp.isfinite(out)))
    assert bool(jnp.all(jnp.isfinite(lat_pred))) and bool(jnp.all(jnp.isfinite(lon_pred)))
    print("KERNEL_OK")
</pallas_src>

<mosaic_0001>
module attributes {stable_mosaic.version = 11 : i64} {
  func.func @_generator_kernel(%arg0: i32, %arg1: memref<128x11xf32, #tpu.memory_space<vmem>>, %arg2: memref<3x26x8xf32, #tpu.memory_space<vmem>>, %arg3: memref<3x24x26xf32, #tpu.memory_space<vmem>>, %arg4: memref<3x24x24xf32, #tpu.memory_space<vmem>>, %arg5: memref<40x24xf32, #tpu.memory_space<vmem>>, %arg6: memref<40x24xf32, #tpu.memory_space<vmem>>, %arg7: memref<8x5xf32, #tpu.memory_space<vmem>>, %arg8: memref<11x32xbf16, #tpu.memory_space<vmem>>, %arg9: memref<1x32xf32, #tpu.memory_space<vmem>>, %arg10: memref<32x512xbf16, #tpu.memory_space<vmem>>, %arg11: memref<128x512xbf16, #tpu.memory_space<vmem>>, %arg12: memref<1x512xf32, #tpu.memory_space<vmem>>, %arg13: memref<128x32xbf16, #tpu.memory_space<vmem>>, %arg14: memref<1x32xf32, #tpu.memory_space<vmem>>, %arg15: memref<3x192x64xbf16, #tpu.memory_space<vmem>>, %arg16: memref<1x64xf32, #tpu.memory_space<vmem>>, %arg17: memref<3x64x32xbf16, #tpu.memory_space<vmem>>, %arg18: memref<1x32xf32, #tpu.memory_space<vmem>>, %arg19: memref<192x5xbf16, #tpu.memory_space<vmem>>, %arg20: memref<1x5xf32, #tpu.memory_space<vmem>>, %arg21: memref<192x512xbf16, #tpu.memory_space<vmem>>, %arg22: memref<5x512xbf16, #tpu.memory_space<vmem>>, %arg23: memref<128x512xbf16, #tpu.memory_space<vmem>>, %arg24: memref<1x512xf32, #tpu.memory_space<vmem>>, %arg25: memref<128x2xbf16, #tpu.memory_space<vmem>>, %arg26: memref<1x2xf32, #tpu.memory_space<vmem>>, %arg27: memref<200x2xf32, #tpu.memory_space<vmem>>, %arg28: memref<2x3xf32, #tpu.memory_space<vmem>>, %arg29: memref<2x2xf32, #tpu.memory_space<vmem>>, %arg30: memref<200x128xf32, #tpu.memory_space<vmem>>) attributes {dimension_semantics = [#tpu.dimension_semantics<arbitrary>], iteration_bounds = array<i64: 1>, scalar_prefetch = 0 : i64, scratch_operands = 1 : i64, tpu.core_type = #tpu.core_type<tc>, window_params = [{pipeline_mode = #tpu.pipeline_mode<synchronous>, transform_indices = @transform_0, window_bounds = array<i64: 128, 11>}, {pipeline_mode = #tpu.pipeline_mode<synchronous>, transform_indices = @transform_1, window_bounds = array<i64: 3, 26, 8>}, {pipeline_mode = #tpu.pipeline_mode<synchronous>, transform_indices = @transform_2, window_bounds = array<i64: 3, 24, 26>}, {pipeline_mode = #tpu.pipeline_mode<synchronous>, transform_indices = @transform_3, window_bounds = array<i64: 3, 24, 24>}, {pipeline_mode = #tpu.pipeline_mode<synchronous>, transform_indices = @transform_4, window_bounds = array<i64: 40, 24>}, {pipeline_mode = #tpu.pipeline_mode<synchronous>, transform_indices = @transform_5, window_bounds = array<i64: 40, 24>}, {pipeline_mode = #tpu.pipeline_mode<synchronous>, transform_indices = @transform_6, window_bounds = array<i64: 8, 5>}, {pipeline_mode = #tpu.pipeline_mode<synchronous>, transform_indices = @transform_7, window_bounds = array<i64: 11, 32>}, {pipeline_mode = #tpu.pipeline_mode<synchronous>, transform_indices = @transform_8, window_bounds = array<i64: 1, 32>}, {pipeline_mode = #tpu.pipeline_mode<synchronous>, transform_indices = @transform_9, window_bounds = array<i64: 32, 512>}, {pipeline_mode = #tpu.pipeline_mode<synchronous>, transform_indices = @transform_10, window_bounds = array<i64: 128, 512>}, {pipeline_mode = #tpu.pipeline_mode<synchronous>, transform_indices = @transform_11, window_bounds = array<i64: 1, 512>}, {pipeline_mode = #tpu.pipeline_mode<synchronous>, transform_indices = @transform_12, window_bounds = array<i64: 128, 32>}, {pipeline_mode = #tpu.pipeline_mode<synchronous>, transform_indices = @transform_13, window_bounds = array<i64: 1, 32>}, {pipeline_mode = #tpu.pipeline_mode<synchronous>, transform_indices = @transform_14, window_bounds = array<i64: 3, 192, 64>}, {pipeline_mode = #tpu.pipeline_mode<synchronous>, transform_indices = @transform_15, window_bounds = array<i64: 1, 64>}, {pipeline_mode = #tpu.pipeline_mode<synchronous>, transform_indices = @transform_16, window_bounds = array<i64: 3, 64, 32>}, {pipeline_mode = #tpu.pipeline_mode<synchronous>, transform_indices = @transform_17, window_bounds = array<i64: 1, 32>}, {pipeline_mode = #tpu.pipeline_mode<synchronous>, transform_indices = @transform_18, window_bounds = array<i64: 192, 5>}, {pipeline_mode = #tpu.pipeline_mode<synchronous>, transform_indices = @transform_19, window_bounds = array<i64: 1, 5>}, {pipeline_mode = #tpu.pipeline_mode<synchronous>, transform_indices = @transform_20, window_bounds = array<i64: 192, 512>}, {pipeline_mode = #tpu.pipeline_mode<synchronous>, transform_indices = @transform_21, window_bounds = array<i64: 5, 512>}, {pipeline_mode = #tpu.pipeline_mode<synchronous>, transform_indices = @transform_22, window_bounds = array<i64: 128, 512>}, {pipeline_mode = #tpu.pipeline_mode<synchronous>, transform_indices = @transform_23, window_bounds = array<i64: 1, 512>}, {pipeline_mode = #tpu.pipeline_mode<synchronous>, transform_indices = @transform_24, window_bounds = array<i64: 128, 2>}, {pipeline_mode = #tpu.pipeline_mode<synchronous>, transform_indices = @transform_25, window_bounds = array<i64: 1, 2>}, {pipeline_mode = #tpu.pipeline_mode<synchronous>, transform_indices = @transform_26, window_bounds = array<i64: 200, 2>}, {pipeline_mode = #tpu.pipeline_mode<synchronous>, transform_indices = @transform_27, window_bounds = array<i64: 2, 3>}, {pipeline_mode = #tpu.pipeline_mode<synchronous>, transform_indices = @transform_28, window_bounds = array<i64: 2, 2>}]} {
    %c0 = arith.constant 0 : index
    %c0_0 = arith.constant 0 : index
    %0 = vector.load %arg1[%c0, %c0_0] : memref<128x11xf32, #tpu.memory_space<vmem>>, vector<128x11xf32>
    %c0_1 = arith.constant 0 : index
    %c0_2 = arith.constant 0 : index
    %1 = vector.load %arg8[%c0_1, %c0_2] : memref<11x32xbf16, #tpu.memory_space<vmem>>, vector<11x32xbf16>
    %2 = arith.truncf %0 : vector<128x11xf32> to vector<128x11xbf16>
    %cst = arith.constant dense<0.000000e+00> : vector<128x32xf32>
    %3 = tpu.matmul %2, %1, %cst {dimension_numbers = #tpu.dot_dimension_numbers<[1], [0], [0], [1], [0, 0, 1, 1], [], []>} : vector<128x11xbf16>, vector<11x32xbf16>, vector<128x32xf32> -> vector<128x32xf32>
    %c0_3 = arith.constant 0 : index
    %c0_4 = arith.constant 0 : index
    %4 = vector.load %arg9[%c0_3, %c0_4] : memref<1x32xf32, #tpu.memory_space<vmem>>, vector<1x32xf32>
    %5 = vector.broadcast %4 : vector<1x32xf32> to vector<128x32xf32>
    %6 = arith.addf %3, %5 : vector<128x32xf32>
    %cst_5 = arith.constant 0.000000e+00 : f32
    %7 = vector.broadcast %cst_5 : f32 to vector<128x32xf32>
    %8 = arith.cmpf oge, %6, %7 : vector<128x32xf32>
    %cst_6 = arith.constant 1.000000e-01 : f32
    %9 = vector.broadcast %cst_6 : f32 to vector<128x32xf32>
    %10 = arith.mulf %9, %6 : vector<128x32xf32>
    %11 = arith.select %8, %6, %10 : vector<128x32xi1>, vector<128x32xf32>
    %c0_7 = arith.constant 0 : index
    %c0_8 = arith.constant 0 : index
    %12 = vector.load %arg10[%c0_7, %c0_8] : memref<32x512xbf16, #tpu.memory_space<vmem>>, vector<32x512xbf16>
    %13 = arith.truncf %11 : vector<128x32xf32> to vector<128x32xbf16>
    %cst_9 = arith.constant dense<0.000000e+00> : vector<128x512xf32>
    %14 = tpu.matmul %13, %12, %cst_9 {dimension_numbers = #tpu.dot_dimension_numbers<[1], [0], [0], [1], [0, 0, 1, 1], [], []>} : vector<128x32xbf16>, vector<32x512xbf16>, vector<128x512xf32> -> vector<128x512xf32>
    %c0_10 = arith.constant 0 : index
    %c0_11 = arith.constant 0 : index
    %15 = vector.load %arg12[%c0_10, %c0_11] : memref<1x512xf32, #tpu.memory_space<vmem>>, vector<1x512xf32>
    %16 = vector.broadcast %15 : vector<1x512xf32> to vector<128x512xf32>
    %17 = arith.addf %14, %16 : vector<128x512xf32>
    %cst_12 = arith.constant 0.000000e+00 : f32
    %18 = vector.broadcast %cst_12 : f32 to vector<16x128xf32>
    %cst_13 = arith.constant 0.000000e+00 : f32
    %19 = vector.broadcast %cst_13 : f32 to vector<16x128xf32>
    %20 = vector.extract_strided_slice %17 {offsets = [0, 0], sizes = [16, 512], strides = [1, 1]} : vector<128x512xf32> to vector<16x512xf32>
    %c0_14 = arith.constant 0 : index
    %c0_15 = arith.constant 0 : index
    %21 = vector.load %arg11[%c0_14, %c0_15] : memref<128x512xbf16, #tpu.memory_space<vmem>>, vector<128x512xbf16>
    %22 = arith.truncf %18 : vector<16x128xf32> to vector<16x128xbf16>
    %cst_16 = arith.constant dense<0.000000e+00> : vector<16x512xf32>
    %23 = tpu.matmul %22, %21, %cst_16 {dimension_numbers = #tpu.dot_dimension_numbers<[1], [0], [0], [1], [0, 0, 1, 1], [], []>} : vector<16x128xbf16>, vector<128x512xbf16>, vector<16x512xf32> -> vector<16x512xf32>
    %24 = arith.addf %20, %23 : vector<16x512xf32>
    %25 = vector.extract_strided_slice %24 {offsets = [0, 0], sizes = [16, 128], strides = [1, 1]} : vector<16x512xf32> to vector<16x128xf32>
    %26 = arith.negf %25 : vector<16x128xf32>
    %27 = math.exp %26 : vector<16x128xf32>
    %cst_17 = arith.constant 1.000000e+00 : f32
    %28 = vector.broadcast %cst_17 : f32 to vector<16x128xf32>
    %29 = arith.addf %28, %27 : vector<16x128xf32>
    %30 = arith.divf %28, %29 : vector<16x128xf32>
    %31 = vector.extract_strided_slice %24 {offsets = [0, 128], sizes = [16, 128], strides = [1, 1]} : vector<16x512xf32> to vector<16x128xf32>
    %32 = arith.negf %31 : vector<16x128xf32>
    %33 = math.exp %32 : vector<16x128xf32>
    %cst_18 = arith.constant 1.000000e+00 : f32
    %34 = vector.broadcast %cst_18 : f32 to vector<16x128xf32>
    %35 = arith.addf %34, %33 : vector<16x128xf32>
    %36 = arith.divf %34, %35 : vector<16x128xf32>
    %37 = vector.extract_strided_slice %24 {offsets = [0, 256], sizes = [16, 128], strides = [1, 1]} : vector<16x512xf32> to vector<16x128xf32>
    %38 = math.tanh %37 : vector<16x128xf32>
    %39 = vector.extract_strided_slice %24 {offsets = [0, 384], sizes = [16, 128], strides = [1, 1]} : vector<16x512xf32> to vector<16x128xf32>
    %40 = arith.negf %39 : vector<16x128xf32>
    %41 = math.exp %40 : vector<16x128xf32>
    %cst_19 = arith.constant 1.000000e+00 : f32
    %42 = vector.broadcast %cst_19 : f32 to vector<16x128xf32>
    %43 = arith.addf %42, %41 : vector<16x128xf32>
    %44 = arith.divf %42, %43 : vector<16x128xf32>
    %45 = arith.mulf %36, %19 : vector<16x128xf32>
    %46 = arith.mulf %30, %38 : vector<16x128xf32>
    %47 = arith.addf %45, %46 : vector<16x128xf32>
    %48 = math.tanh %47 : vector<16x128xf32>
    %49 = arith.mulf %44, %48 : vector<16x128xf32>
    %50 = vector.extract_strided_slice %17 {offsets = [16, 0], sizes = [16, 512], strides = [1, 1]} : vector<128x512xf32> to vector<16x512xf32>
    %c0_20 = arith.constant 0 : index
    %c0_21 = arith.constant 0 : index
    %51 = vector.load %arg11[%c0_20, %c0_21] : memref<128x512xbf16, #tpu.memory_space<vmem>>, vector<128x512xbf16>
    %52 = arith.truncf %49 : vector<16x128xf32> to vector<16x128xbf16>
    %cst_22 = arith.constant dense<0.000000e+00> : vector<16x512xf32>
    %53 = tpu.matmul %52, %51, %cst_22 {dimension_numbers = #tpu.dot_dimension_numbers<[1], [0], [0], [1], [0, 0, 1, 1], [], []>} : vector<16x128xbf16>, vector<128x512xbf16>, vector<16x512xf32> -> vector<16x512xf32>
    %54 = arith.addf %50, %53 : vector<16x512xf32>
    %55 = vector.extract_strided_slice %54 {offsets = [0, 0], sizes = [16, 128], strides = [1, 1]} : vector<16x512xf32> to vector<16x128xf32>
    %56 = arith.negf %55 : vector<16x128xf32>
    %57 = math.exp %56 : vector<16x128xf32>
    %cst_23 = arith.constant 1.000000e+00 : f32
    %58 = vector.broadcast %cst_23 : f32 to vector<16x128xf32>
    %59 = arith.addf %58, %57 : vector<16x128xf32>
    %60 = arith.divf %58, %59 : vector<16x128xf32>
    %61 = vector.extract_strided_slice %54 {offsets = [0, 128], sizes = [16, 128], strides = [1, 1]} : vector<16x512xf32> to vector<16x128xf32>
    %62 = arith.negf %61 : vector<16x128xf32>
    %63 = math.exp %62 : vector<16x128xf32>
    %cst_24 = arith.constant 1.000000e+00 : f32
    %64 = vector.broadcast %cst_24 : f32 to vector<16x128xf32>
    %65 = arith.addf %64, %63 : vector<16x128xf32>
    %66 = arith.divf %64, %65 : vector<16x128xf32>
    %67 = vector.extract_strided_slice %54 {offsets = [0, 256], sizes = [16, 128], strides = [1, 1]} : vector<16x512xf32> to vector<16x128xf32>
    %68 = math.tanh %67 : vector<16x128xf32>
    %69 = vector.extract_strided_slice %54 {offsets = [0, 384], sizes = [16, 128], strides = [1, 1]} : vector<16x512xf32> to vector<16x128xf32>
    %70 = arith.negf %69 : vector<16x128xf32>
    %71 = math.exp %70 : vector<16x128xf32>
    %cst_25 = arith.constant 1.000000e+00 : f32
    %72 = vector.broadcast %cst_25 : f32 to vector<16x128xf32>
    %73 = arith.addf %72, %71 : vector<16x128xf32>
    %74 = arith.divf %72, %73 : vector<16x128xf32>
    %75 = arith.mulf %66, %47 : vector<16x128xf32>
    %76 = arith.mulf %60, %68 : vector<16x128xf32>
    %77 = arith.addf %75, %76 : vector<16x128xf32>
    %78 = math.tanh %77 : vector<16x128xf32>
    %79 = arith.mulf %74, %78 : vector<16x128xf32>
    %80 = vector.extract_strided_slice %17 {offsets = [32, 0], sizes = [16, 512], strides = [1, 1]} : vector<128x512xf32> to vector<16x512xf32>
    %c0_26 = arith.constant 0 : index
    %c0_27 = arith.constant 0 : index
    %81 = vector.load %arg11[%c0_26, %c0_27] : memref<128x512xbf16, #tpu.memory_space<vmem>>, vector<128x512xbf16>
    %82 = arith.truncf %79 : vector<16x128xf32> to vector<16x128xbf16>
    %cst_28 = arith.constant dense<0.000000e+00> : vector<16x512xf32>
    %83 = tpu.matmul %82, %81, %cst_28 {dimension_numbers = #tpu.dot_dimension_numbers<[1], [0], [0], [1], [0, 0, 1, 1], [], []>} : vector<16x128xbf16>, vector<128x512xbf16>, vector<16x512xf32> -> vector<16x512xf32>
    %84 = arith.addf %80, %83 : vector<16x512xf32>
    %85 = vector.extract_strided_slice %84 {offsets = [0, 0], sizes = [16, 128], strides = [1, 1]} : vector<16x512xf32> to vector<16x128xf32>
    %86 = arith.negf %85 : vector<16x128xf32>
    %87 = math.exp %86 : vector<16x128xf32>
    %cst_29 = arith.constant 1.000000e+00 : f32
    %88 = vector.broadcast %cst_29 : f32 to vector<16x128xf32>
    %89 = arith.addf %88, %87 : vector<16x128xf32>
    %90 = arith.divf %88, %89 : vector<16x128xf32>
    %91 = vector.extract_strided_slice %84 {offsets = [0, 128], sizes = [16, 128], strides = [1, 1]} : vector<16x512xf32> to vector<16x128xf32>
    %92 = arith.negf %91 : vector<16x128xf32>
    %93 = math.exp %92 : vector<16x128xf32>
    %cst_30 = arith.constant 1.000000e+00 : f32
    %94 = vector.broadcast %cst_30 : f32 to vector<16x128xf32>
    %95 = arith.addf %94, %93 : vector<16x128xf32>
    %96 = arith.divf %94, %95 : vector<16x128xf32>
    %97 = vector.extract_strided_slice %84 {offsets = [0, 256], sizes = [16, 128], strides = [1, 1]} : vector<16x512xf32> to vector<16x128xf32>
    %98 = math.tanh %97 : vector<16x128xf32>
    %99 = vector.extract_strided_slice %84 {offsets = [0, 384], sizes = [16, 128], strides = [1, 1]} : vector<16x512xf32> to vector<16x128xf32>
    %100 = arith.negf %99 : vector<16x128xf32>
    %101 = math.exp %100 : vector<16x128xf32>
    %cst_31 = arith.constant 1.000000e+00 : f32
    %102 = vector.broadcast %cst_31 : f32 to vector<16x128xf32>
    %103 = arith.addf %102, %101 : vector<16x128xf32>
    %104 = arith.divf %102, %103 : vector<16x128xf32>
    %105 = arith.mulf %96, %77 : vector<16x128xf32>
    %106 = arith.mulf %90, %98 : vector<16x128xf32>
    %107 = arith.addf %105, %106 : vector<16x128xf32>
    %108 = math.tanh %107 : vector<16x128xf32>
    %109 = arith.mulf %104, %108 : vector<16x128xf32>
    %110 = vector.extract_strided_slice %17 {offsets = [48, 0], sizes = [16, 512], strides = [1, 1]} : vector<128x512xf32> to vector<16x512xf32>
    %c0_32 = arith.constant 0 : index
    %c0_33 = arith.constant 0 : index
    %111 = vector.load %arg11[%c0_32, %c0_33] : memref<128x512xbf16, #tpu.memory_space<vmem>>, vector<128x512xbf16>
    %112 = arith.truncf %109 : vector<16x128xf32> to vector<16x128xbf16>
    %cst_34 = arith.constant dense<0.000000e+00> : vector<16x512xf32>
    %113 = tpu.matmul %112, %111, %cst_34 {dimension_numbers = #tpu.dot_dimension_numbers<[1], [0], [0], [1], [0, 0, 1, 1], [], []>} : vector<16x128xbf16>, vector<128x512xbf16>, vector<16x512xf32> -> vector<16x512xf32>
    %114 = arith.addf %110, %113 : vector<16x512xf32>
    %115 = vector.extract_strided_slice %114 {offsets = [0, 0], sizes = [16, 128], strides = [1, 1]} : vector<16x512xf32> to vector<16x128xf32>
    %116 = arith.negf %115 : vector<16x128xf32>
    %117 = math.exp %116 : vector<16x128xf32>
    %cst_35 = arith.constant 1.000000e+00 : f32
    %118 = vector.broadcast %cst_35 : f32 to vector<16x128xf32>
    %119 = arith.addf %118, %117 : vector<16x128xf32>
    %120 = arith.divf %118, %119 : vector<16x128xf32>
    %121 = vector.extract_strided_slice %114 {offsets = [0, 128], sizes = [16, 128], strides = [1, 1]} : vector<16x512xf32> to vector<16x128xf32>
    %122 = arith.negf %121 : vector<16x128xf32>
    %123 = math.exp %122 : vector<16x128xf32>
    %cst_36 = arith.constant 1.000000e+00 : f32
    %124 = vector.broadcast %cst_36 : f32 to vector<16x128xf32>
    %125 = arith.addf %124, %123 : vector<16x128xf32>
    %126 = arith.divf %124, %125 : vector<16x128xf32>
    %127 = vector.extract_strided_slice %114 {offsets = [0, 256], sizes = [16, 128], strides = [1, 1]} : vector<16x512xf32> to vector<16x128xf32>
    %128 = math.tanh %127 : vector<16x128xf32>
    %129 = vector.extract_strided_slice %114 {offsets = [0, 384], sizes = [16, 128], strides = [1, 1]} : vector<16x512xf32> to vector<16x128xf32>
    %130 = arith.negf %129 : vector<16x128xf32>
    %131 = math.exp %130 : vector<16x128xf32>
    %cst_37 = arith.constant 1.000000e+00 : f32
    %132 = vector.broadcast %cst_37 : f32 to vector<16x128xf32>
    %133 = arith.addf %132, %131 : vector<16x128xf32>
    %134 = arith.divf %132, %133 : vector<16x128xf32>
    %135 = arith.mulf %126, %107 : vector<16x128xf32>
    %136 = arith.mulf %120, %128 : vector<16x128xf32>
    %137 = arith.addf %135, %136 : vector<16x128xf32>
    %138 = math.tanh %137 : vector<16x128xf32>
    %139 = arith.mulf %134, %138 : vector<16x128xf32>
    %140 = vector.extract_strided_slice %17 {offsets = [64, 0], sizes = [16, 512], strides = [1, 1]} : vector<128x512xf32> to vector<16x512xf32>
    %c0_38 = arith.constant 0 : index
    %c0_39 = arith.constant 0 : index
    %141 = vector.load %arg11[%c0_38, %c0_39] : memref<128x512xbf16, #tpu.memory_space<vmem>>, vector<128x512xbf16>
    %142 = arith.truncf %139 : vector<16x128xf32> to vector<16x128xbf16>
    %cst_40 = arith.constant dense<0.000000e+00> : vector<16x512xf32>
    %143 = tpu.matmul %142, %141, %cst_40 {dimension_numbers = #tpu.dot_dimension_numbers<[1], [0], [0], [1], [0, 0, 1, 1], [], []>} : vector<16x128xbf16>, vector<128x512xbf16>, vector<16x512xf32> -> vector<16x512xf32>
    %144 = arith.addf %140, %143 : vector<16x512xf32>
    %145 = vector.extract_strided_slice %144 {offsets = [0, 0], sizes = [16, 128], strides = [1, 1]} : vector<16x512xf32> to vector<16x128xf32>
    %146 = arith.negf %145 : vector<16x128xf32>
    %147 = math.exp %146 : vector<16x128xf32>
    %cst_41 = arith.constant 1.000000e+00 : f32
    %148 = vector.broadcast %cst_41 : f32 to vector<16x128xf32>
    %149 = arith.addf %148, %147 : vector<16x128xf32>
    %150 = arith.divf %148, %149 : vector<16x128xf32>
    %151 = vector.extract_strided_slice %144 {offsets = [0, 128], sizes = [16, 128], strides = [1, 1]} : vector<16x512xf32> to vector<16x128xf32>
    %152 = arith.negf %151 : vector<16x128xf32>
    %153 = math.exp %152 : vector<16x128xf32>
    %cst_42 = arith.constant 1.000000e+00 : f32
    %154 = vector.broadcast %cst_42 : f32 to vector<16x128xf32>
    %155 = arith.addf %154, %153 : vector<16x128xf32>
    %156 = arith.divf %154, %155 : vector<16x128xf32>
    %157 = vector.extract_strided_slice %144 {offsets = [0, 256], sizes = [16, 128], strides = [1, 1]} : vector<16x512xf32> to vector<16x128xf32>
    %158 = math.tanh %157 : vector<16x128xf32>
    %159 = vector.extract_strided_slice %144 {offsets = [0, 384], sizes = [16, 128], strides = [1, 1]} : vector<16x512xf32> to vector<16x128xf32>
    %160 = arith.negf %159 : vector<16x128xf32>
    %161 = math.exp %160 : vector<16x128xf32>
    %cst_43 = arith.constant 1.000000e+00 : f32
    %162 = vector.broadcast %cst_43 : f32 to vector<16x128xf32>
    %163 = arith.addf %162, %161 : vector<16x128xf32>
    %164 = arith.divf %162, %163 : vector<16x128xf32>
    %165 = arith.mulf %156, %137 : vector<16x128xf32>
    %166 = arith.mulf %150, %158 : vector<16x128xf32>
    %167 = arith.addf %165, %166 : vector<16x128xf32>
    %168 = math.tanh %167 : vector<16x128xf32>
    %169 = arith.mulf %164, %168 : vector<16x128xf32>
    %170 = vector.extract_strided_slice %17 {offsets = [80, 0], sizes = [16, 512], strides = [1, 1]} : vector<128x512xf32> to vector<16x512xf32>
    %c0_44 = arith.constant 0 : index
    %c0_45 = arith.constant 0 : index
    %171 = vector.load %arg11[%c0_44, %c0_45] : memref<128x512xbf16, #tpu.memory_space<vmem>>, vector<128x512xbf16>
    %172 = arith.truncf %169 : vector<16x128xf32> to vector<16x128xbf16>
    %cst_46 = arith.constant dense<0.000000e+00> : vector<16x512xf32>
    %173 = tpu.matmul %172, %171, %cst_46 {dimension_numbers = #tpu.dot_dimension_numbers<[1], [0], [0], [1], [0, 0, 1, 1], [], []>} : vector<16x128xbf16>, vector<128x512xbf16>, vector<16x512xf32> -> vector<16x512xf32>
    %174 = arith.addf %170, %173 : vector<16x512xf32>
    %175 = vector.extract_strided_slice %174 {offsets = [0, 0], sizes = [16, 128], strides = [1, 1]} : vector<16x512xf32> to vector<16x128xf32>
    %176 = arith.negf %175 : vector<16x128xf32>
    %177 = math.exp %176 : vector<16x128xf32>
    %cst_47 = arith.constant 1.000000e+00 : f32
    %178 = vector.broadcast %cst_47 : f32 to vector<16x128xf32>
    %179 = arith.addf %178, %177 : vector<16x128xf32>
    %180 = arith.divf %178, %179 : vector<16x128xf32>
    %181 = vector.extract_strided_slice %174 {offsets = [0, 128], sizes = [16, 128], strides = [1, 1]} : vector<16x512xf32> to vector<16x128xf32>
    %182 = arith.negf %181 : vector<16x128xf32>
    %183 = math.exp %182 : vector<16x128xf32>
    %cst_48 = arith.constant 1.000000e+00 : f32
    %184 = vector.broadcast %cst_48 : f32 to vector<16x128xf32>
    %185 = arith.addf %184, %183 : vector<16x128xf32>
    %186 = arith.divf %184, %185 : vector<16x128xf32>
    %187 = vector.extract_strided_slice %174 {offsets = [0, 256], sizes = [16, 128], strides = [1, 1]} : vector<16x512xf32> to vector<16x128xf32>
    %188 = math.tanh %187 : vector<16x128xf32>
    %189 = vector.extract_strided_slice %174 {offsets = [0, 384], sizes = [16, 128], strides = [1, 1]} : vector<16x512xf32> to vector<16x128xf32>
    %190 = arith.negf %189 : vector<16x128xf32>
    %191 = math.exp %190 : vector<16x128xf32>
    %cst_49 = arith.constant 1.000000e+00 : f32
    %192 = vector.broadcast %cst_49 : f32 to vector<16x128xf32>
    %193 = arith.addf %192, %191 : vector<16x128xf32>
    %194 = arith.divf %192, %193 : vector<16x128xf32>
    %195 = arith.mulf %186, %167 : vector<16x128xf32>
    %196 = arith.mulf %180, %188 : vector<16x128xf32>
    %197 = arith.addf %195, %196 : vector<16x128xf32>
    %198 = math.tanh %197 : vector<16x128xf32>
    %199 = arith.mulf %194, %198 : vector<16x128xf32>
    %200 = vector.extract_strided_slice %17 {offsets = [96, 0], sizes = [16, 512], strides = [1, 1]} : vector<128x512xf32> to vector<16x512xf32>
    %c0_50 = arith.constant 0 : index
    %c0_51 = arith.constant 0 : index
    %201 = vector.load %arg11[%c0_50, %c0_51] : memref<128x512xbf16, #tpu.memory_space<vmem>>, vector<128x512xbf16>
    %202 = arith.truncf %199 : vector<16x128xf32> to vector<16x128xbf16>
    %cst_52 = arith.constant dense<0.000000e+00> : vector<16x512xf32>
    %203 = tpu.matmul %202, %201, %cst_52 {dimension_numbers = #tpu.dot_dimension_numbers<[1], [0], [0], [1], [0, 0, 1, 1], [], []>} : vector<16x128xbf16>, vector<128x512xbf16>, vector<16x512xf32> -> vector<16x512xf32>
    %204 = arith.addf %200, %203 : vector<16x512xf32>
    %205 = vector.extract_strided_slice %204 {offsets = [0, 0], sizes = [16, 128], strides = [1, 1]} : vector<16x512xf32> to vector<16x128xf32>
    %206 = arith.negf %205 : vector<16x128xf32>
    %207 = math.exp %206 : vector<16x128xf32>
    %cst_53 = arith.constant 1.000000e+00 : f32
    %208 = vector.broadcast %cst_53 : f32 to vector<16x128xf32>
    %209 = arith.addf %208, %207 : vector<16x128xf32>
    %210 = arith.divf %208, %209 : vector<16x128xf32>
    %211 = vector.extract_strided_slice %204 {offsets = [0, 128], sizes = [16, 128], strides = [1, 1]} : vector<16x512xf32> to vector<16x128xf32>
    %212 = arith.negf %211 : vector<16x128xf32>
    %213 = math.exp %212 : vector<16x128xf32>
    %cst_54 = arith.constant 1.000000e+00 : f32
    %214 = vector.broadcast %cst_54 : f32 to vector<16x128xf32>
    %215 = arith.addf %214, %213 : vector<16x128xf32>
    %216 = arith.divf %214, %215 : vector<16x128xf32>
    %217 = vector.extract_strided_slice %204 {offsets = [0, 256], sizes = [16, 128], strides = [1, 1]} : vector<16x512xf32> to vector<16x128xf32>
    %218 = math.tanh %217 : vector<16x128xf32>
    %219 = vector.extract_strided_slice %204 {offsets = [0, 384], sizes = [16, 128], strides = [1, 1]} : vector<16x512xf32> to vector<16x128xf32>
    %220 = arith.negf %219 : vector<16x128xf32>
    %221 = math.exp %220 : vector<16x128xf32>
    %cst_55 = arith.constant 1.000000e+00 : f32
    %222 = vector.broadcast %cst_55 : f32 to vector<16x128xf32>
    %223 = arith.addf %222, %221 : vector<16x128xf32>
    %224 = arith.divf %222, %223 : vector<16x128xf32>
    %225 = arith.mulf %216, %197 : vector<16x128xf32>
    %226 = arith.mulf %210, %218 : vector<16x128xf32>
    %227 = arith.addf %225, %226 : vector<16x128xf32>
    %228 = math.tanh %227 : vector<16x128xf32>
    %229 = arith.mulf %224, %228 : vector<16x128xf32>
    %230 = vector.extract_strided_slice %17 {offsets = [112, 0], sizes = [16, 512], strides = [1, 1]} : vector<128x512xf32> to vector<16x512xf32>
    %c0_56 = arith.constant 0 : index
    %c0_57 = arith.constant 0 : index
    %231 = vector.load %arg11[%c0_56, %c0_57] : memref<128x512xbf16, #tpu.memory_space<vmem>>, vector<128x512xbf16>
    %232 = arith.truncf %229 : vector<16x128xf32> to vector<16x128xbf16>
    %cst_58 = arith.constant dense<0.000000e+00> : vector<16x512xf32>
    %233 = tpu.matmul %232, %231, %cst_58 {dimension_numbers = #tpu.dot_dimension_numbers<[1], [0], [0], [1], [0, 0, 1, 1], [], []>} : vector<16x128xbf16>, vector<128x512xbf16>, vector<16x512xf32> -> vector<16x512xf32>
    %234 = arith.addf %230, %233 : vector<16x512xf32>
    %235 = vector.extract_strided_slice %234 {offsets = [0, 0], sizes = [16, 128], strides = [1, 1]} : vector<16x512xf32> to vector<16x128xf32>
    %236 = arith.negf %235 : vector<16x128xf32>
    %237 = math.exp %236 : vector<16x128xf32>
    %cst_59 = arith.constant 1.000000e+00 : f32
    %238 = vector.broadcast %cst_59 : f32 to vector<16x128xf32>
    %239 = arith.addf %238, %237 : vector<16x128xf32>
    %240 = arith.divf %238, %239 : vector<16x128xf32>
    %241 = vector.extract_strided_slice %234 {offsets = [0, 128], sizes = [16, 128], strides = [1, 1]} : vector<16x512xf32> to vector<16x128xf32>
    %242 = arith.negf %241 : vector<16x128xf32>
    %243 = math.exp %242 : vector<16x128xf32>
    %cst_60 = arith.constant 1.000000e+00 : f32
    %244 = vector.broadcast %cst_60 : f32 to vector<16x128xf32>
    %245 = arith.addf %244, %243 : vector<16x128xf32>
    %246 = arith.divf %244, %245 : vector<16x128xf32>
    %247 = vector.extract_strided_slice %234 {offsets = [0, 256], sizes = [16, 128], strides = [1, 1]} : vector<16x512xf32> to vector<16x128xf32>
    %248 = math.tanh %247 : vector<16x128xf32>
    %249 = vector.extract_strided_slice %234 {offsets = [0, 384], sizes = [16, 128], strides = [1, 1]} : vector<16x512xf32> to vector<16x128xf32>
    %250 = arith.negf %249 : vector<16x128xf32>
    %251 = math.exp %250 : vector<16x128xf32>
    %cst_61 = arith.constant 1.000000e+00 : f32
    %252 = vector.broadcast %cst_61 : f32 to vector<16x128xf32>
    %253 = arith.addf %252, %251 : vector<16x128xf32>
    %254 = arith.divf %252, %253 : vector<16x128xf32>
    %255 = arith.mulf %246, %227 : vector<16x128xf32>
    %256 = arith.mulf %240, %248 : vector<16x128xf32>
    %257 = arith.addf %255, %256 : vector<16x128xf32>
    %258 = math.tanh %257 : vector<16x128xf32>
    %259 = arith.mulf %254, %258 : vector<16x128xf32>
    %260 = vector.extract_strided_slice %259 {offsets = [0, 0], sizes = [8, 128], strides = [1, 1]} : vector<16x128xf32> to vector<8x128xf32>
    %c0_62 = arith.constant 0 : index
    %c0_63 = arith.constant 0 : index
    %261 = vector.load %arg13[%c0_62, %c0_63] : memref<128x32xbf16, #tpu.memory_space<vmem>>, vector<128x32xbf16>
    %262 = arith.truncf %260 : vector<8x128xf32> to vector<8x128xbf16>
    %cst_64 = arith.constant dense<0.000000e+00> : vector<8x32xf32>
    %263 = tpu.matmul %262, %261, %cst_64 {dimension_numbers = #tpu.dot_dimension_numbers<[1], [0], [0], [1], [0, 0, 1, 1], [], []>} : vector<8x128xbf16>, vector<128x32xbf16>, vector<8x32xf32> -> vector<8x32xf32>
    %c0_65 = arith.constant 0 : index
    %c0_66 = arith.constant 0 : index
    %264 = vector.load %arg14[%c0_65, %c0_66] : memref<1x32xf32, #tpu.memory_space<vmem>>, vector<1x32xf32>
    %265 = vector.broadcast %264 : vector<1x32xf32> to vector<8x32xf32>
    %266 = arith.addf %263, %265 : vector<8x32xf32>
    %cst_67 = arith.constant 0.000000e+00 : f32
    %267 = vector.broadcast %cst_67 : f32 to vector<8x32xf32>
    %268 = arith.cmpf oge, %266, %267 : vector<8x32xf32>
    %cst_68 = arith.constant 1.000000e-01 : f32
    %269 = vector.broadcast %cst_68 : f32 to vector<8x32xf32>
    %270 = arith.mulf %269, %266 : vector<8x32xf32>
    %271 = arith.select %268, %266, %270 : vector<8x32xi1>, vector<8x32xf32>
    %272 = vector.extract_strided_slice %259 {offsets = [8, 0], sizes = [8, 64], strides = [1, 1]} : vector<16x128xf32> to vector<8x64xf32>
    %c0_69 = arith.constant 0 : index
    %c0_70 = arith.constant 0 : index
    %c0_71 = arith.constant 0 : index
    %273 = vector.load %arg2[%c0_69, %c0_70, %c0_71] : memref<3x26x8xf32, #tpu.memory_space<vmem>>, vector<1x26x8xf32>
    %274 = vector.shape_cast %273 : vector<1x26x8xf32> to vector<26x8xf32>
    %cst_72 = arith.constant dense<0.000000e+00> : vector<26x64xf32>
    %275 = tpu.matmul %274, %272, %cst_72 {dimension_numbers = #tpu.dot_dimension_numbers<[1], [0], [0], [1], [0, 0, 1, 1], [], []>} : vector<26x8xf32>, vector<8x64xf32>, vector<26x64xf32> -> vector<26x64xf32>
    %c1 = arith.constant 1 : index
    %c0_73 = arith.constant 0 : index
    %c0_74 = arith.constant 0 : index
    %276 = vector.load %arg2[%c1, %c0_73, %c0_74] : memref<3x26x8xf32, #tpu.memory_space<vmem>>, vector<1x26x8xf32>
    %277 = vector.shape_cast %276 : vector<1x26x8xf32> to vector<26x8xf32>
    %cst_75 = arith.constant dense<0.000000e+00> : vector<26x64xf32>
    %278 = tpu.matmul %277, %272, %cst_75 {dimension_numbers = #tpu.dot_dimension_numbers<[1], [0], [0], [1], [0, 0, 1, 1], [], []>} : vector<26x8xf32>, vector<8x64xf32>, vector<26x64xf32> -> vector<26x64xf32>
    %c2 = arith.constant 2 : index
    %c0_76 = arith.constant 0 : index
    %c0_77 = arith.constant 0 : index
    %279 = vector.load %arg2[%c2, %c0_76, %c0_77] : memref<3x26x8xf32, #tpu.memory_space<vmem>>, vector<1x26x8xf32>
    %280 = vector.shape_cast %279 : vector<1x26x8xf32> to vector<26x8xf32>
    %cst_78 = arith.constant dense<0.000000e+00> : vector<26x64xf32>
    %281 = tpu.matmul %280, %272, %cst_78 {dimension_numbers = #tpu.dot_dimension_numbers<[1], [0], [0], [1], [0, 0, 1, 1], [], []>} : vector<26x8xf32>, vector<8x64xf32>, vector<26x64xf32> -> vector<26x64xf32>
    %282 = tpu.concatenate %275, %278, %281 in 1 : vector<26x64xf32>, vector<26x64xf32>, vector<26x64xf32> -> vector<26x192xf32>
    %c0_79 = arith.constant 0 : index
    %c0_80 = arith.constant 0 : index
    %c0_81 = arith.constant 0 : index
    %283 = vector.load %arg3[%c0_79, %c0_80, %c0_81] : memref<3x24x26xf32, #tpu.memory_space<vmem>>, vector<1x24x26xf32>
    %284 = vector.shape_cast %283 : vector<1x24x26xf32> to vector<24x26xf32>
    %c0_82 = arith.constant 0 : index
    %c0_83 = arith.constant 0 : index
    %c0_84 = arith.constant 0 : index
    %285 = vector.load %arg15[%c0_82, %c0_83, %c0_84] : memref<3x192x64xbf16, #tpu.memory_space<vmem>>, vector<1x192x64xbf16>
    %286 = vector.shape_cast %285 : vector<1x192x64xbf16> to vector<192x64xbf16>
    %287 = arith.truncf %282 : vector<26x192xf32> to vector<26x192xbf16>
    %cst_85 = arith.constant dense<0.000000e+00> : vector<26x64xf32>
    %288 = tpu.matmul %287, %286, %cst_85 {dimension_numbers = #tpu.dot_dimension_numbers<[1], [0], [0], [1], [0, 0, 1, 1], [], []>} : vector<26x192xbf16>, vector<192x64xbf16>, vector<26x64xf32> -> vector<26x64xf32>
    %cst_86 = arith.constant dense<0.000000e+00> : vector<24x64xf32>
    %289 = tpu.matmul %284, %288, %cst_86 {dimension_numbers = #tpu.dot_dimension_numbers<[1], [0], [0], [1], [0, 0, 1, 1], [], []>} : vector<24x26xf32>, vector<26x64xf32>, vector<24x64xf32> -> vector<24x64xf32>
    %c1_87 = arith.constant 1 : index
    %c0_88 = arith.constant 0 : index
    %c0_89 = arith.constant 0 : index
    %290 = vector.load %arg3[%c1_87, %c0_88, %c0_89] : memref<3x24x26xf32, #tpu.memory_space<vmem>>, vector<1x24x26xf32>
    %291 = vector.shape_cast %290 : vector<1x24x26xf32> to vector<24x26xf32>
    %c1_90 = arith.constant 1 : index
    %c0_91 = arith.constant 0 : index
    %c0_92 = arith.constant 0 : index
    %292 = vector.load %arg15[%c1_90, %c0_91, %c0_92] : memref<3x192x64xbf16, #tpu.memory_space<vmem>>, vector<1x192x64xbf16>
    %293 = vector.shape_cast %292 : vector<1x192x64xbf16> to vector<192x64xbf16>
    %294 = arith.truncf %282 : vector<26x192xf32> to vector<26x192xbf16>
    %cst_93 = arith.constant dense<0.000000e+00> : vector<26x64xf32>
    %295 = tpu.matmul %294, %293, %cst_93 {dimension_numbers = #tpu.dot_dimension_numbers<[1], [0], [0], [1], [0, 0, 1, 1], [], []>} : vector<26x192xbf16>, vector<192x64xbf16>, vector<26x64xf32> -> vector<26x64xf32>
    %cst_94 = arith.constant dense<0.000000e+00> : vector<24x64xf32>
    %296 = tpu.matmul %291, %295, %cst_94 {dimension_numbers = #tpu.dot_dimension_numbers<[1], [0], [0], [1], [0, 0, 1, 1], [], []>} : vector<24x26xf32>, vector<26x64xf32>, vector<24x64xf32> -> vector<24x64xf32>
    %297 = arith.addf %289, %296 : vector<24x64xf32>
    %c2_95 = arith.constant 2 : index
    %c0_96 = arith.constant 0 : index
    %c0_97 = arith.constant 0 : index
    %298 = vector.load %arg3[%c2_95, %c0_96, %c0_97] : memref<3x24x26xf32, #tpu.memory_space<vmem>>, vector<1x24x26xf32>
    %299 = vector.shape_cast %298 : vector<1x24x26xf32> to vector<24x26xf32>
    %c2_98 = arith.constant 2 : index
    %c0_99 = arith.constant 0 : index
    %c0_100 = arith.constant 0 : index
    %300 = vector.load %arg15[%c2_98, %c0_99, %c0_100] : memref<3x192x64xbf16, #tpu.memory_space<vmem>>, vector<1x192x64xbf16>
    %301 = vector.shape_cast %300 : vector<1x192x64xbf16> to vector<192x64xbf16>
    %302 = arith.truncf %282 : vector<26x192xf32> to vector<26x192xbf16>
    %cst_101 = arith.constant dense<0.000000e+00> : vector<26x64xf32>
    %303 = tpu.matmul %302, %301, %cst_101 {dimension_numbers = #tpu.dot_dimension_numbers<[1], [0], [0], [1], [0, 0, 1, 1], [], []>} : vector<26x192xbf16>, vector<192x64xbf16>, vector<26x64xf32> -> vector<26x64xf32>
    %cst_102 = arith.constant dense<0.000000e+00> : vector<24x64xf32>
    %304 = tpu.matmul %299, %303, %cst_102 {dimension_numbers = #tpu.dot_dimension_numbers<[1], [0], [0], [1], [0, 0, 1, 1], [], []>} : vector<24x26xf32>, vector<26x64xf32>, vector<24x64xf32> -> vector<24x64xf32>
    %305 = arith.addf %297, %304 : vector<24x64xf32>
    %c0_103 = arith.constant 0 : index
    %c0_104 = arith.constant 0 : index
    %306 = vector.load %arg16[%c0_103, %c0_104] : memref<1x64xf32, #tpu.memory_space<vmem>>, vector<1x64xf32>
    %307 = vector.broadcast %306 : vector<1x64xf32> to vector<24x64xf32>
    %308 = arith.addf %305, %307 : vector<24x64xf32>
    %cst_105 = arith.constant 0.000000e+00 : f32
    %309 = vector.broadcast %cst_105 : f32 to vector<24x64xf32>
    %310 = arith.cmpf oge, %308, %309 : vector<24x64xf32>
    %cst_106 = arith.constant 1.000000e-01 : f32
    %311 = vector.broadcast %cst_106 : f32 to vector<24x64xf32>
    %312 = arith.mulf %311, %308 : vector<24x64xf32>
    %313 = arith.select %310, %308, %312 : vector<24x64xi1>, vector<24x64xf32>
    %c0_107 = arith.constant 0 : index
    %c0_108 = arith.constant 0 : index
    %c0_109 = arith.constant 0 : index
    %314 = vector.load %arg4[%c0_107, %c0_108, %c0_109] : memref<3x24x24xf32, #tpu.memory_space<vmem>>, vector<1x24x24xf32>
    %315 = vector.shape_cast %314 : vector<1x24x24xf32> to vector<24x24xf32>
    %c0_110 = arith.constant 0 : index
    %c0_111 = arith.constant 0 : index
    %c0_112 = arith.constant 0 : index
    %316 = vector.load %arg17[%c0_110, %c0_111, %c0_112] : memref<3x64x32xbf16, #tpu.memory_space<vmem>>, vector<1x64x32xbf16>
    %317 = vector.shape_cast %316 : vector<1x64x32xbf16> to vector<64x32xbf16>
    %318 = arith.truncf %313 : vector<24x64xf32> to vector<24x64xbf16>
    %cst_113 = arith.constant dense<0.000000e+00> : vector<24x32xf32>
    %319 = tpu.matmul %318, %317, %cst_113 {dimension_numbers = #tpu.dot_dimension_numbers<[1], [0], [0], [1], [0, 0, 1, 1], [], []>} : vector<24x64xbf16>, vector<64x32xbf16>, vector<24x32xf32> -> vector<24x32xf32>
    %cst_114 = arith.constant dense<0.000000e+00> : vector<24x32xf32>
    %320 = tpu.matmul %315, %319, %cst_114 {dimension_numbers = #tpu.dot_dimension_numbers<[1], [0], [0], [1], [0, 0, 1, 1], [], []>} : vector<24x24xf32>, vector<24x32xf32>, vector<24x32xf32> -> vector<24x32xf32>
    %c1_115 = arith.constant 1 : index
    %c0_116 = arith.constant 0 : index
    %c0_117 = arith.constant 0 : index
    %321 = vector.load %arg4[%c1_115, %c0_116, %c0_117] : memref<3x24x24xf32, #tpu.memory_space<vmem>>, vector<1x24x24xf32>
    %322 = vector.shape_cast %321 : vector<1x24x24xf32> to vector<24x24xf32>
    %c1_118 = arith.constant 1 : index
    %c0_119 = arith.constant 0 : index
    %c0_120 = arith.constant 0 : index
    %323 = vector.load %arg17[%c1_118, %c0_119, %c0_120] : memref<3x64x32xbf16, #tpu.memory_space<vmem>>, vector<1x64x32xbf16>
    %324 = vector.shape_cast %323 : vector<1x64x32xbf16> to vector<64x32xbf16>
    %325 = arith.truncf %313 : vector<24x64xf32> to vector<24x64xbf16>
    %cst_121 = arith.constant dense<0.000000e+00> : vector<24x32xf32>
    %326 = tpu.matmul %325, %324, %cst_121 {dimension_numbers = #tpu.dot_dimension_numbers<[1], [0], [0], [1], [0, 0, 1, 1], [], []>} : vector<24x64xbf16>, vector<64x32xbf16>, vector<24x32xf32> -> vector<24x32xf32>
    %cst_122 = arith.constant dense<0.000000e+00> : vector<24x32xf32>
    %327 = tpu.matmul %322, %326, %cst_122 {dimension_numbers = #tpu.dot_dimension_numbers<[1], [0], [0], [1], [0, 0, 1, 1], [], []>} : vector<24x24xf32>, vector<24x32xf32>, vector<24x32xf32> -> vector<24x32xf32>
    %328 = arith.addf %320, %327 : vector<24x32xf32>
    %c2_123 = arith.constant 2 : index
    %c0_124 = arith.constant 0 : index
    %c0_125 = arith.constant 0 : index
    %329 = vector.load %arg4[%c2_123, %c0_124, %c0_125] : memref<3x24x24xf32, #tpu.memory_space<vmem>>, vector<1x24x24xf32>
    %330 = vector.shape_cast %329 : vector<1x24x24xf32> to vector<24x24xf32>
    %c2_126 = arith.constant 2 : index
    %c0_127 = arith.constant 0 : index
    %c0_128 = arith.constant 0 : index
    %331 = vector.load %arg17[%c2_126, %c0_127, %c0_128] : memref<3x64x32xbf16, #tpu.memory_space<vmem>>, vector<1x64x32xbf16>
    %332 = vector.shape_cast %331 : vector<1x64x32xbf16> to vector<64x32xbf16>
    %333 = arith.truncf %313 : vector<24x64xf32> to vector<24x64xbf16>
    %cst_129 = arith.constant dense<0.000000e+00> : vector<24x32xf32>
    %334 = tpu.matmul %333, %332, %cst_129 {dimension_numbers = #tpu.dot_dimension_numbers<[1], [0], [0], [1], [0, 0, 1, 1], [], []>} : vector<24x64xbf16>, vector<64x32xbf16>, vector<24x32xf32> -> vector<24x32xf32>
    %cst_130 = arith.constant dense<0.000000e+00> : vector<24x32xf32>
    %335 = tpu.matmul %330, %334, %cst_130 {dimension_numbers = #tpu.dot_dimension_numbers<[1], [0], [0], [1], [0, 0, 1, 1], [], []>} : vector<24x24xf32>, vector<24x32xf32>, vector<24x32xf32> -> vector<24x32xf32>
    %336 = arith.addf %328, %335 : vector<24x32xf32>
    %c0_131 = arith.constant 0 : index
    %c0_132 = arith.constant 0 : index
    %337 = vector.load %arg18[%c0_131, %c0_132] : memref<1x32xf32, #tpu.memory_space<vmem>>, vector<1x32xf32>
    %338 = vector.broadcast %337 : vector<1x32xf32> to vector<24x32xf32>
    %339 = arith.addf %336, %338 : vector<24x32xf32>
    %cst_133 = arith.constant 0.000000e+00 : f32
    %340 = vector.broadcast %cst_133 : f32 to vector<24x32xf32>
    %341 = arith.cmpf oge, %339, %340 : vector<24x32xf32>
    %cst_134 = arith.constant 1.000000e-01 : f32
    %342 = vector.broadcast %cst_134 : f32 to vector<24x32xf32>
    %343 = arith.mulf %342, %339 : vector<24x32xf32>
    %344 = arith.select %341, %339, %343 : vector<24x32xi1>, vector<24x32xf32>
    %c0_135 = arith.constant 0 : index
    %c0_136 = arith.constant 0 : index
    %345 = vector.load %arg5[%c0_135, %c0_136] : memref<40x24xf32, #tpu.memory_space<vmem>>, vector<40x24xf32>
    %cst_137 = arith.constant dense<0.000000e+00> : vector<40x32xf32>
    %346 = tpu.matmul %345, %344, %cst_137 {dimension_numbers = #tpu.dot_dimension_numbers<[1], [0], [0], [1], [0, 0, 1, 1], [], []>} : vector<40x24xf32>, vector<24x32xf32>, vector<40x32xf32> -> vector<40x32xf32>
    %c0_138 = arith.constant 0 : index
    %c0_139 = arith.constant 0 : index
    %347 = vector.load %arg6[%c0_138, %c0_139] : memref<40x24xf32, #tpu.memory_space<vmem>>, vector<40x24xf32>
    %cst_140 = arith.constant dense<0.000000e+00> : vector<40x32xf32>
    %348 = tpu.matmul %347, %344, %cst_140 {dimension_numbers = #tpu.dot_dimension_numbers<[1], [0], [0], [1], [0, 0, 1, 1], [], []>} : vector<40x24xf32>, vector<24x32xf32>, vector<40x32xf32> -> vector<40x32xf32>
    %349 = arith.maximumf %346, %348 : vector<40x32xf32>
    %350 = vector.extract_strided_slice %349 {offsets = [0, 0], sizes = [8, 32], strides = [1, 1]} : vector<40x32xf32> to vector<8x32xf32>
    %351 = vector.extract_strided_slice %349 {offsets = [8, 0], sizes = [8, 32], strides = [1, 1]} : vector<40x32xf32> to vector<8x32xf32>
    %352 = vector.extract_strided_slice %349 {offsets = [16, 0], sizes = [8, 32], strides = [1, 1]} : vector<40x32xf32> to vector<8x32xf32>
    %353 = vector.extract_strided_slice %349 {offsets = [24, 0], sizes = [8, 32], strides = [1, 1]} : vector<40x32xf32> to vector<8x32xf32>
    %354 = vector.extract_strided_slice %349 {offsets = [32, 0], sizes = [8, 32], strides = [1, 1]} : vector<40x32xf32> to vector<8x32xf32>
    %355 = tpu.concatenate %350, %351, %352, %353, %354, %271 in 1 : vector<8x32xf32>, vector<8x32xf32>, vector<8x32xf32>, vector<8x32xf32>, vector<8x32xf32>, vector<8x32xf32> -> vector<8x192xf32>
    %c0_141 = arith.constant 0 : index
    %c0_142 = arith.constant 0 : index
    %356 = vector.load %arg19[%c0_141, %c0_142] : memref<192x5xbf16, #tpu.memory_space<vmem>>, vector<192x5xbf16>
    %357 = arith.truncf %355 : vector<8x192xf32> to vector<8x192xbf16>
    %cst_143 = arith.constant dense<0.000000e+00> : vector<8x5xf32>
    %358 = tpu.matmul %357, %356, %cst_143 {dimension_numbers = #tpu.dot_dimension_numbers<[1], [0], [0], [1], [0, 0, 1, 1], [], []>} : vector<8x192xbf16>, vector<192x5xbf16>, vector<8x5xf32> -> vector<8x5xf32>
    %c0_144 = arith.constant 0 : index
    %c0_145 = arith.constant 0 : index
    %359 = vector.load %arg20[%c0_144, %c0_145] : memref<1x5xf32, #tpu.memory_space<vmem>>, vector<1x5xf32>
    %360 = vector.broadcast %359 : vector<1x5xf32> to vector<8x5xf32>
    %361 = arith.addf %358, %360 : vector<8x5xf32>
    %362 = vector.extract_strided_slice %361 {offsets = [0, 0], sizes = [2, 5], strides = [1, 1]} : vector<8x5xf32> to vector<2x5xf32>
    %363 = vector.extract_strided_slice %362 {offsets = [0, 0], sizes = [2, 3], strides = [1, 1]} : vector<2x5xf32> to vector<2x3xf32>
    %cst_146 = arith.constant dense<0xFF800000> : vector<2xf32>
    %364 = vector.multi_reduction <maximumf>, %363, %cst_146 [1] : vector<2x3xf32> to vector<2xf32>
    %365 = vector.shape_cast %364 : vector<2xf32> to vector<2x1xf32>
    %366 = vector.broadcast %365 : vector<2x1xf32> to vector<2x3xf32>
    %367 = arith.subf %363, %366 : vector<2x3xf32>
    %368 = math.exp %367 : vector<2x3xf32>
    %cst_147 = arith.constant dense<0.000000e+00> : vector<2xf32>
    %369 = vector.multi_reduction <add>, %368, %cst_147 [1] : vector<2x3xf32> to vector<2xf32>
    %370 = vector.shape_cast %369 : vector<2xf32> to vector<2x1xf32>
    %371 = vector.broadcast %370 : vector<2x1xf32> to vector<2x3xf32>
    %372 = arith.divf %368, %371 : vector<2x3xf32>
    %c0_148 = arith.constant 0 : index
    %c0_149 = arith.constant 0 : index
    %373 = vector.load %arg28[%c0_148, %c0_149] : memref<2x3xf32, #tpu.memory_space<vmem>>, vector<2x3xf32>
    tpu.vector_store %arg28[%c0_148, %c0_149], %372 {strides = array<i32>} : memref<2x3xf32, #tpu.memory_space<vmem>>, vector<2x3xf32>,
    %374 = vector.extract_strided_slice %362 {offsets = [0, 3], sizes = [2, 2], strides = [1, 1]} : vector<2x5xf32> to vector<2x2xf32>
    %cst_150 = arith.constant dense<0xFF800000> : vector<2xf32>
    %375 = vector.multi_reduction <maximumf>, %374, %cst_150 [1] : vector<2x2xf32> to vector<2xf32>
    %376 = vector.shape_cast %375 : vector<2xf32> to vector<2x1xf32>
    %377 = vector.broadcast %376 : vector<2x1xf32> to vector<2x2xf32>
    %378 = arith.subf %374, %377 : vector<2x2xf32>
    %379 = math.exp %378 : vector<2x2xf32>
    %cst_151 = arith.constant dense<0.000000e+00> : vector<2xf32>
    %380 = vector.multi_reduction <add>, %379, %cst_151 [1] : vector<2x2xf32> to vector<2xf32>
    %381 = vector.shape_cast %380 : vector<2xf32> to vector<2x1xf32>
    %382 = vector.broadcast %381 : vector<2x1xf32> to vector<2x2xf32>
    %383 = arith.divf %379, %382 : vector<2x2xf32>
    %c0_152 = arith.constant 0 : index
    %c0_153 = arith.constant 0 : index
    %384 = vector.load %arg29[%c0_152, %c0_153] : memref<2x2xf32, #tpu.memory_space<vmem>>, vector<2x2xf32>
    tpu.vector_store %arg29[%c0_152, %c0_153], %383 {strides = array<i32>} : memref<2x2xf32, #tpu.memory_space<vmem>>, vector<2x2xf32>,
    %c0_154 = arith.constant 0 : index
    %c0_155 = arith.constant 0 : index
    %385 = vector.load %arg21[%c0_154, %c0_155] : memref<192x512xbf16, #tpu.memory_space<vmem>>, vector<192x512xbf16>
    %386 = arith.truncf %355 : vector<8x192xf32> to vector<8x192xbf16>
    %cst_156 = arith.constant dense<0.000000e+00> : vector<8x512xf32>
    %387 = tpu.matmul %386, %385, %cst_156 {dimension_numbers = #tpu.dot_dimension_numbers<[1], [0], [0], [1], [0, 0, 1, 1], [], []>} : vector<8x192xbf16>, vector<192x512xbf16>, vector<8x512xf32> -> vector<8x512xf32>
    %c0_157 = arith.constant 0 : index
    %c0_158 = arith.constant 0 : index
    %388 = vector.load %arg7[%c0_157, %c0_158] : memref<8x5xf32, #tpu.memory_space<vmem>>, vector<8x5xf32>
    %c0_159 = arith.constant 0 : index
    %c0_160 = arith.constant 0 : index
    %389 = vector.load %arg22[%c0_159, %c0_160] : memref<5x512xbf16, #tpu.memory_space<vmem>>, vector<5x512xbf16>
    %390 = arith.truncf %388 : vector<8x5xf32> to vector<8x5xbf16>
    %cst_161 = arith.constant dense<0.000000e+00> : vector<8x512xf32>
    %391 = tpu.matmul %390, %389, %cst_161 {dimension_numbers = #tpu.dot_dimension_numbers<[1], [0], [0], [1], [0, 0, 1, 1], [], []>} : vector<8x5xbf16>, vector<5x512xbf16>, vector<8x512xf32> -> vector<8x512xf32>
    %392 = arith.addf %387, %391 : vector<8x512xf32>
    %c0_162 = arith.constant 0 : index
    %c0_163 = arith.constant 0 : index
    %393 = vector.load %arg24[%c0_162, %c0_163] : memref<1x512xf32, #tpu.memory_space<vmem>>, vector<1x512xf32>
    %394 = vector.broadcast %393 : vector<1x512xf32> to vector<8x512xf32>
    %395 = arith.addf %392, %394 : vector<8x512xf32>
    %cst_164 = arith.constant 0.000000e+00 : f32
    %396 = vector.broadcast %cst_164 : f32 to vector<8x128xf32>
    %cst_165 = arith.constant 0.000000e+00 : f32
    %397 = vector.broadcast %cst_165 : f32 to vector<8x128xf32>
    %c0_166 = arith.constant 0 : index
    %c0_167 = arith.constant 0 : index
    %398 = vector.load %arg23[%c0_166, %c0_167] : memref<128x512xbf16, #tpu.memory_space<vmem>>, vector<128x512xbf16>
    %399 = arith.truncf %396 : vector<8x128xf32> to vector<8x128xbf16>
    %cst_168 = arith.constant dense<0.000000e+00> : vector<8x512xf32>
    %400 = tpu.matmul %399, %398, %cst_168 {dimension_numbers = #tpu.dot_dimension_numbers<[1], [0], [0], [1], [0, 0, 1, 1], [], []>} : vector<8x128xbf16>, vector<128x512xbf16>, vector<8x512xf32> -> vector<8x512xf32>
    %401 = arith.addf %395, %400 : vector<8x512xf32>
    %402 = vector.extract_strided_slice %401 {offsets = [0, 0], sizes = [8, 128], strides = [1, 1]} : vector<8x512xf32> to vector<8x128xf32>
    %403 = arith.negf %402 : vector<8x128xf32>
    %404 = math.exp %403 : vector<8x128xf32>
    %cst_169 = arith.constant 1.000000e+00 : f32
    %405 = vector.broadcast %cst_169 : f32 to vector<8x128xf32>
    %406 = arith.addf %405, %404 : vector<8x128xf32>
    %407 = arith.divf %405, %406 : vector<8x128xf32>
    %408 = vector.extract_strided_slice %401 {offsets = [0, 128], sizes = [8, 128], strides = [1, 1]} : vector<8x512xf32> to vector<8x128xf32>
    %409 = arith.negf %408 : vector<8x128xf32>
    %410 = math.exp %409 : vector<8x128xf32>
    %cst_170 = arith.constant 1.000000e+00 : f32
    %411 = vector.broadcast %cst_170 : f32 to vector<8x128xf32>
    %412 = arith.addf %411, %410 : vector<8x128xf32>
    %413 = arith.divf %411, %412 : vector<8x128xf32>
    %414 = vector.extract_strided_slice %401 {offsets = [0, 256], sizes = [8, 128], strides = [1, 1]} : vector<8x512xf32> to vector<8x128xf32>
    %415 = math.tanh %414 : vector<8x128xf32>
    %416 = vector.extract_strided_slice %401 {offsets = [0, 384], sizes = [8, 128], strides = [1, 1]} : vector<8x512xf32> to vector<8x128xf32>
    %417 = arith.negf %416 : vector<8x128xf32>
    %418 = math.exp %417 : vector<8x128xf32>
    %cst_171 = arith.constant 1.000000e+00 : f32
    %419 = vector.broadcast %cst_171 : f32 to vector<8x128xf32>
    %420 = arith.addf %419, %418 : vector<8x128xf32>
    %421 = arith.divf %419, %420 : vector<8x128xf32>
    %422 = arith.mulf %413, %397 : vector<8x128xf32>
    %423 = arith.mulf %407, %415 : vector<8x128xf32>
    %424 = arith.addf %422, %423 : vector<8x128xf32>
    %425 = math.tanh %424 : vector<8x128xf32>
    %426 = arith.mulf %421, %425 : vector<8x128xf32>
    %c0_172 = arith.constant 0 : index
    %c0_173 = arith.constant 0 : index
    %427 = vector.load %arg30[%c0_172, %c0_173] : memref<200x128xf32, #tpu.memory_space<vmem>>, vector<8x128xf32>
    tpu.vector_store %arg30[%c0_172, %c0_173], %426 {strides = array<i32>} : memref<200x128xf32, #tpu.memory_space<vmem>>, vector<8x128xf32>,
    %c0_174 = arith.constant 0 : index
    %c0_175 = arith.constant 0 : index
    %428 = vector.load %arg23[%c0_174, %c0_175] : memref<128x512xbf16, #tpu.memory_space<vmem>>, vector<128x512xbf16>
    %429 = arith.truncf %426 : vector<8x128xf32> to vector<8x128xbf16>
    %cst_176 = arith.constant dense<0.000000e+00> : vector<8x512xf32>
    %430 = tpu.matmul %429, %428, %cst_176 {dimension_numbers = #tpu.dot_dimension_numbers<[1], [0], [0], [1], [0, 0, 1, 1], [], []>} : vector<8x128xbf16>, vector<128x512xbf16>, vector<8x512xf32> -> vector<8x512xf32>
    %431 = arith.addf %395, %430 : vector<8x512xf32>
    %432 = vector.extract_strided_slice %431 {offsets = [0, 0], sizes = [8, 128], strides = [1, 1]} : vector<8x512xf32> to vector<8x128xf32>
    %433 = arith.negf %432 : vector<8x128xf32>
    %434 = math.exp %433 : vector<8x128xf32>
    %cst_177 = arith.constant 1.000000e+00 : f32
    %435 = vector.broadcast %cst_177 : f32 to vector<8x128xf32>
    %436 = arith.addf %435, %434 : vector<8x128xf32>
    %437 = arith.divf %435, %436 : vector<8x128xf32>
    %438 = vector.extract_strided_slice %431 {offsets = [0, 128], sizes = [8, 128], strides = [1, 1]} : vector<8x512xf32> to vector<8x128xf32>
    %439 = arith.negf %438 : vector<8x128xf32>
    %440 = math.exp %439 : vector<8x128xf32>
    %cst_178 = arith.constant 1.000000e+00 : f32
    %441 = vector.broadcast %cst_178 : f32 to vector<8x128xf32>
    %442 = arith.addf %441, %440 : vector<8x128xf32>
    %443 = arith.divf %441, %442 : vector<8x128xf32>
    %444 = vector.extract_strided_slice %431 {offsets = [0, 256], sizes = [8, 128], strides = [1, 1]} : vector<8x512xf32> to vector<8x128xf32>
    %445 = math.tanh %444 : vector<8x128xf32>
    %446 = vector.extract_strided_slice %431 {offsets = [0, 384], sizes = [8, 128], strides = [1, 1]} : vector<8x512xf32> to vector<8x128xf32>
    %447 = arith.negf %446 : vector<8x128xf32>
    %448 = math.exp %447 : vector<8x128xf32>
    %cst_179 = arith.constant 1.000000e+00 : f32
    %449 = vector.broadcast %cst_179 : f32 to vector<8x128xf32>
    %450 = arith.addf %449, %448 : vector<8x128xf32>
    %451 = arith.divf %449, %450 : vector<8x128xf32>
    %452 = arith.mulf %443, %424 : vector<8x128xf32>
    %453 = arith.mulf %437, %445 : vector<8x128xf32>
    %454 = arith.addf %452, %453 : vector<8x128xf32>
    %455 = math.tanh %454 : vector<8x128xf32>
    %456 = arith.mulf %451, %455 : vector<8x128xf32>
    %c8 = arith.constant 8 : index
    %c0_180 = arith.constant 0 : index
    %457 = vector.load %arg30[%c8, %c0_180] : memref<200x128xf32, #tpu.memory_space<vmem>>, vector<8x128xf32>
    tpu.vector_store %arg30[%c8, %c0_180], %456 {strides = array<i32>} : memref<200x128xf32, #tpu.memory_space<vmem>>, vector<8x128xf32>,
    %c0_181 = arith.constant 0 : index
    %c0_182 = arith.constant 0 : index
    %458 = vector.load %arg23[%c0_181, %c0_182] : memref<128x512xbf16, #tpu.memory_space<vmem>>, vector<128x512xbf16>
    %459 = arith.truncf %456 : vector<8x128xf32> to vector<8x128xbf16>
    %cst_183 = arith.constant dense<0.000000e+00> : vector<8x512xf32>
    %460 = tpu.matmul %459, %458, %cst_183 {dimension_numbers = #tpu.dot_dimension_numbers<[1], [0], [0], [1], [0, 0, 1, 1], [], []>} : vector<8x128xbf16>, vector<128x512xbf16>, vector<8x512xf32> -> vector<8x512xf32>
    %461 = arith.addf %395, %460 : vector<8x512xf32>
    %462 = vector.extract_strided_slice %461 {offsets = [0, 0], sizes = [8, 128], strides = [1, 1]} : vector<8x512xf32> to vector<8x128xf32>
    %463 = arith.negf %462 : vector<8x128xf32>
    %464 = math.exp %463 : vector<8x128xf32>
    %cst_184 = arith.constant 1.000000e+00 : f32
    %465 = vector.broadcast %cst_184 : f32 to vector<8x128xf32>
    %466 = arith.addf %465, %464 : vector<8x128xf32>
    %467 = arith.divf %465, %466 : vector<8x128xf32>
    %468 = vector.extract_strided_slice %461 {offsets = [0, 128], sizes = [8, 128], strides = [1, 1]} : vector<8x512xf32> to vector<8x128xf32>
    %469 = arith.negf %468 : vector<8x128xf32>
    %470 = math.exp %469 : vector<8x128xf32>
    %cst_185 = arith.constant 1.000000e+00 : f32
    %471 = vector.broadcast %cst_185 : f32 to vector<8x128xf32>
    %472 = arith.addf %471, %470 : vector<8x128xf32>
    %473 = arith.divf %471, %472 : vector<8x128xf32>
    %474 = vector.extract_strided_slice %461 {offsets = [0, 256], sizes = [8, 128], strides = [1, 1]} : vector<8x512xf32> to vector<8x128xf32>
    %475 = math.tanh %474 : vector<8x128xf32>
    %476 = vector.extract_strided_slice %461 {offsets = [0, 384], sizes = [8, 128], strides = [1, 1]} : vector<8x512xf32> to vector<8x128xf32>
    %477 = arith.negf %476 : vector<8x128xf32>
    %478 = math.exp %477 : vector<8x128xf32>
    %cst_186 = arith.constant 1.000000e+00 : f32
    %479 = vector.broadcast %cst_186 : f32 to vector<8x128xf32>
    %480 = arith.addf %479, %478 : vector<8x128xf32>
    %481 = arith.divf %479, %480 : vector<8x128xf32>
    %482 = arith.mulf %473, %454 : vector<8x128xf32>
    %483 = arith.mulf %467, %475 : vector<8x128xf32>
    %484 = arith.addf %482, %483 : vector<8x128xf32>
    %485 = math.tanh %484 : vector<8x128xf32>
    %486 = arith.mulf %481, %485 : vector<8x128xf32>
    %c16 = arith.constant 16 : index
    %c0_187 = arith.constant 0 : index
    %487 = vector.load %arg30[%c16, %c0_187] : memref<200x128xf32, #tpu.memory_space<vmem>>, vector<8x128xf32>
    tpu.vector_store %arg30[%c16, %c0_187], %486 {strides = array<i32>} : memref<200x128xf32, #tpu.memory_space<vmem>>, vector<8x128xf32>,
    %c0_188 = arith.constant 0 : index
    %c0_189 = arith.constant 0 : index
    %488 = vector.load %arg23[%c0_188, %c0_189] : memref<128x512xbf16, #tpu.memory_space<vmem>>, vector<128x512xbf16>
    %489 = arith.truncf %486 : vector<8x128xf32> to vector<8x128xbf16>
    %cst_190 = arith.constant dense<0.000000e+00> : vector<8x512xf32>
    %490 = tpu.matmul %489, %488, %cst_190 {dimension_numbers = #tpu.dot_dimension_numbers<[1], [0], [0], [1], [0, 0, 1, 1], [], []>} : vector<8x128xbf16>, vector<128x512xbf16>, vector<8x512xf32> -> vector<8x512xf32>
    %491 = arith.addf %395, %490 : vector<8x512xf32>
    %492 = vector.extract_strided_slice %491 {offsets = [0, 0], sizes = [8, 128], strides = [1, 1]} : vector<8x512xf32> to vector<8x128xf32>
    %493 = arith.negf %492 : vector<8x128xf32>
    %494 = math.exp %493 : vector<8x128xf32>
    %cst_191 = arith.constant 1.000000e+00 : f32
    %495 = vector.broadcast %cst_191 : f32 to vector<8x128xf32>
    %496 = arith.addf %495, %494 : vector<8x128xf32>
    %497 = arith.divf %495, %496 : vector<8x128xf32>
    %498 = vector.extract_strided_slice %491 {offsets = [0, 128], sizes = [8, 128], strides = [1, 1]} : vector<8x512xf32> to vector<8x128xf32>
    %499 = arith.negf %498 : vector<8x128xf32>
    %500 = math.exp %499 : vector<8x128xf32>
    %cst_192 = arith.constant 1.000000e+00 : f32
    %501 = vector.broadcast %cst_192 : f32 to vector<8x128xf32>
    %502 = arith.addf %501, %500 : vector<8x128xf32>
    %503 = arith.divf %501, %502 : vector<8x128xf32>
    %504 = vector.extract_strided_slice %491 {offsets = [0, 256], sizes = [8, 128], strides = [1, 1]} : vector<8x512xf32> to vector<8x128xf32>
    %505 = math.tanh %504 : vector<8x128xf32>
    %506 = vector.extract_strided_slice %491 {offsets = [0, 384], sizes = [8, 128], strides = [1, 1]} : vector<8x512xf32> to vector<8x128xf32>
    %507 = arith.negf %506 : vector<8x128xf32>
    %508 = math.exp %507 : vector<8x128xf32>
    %cst_193 = arith.constant 1.000000e+00 : f32
    %509 = vector.broadcast %cst_193 : f32 to vector<8x128xf32>
    %510 = arith.addf %509, %508 : vector<8x128xf32>
    %511 = arith.divf %509, %510 : vector<8x128xf32>
    %512 = arith.mulf %503, %484 : vector<8x128xf32>
    %513 = arith.mulf %497, %505 : vector<8x128xf32>
    %514 = arith.addf %512, %513 : vector<8x128xf32>
    %515 = math.tanh %514 : vector<8x128xf32>
    %516 = arith.mulf %511, %515 : vector<8x128xf32>
    %c24 = arith.constant 24 : index
    %c0_194 = arith.constant 0 : index
    %517 = vector.load %arg30[%c24, %c0_194] : memref<200x128xf32, #tpu.memory_space<vmem>>, vector<8x128xf32>
    tpu.vector_store %arg30[%c24, %c0_194], %516 {strides = array<i32>} : memref<200x128xf32, #tpu.memory_space<vmem>>, vector<8x128xf32>,
    %c0_195 = arith.constant 0 : index
    %c0_196 = arith.constant 0 : index
    %518 = vector.load %arg23[%c0_195, %c0_196] : memref<128x512xbf16, #tpu.memory_space<vmem>>, vector<128x512xbf16>
    %519 = arith.truncf %516 : vector<8x128xf32> to vector<8x128xbf16>
    %cst_197 = arith.constant dense<0.000000e+00> : vector<8x512xf32>
    %520 = tpu.matmul %519, %518, %cst_197 {dimension_numbers = #tpu.dot_dimension_numbers<[1], [0], [0], [1], [0, 0, 1, 1], [], []>} : vector<8x128xbf16>, vector<128x512xbf16>, vector<8x512xf32> -> vector<8x512xf32>
    %521 = arith.addf %395, %520 : vector<8x512xf32>
    %522 = vector.extract_strided_slice %521 {offsets = [0, 0], sizes = [8, 128], strides = [1, 1]} : vector<8x512xf32> to vector<8x128xf32>
    %523 = arith.negf %522 : vector<8x128xf32>
    %524 = math.exp %523 : vector<8x128xf32>
    %cst_198 = arith.constant 1.000000e+00 : f32
    %525 = vector.broadcast %cst_198 : f32 to vector<8x128xf32>
    %526 = arith.addf %525, %524 : vector<8x128xf32>
    %527 = arith.divf %525, %526 : vector<8x128xf32>
    %528 = vector.extract_strided_slice %521 {offsets = [0, 128], sizes = [8, 128], strides = [1, 1]} : vector<8x512xf32> to vector<8x128xf32>
    %529 = arith.negf %528 : vector<8x128xf32>
    %530 = math.exp %529 : vector<8x128xf32>
    %cst_199 = arith.constant 1.000000e+00 : f32
    %531 = vector.broadcast %cst_199 : f32 to vector<8x128xf32>
    %532 = arith.addf %531, %530 : vector<8x128xf32>
    %533 = arith.divf %531, %532 : vector<8x128xf32>
    %534 = vector.extract_strided_slice %521 {offsets = [0, 256], sizes = [8, 128], strides = [1, 1]} : vector<8x512xf32> to vector<8x128xf32>
    %535 = math.tanh %534 : vector<8x128xf32>
    %536 = vector.extract_strided_slice %521 {offsets = [0, 384], sizes = [8, 128], strides = [1, 1]} : vector<8x512xf32> to vector<8x128xf32>
    %537 = arith.negf %536 : vector<8x128xf32>
    %538 = math.exp %537 : vector<8x128xf32>
    %cst_200 = arith.constant 1.000000e+00 : f32
    %539 = vector.broadcast %cst_200 : f32 to vector<8x128xf32>
    %540 = arith.addf %539, %538 : vector<8x128xf32>
    %541 = arith.divf %539, %540 : vector<8x128xf32>
    %542 = arith.mulf %533, %514 : vector<8x128xf32>
    %543 = arith.mulf %527, %535 : vector<8x128xf32>
    %544 = arith.addf %542, %543 : vector<8x128xf32>
    %545 = math.tanh %544 : vector<8x128xf32>
    %546 = arith.mulf %541, %545 : vector<8x128xf32>
    %c32 = arith.constant 32 : index
    %c0_201 = arith.constant 0 : index
    %547 = vector.load %arg30[%c32, %c0_201] : memref<200x128xf32, #tpu.memory_space<vmem>>, vector<8x128xf32>
    tpu.vector_store %arg30[%c32, %c0_201], %546 {strides = array<i32>} : memref<200x128xf32, #tpu.memory_space<vmem>>, vector<8x128xf32>,
    %c0_202 = arith.constant 0 : index
    %c0_203 = arith.constant 0 : index
    %548 = vector.load %arg23[%c0_202, %c0_203] : memref<128x512xbf16, #tpu.memory_space<vmem>>, vector<128x512xbf16>
    %549 = arith.truncf %546 : vector<8x128xf32> to vector<8x128xbf16>
    %cst_204 = arith.constant dense<0.000000e+00> : vector<8x512xf32>
    %550 = tpu.matmul %549, %548, %cst_204 {dimension_numbers = #tpu.dot_dimension_numbers<[1], [0], [0], [1], [0, 0, 1, 1], [], []>} : vector<8x128xbf16>, vector<128x512xbf16>, vector<8x512xf32> -> vector<8x512xf32>
    %551 = arith.addf %395, %550 : vector<8x512xf32>
    %552 = vector.extract_strided_slice %551 {offsets = [0, 0], sizes = [8, 128], strides = [1, 1]} : vector<8x512xf32> to vector<8x128xf32>
    %553 = arith.negf %552 : vector<8x128xf32>
    %554 = math.exp %553 : vector<8x128xf32>
    %cst_205 = arith.constant 1.000000e+00 : f32
    %555 = vector.broadcast %cst_205 : f32 to vector<8x128xf32>
    %556 = arith.addf %555, %554 : vector<8x128xf32>
    %557 = arith.divf %555, %556 : vector<8x128xf32>
    %558 = vector.extract_strided_slice %551 {offsets = [0, 128], sizes = [8, 128], strides = [1, 1]} : vector<8x512xf32> to vector<8x128xf32>
    %559 = arith.negf %558 : vector<8x128xf32>
    %560 = math.exp %559 : vector<8x128xf32>
    %cst_206 = arith.constant 1.000000e+00 : f32
    %561 = vector.broadcast %cst_206 : f32 to vector<8x128xf32>
    %562 = arith.addf %561, %560 : vector<8x128xf32>
    %563 = arith.divf %561, %562 : vector<8x128xf32>
    %564 = vector.extract_strided_slice %551 {offsets = [0, 256], sizes = [8, 128], strides = [1, 1]} : vector<8x512xf32> to vector<8x128xf32>
    %565 = math.tanh %564 : vector<8x128xf32>
    %566 = vector.extract_strided_slice %551 {offsets = [0, 384], sizes = [8, 128], strides = [1, 1]} : vector<8x512xf32> to vector<8x128xf32>
    %567 = arith.negf %566 : vector<8x128xf32>
    %568 = math.exp %567 : vector<8x128xf32>
    %cst_207 = arith.constant 1.000000e+00 : f32
    %569 = vector.broadcast %cst_207 : f32 to vector<8x128xf32>
    %570 = arith.addf %569, %568 : vector<8x128xf32>
    %571 = arith.divf %569, %570 : vector<8x128xf32>
    %572 = arith.mulf %563, %544 : vector<8x128xf32>
    %573 = arith.mulf %557, %565 : vector<8x128xf32>
    %574 = arith.addf %572, %573 : vector<8x128xf32>
    %575 = math.tanh %574 : vector<8x128xf32>
    %576 = arith.mulf %571, %575 : vector<8x128xf32>
    %c40 = arith.constant 40 : index
    %c0_208 = arith.constant 0 : index
    %577 = vector.load %arg30[%c40, %c0_208] : memref<200x128xf32, #tpu.memory_space<vmem>>, vector<8x128xf32>
    tpu.vector_store %arg30[%c40, %c0_208], %576 {strides = array<i32>} : memref<200x128xf32, #tpu.memory_space<vmem>>, vector<8x128xf32>,
    %c0_209 = arith.constant 0 : index
    %c0_210 = arith.constant 0 : index
    %578 = vector.load %arg23[%c0_209, %c0_210] : memref<128x512xbf16, #tpu.memory_space<vmem>>, vector<128x512xbf16>
    %579 = arith.truncf %576 : vector<8x128xf32> to vector<8x128xbf16>
    %cst_211 = arith.constant dense<0.000000e+00> : vector<8x512xf32>
    %580 = tpu.matmul %579, %578, %cst_211 {dimension_numbers = #tpu.dot_dimension_numbers<[1], [0], [0], [1], [0, 0, 1, 1], [], []>} : vector<8x128xbf16>, vector<128x512xbf16>, vector<8x512xf32> -> vector<8x512xf32>
    %581 = arith.addf %395, %580 : vector<8x512xf32>
    %582 = vector.extract_strided_slice %581 {offsets = [0, 0], sizes = [8, 128], strides = [1, 1]} : vector<8x512xf32> to vector<8x128xf32>
    %583 = arith.negf %582 : vector<8x128xf32>
    %584 = math.exp %583 : vector<8x128xf32>
    %cst_212 = arith.constant 1.000000e+00 : f32
    %585 = vector.broadcast %cst_212 : f32 to vector<8x128xf32>
    %586 = arith.addf %585, %584 : vector<8x128xf32>
    %587 = arith.divf %585, %586 : vector<8x128xf32>
    %588 = vector.extract_strided_slice %581 {offsets = [0, 128], sizes = [8, 128], strides = [1, 1]} : vector<8x512xf32> to vector<8x128xf32>
    %589 = arith.negf %588 : vector<8x128xf32>
    %590 = math.exp %589 : vector<8x128xf32>
    %cst_213 = arith.constant 1.000000e+00 : f32
    %591 = vector.broadcast %cst_213 : f32 to vector<8x128xf32>
    %592 = arith.addf %591, %590 : vector<8x128xf32>
    %593 = arith.divf %591, %592 : vector<8x128xf32>
    %594 = vector.extract_strided_slice %581 {offsets = [0, 256], sizes = [8, 128], strides = [1, 1]} : vector<8x512xf32> to vector<8x128xf32>
    %595 = math.tanh %594 : vector<8x128xf32>
    %596 = vector.extract_strided_slice %581 {offsets = [0, 384], sizes = [8, 128], strides = [1, 1]} : vector<8x512xf32> to vector<8x128xf32>
    %597 = arith.negf %596 : vector<8x128xf32>
    %598 = math.exp %597 : vector<8x128xf32>
    %cst_214 = arith.constant 1.000000e+00 : f32
    %599 = vector.broadcast %cst_214 : f32 to vector<8x128xf32>
    %600 = arith.addf %599, %598 : vector<8x128xf32>
    %601 = arith.divf %599, %600 : vector<8x128xf32>
    %602 = arith.mulf %593, %574 : vector<8x128xf32>
    %603 = arith.mulf %587, %595 : vector<8x128xf32>
    %604 = arith.addf %602, %603 : vector<8x128xf32>
    %605 = math.tanh %604 : vector<8x128xf32>
    %606 = arith.mulf %601, %605 : vector<8x128xf32>
    %c48 = arith.constant 48 : index
    %c0_215 = arith.constant 0 : index
    %607 = vector.load %arg30[%c48, %c0_215] : memref<200x128xf32, #tpu.memory_space<vmem>>, vector<8x128xf32>
    tpu.vector_store %arg30[%c48, %c0_215], %606 {strides = array<i32>} : memref<200x128xf32, #tpu.memory_space<vmem>>, vector<8x128xf32>,
    %c0_216 = arith.constant 0 : index
    %c0_217 = arith.constant 0 : index
    %608 = vector.load %arg23[%c0_216, %c0_217] : memref<128x512xbf16, #tpu.memory_space<vmem>>, vector<128x512xbf16>
    %609 = arith.truncf %606 : vector<8x128xf32> to vector<8x128xbf16>
    %cst_218 = arith.constant dense<0.000000e+00> : vector<8x512xf32>
    %610 = tpu.matmul %609, %608, %cst_218 {dimension_numbers = #tpu.dot_dimension_numbers<[1], [0], [0], [1], [0, 0, 1, 1], [], []>} : vector<8x128xbf16>, vector<128x512xbf16>, vector<8x512xf32> -> vector<8x512xf32>
    %611 = arith.addf %395, %610 : vector<8x512xf32>
    %612 = vector.extract_strided_slice %611 {offsets = [0, 0], sizes = [8, 128], strides = [1, 1]} : vector<8x512xf32> to vector<8x128xf32>
    %613 = arith.negf %612 : vector<8x128xf32>
    %614 = math.exp %613 : vector<8x128xf32>
    %cst_219 = arith.constant 1.000000e+00 : f32
    %615 = vector.broadcast %cst_219 : f32 to vector<8x128xf32>
    %616 = arith.addf %615, %614 : vector<8x128xf32>
    %617 = arith.divf %615, %616 : vector<8x128xf32>
    %618 = vector.extract_strided_slice %611 {offsets = [0, 128], sizes = [8, 128], strides = [1, 1]} : vector<8x512xf32> to vector<8x128xf32>
    %619 = arith.negf %618 : vector<8x128xf32>
    %620 = math.exp %619 : vector<8x128xf32>
    %cst_220 = arith.constant 1.000000e+00 : f32
    %621 = vector.broadcast %cst_220 : f32 to vector<8x128xf32>
    %622 = arith.addf %621, %620 : vector<8x128xf32>
    %623 = arith.divf %621, %622 : vector<8x128xf32>
    %624 = vector.extract_strided_slice %611 {offsets = [0, 256], sizes = [8, 128], strides = [1, 1]} : vector<8x512xf32> to vector<8x128xf32>
    %625 = math.tanh %624 : vector<8x128xf32>
    %626 = vector.extract_strided_slice %611 {offsets = [0, 384], sizes = [8, 128], strides = [1, 1]} : vector<8x512xf32> to vector<8x128xf32>
    %627 = arith.negf %626 : vector<8x128xf32>
    %628 = math.exp %627 : vector<8x128xf32>
    %cst_221 = arith.constant 1.000000e+00 : f32
    %629 = vector.broadcast %cst_221 : f32 to vector<8x128xf32>
    %630 = arith.addf %629, %628 : vector<8x128xf32>
    %631 = arith.divf %629, %630 : vector<8x128xf32>
    %632 = arith.mulf %623, %604 : vector<8x128xf32>
    %633 = arith.mulf %617, %625 : vector<8x128xf32>
    %634 = arith.addf %632, %633 : vector<8x128xf32>
    %635 = math.tanh %634 : vector<8x128xf32>
    %636 = arith.mulf %631, %635 : vector<8x128xf32>
    %c56 = arith.constant 56 : index
    %c0_222 = arith.constant 0 : index
    %637 = vector.load %arg30[%c56, %c0_222] : memref<200x128xf32, #tpu.memory_space<vmem>>, vector<8x128xf32>
    tpu.vector_store %arg30[%c56, %c0_222], %636 {strides = array<i32>} : memref<200x128xf32, #tpu.memory_space<vmem>>, vector<8x128xf32>,
    %c0_223 = arith.constant 0 : index
    %c0_224 = arith.constant 0 : index
    %638 = vector.load %arg23[%c0_223, %c0_224] : memref<128x512xbf16, #tpu.memory_space<vmem>>, vector<128x512xbf16>
    %639 = arith.truncf %636 : vector<8x128xf32> to vector<8x128xbf16>
    %cst_225 = arith.constant dense<0.000000e+00> : vector<8x512xf32>
    %640 = tpu.matmul %639, %638, %cst_225 {dimension_numbers = #tpu.dot_dimension_numbers<[1], [0], [0], [1], [0, 0, 1, 1], [], []>} : vector<8x128xbf16>, vector<128x512xbf16>, vector<8x512xf32> -> vector<8x512xf32>
    %641 = arith.addf %395, %640 : vector<8x512xf32>
    %642 = vector.extract_strided_slice %641 {offsets = [0, 0], sizes = [8, 128], strides = [1, 1]} : vector<8x512xf32> to vector<8x128xf32>
    %643 = arith.negf %642 : vector<8x128xf32>
    %644 = math.exp %643 : vector<8x128xf32>
    %cst_226 = arith.constant 1.000000e+00 : f32
    %645 = vector.broadcast %cst_226 : f32 to vector<8x128xf32>
    %646 = arith.addf %645, %644 : vector<8x128xf32>
    %647 = arith.divf %645, %646 : vector<8x128xf32>
    %648 = vector.extract_strided_slice %641 {offsets = [0, 128], sizes = [8, 128], strides = [1, 1]} : vector<8x512xf32> to vector<8x128xf32>
    %649 = arith.negf %648 : vector<8x128xf32>
    %650 = math.exp %649 : vector<8x128xf32>
    %cst_227 = arith.constant 1.000000e+00 : f32
    %651 = vector.broadcast %cst_227 : f32 to vector<8x128xf32>
    %652 = arith.addf %651, %650 : vector<8x128xf32>
    %653 = arith.divf %651, %652 : vector<8x128xf32>
    %654 = vector.extract_strided_slice %641 {offsets = [0, 256], sizes = [8, 128], strides = [1, 1]} : vector<8x512xf32> to vector<8x128xf32>
    %655 = math.tanh %654 : vector<8x128xf32>
    %656 = vector.extract_strided_slice %641 {offsets = [0, 384], sizes = [8, 128], strides = [1, 1]} : vector<8x512xf32> to vector<8x128xf32>
    %657 = arith.negf %656 : vector<8x128xf32>
    %658 = math.exp %657 : vector<8x128xf32>
    %cst_228 = arith.constant 1.000000e+00 : f32
    %659 = vector.broadcast %cst_228 : f32 to vector<8x128xf32>
    %660 = arith.addf %659, %658 : vector<8x128xf32>
    %661 = arith.divf %659, %660 : vector<8x128xf32>
    %662 = arith.mulf %653, %634 : vector<8x128xf32>
    %663 = arith.mulf %647, %655 : vector<8x128xf32>
    %664 = arith.addf %662, %663 : vector<8x128xf32>
    %665 = math.tanh %664 : vector<8x128xf32>
    %666 = arith.mulf %661, %665 : vector<8x128xf32>
    %c64 = arith.constant 64 : index
    %c0_229 = arith.constant 0 : index
    %667 = vector.load %arg30[%c64, %c0_229] : memref<200x128xf32, #tpu.memory_space<vmem>>, vector<8x128xf32>
    tpu.vector_store %arg30[%c64, %c0_229], %666 {strides = array<i32>} : memref<200x128xf32, #tpu.memory_space<vmem>>, vector<8x128xf32>,
    %c0_230 = arith.constant 0 : index
    %c0_231 = arith.constant 0 : index
    %668 = vector.load %arg23[%c0_230, %c0_231] : memref<128x512xbf16, #tpu.memory_space<vmem>>, vector<128x512xbf16>
    %669 = arith.truncf %666 : vector<8x128xf32> to vector<8x128xbf16>
    %cst_232 = arith.constant dense<0.000000e+00> : vector<8x512xf32>
    %670 = tpu.matmul %669, %668, %cst_232 {dimension_numbers = #tpu.dot_dimension_numbers<[1], [0], [0], [1], [0, 0, 1, 1], [], []>} : vector<8x128xbf16>, vector<128x512xbf16>, vector<8x512xf32> -> vector<8x512xf32>
    %671 = arith.addf %395, %670 : vector<8x512xf32>
    %672 = vector.extract_strided_slice %671 {offsets = [0, 0], sizes = [8, 128], strides = [1, 1]} : vector<8x512xf32> to vector<8x128xf32>
    %673 = arith.negf %672 : vector<8x128xf32>
    %674 = math.exp %673 : vector<8x128xf32>
    %cst_233 = arith.constant 1.000000e+00 : f32
    %675 = vector.broadcast %cst_233 : f32 to vector<8x128xf32>
    %676 = arith.addf %675, %674 : vector<8x128xf32>
    %677 = arith.divf %675, %676 : vector<8x128xf32>
    %678 = vector.extract_strided_slice %671 {offsets = [0, 128], sizes = [8, 128], strides = [1, 1]} : vector<8x512xf32> to vector<8x128xf32>
    %679 = arith.negf %678 : vector<8x128xf32>
    %680 = math.exp %679 : vector<8x128xf32>
    %cst_234 = arith.constant 1.000000e+00 : f32
    %681 = vector.broadcast %cst_234 : f32 to vector<8x128xf32>
    %682 = arith.addf %681, %680 : vector<8x128xf32>
    %683 = arith.divf %681, %682 : vector<8x128xf32>
    %684 = vector.extract_strided_slice %671 {offsets = [0, 256], sizes = [8, 128], strides = [1, 1]} : vector<8x512xf32> to vector<8x128xf32>
    %685 = math.tanh %684 : vector<8x128xf32>
    %686 = vector.extract_strided_slice %671 {offsets = [0, 384], sizes = [8, 128], strides = [1, 1]} : vector<8x512xf32> to vector<8x128xf32>
    %687 = arith.negf %686 : vector<8x128xf32>
    %688 = math.exp %687 : vector<8x128xf32>
    %cst_235 = arith.constant 1.000000e+00 : f32
    %689 = vector.broadcast %cst_235 : f32 to vector<8x128xf32>
    %690 = arith.addf %689, %688 : vector<8x128xf32>
    %691 = arith.divf %689, %690 : vector<8x128xf32>
    %692 = arith.mulf %683, %664 : vector<8x128xf32>
    %693 = arith.mulf %677, %685 : vector<8x128xf32>
    %694 = arith.addf %692, %693 : vector<8x128xf32>
    %695 = math.tanh %694 : vector<8x128xf32>
    %696 = arith.mulf %691, %695 : vector<8x128xf32>
    %c72 = arith.constant 72 : index
    %c0_236 = arith.constant 0 : index
    %697 = vector.load %arg30[%c72, %c0_236] : memref<200x128xf32, #tpu.memory_space<vmem>>, vector<8x128xf32>
    tpu.vector_store %arg30[%c72, %c0_236], %696 {strides = array<i32>} : memref<200x128xf32, #tpu.memory_space<vmem>>, vector<8x128xf32>,
    %c0_237 = arith.constant 0 : index
    %c0_238 = arith.constant 0 : index
    %698 = vector.load %arg23[%c0_237, %c0_238] : memref<128x512xbf16, #tpu.memory_space<vmem>>, vector<128x512xbf16>
    %699 = arith.truncf %696 : vector<8x128xf32> to vector<8x128xbf16>
    %cst_239 = arith.constant dense<0.000000e+00> : vector<8x512xf32>
    %700 = tpu.matmul %699, %698, %cst_239 {dimension_numbers = #tpu.dot_dimension_numbers<[1], [0], [0], [1], [0, 0, 1, 1], [], []>} : vector<8x128xbf16>, vector<128x512xbf16>, vector<8x512xf32> -> vector<8x512xf32>
    %701 = arith.addf %395, %700 : vector<8x512xf32>
    %702 = vector.extract_strided_slice %701 {offsets = [0, 0], sizes = [8, 128], strides = [1, 1]} : vector<8x512xf32> to vector<8x128xf32>
    %703 = arith.negf %702 : vector<8x128xf32>
    %704 = math.exp %703 : vector<8x128xf32>
    %cst_240 = arith.constant 1.000000e+00 : f32
    %705 = vector.broadcast %cst_240 : f32 to vector<8x128xf32>
    %706 = arith.addf %705, %704 : vector<8x128xf32>
    %707 = arith.divf %705, %706 : vector<8x128xf32>
    %708 = vector.extract_strided_slice %701 {offsets = [0, 128], sizes = [8, 128], strides = [1, 1]} : vector<8x512xf32> to vector<8x128xf32>
    %709 = arith.negf %708 : vector<8x128xf32>
    %710 = math.exp %709 : vector<8x128xf32>
    %cst_241 = arith.constant 1.000000e+00 : f32
    %711 = vector.broadcast %cst_241 : f32 to vector<8x128xf32>
    %712 = arith.addf %711, %710 : vector<8x128xf32>
    %713 = arith.divf %711, %712 : vector<8x128xf32>
    %714 = vector.extract_strided_slice %701 {offsets = [0, 256], sizes = [8, 128], strides = [1, 1]} : vector<8x512xf32> to vector<8x128xf32>
    %715 = math.tanh %714 : vector<8x128xf32>
    %716 = vector.extract_strided_slice %701 {offsets = [0, 384], sizes = [8, 128], strides = [1, 1]} : vector<8x512xf32> to vector<8x128xf32>
    %717 = arith.negf %716 : vector<8x128xf32>
    %718 = math.exp %717 : vector<8x128xf32>
    %cst_242 = arith.constant 1.000000e+00 : f32
    %719 = vector.broadcast %cst_242 : f32 to vector<8x128xf32>
    %720 = arith.addf %719, %718 : vector<8x128xf32>
    %721 = arith.divf %719, %720 : vector<8x128xf32>
    %722 = arith.mulf %713, %694 : vector<8x128xf32>
    %723 = arith.mulf %707, %715 : vector<8x128xf32>
    %724 = arith.addf %722, %723 : vector<8x128xf32>
    %725 = math.tanh %724 : vector<8x128xf32>
    %726 = arith.mulf %721, %725 : vector<8x128xf32>
    %c80 = arith.constant 80 : index
    %c0_243 = arith.constant 0 : index
    %727 = vector.load %arg30[%c80, %c0_243] : memref<200x128xf32, #tpu.memory_space<vmem>>, vector<8x128xf32>
    tpu.vector_store %arg30[%c80, %c0_243], %726 {strides = array<i32>} : memref<200x128xf32, #tpu.memory_space<vmem>>, vector<8x128xf32>,
    %c0_244 = arith.constant 0 : index
    %c0_245 = arith.constant 0 : index
    %728 = vector.load %arg23[%c0_244, %c0_245] : memref<128x512xbf16, #tpu.memory_space<vmem>>, vector<128x512xbf16>
    %729 = arith.truncf %726 : vector<8x128xf32> to vector<8x128xbf16>
    %cst_246 = arith.constant dense<0.000000e+00> : vector<8x512xf32>
    %730 = tpu.matmul %729, %728, %cst_246 {dimension_numbers = #tpu.dot_dimension_numbers<[1], [0], [0], [1], [0, 0, 1, 1], [], []>} : vector<8x128xbf16>, vector<128x512xbf16>, vector<8x512xf32> -> vector<8x512xf32>
    %731 = arith.addf %395, %730 : vector<8x512xf32>
    %732 = vector.extract_strided_slice %731 {offsets = [0, 0], sizes = [8, 128], strides = [1, 1]} : vector<8x512xf32> to vector<8x128xf32>
    %733 = arith.negf %732 : vector<8x128xf32>
    %734 = math.exp %733 : vector<8x128xf32>
    %cst_247 = arith.constant 1.000000e+00 : f32
    %735 = vector.broadcast %cst_247 : f32 to vector<8x128xf32>
    %736 = arith.addf %735, %734 : vector<8x128xf32>
    %737 = arith.divf %735, %736 : vector<8x128xf32>
    %738 = vector.extract_strided_slice %731 {offsets = [0, 128], sizes = [8, 128], strides = [1, 1]} : vector<8x512xf32> to vector<8x128xf32>
    %739 = arith.negf %738 : vector<8x128xf32>
    %740 = math.exp %739 : vector<8x128xf32>
    %cst_248 = arith.constant 1.000000e+00 : f32
    %741 = vector.broadcast %cst_248 : f32 to vector<8x128xf32>
    %742 = arith.addf %741, %740 : vector<8x128xf32>
    %743 = arith.divf %741, %742 : vector<8x128xf32>
    %744 = vector.extract_strided_slice %731 {offsets = [0, 256], sizes = [8, 128], strides = [1, 1]} : vector<8x512xf32> to vector<8x128xf32>
    %745 = math.tanh %744 : vector<8x128xf32>
    %746 = vector.extract_strided_slice %731 {offsets = [0, 384], sizes = [8, 128], strides = [1, 1]} : vector<8x512xf32> to vector<8x128xf32>
    %747 = arith.negf %746 : vector<8x128xf32>
    %748 = math.exp %747 : vector<8x128xf32>
    %cst_249 = arith.constant 1.000000e+00 : f32
    %749 = vector.broadcast %cst_249 : f32 to vector<8x128xf32>
    %750 = arith.addf %749, %748 : vector<8x128xf32>
    %751 = arith.divf %749, %750 : vector<8x128xf32>
    %752 = arith.mulf %743, %724 : vector<8x128xf32>
    %753 = arith.mulf %737, %745 : vector<8x128xf32>
    %754 = arith.addf %752, %753 : vector<8x128xf32>
    %755 = math.tanh %754 : vector<8x128xf32>
    %756 = arith.mulf %751, %755 : vector<8x128xf32>
    %c88 = arith.constant 88 : index
    %c0_250 = arith.constant 0 : index
    %757 = vector.load %arg30[%c88, %c0_250] : memref<200x128xf32, #tpu.memory_space<vmem>>, vector<8x128xf32>
    tpu.vector_store %arg30[%c88, %c0_250], %756 {strides = array<i32>} : memref<200x128xf32, #tpu.memory_space<vmem>>, vector<8x128xf32>,
    %c0_251 = arith.constant 0 : index
    %c0_252 = arith.constant 0 : index
    %758 = vector.load %arg23[%c0_251, %c0_252] : memref<128x512xbf16, #tpu.memory_space<vmem>>, vector<128x512xbf16>
    %759 = arith.truncf %756 : vector<8x128xf32> to vector<8x128xbf16>
    %cst_253 = arith.constant dense<0.000000e+00> : vector<8x512xf32>
    %760 = tpu.matmul %759, %758, %cst_253 {dimension_numbers = #tpu.dot_dimension_numbers<[1], [0], [0], [1], [0, 0, 1, 1], [], []>} : vector<8x128xbf16>, vector<128x512xbf16>, vector<8x512xf32> -> vector<8x512xf32>
    %761 = arith.addf %395, %760 : vector<8x512xf32>
    %762 = vector.extract_strided_slice %761 {offsets = [0, 0], sizes = [8, 128], strides = [1, 1]} : vector<8x512xf32> to vector<8x128xf32>
    %763 = arith.negf %762 : vector<8x128xf32>
    %764 = math.exp %763 : vector<8x128xf32>
    %cst_254 = arith.constant 1.000000e+00 : f32
    %765 = vector.broadcast %cst_254 : f32 to vector<8x128xf32>
    %766 = arith.addf %765, %764 : vector<8x128xf32>
    %767 = arith.divf %765, %766 : vector<8x128xf32>
    %768 = vector.extract_strided_slice %761 {offsets = [0, 128], sizes = [8, 128], strides = [1, 1]} : vector<8x512xf32> to vector<8x128xf32>
    %769 = arith.negf %768 : vector<8x128xf32>
    %770 = math.exp %769 : vector<8x128xf32>
    %cst_255 = arith.constant 1.000000e+00 : f32
    %771 = vector.broadcast %cst_255 : f32 to vector<8x128xf32>
    %772 = arith.addf %771, %770 : vector<8x128xf32>
    %773 = arith.divf %771, %772 : vector<8x128xf32>
    %774 = vector.extract_strided_slice %761 {offsets = [0, 256], sizes = [8, 128], strides = [1, 1]} : vector<8x512xf32> to vector<8x128xf32>
    %775 = math.tanh %774 : vector<8x128xf32>
    %776 = vector.extract_strided_slice %761 {offsets = [0, 384], sizes = [8, 128], strides = [1, 1]} : vector<8x512xf32> to vector<8x128xf32>
    %777 = arith.negf %776 : vector<8x128xf32>
    %778 = math.exp %777 : vector<8x128xf32>
    %cst_256 = arith.constant 1.000000e+00 : f32
    %779 = vector.broadcast %cst_256 : f32 to vector<8x128xf32>
    %780 = arith.addf %779, %778 : vector<8x128xf32>
    %781 = arith.divf %779, %780 : vector<8x128xf32>
    %782 = arith.mulf %773, %754 : vector<8x128xf32>
    %783 = arith.mulf %767, %775 : vector<8x128xf32>
    %784 = arith.addf %782, %783 : vector<8x128xf32>
    %785 = math.tanh %784 : vector<8x128xf32>
    %786 = arith.mulf %781, %785 : vector<8x128xf32>
    %c96 = arith.constant 96 : index
    %c0_257 = arith.constant 0 : index
    %787 = vector.load %arg30[%c96, %c0_257] : memref<200x128xf32, #tpu.memory_space<vmem>>, vector<8x128xf32>
    tpu.vector_store %arg30[%c96, %c0_257], %786 {strides = array<i32>} : memref<200x128xf32, #tpu.memory_space<vmem>>, vector<8x128xf32>,
    %c0_258 = arith.constant 0 : index
    %c0_259 = arith.constant 0 : index
    %788 = vector.load %arg23[%c0_258, %c0_259] : memref<128x512xbf16, #tpu.memory_space<vmem>>, vector<128x512xbf16>
    %789 = arith.truncf %786 : vector<8x128xf32> to vector<8x128xbf16>
    %cst_260 = arith.constant dense<0.000000e+00> : vector<8x512xf32>
    %790 = tpu.matmul %789, %788, %cst_260 {dimension_numbers = #tpu.dot_dimension_numbers<[1], [0], [0], [1], [0, 0, 1, 1], [], []>} : vector<8x128xbf16>, vector<128x512xbf16>, vector<8x512xf32> -> vector<8x512xf32>
    %791 = arith.addf %395, %790 : vector<8x512xf32>
    %792 = vector.extract_strided_slice %791 {offsets = [0, 0], sizes = [8, 128], strides = [1, 1]} : vector<8x512xf32> to vector<8x128xf32>
    %793 = arith.negf %792 : vector<8x128xf32>
    %794 = math.exp %793 : vector<8x128xf32>
    %cst_261 = arith.constant 1.000000e+00 : f32
    %795 = vector.broadcast %cst_261 : f32 to vector<8x128xf32>
    %796 = arith.addf %795, %794 : vector<8x128xf32>
    %797 = arith.divf %795, %796 : vector<8x128xf32>
    %798 = vector.extract_strided_slice %791 {offsets = [0, 128], sizes = [8, 128], strides = [1, 1]} : vector<8x512xf32> to vector<8x128xf32>
    %799 = arith.negf %798 : vector<8x128xf32>
    %800 = math.exp %799 : vector<8x128xf32>
    %cst_262 = arith.constant 1.000000e+00 : f32
    %801 = vector.broadcast %cst_262 : f32 to vector<8x128xf32>
    %802 = arith.addf %801, %800 : vector<8x128xf32>
    %803 = arith.divf %801, %802 : vector<8x128xf32>
    %804 = vector.extract_strided_slice %791 {offsets = [0, 256], sizes = [8, 128], strides = [1, 1]} : vector<8x512xf32> to vector<8x128xf32>
    %805 = math.tanh %804 : vector<8x128xf32>
    %806 = vector.extract_strided_slice %791 {offsets = [0, 384], sizes = [8, 128], strides = [1, 1]} : vector<8x512xf32> to vector<8x128xf32>
    %807 = arith.negf %806 : vector<8x128xf32>
    %808 = math.exp %807 : vector<8x128xf32>
    %cst_263 = arith.constant 1.000000e+00 : f32
    %809 = vector.broadcast %cst_263 : f32 to vector<8x128xf32>
    %810 = arith.addf %809, %808 : vector<8x128xf32>
    %811 = arith.divf %809, %810 : vector<8x128xf32>
    %812 = arith.mulf %803, %784 : vector<8x128xf32>
    %813 = arith.mulf %797, %805 : vector<8x128xf32>
    %814 = arith.addf %812, %813 : vector<8x128xf32>
    %815 = math.tanh %814 : vector<8x128xf32>
    %816 = arith.mulf %811, %815 : vector<8x128xf32>
    %c104 = arith.constant 104 : index
    %c0_264 = arith.constant 0 : index
    %817 = vector.load %arg30[%c104, %c0_264] : memref<200x128xf32, #tpu.memory_space<vmem>>, vector<8x128xf32>
    tpu.vector_store %arg30[%c104, %c0_264], %816 {strides = array<i32>} : memref<200x128xf32, #tpu.memory_space<vmem>>, vector<8x128xf32>,
    %c0_265 = arith.constant 0 : index
    %c0_266 = arith.constant 0 : index
    %818 = vector.load %arg23[%c0_265, %c0_266] : memref<128x512xbf16, #tpu.memory_space<vmem>>, vector<128x512xbf16>
    %819 = arith.truncf %816 : vector<8x128xf32> to vector<8x128xbf16>
    %cst_267 = arith.constant dense<0.000000e+00> : vector<8x512xf32>
    %820 = tpu.matmul %819, %818, %cst_267 {dimension_numbers = #tpu.dot_dimension_numbers<[1], [0], [0], [1], [0, 0, 1, 1], [], []>} : vector<8x128xbf16>, vector<128x512xbf16>, vector<8x512xf32> -> vector<8x512xf32>
    %821 = arith.addf %395, %820 : vector<8x512xf32>
    %822 = vector.extract_strided_slice %821 {offsets = [0, 0], sizes = [8, 128], strides = [1, 1]} : vector<8x512xf32> to vector<8x128xf32>
    %823 = arith.negf %822 : vector<8x128xf32>
    %824 = math.exp %823 : vector<8x128xf32>
    %cst_268 = arith.constant 1.000000e+00 : f32
    %825 = vector.broadcast %cst_268 : f32 to vector<8x128xf32>
    %826 = arith.addf %825, %824 : vector<8x128xf32>
    %827 = arith.divf %825, %826 : vector<8x128xf32>
    %828 = vector.extract_strided_slice %821 {offsets = [0, 128], sizes = [8, 128], strides = [1, 1]} : vector<8x512xf32> to vector<8x128xf32>
    %829 = arith.negf %828 : vector<8x128xf32>
    %830 = math.exp %829 : vector<8x128xf32>
    %cst_269 = arith.constant 1.000000e+00 : f32
    %831 = vector.broadcast %cst_269 : f32 to vector<8x128xf32>
    %832 = arith.addf %831, %830 : vector<8x128xf32>
    %833 = arith.divf %831, %832 : vector<8x128xf32>
    %834 = vector.extract_strided_slice %821 {offsets = [0, 256], sizes = [8, 128], strides = [1, 1]} : vector<8x512xf32> to vector<8x128xf32>
    %835 = math.tanh %834 : vector<8x128xf32>
    %836 = vector.extract_strided_slice %821 {offsets = [0, 384], sizes = [8, 128], strides = [1, 1]} : vector<8x512xf32> to vector<8x128xf32>
    %837 = arith.negf %836 : vector<8x128xf32>
    %838 = math.exp %837 : vector<8x128xf32>
    %cst_270 = arith.constant 1.000000e+00 : f32
    %839 = vector.broadcast %cst_270 : f32 to vector<8x128xf32>
    %840 = arith.addf %839, %838 : vector<8x128xf32>
    %841 = arith.divf %839, %840 : vector<8x128xf32>
    %842 = arith.mulf %833, %814 : vector<8x128xf32>
    %843 = arith.mulf %827, %835 : vector<8x128xf32>
    %844 = arith.addf %842, %843 : vector<8x128xf32>
    %845 = math.tanh %844 : vector<8x128xf32>
    %846 = arith.mulf %841, %845 : vector<8x128xf32>
    %c112 = arith.constant 112 : index
    %c0_271 = arith.constant 0 : index
    %847 = vector.load %arg30[%c112, %c0_271] : memref<200x128xf32, #tpu.memory_space<vmem>>, vector<8x128xf32>
    tpu.vector_store %arg30[%c112, %c0_271], %846 {strides = array<i32>} : memref<200x128xf32, #tpu.memory_space<vmem>>, vector<8x128xf32>,
    %c0_272 = arith.constant 0 : index
    %c0_273 = arith.constant 0 : index
    %848 = vector.load %arg23[%c0_272, %c0_273] : memref<128x512xbf16, #tpu.memory_space<vmem>>, vector<128x512xbf16>
    %849 = arith.truncf %846 : vector<8x128xf32> to vector<8x128xbf16>
    %cst_274 = arith.constant dense<0.000000e+00> : vector<8x512xf32>
    %850 = tpu.matmul %849, %848, %cst_274 {dimension_numbers = #tpu.dot_dimension_numbers<[1], [0], [0], [1], [0, 0, 1, 1], [], []>} : vector<8x128xbf16>, vector<128x512xbf16>, vector<8x512xf32> -> vector<8x512xf32>
    %851 = arith.addf %395, %850 : vector<8x512xf32>
    %852 = vector.extract_strided_slice %851 {offsets = [0, 0], sizes = [8, 128], strides = [1, 1]} : vector<8x512xf32> to vector<8x128xf32>
    %853 = arith.negf %852 : vector<8x128xf32>
    %854 = math.exp %853 : vector<8x128xf32>
    %cst_275 = arith.constant 1.000000e+00 : f32
    %855 = vector.broadcast %cst_275 : f32 to vector<8x128xf32>
    %856 = arith.addf %855, %854 : vector<8x128xf32>
    %857 = arith.divf %855, %856 : vector<8x128xf32>
    %858 = vector.extract_strided_slice %851 {offsets = [0, 128], sizes = [8, 128], strides = [1, 1]} : vector<8x512xf32> to vector<8x128xf32>
    %859 = arith.negf %858 : vector<8x128xf32>
    %860 = math.exp %859 : vector<8x128xf32>
    %cst_276 = arith.constant 1.000000e+00 : f32
    %861 = vector.broadcast %cst_276 : f32 to vector<8x128xf32>
    %862 = arith.addf %861, %860 : vector<8x128xf32>
    %863 = arith.divf %861, %862 : vector<8x128xf32>
    %864 = vector.extract_strided_slice %851 {offsets = [0, 256], sizes = [8, 128], strides = [1, 1]} : vector<8x512xf32> to vector<8x128xf32>
    %865 = math.tanh %864 : vector<8x128xf32>
    %866 = vector.extract_strided_slice %851 {offsets = [0, 384], sizes = [8, 128], strides = [1, 1]} : vector<8x512xf32> to vector<8x128xf32>
    %867 = arith.negf %866 : vector<8x128xf32>
    %868 = math.exp %867 : vector<8x128xf32>
    %cst_277 = arith.constant 1.000000e+00 : f32
    %869 = vector.broadcast %cst_277 : f32 to vector<8x128xf32>
    %870 = arith.addf %869, %868 : vector<8x128xf32>
    %871 = arith.divf %869, %870 : vector<8x128xf32>
    %872 = arith.mulf %863, %844 : vector<8x128xf32>
    %873 = arith.mulf %857, %865 : vector<8x128xf32>
    %874 = arith.addf %872, %873 : vector<8x128xf32>
    %875 = math.tanh %874 : vector<8x128xf32>
    %876 = arith.mulf %871, %875 : vector<8x128xf32>
    %c120 = arith.constant 120 : index
    %c0_278 = arith.constant 0 : index
    %877 = vector.load %arg30[%c120, %c0_278] : memref<200x128xf32, #tpu.memory_space<vmem>>, vector<8x128xf32>
    tpu.vector_store %arg30[%c120, %c0_278], %876 {strides = array<i32>} : memref<200x128xf32, #tpu.memory_space<vmem>>, vector<8x128xf32>,
    %c0_279 = arith.constant 0 : index
    %c0_280 = arith.constant 0 : index
    %878 = vector.load %arg23[%c0_279, %c0_280] : memref<128x512xbf16, #tpu.memory_space<vmem>>, vector<128x512xbf16>
    %879 = arith.truncf %876 : vector<8x128xf32> to vector<8x128xbf16>
    %cst_281 = arith.constant dense<0.000000e+00> : vector<8x512xf32>
    %880 = tpu.matmul %879, %878, %cst_281 {dimension_numbers = #tpu.dot_dimension_numbers<[1], [0], [0], [1], [0, 0, 1, 1], [], []>} : vector<8x128xbf16>, vector<128x512xbf16>, vector<8x512xf32> -> vector<8x512xf32>
    %881 = arith.addf %395, %880 : vector<8x512xf32>
    %882 = vector.extract_strided_slice %881 {offsets = [0, 0], sizes = [8, 128], strides = [1, 1]} : vector<8x512xf32> to vector<8x128xf32>
    %883 = arith.negf %882 : vector<8x128xf32>
    %884 = math.exp %883 : vector<8x128xf32>
    %cst_282 = arith.constant 1.000000e+00 : f32
    %885 = vector.broadcast %cst_282 : f32 to vector<8x128xf32>
    %886 = arith.addf %885, %884 : vector<8x128xf32>
    %887 = arith.divf %885, %886 : vector<8x128xf32>
    %888 = vector.extract_strided_slice %881 {offsets = [0, 128], sizes = [8, 128], strides = [1, 1]} : vector<8x512xf32> to vector<8x128xf32>
    %889 = arith.negf %888 : vector<8x128xf32>
    %890 = math.exp %889 : vector<8x128xf32>
    %cst_283 = arith.constant 1.000000e+00 : f32
    %891 = vector.broadcast %cst_283 : f32 to vector<8x128xf32>
    %892 = arith.addf %891, %890 : vector<8x128xf32>
    %893 = arith.divf %891, %892 : vector<8x128xf32>
    %894 = vector.extract_strided_slice %881 {offsets = [0, 256], sizes = [8, 128], strides = [1, 1]} : vector<8x512xf32> to vector<8x128xf32>
    %895 = math.tanh %894 : vector<8x128xf32>
    %896 = vector.extract_strided_slice %881 {offsets = [0, 384], sizes = [8, 128], strides = [1, 1]} : vector<8x512xf32> to vector<8x128xf32>
    %897 = arith.negf %896 : vector<8x128xf32>
    %898 = math.exp %897 : vector<8x128xf32>
    %cst_284 = arith.constant 1.000000e+00 : f32
    %899 = vector.broadcast %cst_284 : f32 to vector<8x128xf32>
    %900 = arith.addf %899, %898 : vector<8x128xf32>
    %901 = arith.divf %899, %900 : vector<8x128xf32>
    %902 = arith.mulf %893, %874 : vector<8x128xf32>
    %903 = arith.mulf %887, %895 : vector<8x128xf32>
    %904 = arith.addf %902, %903 : vector<8x128xf32>
    %905 = math.tanh %904 : vector<8x128xf32>
    %906 = arith.mulf %901, %905 : vector<8x128xf32>
    %c128 = arith.constant 128 : index
    %c0_285 = arith.constant 0 : index
    %907 = vector.load %arg30[%c128, %c0_285] : memref<200x128xf32, #tpu.memory_space<vmem>>, vector<8x128xf32>
    tpu.vector_store %arg30[%c128, %c0_285], %906 {strides = array<i32>} : memref<200x128xf32, #tpu.memory_space<vmem>>, vector<8x128xf32>,
    %c0_286 = arith.constant 0 : index
    %c0_287 = arith.constant 0 : index
    %908 = vector.load %arg23[%c0_286, %c0_287] : memref<128x512xbf16, #tpu.memory_space<vmem>>, vector<128x512xbf16>
    %909 = arith.truncf %906 : vector<8x128xf32> to vector<8x128xbf16>
    %cst_288 = arith.constant dense<0.000000e+00> : vector<8x512xf32>
    %910 = tpu.matmul %909, %908, %cst_288 {dimension_numbers = #tpu.dot_dimension_numbers<[1], [0], [0], [1], [0, 0, 1, 1], [], []>} : vector<8x128xbf16>, vector<128x512xbf16>, vector<8x512xf32> -> vector<8x512xf32>
    %911 = arith.addf %395, %910 : vector<8x512xf32>
    %912 = vector.extract_strided_slice %911 {offsets = [0, 0], sizes = [8, 128], strides = [1, 1]} : vector<8x512xf32> to vector<8x128xf32>
    %913 = arith.negf %912 : vector<8x128xf32>
    %914 = math.exp %913 : vector<8x128xf32>
    %cst_289 = arith.constant 1.000000e+00 : f32
    %915 = vector.broadcast %cst_289 : f32 to vector<8x128xf32>
    %916 = arith.addf %915, %914 : vector<8x128xf32>
    %917 = arith.divf %915, %916 : vector<8x128xf32>
    %918 = vector.extract_strided_slice %911 {offsets = [0, 128], sizes = [8, 128], strides = [1, 1]} : vector<8x512xf32> to vector<8x128xf32>
    %919 = arith.negf %918 : vector<8x128xf32>
    %920 = math.exp %919 : vector<8x128xf32>
    %cst_290 = arith.constant 1.000000e+00 : f32
    %921 = vector.broadcast %cst_290 : f32 to vector<8x128xf32>
    %922 = arith.addf %921, %920 : vector<8x128xf32>
    %923 = arith.divf %921, %922 : vector<8x128xf32>
    %924 = vector.extract_strided_slice %911 {offsets = [0, 256], sizes = [8, 128], strides = [1, 1]} : vector<8x512xf32> to vector<8x128xf32>
    %925 = math.tanh %924 : vector<8x128xf32>
    %926 = vector.extract_strided_slice %911 {offsets = [0, 384], sizes = [8, 128], strides = [1, 1]} : vector<8x512xf32> to vector<8x128xf32>
    %927 = arith.negf %926 : vector<8x128xf32>
    %928 = math.exp %927 : vector<8x128xf32>
    %cst_291 = arith.constant 1.000000e+00 : f32
    %929 = vector.broadcast %cst_291 : f32 to vector<8x128xf32>
    %930 = arith.addf %929, %928 : vector<8x128xf32>
    %931 = arith.divf %929, %930 : vector<8x128xf32>
    %932 = arith.mulf %923, %904 : vector<8x128xf32>
    %933 = arith.mulf %917, %925 : vector<8x128xf32>
    %934 = arith.addf %932, %933 : vector<8x128xf32>
    %935 = math.tanh %934 : vector<8x128xf32>
    %936 = arith.mulf %931, %935 : vector<8x128xf32>
    %c136 = arith.constant 136 : index
    %c0_292 = arith.constant 0 : index
    %937 = vector.load %arg30[%c136, %c0_292] : memref<200x128xf32, #tpu.memory_space<vmem>>, vector<8x128xf32>
    tpu.vector_store %arg30[%c136, %c0_292], %936 {strides = array<i32>} : memref<200x128xf32, #tpu.memory_space<vmem>>, vector<8x128xf32>,
    %c0_293 = arith.constant 0 : index
    %c0_294 = arith.constant 0 : index
    %938 = vector.load %arg23[%c0_293, %c0_294] : memref<128x512xbf16, #tpu.memory_space<vmem>>, vector<128x512xbf16>
    %939 = arith.truncf %936 : vector<8x128xf32> to vector<8x128xbf16>
    %cst_295 = arith.constant dense<0.000000e+00> : vector<8x512xf32>
    %940 = tpu.matmul %939, %938, %cst_295 {dimension_numbers = #tpu.dot_dimension_numbers<[1], [0], [0], [1], [0, 0, 1, 1], [], []>} : vector<8x128xbf16>, vector<128x512xbf16>, vector<8x512xf32> -> vector<8x512xf32>
    %941 = arith.addf %395, %940 : vector<8x512xf32>
    %942 = vector.extract_strided_slice %941 {offsets = [0, 0], sizes = [8, 128], strides = [1, 1]} : vector<8x512xf32> to vector<8x128xf32>
    %943 = arith.negf %942 : vector<8x128xf32>
    %944 = math.exp %943 : vector<8x128xf32>
    %cst_296 = arith.constant 1.000000e+00 : f32
    %945 = vector.broadcast %cst_296 : f32 to vector<8x128xf32>
    %946 = arith.addf %945, %944 : vector<8x128xf32>
    %947 = arith.divf %945, %946 : vector<8x128xf32>
    %948 = vector.extract_strided_slice %941 {offsets = [0, 128], sizes = [8, 128], strides = [1, 1]} : vector<8x512xf32> to vector<8x128xf32>
    %949 = arith.negf %948 : vector<8x128xf32>
    %950 = math.exp %949 : vector<8x128xf32>
    %cst_297 = arith.constant 1.000000e+00 : f32
    %951 = vector.broadcast %cst_297 : f32 to vector<8x128xf32>
    %952 = arith.addf %951, %950 : vector<8x128xf32>
    %953 = arith.divf %951, %952 : vector<8x128xf32>
    %954 = vector.extract_strided_slice %941 {offsets = [0, 256], sizes = [8, 128], strides = [1, 1]} : vector<8x512xf32> to vector<8x128xf32>
    %955 = math.tanh %954 : vector<8x128xf32>
    %956 = vector.extract_strided_slice %941 {offsets = [0, 384], sizes = [8, 128], strides = [1, 1]} : vector<8x512xf32> to vector<8x128xf32>
    %957 = arith.negf %956 : vector<8x128xf32>
    %958 = math.exp %957 : vector<8x128xf32>
    %cst_298 = arith.constant 1.000000e+00 : f32
    %959 = vector.broadcast %cst_298 : f32 to vector<8x128xf32>
    %960 = arith.addf %959, %958 : vector<8x128xf32>
    %961 = arith.divf %959, %960 : vector<8x128xf32>
    %962 = arith.mulf %953, %934 : vector<8x128xf32>
    %963 = arith.mulf %947, %955 : vector<8x128xf32>
    %964 = arith.addf %962, %963 : vector<8x128xf32>
    %965 = math.tanh %964 : vector<8x128xf32>
    %966 = arith.mulf %961, %965 : vector<8x128xf32>
    %c144 = arith.constant 144 : index
    %c0_299 = arith.constant 0 : index
    %967 = vector.load %arg30[%c144, %c0_299] : memref<200x128xf32, #tpu.memory_space<vmem>>, vector<8x128xf32>
    tpu.vector_store %arg30[%c144, %c0_299], %966 {strides = array<i32>} : memref<200x128xf32, #tpu.memory_space<vmem>>, vector<8x128xf32>,
    %c0_300 = arith.constant 0 : index
    %c0_301 = arith.constant 0 : index
    %968 = vector.load %arg23[%c0_300, %c0_301] : memref<128x512xbf16, #tpu.memory_space<vmem>>, vector<128x512xbf16>
    %969 = arith.truncf %966 : vector<8x128xf32> to vector<8x128xbf16>
    %cst_302 = arith.constant dense<0.000000e+00> : vector<8x512xf32>
    %970 = tpu.matmul %969, %968, %cst_302 {dimension_numbers = #tpu.dot_dimension_numbers<[1], [0], [0], [1], [0, 0, 1, 1], [], []>} : vector<8x128xbf16>, vector<128x512xbf16>, vector<8x512xf32> -> vector<8x512xf32>
    %971 = arith.addf %395, %970 : vector<8x512xf32>
    %972 = vector.extract_strided_slice %971 {offsets = [0, 0], sizes = [8, 128], strides = [1, 1]} : vector<8x512xf32> to vector<8x128xf32>
    %973 = arith.negf %972 : vector<8x128xf32>
    %974 = math.exp %973 : vector<8x128xf32>
    %cst_303 = arith.constant 1.000000e+00 : f32
    %975 = vector.broadcast %cst_303 : f32 to vector<8x128xf32>
    %976 = arith.addf %975, %974 : vector<8x128xf32>
    %977 = arith.divf %975, %976 : vector<8x128xf32>
    %978 = vector.extract_strided_slice %971 {offsets = [0, 128], sizes = [8, 128], strides = [1, 1]} : vector<8x512xf32> to vector<8x128xf32>
    %979 = arith.negf %978 : vector<8x128xf32>
    %980 = math.exp %979 : vector<8x128xf32>
    %cst_304 = arith.constant 1.000000e+00 : f32
    %981 = vector.broadcast %cst_304 : f32 to vector<8x128xf32>
    %982 = arith.addf %981, %980 : vector<8x128xf32>
    %983 = arith.divf %981, %982 : vector<8x128xf32>
    %984 = vector.extract_strided_slice %971 {offsets = [0, 256], sizes = [8, 128], strides = [1, 1]} : vector<8x512xf32> to vector<8x128xf32>
    %985 = math.tanh %984 : vector<8x128xf32>
    %986 = vector.extract_strided_slice %971 {offsets = [0, 384], sizes = [8, 128], strides = [1, 1]} : vector<8x512xf32> to vector<8x128xf32>
    %987 = arith.negf %986 : vector<8x128xf32>
    %988 = math.exp %987 : vector<8x128xf32>
    %cst_305 = arith.constant 1.000000e+00 : f32
    %989 = vector.broadcast %cst_305 : f32 to vector<8x128xf32>
    %990 = arith.addf %989, %988 : vector<8x128xf32>
    %991 = arith.divf %989, %990 : vector<8x128xf32>
    %992 = arith.mulf %983, %964 : vector<8x128xf32>
    %993 = arith.mulf %977, %985 : vector<8x128xf32>
    %994 = arith.addf %992, %993 : vector<8x128xf32>
    %995 = math.tanh %994 : vector<8x128xf32>
    %996 = arith.mulf %991, %995 : vector<8x128xf32>
    %c152 = arith.constant 152 : index
    %c0_306 = arith.constant 0 : index
    %997 = vector.load %arg30[%c152, %c0_306] : memref<200x128xf32, #tpu.memory_space<vmem>>, vector<8x128xf32>
    tpu.vector_store %arg30[%c152, %c0_306], %996 {strides = array<i32>} : memref<200x128xf32, #tpu.memory_space<vmem>>, vector<8x128xf32>,
    %c0_307 = arith.constant 0 : index
    %c0_308 = arith.constant 0 : index
    %998 = vector.load %arg23[%c0_307, %c0_308] : memref<128x512xbf16, #tpu.memory_space<vmem>>, vector<128x512xbf16>
    %999 = arith.truncf %996 : vector<8x128xf32> to vector<8x128xbf16>
    %cst_309 = arith.constant dense<0.000000e+00> : vector<8x512xf32>
    %1000 = tpu.matmul %999, %998, %cst_309 {dimension_numbers = #tpu.dot_dimension_numbers<[1], [0], [0], [1], [0, 0, 1, 1], [], []>} : vector<8x128xbf16>, vector<128x512xbf16>, vector<8x512xf32> -> vector<8x512xf32>
    %1001 = arith.addf %395, %1000 : vector<8x512xf32>
    %1002 = vector.extract_strided_slice %1001 {offsets = [0, 0], sizes = [8, 128], strides = [1, 1]} : vector<8x512xf32> to vector<8x128xf32>
    %1003 = arith.negf %1002 : vector<8x128xf32>
    %1004 = math.exp %1003 : vector<8x128xf32>
    %cst_310 = arith.constant 1.000000e+00 : f32
    %1005 = vector.broadcast %cst_310 : f32 to vector<8x128xf32>
    %1006 = arith.addf %1005, %1004 : vector<8x128xf32>
    %1007 = arith.divf %1005, %1006 : vector<8x128xf32>
    %1008 = vector.extract_strided_slice %1001 {offsets = [0, 128], sizes = [8, 128], strides = [1, 1]} : vector<8x512xf32> to vector<8x128xf32>
    %1009 = arith.negf %1008 : vector<8x128xf32>
    %1010 = math.exp %1009 : vector<8x128xf32>
    %cst_311 = arith.constant 1.000000e+00 : f32
    %1011 = vector.broadcast %cst_311 : f32 to vector<8x128xf32>
    %1012 = arith.addf %1011, %1010 : vector<8x128xf32>
    %1013 = arith.divf %1011, %1012 : vector<8x128xf32>
    %1014 = vector.extract_strided_slice %1001 {offsets = [0, 256], sizes = [8, 128], strides = [1, 1]} : vector<8x512xf32> to vector<8x128xf32>
    %1015 = math.tanh %1014 : vector<8x128xf32>
    %1016 = vector.extract_strided_slice %1001 {offsets = [0, 384], sizes = [8, 128], strides = [1, 1]} : vector<8x512xf32> to vector<8x128xf32>
    %1017 = arith.negf %1016 : vector<8x128xf32>
    %1018 = math.exp %1017 : vector<8x128xf32>
    %cst_312 = arith.constant 1.000000e+00 : f32
    %1019 = vector.broadcast %cst_312 : f32 to vector<8x128xf32>
    %1020 = arith.addf %1019, %1018 : vector<8x128xf32>
    %1021 = arith.divf %1019, %1020 : vector<8x128xf32>
    %1022 = arith.mulf %1013, %994 : vector<8x128xf32>
    %1023 = arith.mulf %1007, %1015 : vector<8x128xf32>
    %1024 = arith.addf %1022, %1023 : vector<8x128xf32>
    %1025 = math.tanh %1024 : vector<8x128xf32>
    %1026 = arith.mulf %1021, %1025 : vector<8x128xf32>
    %c160 = arith.constant 160 : index
    %c0_313 = arith.constant 0 : index
    %1027 = vector.load %arg30[%c160, %c0_313] : memref<200x128xf32, #tpu.memory_space<vmem>>, vector<8x128xf32>
    tpu.vector_store %arg30[%c160, %c0_313], %1026 {strides = array<i32>} : memref<200x128xf32, #tpu.memory_space<vmem>>, vector<8x128xf32>,
    %c0_314 = arith.constant 0 : index
    %c0_315 = arith.constant 0 : index
    %1028 = vector.load %arg23[%c0_314, %c0_315] : memref<128x512xbf16, #tpu.memory_space<vmem>>, vector<128x512xbf16>
    %1029 = arith.truncf %1026 : vector<8x128xf32> to vector<8x128xbf16>
    %cst_316 = arith.constant dense<0.000000e+00> : vector<8x512xf32>
    %1030 = tpu.matmul %1029, %1028, %cst_316 {dimension_numbers = #tpu.dot_dimension_numbers<[1], [0], [0], [1], [0, 0, 1, 1], [], []>} : vector<8x128xbf16>, vector<128x512xbf16>, vector<8x512xf32> -> vector<8x512xf32>
    %1031 = arith.addf %395, %1030 : vector<8x512xf32>
    %1032 = vector.extract_strided_slice %1031 {offsets = [0, 0], sizes = [8, 128], strides = [1, 1]} : vector<8x512xf32> to vector<8x128xf32>
    %1033 = arith.negf %1032 : vector<8x128xf32>
    %1034 = math.exp %1033 : vector<8x128xf32>
    %cst_317 = arith.constant 1.000000e+00 : f32
    %1035 = vector.broadcast %cst_317 : f32 to vector<8x128xf32>
    %1036 = arith.addf %1035, %1034 : vector<8x128xf32>
    %1037 = arith.divf %1035, %1036 : vector<8x128xf32>
    %1038 = vector.extract_strided_slice %1031 {offsets = [0, 128], sizes = [8, 128], strides = [1, 1]} : vector<8x512xf32> to vector<8x128xf32>
    %1039 = arith.negf %1038 : vector<8x128xf32>
    %1040 = math.exp %1039 : vector<8x128xf32>
    %cst_318 = arith.constant 1.000000e+00 : f32
    %1041 = vector.broadcast %cst_318 : f32 to vector<8x128xf32>
    %1042 = arith.addf %1041, %1040 : vector<8x128xf32>
    %1043 = arith.divf %1041, %1042 : vector<8x128xf32>
    %1044 = vector.extract_strided_slice %1031 {offsets = [0, 256], sizes = [8, 128], strides = [1, 1]} : vector<8x512xf32> to vector<8x128xf32>
    %1045 = math.tanh %1044 : vector<8x128xf32>
    %1046 = vector.extract_strided_slice %1031 {offsets = [0, 384], sizes = [8, 128], strides = [1, 1]} : vector<8x512xf32> to vector<8x128xf32>
    %1047 = arith.negf %1046 : vector<8x128xf32>
    %1048 = math.exp %1047 : vector<8x128xf32>
    %cst_319 = arith.constant 1.000000e+00 : f32
    %1049 = vector.broadcast %cst_319 : f32 to vector<8x128xf32>
    %1050 = arith.addf %1049, %1048 : vector<8x128xf32>
    %1051 = arith.divf %1049, %1050 : vector<8x128xf32>
    %1052 = arith.mulf %1043, %1024 : vector<8x128xf32>
    %1053 = arith.mulf %1037, %1045 : vector<8x128xf32>
    %1054 = arith.addf %1052, %1053 : vector<8x128xf32>
    %1055 = math.tanh %1054 : vector<8x128xf32>
    %1056 = arith.mulf %1051, %1055 : vector<8x128xf32>
    %c168 = arith.constant 168 : index
    %c0_320 = arith.constant 0 : index
    %1057 = vector.load %arg30[%c168, %c0_320] : memref<200x128xf32, #tpu.memory_space<vmem>>, vector<8x128xf32>
    tpu.vector_store %arg30[%c168, %c0_320], %1056 {strides = array<i32>} : memref<200x128xf32, #tpu.memory_space<vmem>>, vector<8x128xf32>,
    %c0_321 = arith.constant 0 : index
    %c0_322 = arith.constant 0 : index
    %1058 = vector.load %arg23[%c0_321, %c0_322] : memref<128x512xbf16, #tpu.memory_space<vmem>>, vector<128x512xbf16>
    %1059 = arith.truncf %1056 : vector<8x128xf32> to vector<8x128xbf16>
    %cst_323 = arith.constant dense<0.000000e+00> : vector<8x512xf32>
    %1060 = tpu.matmul %1059, %1058, %cst_323 {dimension_numbers = #tpu.dot_dimension_numbers<[1], [0], [0], [1], [0, 0, 1, 1], [], []>} : vector<8x128xbf16>, vector<128x512xbf16>, vector<8x512xf32> -> vector<8x512xf32>
    %1061 = arith.addf %395, %1060 : vector<8x512xf32>
    %1062 = vector.extract_strided_slice %1061 {offsets = [0, 0], sizes = [8, 128], strides = [1, 1]} : vector<8x512xf32> to vector<8x128xf32>
    %1063 = arith.negf %1062 : vector<8x128xf32>
    %1064 = math.exp %1063 : vector<8x128xf32>
    %cst_324 = arith.constant 1.000000e+00 : f32
    %1065 = vector.broadcast %cst_324 : f32 to vector<8x128xf32>
    %1066 = arith.addf %1065, %1064 : vector<8x128xf32>
    %1067 = arith.divf %1065, %1066 : vector<8x128xf32>
    %1068 = vector.extract_strided_slice %1061 {offsets = [0, 128], sizes = [8, 128], strides = [1, 1]} : vector<8x512xf32> to vector<8x128xf32>
    %1069 = arith.negf %1068 : vector<8x128xf32>
    %1070 = math.exp %1069 : vector<8x128xf32>
    %cst_325 = arith.constant 1.000000e+00 : f32
    %1071 = vector.broadcast %cst_325 : f32 to vector<8x128xf32>
    %1072 = arith.addf %1071, %1070 : vector<8x128xf32>
    %1073 = arith.divf %1071, %1072 : vector<8x128xf32>
    %1074 = vector.extract_strided_slice %1061 {offsets = [0, 256], sizes = [8, 128], strides = [1, 1]} : vector<8x512xf32> to vector<8x128xf32>
    %1075 = math.tanh %1074 : vector<8x128xf32>
    %1076 = vector.extract_strided_slice %1061 {offsets = [0, 384], sizes = [8, 128], strides = [1, 1]} : vector<8x512xf32> to vector<8x128xf32>
    %1077 = arith.negf %1076 : vector<8x128xf32>
    %1078 = math.exp %1077 : vector<8x128xf32>
    %cst_326 = arith.constant 1.000000e+00 : f32
    %1079 = vector.broadcast %cst_326 : f32 to vector<8x128xf32>
    %1080 = arith.addf %1079, %1078 : vector<8x128xf32>
    %1081 = arith.divf %1079, %1080 : vector<8x128xf32>
    %1082 = arith.mulf %1073, %1054 : vector<8x128xf32>
    %1083 = arith.mulf %1067, %1075 : vector<8x128xf32>
    %1084 = arith.addf %1082, %1083 : vector<8x128xf32>
    %1085 = math.tanh %1084 : vector<8x128xf32>
    %1086 = arith.mulf %1081, %1085 : vector<8x128xf32>
    %c176 = arith.constant 176 : index
    %c0_327 = arith.constant 0 : index
    %1087 = vector.load %arg30[%c176, %c0_327] : memref<200x128xf32, #tpu.memory_space<vmem>>, vector<8x128xf32>
    tpu.vector_store %arg30[%c176, %c0_327], %1086 {strides = array<i32>} : memref<200x128xf32, #tpu.memory_space<vmem>>, vector<8x128xf32>,
    %c0_328 = arith.constant 0 : index
    %c0_329 = arith.constant 0 : index
    %1088 = vector.load %arg23[%c0_328, %c0_329] : memref<128x512xbf16, #tpu.memory_space<vmem>>, vector<128x512xbf16>
    %1089 = arith.truncf %1086 : vector<8x128xf32> to vector<8x128xbf16>
    %cst_330 = arith.constant dense<0.000000e+00> : vector<8x512xf32>
    %1090 = tpu.matmul %1089, %1088, %cst_330 {dimension_numbers = #tpu.dot_dimension_numbers<[1], [0], [0], [1], [0, 0, 1, 1], [], []>} : vector<8x128xbf16>, vector<128x512xbf16>, vector<8x512xf32> -> vector<8x512xf32>
    %1091 = arith.addf %395, %1090 : vector<8x512xf32>
    %1092 = vector.extract_strided_slice %1091 {offsets = [0, 0], sizes = [8, 128], strides = [1, 1]} : vector<8x512xf32> to vector<8x128xf32>
    %1093 = arith.negf %1092 : vector<8x128xf32>
    %1094 = math.exp %1093 : vector<8x128xf32>
    %cst_331 = arith.constant 1.000000e+00 : f32
    %1095 = vector.broadcast %cst_331 : f32 to vector<8x128xf32>
    %1096 = arith.addf %1095, %1094 : vector<8x128xf32>
    %1097 = arith.divf %1095, %1096 : vector<8x128xf32>
    %1098 = vector.extract_strided_slice %1091 {offsets = [0, 128], sizes = [8, 128], strides = [1, 1]} : vector<8x512xf32> to vector<8x128xf32>
    %1099 = arith.negf %1098 : vector<8x128xf32>
    %1100 = math.exp %1099 : vector<8x128xf32>
    %cst_332 = arith.constant 1.000000e+00 : f32
    %1101 = vector.broadcast %cst_332 : f32 to vector<8x128xf32>
    %1102 = arith.addf %1101, %1100 : vector<8x128xf32>
    %1103 = arith.divf %1101, %1102 : vector<8x128xf32>
    %1104 = vector.extract_strided_slice %1091 {offsets = [0, 256], sizes = [8, 128], strides = [1, 1]} : vector<8x512xf32> to vector<8x128xf32>
    %1105 = math.tanh %1104 : vector<8x128xf32>
    %1106 = vector.extract_strided_slice %1091 {offsets = [0, 384], sizes = [8, 128], strides = [1, 1]} : vector<8x512xf32> to vector<8x128xf32>
    %1107 = arith.negf %1106 : vector<8x128xf32>
    %1108 = math.exp %1107 : vector<8x128xf32>
    %cst_333 = arith.constant 1.000000e+00 : f32
    %1109 = vector.broadcast %cst_333 : f32 to vector<8x128xf32>
    %1110 = arith.addf %1109, %1108 : vector<8x128xf32>
    %1111 = arith.divf %1109, %1110 : vector<8x128xf32>
    %1112 = arith.mulf %1103, %1084 : vector<8x128xf32>
    %1113 = arith.mulf %1097, %1105 : vector<8x128xf32>
    %1114 = arith.addf %1112, %1113 : vector<8x128xf32>
    %1115 = math.tanh %1114 : vector<8x128xf32>
    %1116 = arith.mulf %1111, %1115 : vector<8x128xf32>
    %c184 = arith.constant 184 : index
    %c0_334 = arith.constant 0 : index
    %1117 = vector.load %arg30[%c184, %c0_334] : memref<200x128xf32, #tpu.memory_space<vmem>>, vector<8x128xf32>
    tpu.vector_store %arg30[%c184, %c0_334], %1116 {strides = array<i32>} : memref<200x128xf32, #tpu.memory_space<vmem>>, vector<8x128xf32>,
    %c0_335 = arith.constant 0 : index
    %c0_336 = arith.constant 0 : index
    %1118 = vector.load %arg23[%c0_335, %c0_336] : memref<128x512xbf16, #tpu.memory_space<vmem>>, vector<128x512xbf16>
    %1119 = arith.truncf %1116 : vector<8x128xf32> to vector<8x128xbf16>
    %cst_337 = arith.constant dense<0.000000e+00> : vector<8x512xf32>
    %1120 = tpu.matmul %1119, %1118, %cst_337 {dimension_numbers = #tpu.dot_dimension_numbers<[1], [0], [0], [1], [0, 0, 1, 1], [], []>} : vector<8x128xbf16>, vector<128x512xbf16>, vector<8x512xf32> -> vector<8x512xf32>
    %1121 = arith.addf %395, %1120 : vector<8x512xf32>
    %1122 = vector.extract_strided_slice %1121 {offsets = [0, 0], sizes = [8, 128], strides = [1, 1]} : vector<8x512xf32> to vector<8x128xf32>
    %1123 = arith.negf %1122 : vector<8x128xf32>
    %1124 = math.exp %1123 : vector<8x128xf32>
    %cst_338 = arith.constant 1.000000e+00 : f32
    %1125 = vector.broadcast %cst_338 : f32 to vector<8x128xf32>
    %1126 = arith.addf %1125, %1124 : vector<8x128xf32>
    %1127 = arith.divf %1125, %1126 : vector<8x128xf32>
    %1128 = vector.extract_strided_slice %1121 {offsets = [0, 128], sizes = [8, 128], strides = [1, 1]} : vector<8x512xf32> to vector<8x128xf32>
    %1129 = arith.negf %1128 : vector<8x128xf32>
    %1130 = math.exp %1129 : vector<8x128xf32>
    %cst_339 = arith.constant 1.000000e+00 : f32
    %1131 = vector.broadcast %cst_339 : f32 to vector<8x128xf32>
    %1132 = arith.addf %1131, %1130 : vector<8x128xf32>
    %1133 = arith.divf %1131, %1132 : vector<8x128xf32>
    %1134 = vector.extract_strided_slice %1121 {offsets = [0, 256], sizes = [8, 128], strides = [1, 1]} : vector<8x512xf32> to vector<8x128xf32>
    %1135 = math.tanh %1134 : vector<8x128xf32>
    %1136 = vector.extract_strided_slice %1121 {offsets = [0, 384], sizes = [8, 128], strides = [1, 1]} : vector<8x512xf32> to vector<8x128xf32>
    %1137 = arith.negf %1136 : vector<8x128xf32>
    %1138 = math.exp %1137 : vector<8x128xf32>
    %cst_340 = arith.constant 1.000000e+00 : f32
    %1139 = vector.broadcast %cst_340 : f32 to vector<8x128xf32>
    %1140 = arith.addf %1139, %1138 : vector<8x128xf32>
    %1141 = arith.divf %1139, %1140 : vector<8x128xf32>
    %1142 = arith.mulf %1133, %1114 : vector<8x128xf32>
    %1143 = arith.mulf %1127, %1135 : vector<8x128xf32>
    %1144 = arith.addf %1142, %1143 : vector<8x128xf32>
    %1145 = math.tanh %1144 : vector<8x128xf32>
    %1146 = arith.mulf %1141, %1145 : vector<8x128xf32>
    %c192 = arith.constant 192 : index
    %c0_341 = arith.constant 0 : index
    %1147 = vector.load %arg30[%c192, %c0_341] : memref<200x128xf32, #tpu.memory_space<vmem>>, vector<8x128xf32>
    tpu.vector_store %arg30[%c192, %c0_341], %1146 {strides = array<i32>} : memref<200x128xf32, #tpu.memory_space<vmem>>, vector<8x128xf32>,
    %c0_342 = arith.constant 0 : index
    %c0_343 = arith.constant 0 : index
    %1148 = vector.load %arg30[%c0_342, %c0_343] : memref<200x128xf32, #tpu.memory_space<vmem>>, vector<200x128xf32>
    %c0_344 = arith.constant 0 : index
    %c0_345 = arith.constant 0 : index
    %1149 = vector.load %arg25[%c0_344, %c0_345] : memref<128x2xbf16, #tpu.memory_space<vmem>>, vector<128x2xbf16>
    %1150 = arith.truncf %1148 : vector<200x128xf32> to vector<200x128xbf16>
    %cst_346 = arith.constant dense<0.000000e+00> : vector<200x2xf32>
    %1151 = tpu.matmul %1150, %1149, %cst_346 {dimension_numbers = #tpu.dot_dimension_numbers<[1], [0], [0], [1], [0, 0, 1, 1], [], []>} : vector<200x128xbf16>, vector<128x2xbf16>, vector<200x2xf32> -> vector<200x2xf32>
    %c0_347 = arith.constant 0 : index
    %c0_348 = arith.constant 0 : index
    %1152 = vector.load %arg26[%c0_347, %c0_348] : memref<1x2xf32, #tpu.memory_space<vmem>>, vector<1x2xf32>
    %1153 = vector.broadcast %1152 : vector<1x2xf32> to vector<200x2xf32>
    %1154 = arith.addf %1151, %1153 : vector<200x2xf32>
    %c0_349 = arith.constant 0 : index
    %c0_350 = arith.constant 0 : index
    %1155 = vector.load %arg27[%c0_349, %c0_350] : memref<200x2xf32, #tpu.memory_space<vmem>>, vector<200x2xf32>
    tpu.vector_store %arg27[%c0_349, %c0_350], %1154 {strides = array<i32>} : memref<200x2xf32, #tpu.memory_space<vmem>>, vector<200x2xf32>,
    return
  }
  func.func @transform_0(%arg0: i32) -> (i32, i32) {
    %c0_i32 = arith.constant 0 : i32
    %c0_i32_0 = arith.constant 0 : i32
    %c0_i32_1 = arith.constant 0 : i32
    return %c0_i32, %c0_i32_0 : i32, i32
  }
  func.func @transform_1(%arg0: i32) -> (i32, i32, i32) {
    %c0_i32 = arith.constant 0 : i32
    %c0_i32_0 = arith.constant 0 : i32
    %c0_i32_1 = arith.constant 0 : i32
    %c0_i32_2 = arith.constant 0 : i32
    return %c0_i32, %c0_i32_0, %c0_i32_1 : i32, i32, i32
  }
  func.func @transform_2(%arg0: i32) -> (i32, i32, i32) {
    %c0_i32 = arith.constant 0 : i32
    %c0_i32_0 = arith.constant 0 : i32
    %c0_i32_1 = arith.constant 0 : i32
    %c0_i32_2 = arith.constant 0 : i32
    return %c0_i32, %c0_i32_0, %c0_i32_1 : i32, i32, i32
  }
  func.func @transform_3(%arg0: i32) -> (i32, i32, i32) {
    %c0_i32 = arith.constant 0 : i32
    %c0_i32_0 = arith.constant 0 : i32
    %c0_i32_1 = arith.constant 0 : i32
    %c0_i32_2 = arith.constant 0 : i32
    return %c0_i32, %c0_i32_0, %c0_i32_1 : i32, i32, i32
  }
  func.func @transform_4(%arg0: i32) -> (i32, i32) {
    %c0_i32 = arith.constant 0 : i32
    %c0_i32_0 = arith.constant 0 : i32
    %c0_i32_1 = arith.constant 0 : i32
    return %c0_i32, %c0_i32_0 : i32, i32
  }
  func.func @transform_5(%arg0: i32) -> (i32, i32) {
    %c0_i32 = arith.constant 0 : i32
    %c0_i32_0 = arith.constant 0 : i32
    %c0_i32_1 = arith.constant 0 : i32
    return %c0_i32, %c0_i32_0 : i32, i32
  }
  func.func @transform_6(%arg0: i32) -> (i32, i32) {
    %c0_i32 = arith.constant 0 : i32
    %c0_i32_0 = arith.constant 0 : i32
    %c0_i32_1 = arith.constant 0 : i32
    return %c0_i32, %c0_i32_0 : i32, i32
  }
  func.func @transform_7(%arg0: i32) -> (i32, i32) {
    %c0_i32 = arith.constant 0 : i32
    %c0_i32_0 = arith.constant 0 : i32
    %c0_i32_1 = arith.constant 0 : i32
    return %c0_i32, %c0_i32_0 : i32, i32
  }
  func.func @transform_8(%arg0: i32) -> (i32, i32) {
    %c0_i32 = arith.constant 0 : i32
    %c0_i32_0 = arith.constant 0 : i32
    %c0_i32_1 = arith.constant 0 : i32
    return %c0_i32, %c0_i32_0 : i32, i32
  }
  func.func @transform_9(%arg0: i32) -> (i32, i32) {
    %c0_i32 = arith.constant 0 : i32
    %c0_i32_0 = arith.constant 0 : i32
    %c0_i32_1 = arith.constant 0 : i32
    return %c0_i32, %c0_i32_0 : i32, i32
  }
  func.func @transform_10(%arg0: i32) -> (i32, i32) {
    %c0_i32 = arith.constant 0 : i32
    %c0_i32_0 = arith.constant 0 : i32
    %c0_i32_1 = arith.constant 0 : i32
    return %c0_i32, %c0_i32_0 : i32, i32
  }
  func.func @transform_11(%arg0: i32) -> (i32, i32) {
    %c0_i32 = arith.constant 0 : i32
    %c0_i32_0 = arith.constant 0 : i32
    %c0_i32_1 = arith.constant 0 : i32
    return %c0_i32, %c0_i32_0 : i32, i32
  }
  func.func @transform_12(%arg0: i32) -> (i32, i32) {
    %c0_i32 = arith.constant 0 : i32
    %c0_i32_0 = arith.constant 0 : i32
    %c0_i32_1 = arith.constant 0 : i32
    return %c0_i32, %c0_i32_0 : i32, i32
  }
  func.func @transform_13(%arg0: i32) -> (i32, i32) {
    %c0_i32 = arith.constant 0 : i32
    %c0_i32_0 = arith.constant 0 : i32
    %c0_i32_1 = arith.constant 0 : i32
    return %c0_i32, %c0_i32_0 : i32, i32
  }
  func.func @transform_14(%arg0: i32) -> (i32, i32, i32) {
    %c0_i32 = arith.constant 0 : i32
    %c0_i32_0 = arith.constant 0 : i32
    %c0_i32_1 = arith.constant 0 : i32
    %c0_i32_2 = arith.constant 0 : i32
    return %c0_i32, %c0_i32_0, %c0_i32_1 : i32, i32, i32
  }
  func.func @transform_15(%arg0: i32) -> (i32, i32) {
    %c0_i32 = arith.constant 0 : i32
    %c0_i32_0 = arith.constant 0 : i32
    %c0_i32_1 = arith.constant 0 : i32
    return %c0_i32, %c0_i32_0 : i32, i32
  }
  func.func @transform_16(%arg0: i32) -> (i32, i32, i32) {
    %c0_i32 = arith.constant 0 : i32
    %c0_i32_0 = arith.constant 0 : i32
    %c0_i32_1 = arith.constant 0 : i32
    %c0_i32_2 = arith.constant 0 : i32
    return %c0_i32, %c0_i32_0, %c0_i32_1 : i32, i32, i32
  }
  func.func @transform_17(%arg0: i32) -> (i32, i32) {
    %c0_i32 = arith.constant 0 : i32
    %c0_i32_0 = arith.constant 0 : i32
    %c0_i32_1 = arith.constant 0 : i32
    return %c0_i32, %c0_i32_0 : i32, i32
  }
  func.func @transform_18(%arg0: i32) -> (i32, i32) {
    %c0_i32 = arith.constant 0 : i32
    %c0_i32_0 = arith.constant 0 : i32
    %c0_i32_1 = arith.constant 0 : i32
    return %c0_i32, %c0_i32_0 : i32, i32
  }
  func.func @transform_19(%arg0: i32) -> (i32, i32) {
    %c0_i32 = arith.constant 0 : i32
    %c0_i32_0 = arith.constant 0 : i32
    %c0_i32_1 = arith.constant 0 : i32
    return %c0_i32, %c0_i32_0 : i32, i32
  }
  func.func @transform_20(%arg0: i32) -> (i32, i32) {
    %c0_i32 = arith.constant 0 : i32
    %c0_i32_0 = arith.constant 0 : i32
    %c0_i32_1 = arith.constant 0 : i32
    return %c0_i32, %c0_i32_0 : i32, i32
  }
  func.func @transform_21(%arg0: i32) -> (i32, i32) {
    %c0_i32 = arith.constant 0 : i32
    %c0_i32_0 = arith.constant 0 : i32
    %c0_i32_1 = arith.constant 0 : i32
    return %c0_i32, %c0_i32_0 : i32, i32
  }
  func.func @transform_22(%arg0: i32) -> (i32, i32) {
    %c0_i32 = arith.constant 0 : i32
    %c0_i32_0 = arith.constant 0 : i32
    %c0_i32_1 = arith.constant 0 : i32
    return %c0_i32, %c0_i32_0 : i32, i32
  }
  func.func @transform_23(%arg0: i32) -> (i32, i32) {
    %c0_i32 = arith.constant 0 : i32
    %c0_i32_0 = arith.constant 0 : i32
    %c0_i32_1 = arith.constant 0 : i32
    return %c0_i32, %c0_i32_0 : i32, i32
  }
  func.func @transform_24(%arg0: i32) -> (i32, i32) {
    %c0_i32 = arith.constant 0 : i32
    %c0_i32_0 = arith.constant 0 : i32
    %c0_i32_1 = arith.constant 0 : i32
    return %c0_i32, %c0_i32_0 : i32, i32
  }
  func.func @transform_25(%arg0: i32) -> (i32, i32) {
    %c0_i32 = arith.constant 0 : i32
    %c0_i32_0 = arith.constant 0 : i32
    %c0_i32_1 = arith.constant 0 : i32
    return %c0_i32, %c0_i32_0 : i32, i32
  }
  func.func @transform_26(%arg0: i32) -> (i32, i32) {
    %c0_i32 = arith.constant 0 : i32
    %c0_i32_0 = arith.constant 0 : i32
    %c0_i32_1 = arith.constant 0 : i32
    return %c0_i32, %c0_i32_0 : i32, i32
  }
  func.func @transform_27(%arg0: i32) -> (i32, i32) {
    %c0_i32 = arith.constant 0 : i32
    %c0_i32_0 = arith.constant 0 : i32
    %c0_i32_1 = arith.constant 0 : i32
    return %c0_i32, %c0_i32_0 : i32, i32
  }
  func.func @transform_28(%arg0: i32) -> (i32, i32) {
    %c0_i32 = arith.constant 0 : i32
    %c0_i32_0 = arith.constant 0 : i32
    %c0_i32_1 = arith.constant 0 : i32
    return %c0_i32, %c0_i32_0 : i32, i32
  }
}

</mosaic_0001>

<bundles_post_ra>
// kernel: generator_forward.1
= control target key start
LH: loop header
LB: loop body
LE: loop exit
PB: predicated region body
PF: predicated region fallthrough
CT: control target
= control target key end

     0   :  { %s20009_s0 = inlined_call_operand.vmem [shape: f32[128,11], index: 0, kind: input, shape index: {}]   ;;  %s20010_s1 = inlined_call_operand.vmem [shape: f32[3,26,8], index: 1, kind: input, shape index: {}]   ;;  %s20011_s2 = inlined_call_operand.vmem [shape: f32[3,24,26], index: 2, kind: input, shape index: {}]   ;;  %s20012_s3 = inlined_call_operand.vmem [shape: f32[3,24,24], index: 3, kind: input, shape index: {}]   ;;  %s20013_s4 = inlined_call_operand.vmem [shape: f32[40,24], index: 4, kind: input, shape index: {}]   ;;  %s20014_s5 = inlined_call_operand.vmem [shape: f32[40,24], index: 5, kind: input, shape index: {}]   ;;  %s20015_s6 = inlined_call_operand.vmem [shape: f32[8,5], index: 6, kind: input, shape index: {}]   ;;  %s20016_s7 = inlined_call_operand.vmem [shape: bf16[11,32], index: 7, kind: input, shape index: {}]   ;;  %s20017_s8 = inlined_call_operand.vmem [shape: f32[1,32], index: 8, kind: input, shape index: {}]   ;;  %s20018_s9 = inlined_call_operand.vmem [shape: bf16[32,512], index: 9, kind: input, shape index: {}]   ;;  %s20019_s10 = inlined_call_operand.vmem [shape: bf16[128,512], index: 10, kind: input, shape index: {}]   ;;  %s20020_s11 = inlined_call_operand.vmem [shape: f32[1,512], index: 11, kind: input, shape index: {}]   ;;  %s20021_s12 = inlined_call_operand.vmem [shape: bf16[128,32], index: 12, kind: input, shape index: {}]   ;;  %s20022_s13 = inlined_call_operand.vmem [shape: f32[1,32], index: 13, kind: input, shape index: {}]   ;;  %s20023_s14 = inlined_call_operand.vmem [shape: bf16[3,192,64], index: 14, kind: input, shape index: {}]   ;;  %s20024_s15 = inlined_call_operand.vmem [shape: f32[1,64], index: 15, kind: input, shape index: {}]   ;;  %s20025_s16 = inlined_call_operand.vmem [shape: bf16[3,64,32], index: 16, kind: input, shape index: {}]   ;;  %s20026_s17 = inlined_call_operand.vmem [shape: f32[1,32], index: 17, kind: input, shape index: {}]   ;;  %s20027_s18 = inlined_call_operand.vmem [shape: bf16[192,5], index: 18, kind: input, shape index: {}]   ;;  %s20028_s19 = inlined_call_operand.vmem [shape: f32[1,5], index: 19, kind: input, shape index: {}]   ;;  %s20029_s20 = inlined_call_operand.vmem [shape: bf16[192,512], index: 20, kind: input, shape index: {}]   ;;  %s20030_s21 = inlined_call_operand.vmem [shape: bf16[5,512], index: 21, kind: input, shape index: {}]   ;;  %s20031_s22 = inlined_call_operand.vmem [shape: bf16[128,512], index: 22, kind: input, shape index: {}]   ;;  %s20032_s23 = inlined_call_operand.vmem [shape: f32[1,512], index: 23, kind: input, shape index: {}]   ;;  %s20033_s24 = inlined_call_operand.vmem [shape: bf16[128,2], index: 24, kind: input, shape index: {}]   ;;  %s20034_s25 = inlined_call_operand.vmem [shape: f32[1,2], index: 25, kind: input, shape index: {}]   ;;  %s20035_s26 = inlined_call_operand.vmem [shape: f32[200,2], index: 26, kind: output, shape index: {0}]   ;;  %s20036_s27 = inlined_call_operand.hbm [shape: f32[2,3], index: 27, kind: output, shape index: {1}]   ;;  %s20037_s28 = inlined_call_operand.hbm [shape: f32[2,2], index: 28, kind: output, shape index: {2}]  }
   0x1   :  { %20062 = sst [smem:[#allocation20_spill]] %s20009_s0 }
   0x2   :  { %20063 = sst [smem:[#allocation21_spill]] %s20010_s1 }
   0x3   :  { %20064 = sst [smem:[#allocation22_spill]] %s20011_s2 }
   0x4   :  { %20065 = sst [smem:[#allocation23_spill]] %s20012_s3 }
   0x5   :  { %20066 = sst [smem:[#allocation24_spill]] %s20013_s4 }
   0x6   :  { %20067 = sst [smem:[#allocation25_spill]] %s20014_s5 }
   0x7   :  { %20068 = sst [smem:[#allocation26_spill]] %s20015_s6 }
   0x8   :  { %20069 = sst [smem:[#allocation27_spill]] %s20016_s7 }
   0x9   :  { %20070 = sst [smem:[#allocation28_spill]] %s20017_s8 }
   0xa   :  { %20071 = sst [smem:[#allocation29_spill]] %s20018_s9 }
   0xb   :  { %20072 = sst [smem:[#allocation30_spill]] %s20019_s10 }
   0xc   :  { %20073 = sst [smem:[#allocation31_spill]] %s20020_s11 }
   0xd   :  { %20074 = sst [smem:[#allocation32_spill]] %s20021_s12 }
   0xe   :  { %34 = vsyncpa [#allocation4], 0  ;;  %s20075_s9 = sld [smem:[#allocation27_spill]]  ;;  %vm152_vm0 = vcmask 1044480   ;;  %vm153_vm1 = vcmask 1045504   ;;  %s20076_s6 = sld [smem:[#allocation20_spill]] }
   0xf   :  { %v15742_v3 = vmov 65535   ;;  %vm127_vm2 = vcmask 89088   ;;  %s20077_s2 = sld [smem:[#allocation29_spill]]  ;;  %v20049_v37 = vmov 0   ;;  %s20078_s1 = sld [smem:[#allocation30_spill]] }
  0x10   :  { %v154_v4 = vsel %vm152_vm0, 4294967295, %v15742_v3  ;;  %439 = vmatprep.mubr.bf16.mxu1 %v20049_v37 }
  0x11   :  { %v155_v6 = vsel %vm153_vm1, %v154_v4, 0 }
  0x14   :  { %v14449_v0 = vld [vmem:[%s20075_s9] sm:$0x3f]   ;;  %v90_v2 = vld [vmem:[%s20076_s6 + $0x8] sm:$0xff]  ;;  %v91_v7 = vld [vmem:[%s20076_s6 + $0x10] sm:$0xff] }
  0x15   :  { %v89_v1 = vld [vmem:[%s20076_s6] sm:$0xff]  ;;  %v92_v8 = vld [vmem:[%s20076_s6 + $0x18] sm:$0xff]  ;;  %v157_v9 = vand.u32 %v14449_v0, %v155_v6  ;;  %v94_v11 = vld [vmem:[%s20076_s6 + $0x28] sm:$0xff] }
  0x16   :  { %v107_v5 = vpack.c.bf16 %v90_v2, %v89_v1  ;;  %v93_v10 = vld [vmem:[%s20076_s6 + $0x20] sm:$0xff]  ;;  %v108_v12 = vpack.c.bf16 %v92_v8, %v91_v7  ;;  %v95_v14 = vld [vmem:[%s20076_s6 + $0x30] sm:$0xff]  ;;  %v96_v15 = vld [vmem:[%s20076_s6 + $0x38] sm:$0xff] }
  0x17   :  { %13954 = vmatprep.subr.bf16.mxu0 %v157_v9  ;;  %v109_v13 = vpack.c.bf16 %v94_v11, %v93_v10  ;;  %v97_v16 = vld [vmem:[%s20076_s6 + $0x40] sm:$0xff]  ;;  %v98_v17 = vld [vmem:[%s20076_s6 + $0x48] sm:$0xff]  ;;  %v110_v18 = vpack.c.bf16 %v96_v15, %v95_v14  ;;  %v99_v20 = vld [vmem:[%s20076_s6 + $0x50] sm:$0xff] }
  0x18   :  { %13956 = vmatprep.mubr.msk.bf16.mxu0 %vm127_vm2, %v107_v5  ;;  %13955 = vmatpush3.bf16.msra.mxu0 %v157_v9  ;;  %v111_v19 = vpack.c.bf16 %v98_v17, %v97_v16  ;;  %v100_v21 = vld [vmem:[%s20076_s6 + $0x58] sm:$0xff]  ;;  %v101_v22 = vld [vmem:[%s20076_s6 + $0x60] sm:$0xff]  ;;  %v102_v23 = vld [vmem:[%s20076_s6 + $0x68] sm:$0xff] }
  0x19   :  { %v112_v24 = vpack.c.bf16 %v100_v21, %v99_v20  ;;  %v113_v25 = vpack.c.bf16 %v102_v23, %v101_v22  ;;  %v103_v26 = vld [vmem:[%s20076_s6 + $0x70] sm:$0xff]  ;;  %v104_v27 = vld [vmem:[%s20076_s6 + $0x78] sm:$0xff] }
  0x1a   :  { %v114_v28 = vpack.c.bf16 %v104_v27, %v103_v26  ;;  %v14452_v29 = vld [vmem:[%s20077_s2 + $0xc] ss:$16 sps:$4 sm:$0xff]   ;;  %v14453_v30 = vld [vmem:[%s20077_s2 + $0x4] ss:$16 sps:$4 sm:$0xff]   ;;  %v14450_v31 = vld [vmem:[%s20077_s2 + $0x8] ss:$16 sps:$4 sm:$0xff]  }
  0x1b   :  { %13957 = vmatmul.mubr.msk.bf16.vlgmr.msra.gmra.mrb[0].mxu0 %vm127_vm2, %v108_v12  ;;  %v14455_v32 = vld [vmem:[%s20077_s2] ss:$16 sps:$4 sm:$0xff]   ;;  %520 = vmatprep.subr.bf16.mxu0 %v14452_v29  ;;  %v14456_v33 = vld [vmem:[%s20077_s2 + $0x24] ss:$16 sps:$4 sm:$0xff]   ;;  %v14460_v34 = vld [vmem:[%s20077_s2 + $0x2c] ss:$16 sps:$4 sm:$0xff]  }
  0x1c   :  { %13960 = vmatprep.mubr.msk.bf16.mxu0 %vm127_vm2, %v109_v13  ;;  %407 = vmatprep.subr.bf16.mxu1 %v14453_v30  ;;  %v14458_v35 = vld [vmem:[%s20077_s2 + $0x28] ss:$16 sps:$4 sm:$0xff]   ;;  %v14461_v36 = vld [vmem:[%s20077_s2 + $0x20] ss:$16 sps:$4 sm:$0xff]   ;;  %v15988_v38 = vld [vmem:[%s20078_s1 + $0x4] ss:$16 sps:$4 sm:$0xff]  }
  0x1d   :  { %521 = vmatpush1.bf16.msra.mxu0 %v14450_v31  ;;  %408 = vmatpush1.bf16.msra.mxu1 %v14455_v32  ;;  %v15994_v39 = vld [vmem:[%s20078_s1 + $0xc] ss:$16 sps:$4 sm:$0xff]  }
  0x1e   :  { %409 = vmatprep.subr.bf16.mxu1 %v14456_v33  ;;  %522 = vmatprep.subr.bf16.mxu0 %v14460_v34 }
  0x21   :  { %410 = vmatpush1.bf16.msra.mxu1 %v14461_v36  ;;  %523 = vmatpush1.bf16.msra.mxu0 %v14458_v35 }
  0x22   :  { %825 = vmatprep.subr.bf16.mxu1 %v15988_v38  ;;  %868 = vmatprep.subr.bf16.mxu0 %v15994_v39 }
  0x23   :  { %13961 = vmatmul.mubr.msk.bf16.gmra.mrb[4].mxu0 %vm127_vm2, %v110_v18 }
  0x24   :  { %13964 = vmatprep.mubr.msk.bf16.mxu0 %vm127_vm2, %v111_v19 }
  0x2b   :  { %13965 = vmatmul.mubr.msk.bf16.gmra.mrb[8].mxu0 %vm127_vm2, %v112_v24 }
  0x2c   :  { %13968 = vmatprep.mubr.msk.bf16.mxu0 %vm127_vm2, %v113_v25 }
  0x33   :  { %13969 = vmatmul.mubr.msk.bf16.gmra.mrb[12].mxu0 %vm127_vm2, %v114_v28 }
  0x34   :  { %552 = vmatprep.mubr.bf16.mxu0 %v20049_v37 }
  0x35   :  { %35 = vsyncpa [#allocation6], 0  ;;  %s20079_s5 = sld [smem:[#allocation28_spill]]  ;;  %vm382_vm7 = vcmask 261120   ;;  %v16010_v62 = vld [vmem:[%s20078_s1] ss:$16 sps:$4 sm:$0xff]  }
  0x36   :  { %v16015_v63 = vld [vmem:[%s20078_s1 + $0x8] ss:$16 sps:$4 sm:$0xff]   ;;  %v16021_v2 = vld [vmem:[%s20078_s1 + $0x24] ss:$16 sps:$4 sm:$0xff]   ;;  %v16026_v4 = vld [vmem:[%s20078_s1 + $0x2c] ss:$16 sps:$4 sm:$0xff]  }
  0x37   :  { %v16034_v8 = vld [vmem:[%s20078_s1 + $0x20] ss:$16 sps:$4 sm:$0xff]   ;;  %v16042_v11 = vld [vmem:[%s20078_s1 + $0x44] ss:$16 sps:$4 sm:$0xff]   ;;  %v16049_v14 = vld [vmem:[%s20078_s1 + $0x28] ss:$16 sps:$4 sm:$0xff]  }
  0x38   :  { %v16056_v17 = vld [vmem:[%s20078_s1 + $0x4c] ss:$16 sps:$4 sm:$0xff]   ;;  %v16065_v25 = vld [vmem:[%s20078_s1 + $0x40] ss:$16 sps:$4 sm:$0xff]   ;;  %v16071_v26 = vld [vmem:[%s20078_s1 + $0x48] ss:$16 sps:$4 sm:$0xff]  }
  0x39   :  { %v16078_v29 = vld [vmem:[%s20078_s1 + $0x64] ss:$16 sps:$4 sm:$0xff]   ;;  %v16084_v30 = vld [vmem:[%s20078_s1 + $0x6c] ss:$16 sps:$4 sm:$0xff]   ;;  %v16092_v34 = vld [vmem:[%s20078_s1 + $0x60] ss:$16 sps:$4 sm:$0xff]  }
  0x3a   :  { %s20080_s29 = sld [smem:[#allocation31_spill]]  ;;  %s20081_s3 = sld [smem:[#allocation32_spill]] }
  0x3b   :  { %v16000_v40 = vld [vmem:[%s20079_s5] ss:$0 sm:$0xff]  ;;  %s20082_s11 = sld [smem:[#allocation21_spill]]  ;;  %s15746_s7 = smov 64  }
  0x3c   :  { %s20086_s2 = sld [smem:[#allocation23_spill]]  ;;  %s20088_s4 = sld [smem:[#allocation25_spill]] }
  0xee   :  { %v13958_v41 = vpop.f32.mrb[0].mxu0 }
  0xef   :  { %v202_v42 = vadd.f32 %v13958_v41, %v16000_v40  ;;  %v193_v43 = vpop.f32.mrb[1].mxu0  ;;  %v16100_v41 = vld [vmem:[%s20078_s1 + $0x84] ss:$16 sps:$4 sm:$0xff]  }
  0xf0   :  { %v194_v44 = vadd.f32 %v16000_v40, %v193_v43  ;;  %v13959_v45 = vpop.f32.mrb[2].mxu0 }
  0xf1   :  { %v274_v46 = vmul.f32 0.1, %v202_v42  ;;  %v205_v47 = vadd.f32 %v13959_v45, %v16000_v40  ;;  %v196_v48 = vpop.f32.mrb[3].mxu0  ;;  %vm258_vm3 = vcmp.ge.f32.partialorder %v202_v42, 0.0 }
  0xf2   :  { %v272_v49 = vmul.f32 0.1, %v194_v44  ;;  %v197_v50 = vadd.f32 %v16000_v40, %v196_v48  ;;  %vm256_vm4 = vcmp.ge.f32.partialorder %v194_v44, 0.0 }
  0xf3   :  { %vm259_vm5 = vcmp.ge.f32.partialorder %v205_v47, 0.0  ;;  %v275_v51 = vmul.f32 0.1, %v205_v47  ;;  %v290_v53 = vsel %vm258_vm3, %v202_v42, %v274_v46 }
  0xf4   :  { %vm257_vm6 = vcmp.ge.f32.partialorder %v197_v50, 0.0  ;;  %v273_v52 = vmul.f32 0.1, %v197_v50  ;;  %v288_v55 = vsel %vm256_vm4, %v194_v44, %v272_v49  ;;  %v16107_v44 = vld [vmem:[%s20078_s1 + $0x68] ss:$16 sps:$4 sm:$0xff]   ;;  %vm15745_vm4 = vmmov 0  }
  0xf5   :  { %v291_v54 = vsel %vm259_vm5, %v205_v47, %v275_v51  ;;  %v16114_v47 = vld [vmem:[%s20078_s1 + $0x8c] ss:$16 sps:$4 sm:$0xff]   ;;  %vm2087_vm5 = vcmask 64512  }
  0xf6   :  { %v313_v56 = vpack.c.bf16 %v291_v54, %v290_v53  ;;  %v289_v57 = vsel %vm257_vm6, %v197_v50, %v273_v52  ;;  %v13962_v58 = vpop.f32.mrb[4].mxu0  ;;  %vm2405_vm6 = vcmask 523264  }
  0xf7   :  { %v312_v59 = vpack.c.bf16 %v289_v57, %v288_v55  ;;  %v218_v60 = vadd.f32 %v13962_v58, %v16000_v40  ;;  %v209_v61 = vpop.f32.mrb[5].mxu0  ;;  %v16125_v55 = vld [vmem:[%s20078_s1 + $0x80] ss:$16 sps:$4 sm:$0xff]  }
  0xf8   :  { %v210_v0 = vadd.f32 %v16000_v40, %v209_v61  ;;  %v13963_v1 = vpop.f32.mrb[6].mxu0 }
  0xf9   :  { %vm262_vm8 = vcmp.ge.f32.partialorder %v218_v60, 0.0  ;;  %v278_v5 = vmul.f32 0.1, %v218_v60  ;;  %12579 = vmatmul.mubr.msk.bf16.vlgmr.msra.gmra.mrb[0].mxu1 %vm382_vm7, %v312_v59  ;;  %12587 = vmatmul.mubr.msk.bf16.vlgmr.msra.gmra.mrb[16].mxu0 %vm382_vm7, %v312_v59  ;;  %v221_v6 = vadd.f32 %v13963_v1, %v16000_v40  ;;  %v212_v7 = vpop.f32.mrb[7].mxu0  ;;  %v16138_v59 = vld [vmem:[%s20078_s1 + $0xa4] ss:$16 sps:$4 sm:$0xff]  }
  0xfa   :  { %vm260_vm9 = vcmp.ge.f32.partialorder %v210_v0, 0.0  ;;  %v276_v9 = vmul.f32 0.1, %v210_v0  ;;  %v213_v10 = vadd.f32 %v16000_v40, %v212_v7  ;;  %449 = vmatprep.mubr.bf16.mxu1 %v20049_v37  ;;  %562 = vmatprep.mubr.bf16.mxu0 %v20049_v37 }
  0xfb   :  { %v294_v12 = vsel %vm262_vm8, %v218_v60, %v278_v5  ;;  %vm263_vm10 = vcmp.ge.f32.partialorder %v221_v6, 0.0  ;;  %v279_v13 = vmul.f32 0.1, %v221_v6  ;;  %826 = vmatpush1.bf16.msra.mxu1 %v16010_v62  ;;  %869 = vmatpush1.bf16.msra.mxu0 %v16015_v63  ;;  %v16144_v60 = vld [vmem:[%s20078_s1 + $0xac] ss:$16 sps:$4 sm:$0xff]   ;;  %vm2728_vm8 = vcmask 1041408  }
  0xfc   :  { %v292_v15 = vsel %vm260_vm9, %v210_v0, %v276_v9  ;;  %vm261_vm11 = vcmp.ge.f32.partialorder %v213_v10, 0.0  ;;  %v277_v16 = vmul.f32 0.1, %v213_v10  ;;  %827 = vmatprep.subr.bf16.mxu1 %v16021_v2  ;;  %870 = vmatprep.subr.bf16.mxu0 %v16026_v4  ;;  %v16152_v5 = vld [vmem:[%s20078_s1 + $0xa0] ss:$16 sps:$4 sm:$0xff]   ;;  %vm15748_vm9 = vmmov 1  }
  0xfd   :  { %v295_v18 = vsel %vm263_vm10, %v221_v6, %v279_v13  ;;  %v16160_v9 = vld [vmem:[%s20078_s1 + $0xa8] ss:$16 sps:$4 sm:$0xff]   ;;  %v16167_v13 = vld [vmem:[%s20078_s1 + $0xc4] ss:$16 sps:$4 sm:$0xff]   ;;  %vm17001_vm10 = vmpackc.low %vm2728_vm8, %vm15748_vm9  ;;  %vm3962_vm9 = vcmask 785408  }
  0xfe   :  { %v16058_v19 = vpack.c.bf16 %v295_v18, %v294_v12  ;;  %v293_v20 = vsel %vm261_vm11, %v213_v10, %v277_v16  ;;  %v13966_v21 = vpop.f32.mrb[8].mxu0  ;;  %v16174_v16 = vld [vmem:[%s20078_s1 + $0xcc] ss:$16 sps:$4 sm:$0xff]   ;;  %vm2718_vm11 = vcmask 211968  }
  0xff   :  { %v314_v22 = vpack.c.bf16 %v293_v20, %v292_v15  ;;  %828 = vmatpush1.bf16.msra.mxu1 %v16034_v8  ;;  %v234_v23 = vadd.f32 %v13966_v21, %v16000_v40  ;;  %v225_v24 = vpop.f32.mrb[9].mxu0  ;;  %871 = vmatpush1.bf16.msra.mxu0 %v16049_v14 }
 0x100   :  { %v226_v27 = vadd.f32 %v16000_v40, %v225_v24  ;;  %v13967_v28 = vpop.f32.mrb[10].mxu0  ;;  %829 = vmatprep.subr.bf16.mxu1 %v16042_v11  ;;  %872 = vmatprep.subr.bf16.mxu0 %v16056_v17  ;;  %v16186_v24 = vld [vmem:[%s20078_s1 + $0xc8] ss:$16 sps:$4 sm:$0xff]  }
 0x101   :  { %12580 = vmatmul.mubr.msk.bf16.gmra.mrb[4].mxu1 %vm382_vm7, %v313_v56  ;;  %12588 = vmatmul.mubr.msk.bf16.gmra.mrb[20].mxu0 %vm382_vm7, %v313_v56  ;;  %vm266_vm12 = vcmp.ge.f32.partialorder %v234_v23, 0.0  ;;  %v282_v31 = vmul.f32 0.1, %v234_v23  ;;  %v237_v32 = vadd.f32 %v13967_v28, %v16000_v40  ;;  %v228_v33 = vpop.f32.mrb[11].mxu0  ;;  %v16131_v56 = vld [vmem:[%s20078_s1 + $0x88] ss:$16 sps:$4 sm:$0xff]  }
 0x102   :  { %459 = vmatprep.mubr.bf16.mxu1 %v20049_v37  ;;  %572 = vmatprep.mubr.bf16.mxu0 %v20049_v37  ;;  %vm264_vm13 = vcmp.ge.f32.partialorder %v226_v27, 0.0  ;;  %v280_v35 = vmul.f32 0.1, %v226_v27  ;;  %v229_v36 = vadd.f32 %v16000_v40, %v228_v33  ;;  %v16198_v28 = vld [vmem:[%s20078_s1 + $0xec] ss:$16 sps:$4 sm:$0xff]  }
 0x103   :  { %v298_v42 = vsel %vm266_vm12, %v234_v23, %v282_v31  ;;  %vm267_vm14 = vcmp.ge.f32.partialorder %v237_v32, 0.0  ;;  %v283_v43 = vmul.f32 0.1, %v237_v32  ;;  %830 = vmatpush1.bf16.msra.mxu1 %v16065_v25  ;;  %873 = vmatpush1.bf16.msra.mxu0 %v16071_v26  ;;  %v16181_v23 = vld [vmem:[%s20078_s1 + $0xc0] ss:$16 sps:$4 sm:$0xff]  }
 0x104   :  { %v296_v45 = vsel %vm264_vm13, %v226_v27, %v280_v35  ;;  %vm265_vm15 = vcmp.ge.f32.partialorder %v229_v36, 0.0  ;;  %v281_v46 = vmul.f32 0.1, %v229_v36  ;;  %831 = vmatprep.subr.bf16.mxu1 %v16078_v29  ;;  %874 = vmatprep.subr.bf16.mxu0 %v16084_v30  ;;  %v16193_v27 = vld [vmem:[%s20078_s1 + $0xe4] ss:$16 sps:$4 sm:$0xff]  }
 0x105   :  { %v299_v48 = vsel %vm267_vm14, %v237_v32, %v283_v43  ;;  %v16211_v31 = vld [vmem:[%s20078_s1 + $0xe0] ss:$16 sps:$4 sm:$0xff]   ;;  %v16216_v32 = vld [vmem:[%s20078_s1 + $0xe8] ss:$16 sps:$4 sm:$0xff]  }
 0x106   :  { %v16116_v49 = vpack.c.bf16 %v299_v48, %v298_v42  ;;  %v297_v50 = vsel %vm265_vm15, %v229_v36, %v281_v46  ;;  %v13970_v51 = vpop.f32.mrb[12].mxu0  ;;  %v320_v36 = vld [vmem:[%s20080_s29] sm:$0xf]  ;;  %vm3344_vm15 = vcmask 195584  }
 0x107   :  { %v16118_v52 = vpack.c.bf16 %v297_v50, %v296_v45  ;;  %832 = vmatpush1.bf16.msra.mxu1 %v16092_v34  ;;  %v250_v53 = vadd.f32 %v13970_v51, %v16000_v40  ;;  %v241_v54 = vpop.f32.mrb[13].mxu0  ;;  %875 = vmatpush1.bf16.msra.mxu0 %v16107_v44 }
 0x108   :  { %v242_v57 = vadd.f32 %v16000_v40, %v241_v54  ;;  %v13971_v58 = vpop.f32.mrb[14].mxu0  ;;  %833 = vmatprep.subr.bf16.mxu1 %v16100_v41  ;;  %876 = vmatprep.subr.bf16.mxu0 %v16114_v47 }
 0x109   :  { %12581 = vmatmul.mubr.msk.bf16.gmra.mrb[8].mxu1 %vm382_vm7, %v314_v22  ;;  %12589 = vmatmul.mubr.msk.bf16.gmra.mrb[24].mxu0 %vm382_vm7, %v314_v22  ;;  %vm270_vm0 = vcmp.ge.f32.partialorder %v250_v53, 0.0  ;;  %v286_v61 = vmul.f32 0.1, %v250_v53  ;;  %v253_v0 = vadd.f32 %v13971_v58, %v16000_v40  ;;  %v244_v1 = vpop.f32.mrb[15].mxu0 }
 0x10a   :  { %469 = vmatprep.mubr.bf16.mxu1 %v20049_v37  ;;  %582 = vmatprep.mubr.bf16.mxu0 %v20049_v37  ;;  %vm268_vm1 = vcmp.ge.f32.partialorder %v242_v57, 0.0  ;;  %v284_v6 = vmul.f32 0.1, %v242_v57  ;;  %v245_v7 = vadd.f32 %v16000_v40, %v244_v1 }
 0x10b   :  { %v302_v10 = vsel %vm270_vm0, %v250_v53, %v286_v61  ;;  %vm271_vm2 = vcmp.ge.f32.partialorder %v253_v0, 0.0  ;;  %v287_v12 = vmul.f32 0.1, %v253_v0  ;;  %834 = vmatpush1.bf16.msra.mxu1 %v16125_v55  ;;  %877 = vmatpush1.bf16.msra.mxu0 %v16131_v56 }
 0x10c   :  { %v300_v15 = vsel %vm268_vm1, %v242_v57, %v284_v6  ;;  %vm269_vm3 = vcmp.ge.f32.partialorder %v245_v7, 0.0  ;;  %v285_v40 = vmul.f32 0.1, %v245_v7  ;;  %835 = vmatprep.subr.bf16.mxu1 %v16138_v59  ;;  %878 = vmatprep.subr.bf16.mxu0 %v16144_v60 }
 0x10d   :  { %v303_v18 = vsel %vm271_vm2, %v253_v0, %v287_v12 }
 0x10e   :  { %v319_v20 = vpack.c.bf16 %v303_v18, %v302_v10  ;;  %v301_v21 = vsel %vm269_vm3, %v245_v7, %v285_v40  ;;  %vm4214_vm3 = vcmask 1042432  }
 0x10f   :  { %v318_v22 = vpack.c.bf16 %v301_v21, %v300_v15  ;;  %836 = vmatpush1.bf16.msra.mxu1 %v16152_v5  ;;  %879 = vmatpush1.bf16.msra.mxu0 %v16160_v9 }
 0x110   :  { %837 = vmatprep.subr.bf16.mxu1 %v16167_v13  ;;  %880 = vmatprep.subr.bf16.mxu0 %v16174_v16 }
 0x111   :  { %12582 = vmatmul.mubr.msk.bf16.gmra.mrb[12].mxu1 %vm382_vm7, %v16058_v19  ;;  %12590 = vmatmul.mubr.msk.bf16.gmra.mrb[28].mxu0 %vm382_vm7, %v16058_v19  ;;  %v322_v19 = vlaneseq }
 0x112   :  { %479 = vmatprep.mubr.bf16.mxu1 %v20049_v37  ;;  %592 = vmatprep.mubr.bf16.mxu0 %v20049_v37 }
 0x113   :  { %838 = vmatpush1.bf16.msra.mxu1 %v16181_v23  ;;  %881 = vmatpush1.bf16.msra.mxu0 %v16186_v24  ;;  %v16280_v33 = vshrl.u32 %v322_v19, 7 }
 0x114   :  { %839 = vmatprep.subr.bf16.mxu1 %v16193_v27  ;;  %882 = vmatprep.subr.bf16.mxu0 %v16198_v28 }
 0x115   :  { %v324_v35 = vsub.s32 0, %v16280_v33  ;;  %v328_v42 = vsub.s32 1, %v16280_v33  ;;  %v332_v61 = vsub.s32 2, %v16280_v33 }
 0x117   :  { %840 = vmatpush1.bf16.msra.mxu1 %v16211_v31  ;;  %883 = vmatpush1.bf16.msra.mxu0 %v16216_v32  ;;  %v16289_v43 = vrot.slane %v320_v36, %v324_v35  ;;  %v16293_v45 = vrot.slane %v320_v36, %v328_v42  ;;  %v16307_v18 = vrot.slane %v320_v36, %v332_v61 }
 0x118   :  { %968 = vmatprep.subr.bf16.mxu1 %v15988_v38  ;;  %1011 = vmatprep.subr.bf16.mxu0 %v15994_v39 }
 0x119   :  { %12583 = vmatmul.mubr.msk.bf16.gmra.mrb[16].mxu1 %vm382_vm7, %v16118_v52  ;;  %12591 = vmatmul.mubr.msk.bf16.gmra.mrb[32].mxu0 %vm382_vm7, %v16118_v52 }
 0x11a   :  { %489 = vmatprep.mubr.bf16.mxu1 %v20049_v37  ;;  %602 = vmatprep.mubr.bf16.mxu0 %v20049_v37 }
 0x121   :  { %12584 = vmatmul.mubr.msk.bf16.gmra.mrb[20].mxu1 %vm382_vm7, %v16116_v49  ;;  %12592 = vmatmul.mubr.msk.bf16.gmra.mrb[36].mxu0 %vm382_vm7, %v16116_v49  ;;  %v336_v49 = vsub.s32 3, %v16280_v33 }
 0x122   :  { %499 = vmatprep.mubr.bf16.mxu1 %v20049_v37  ;;  %612 = vmatprep.mubr.bf16.mxu0 %v20049_v37 }
 0x123   :  { %v16302_v10 = vrot.slane %v320_v36, %v336_v49 }
 0x129   :  { %12585 = vmatmul.mubr.msk.bf16.gmra.mrb[24].mxu1 %vm382_vm7, %v318_v22  ;;  %12593 = vmatmul.mubr.msk.bf16.gmra.mrb[40].mxu0 %vm382_vm7, %v318_v22 }
 0x12a   :  { %509 = vmatprep.mubr.bf16.mxu1 %v20049_v37  ;;  %622 = vmatprep.mubr.bf16.mxu0 %v20049_v37 }
 0x131   :  { %12586 = vmatmul.mubr.msk.bf16.gmra.mrb[28].mxu1 %vm382_vm7, %v319_v20  ;;  %12594 = vmatmul.mubr.msk.bf16.gmra.mrb[44].mxu0 %vm382_vm7, %v319_v20 }
 0x132   :  { %857 = vmatprep.mubr.bf16.mxu1 %v20049_v37  ;;  %900 = vmatprep.mubr.bf16.mxu0 %v20049_v37 }
 0x139   :  { %858 = vmatmul.mubr.bf16.vlgmr.msra.gmra.mrb[0].mxu1 %v20049_v37  ;;  %901 = vmatmul.mubr.bf16.vlgmr.msra.gmra.mrb[16].mxu0 %v20049_v37 }
 0x13a   :  { %969 = vmatpush1.bf16.msra.mxu1 %v16010_v62  ;;  %1012 = vmatpush1.bf16.msra.mxu0 %v16015_v63 }
 0x13b   :  { %970 = vmatprep.subr.bf16.mxu1 %v16021_v2  ;;  %1013 = vmatprep.subr.bf16.mxu0 %v16026_v4 }
 0x13c   :  { %1000 = vmatprep.mubr.bf16.mxu1 %v20049_v37  ;;  %1043 = vmatprep.mubr.bf16.mxu0 %v20049_v37 }
 0x13e   :  { %971 = vmatpush1.bf16.msra.mxu1 %v16034_v8  ;;  %1014 = vmatpush1.bf16.msra.mxu0 %v16049_v14 }
 0x13f   :  { %972 = vmatprep.subr.bf16.mxu1 %v16042_v11  ;;  %1015 = vmatprep.subr.bf16.mxu0 %v16056_v17 }
 0x142   :  { %973 = vmatpush1.bf16.msra.mxu1 %v16065_v25  ;;  %1016 = vmatpush1.bf16.msra.mxu0 %v16071_v26 }
 0x143   :  { %974 = vmatprep.subr.bf16.mxu1 %v16078_v29  ;;  %1017 = vmatprep.subr.bf16.mxu0 %v16084_v30 }
 0x146   :  { %975 = vmatpush1.bf16.msra.mxu1 %v16092_v34  ;;  %1018 = vmatpush1.bf16.msra.mxu0 %v16107_v44 }
 0x147   :  { %976 = vmatprep.subr.bf16.mxu1 %v16100_v41  ;;  %1019 = vmatprep.subr.bf16.mxu0 %v16114_v47 }
 0x14a   :  { %977 = vmatpush1.bf16.msra.mxu1 %v16125_v55  ;;  %1020 = vmatpush1.bf16.msra.mxu0 %v16131_v56 }
 0x14b   :  { %978 = vmatprep.subr.bf16.mxu1 %v16138_v59  ;;  %1021 = vmatprep.subr.bf16.mxu0 %v16144_v60 }
 0x14e   :  { %979 = vmatpush1.bf16.msra.mxu1 %v16152_v5  ;;  %1022 = vmatpush1.bf16.msra.mxu0 %v16160_v9 }
 0x14f   :  { %980 = vmatprep.subr.bf16.mxu1 %v16167_v13  ;;  %1023 = vmatprep.subr.bf16.mxu0 %v16174_v16 }
 0x152   :  { %981 = vmatpush1.bf16.msra.mxu1 %v16181_v23  ;;  %1024 = vmatpush1.bf16.msra.mxu0 %v16186_v24 }
 0x153   :  { %982 = vmatprep.subr.bf16.mxu1 %v16193_v27  ;;  %1025 = vmatprep.subr.bf16.mxu0 %v16198_v28 }
 0x156   :  { %983 = vmatpush1.bf16.msra.mxu1 %v16211_v31  ;;  %1026 = vmatpush1.bf16.msra.mxu0 %v16216_v32 }
 0x157   :  { %1111 = vmatprep.subr.bf16.mxu1 %v15988_v38  ;;  %1154 = vmatprep.subr.bf16.mxu0 %v15994_v39 }
 0x20c   :  { %v859_v46 = vpop.f32.mrb[0].mxu1  ;;  %v902_v48 = vpop.f32.mrb[16].mxu0 }
 0x20d   :  { %v14294_v50 = vadd.f32 %v859_v46, %v16289_v43  ;;  %v861_v51 = vpop.f32.mrb[1].mxu1  ;;  %v904_v52 = vpop.f32.mrb[17].mxu0  ;;  %v14326_v21 = vadd.f32 %v902_v48, %v16307_v18 }
 0x20e   :  { %v14295_v53 = vadd.f32 %v861_v51, %v16293_v45  ;;  %v863_v54 = vpop.f32.mrb[2].mxu1  ;;  %v906_v57 = vpop.f32.mrb[18].mxu0  ;;  %v14327_v20 = vadd.f32 %v904_v52, %v16302_v10 }
 0x20f   :  { %v12627_v58 = vmul.f32 -1.442695, %v14294_v50  ;;  %v14296_v0 = vadd.f32 %v863_v54, %v16289_v43  ;;  %v865_v1 = vpop.f32.mrb[3].mxu1  ;;  %v908_v6 = vpop.f32.mrb[19].mxu0  ;;  %v14328_v46 = vadd.f32 %v906_v57, %v16307_v18 }
 0x210   :  { %v12629_v7 = vmul.f32 -1.442695, %v14295_v53  ;;  %v14297_v12 = vadd.f32 %v865_v1, %v16293_v45  ;;  %v12631_v22 = vmul.f32 -1.442695, %v14327_v20  ;;  %v14329_v19 = vadd.f32 %v908_v6, %v16302_v10 }
 0x211   :  { %14998 = vpow2.f32 %v12627_v58  ;;  %v12628_v15 = vmul.f32 -1.442695, %v14296_v0 }
 0x212   :  { %15000 = vpow2.f32 %v12629_v7  ;;  %v12630_v40 = vmul.f32 -1.442695, %v14297_v12  ;;  %v12632_v54 = vmul.f32 -1.442695, %v14329_v19 }
 0x213   :  { %15002 = vpow2.f32 %v12628_v15 }
 0x214   :  { %15004 = vpow2.f32 %v12630_v40 }
 0x215   :  { %15006 = vtanh.f32 %v14326_v21 }
 0x216   :  { %15008 = vpow2.f32 %v12631_v22 }
 0x217   :  { %15010 = vtanh.f32 %v14328_v46 }
 0x21b   :  { %v14999_v50 = vpop.eup %14998 }
 0x21c   :  { %v15001_v51 = vpop.eup %15000  ;;  %v925_v53 = vadd.f32 1.0, %v14999_v50 }
 0x21d   :  { %v937_v58 = vadd.f32 1.0, %v15001_v51  ;;  %v15003_v36 = vpop.eup %15002 }
 0x21e   :  { %15012 = vrcp.f32 %v925_v53  ;;  %v926_v52 = vadd.f32 1.0, %v15003_v36  ;;  %v15005_v0 = vpop.eup %15004 }
 0x21f   :  { %15014 = vrcp.f32 %v937_v58  ;;  %v938_v48 = vadd.f32 1.0, %v15005_v0  ;;  %v15007_v1 = vpop.eup %15006 }
 0x220   :  { %15016 = vpow2.f32 %v12632_v54  ;;  %v15009_v6 = vpop.eup %15008 }
 0x221   :  { %15018 = vrcp.f32 %v926_v52  ;;  %v15011_v57 = vpop.eup %15010  ;;  %v951_v22 = vadd.f32 1.0, %v15009_v6 }
 0x222   :  { %15020 = vrcp.f32 %v938_v48 }
 0x223   :  { %15022 = vrcp.f32 %v951_v22 }
 0x228   :  { %v15013_v7 = vpop.eup %15012 }
 0x229   :  { %v15015_v12 = vpop.eup %15014  ;;  %v959_v15 = vmul.f32 %v15013_v7, %v15007_v1 }
 0x22a   :  { %v15017_v40 = vpop.eup %15016  ;;  %v957_v20 = vmul.f32 0.0, %v15015_v12 }
 0x22b   :  { %v15019_v21 = vpop.eup %15018  ;;  %v952_v51 = vadd.f32 1.0, %v15017_v40 }
 0x22c   :  { %v16313_v19 = vadd.f32 %v959_v15, %v957_v20  ;;  %v960_v46 = vmul.f32 %v15019_v21, %v15011_v57  ;;  %v15021_v50 = vpop.eup %15020 }
 0x22d   :  { %v958_v53 = vmul.f32 0.0, %v15021_v50  ;;  %v15023_v58 = vpop.eup %15022 }
 0x22e   :  { %15024 = vtanh.f32 %v16313_v19 }
 0x22f   :  { %v16316_v54 = vadd.f32 %v960_v46, %v958_v53  ;;  %15026 = vrcp.f32 %v952_v51 }
 0x231   :  { %15028 = vtanh.f32 %v16316_v54 }
 0x238   :  { %v15025_v36 = vpop.eup %15024 }
 0x239   :  { %v15027_v52 = vpop.eup %15026  ;;  %v965_v48 = vmul.f32 %v15025_v36, %v15023_v58 }
 0x23b   :  { %v15029_v0 = vpop.eup %15028 }
 0x23c   :  { %v966_v1 = vmul.f32 %v15029_v0, %v15027_v52 }
 0x23e   :  { %v967_v6 = vpack.c.bf16 %v966_v1, %v965_v48 }
 0x240   :  { %1001 = vmatmul.mubr.bf16.vlgmr.msra.gmra.mrb[4].mxu1 %v967_v6  ;;  %1044 = vmatmul.mubr.bf16.vlgmr.msra.gmra.mrb[20].mxu0 %v967_v6 }
 0x241   :  { %1112 = vmatpush1.bf16.msra.mxu1 %v16010_v62  ;;  %1155 = vmatpush1.bf16.msra.mxu0 %v16015_v63 }
 0x242   :  { %1113 = vmatprep.subr.bf16.mxu1 %v16021_v2  ;;  %1156 = vmatprep.subr.bf16.mxu0 %v16026_v4 }
 0x243   :  { %1143 = vmatprep.mubr.bf16.mxu1 %v20049_v37  ;;  %1186 = vmatprep.mubr.bf16.mxu0 %v20049_v37 }
 0x245   :  { %1114 = vmatpush1.bf16.msra.mxu1 %v16034_v8  ;;  %1157 = vmatpush1.bf16.msra.mxu0 %v16049_v14 }
 0x246   :  { %1115 = vmatprep.subr.bf16.mxu1 %v16042_v11  ;;  %1158 = vmatprep.subr.bf16.mxu0 %v16056_v17 }
 0x249   :  { %1116 = vmatpush1.bf16.msra.mxu1 %v16065_v25  ;;  %1159 = vmatpush1.bf16.msra.mxu0 %v16071_v26 }
 0x24a   :  { %1117 = vmatprep.subr.bf16.mxu1 %v16078_v29  ;;  %1160 = vmatprep.subr.bf16.mxu0 %v16084_v30 }
 0x24d   :  { %1118 = vmatpush1.bf16.msra.mxu1 %v16092_v34  ;;  %1161 = vmatpush1.bf16.msra.mxu0 %v16107_v44 }
 0x24e   :  { %1119 = vmatprep.subr.bf16.mxu1 %v16100_v41  ;;  %1162 = vmatprep.subr.bf16.mxu0 %v16114_v47 }
 0x251   :  { %1120 = vmatpush1.bf16.msra.mxu1 %v16125_v55  ;;  %1163 = vmatpush1.bf16.msra.mxu0 %v16131_v56 }
 0x252   :  { %1121 = vmatprep.subr.bf16.mxu1 %v16138_v59  ;;  %1164 = vmatprep.subr.bf16.mxu0 %v16144_v60 }
 0x255   :  { %1122 = vmatpush1.bf16.msra.mxu1 %v16152_v5  ;;  %1165 = vmatpush1.bf16.msra.mxu0 %v16160_v9 }
 0x256   :  { %1123 = vmatprep.subr.bf16.mxu1 %v16167_v13  ;;  %1166 = vmatprep.subr.bf16.mxu0 %v16174_v16 }
 0x259   :  { %1124 = vmatpush1.bf16.msra.mxu1 %v16181_v23  ;;  %1167 = vmatpush1.bf16.msra.mxu0 %v16186_v24 }
 0x25a   :  { %1125 = vmatprep.subr.bf16.mxu1 %v16193_v27  ;;  %1168 = vmatprep.subr.bf16.mxu0 %v16198_v28 }
 0x25d   :  { %1126 = vmatpush1.bf16.msra.mxu1 %v16211_v31  ;;  %1169 = vmatpush1.bf16.msra.mxu0 %v16216_v32 }
 0x25e   :  { %1254 = vmatprep.subr.bf16.mxu1 %v15988_v38  ;;  %1297 = vmatprep.subr.bf16.mxu0 %v15994_v39 }
 0x313   :  { %v1002_v57 = vpop.f32.mrb[4].mxu1  ;;  %v1045_v7 = vpop.f32.mrb[20].mxu0 }
 0x314   :  { %v14298_v12 = vadd.f32 %v1002_v57, %v16289_v43  ;;  %v1004_v15 = vpop.f32.mrb[5].mxu1  ;;  %v1047_v40 = vpop.f32.mrb[21].mxu0  ;;  %v14330_v0 = vadd.f32 %v1045_v7, %v16307_v18 }
 0x315   :  { %v14299_v20 = vadd.f32 %v1004_v15, %v16293_v45  ;;  %v1006_v21 = vpop.f32.mrb[6].mxu1  ;;  %v1049_v22 = vpop.f32.mrb[22].mxu0  ;;  %v14331_v52 = vadd.f32 %v1047_v40, %v16302_v10 }
 0x316   :  { %v12633_v46 = vmul.f32 -1.442695, %v14298_v12  ;;  %v14300_v50 = vadd.f32 %v1006_v21, %v16289_v43  ;;  %v1008_v51 = vpop.f32.mrb[7].mxu1  ;;  %v1051_v53 = vpop.f32.mrb[23].mxu0  ;;  %v14332_v6 = vadd.f32 %v1049_v22, %v16307_v18 }
 0x317   :  { %v12635_v58 = vmul.f32 -1.442695, %v14299_v20  ;;  %v14301_v38 = vadd.f32 %v1008_v51, %v16293_v45  ;;  %v12637_v48 = vmul.f32 -1.442695, %v14331_v52  ;;  %v14333_v1 = vadd.f32 %v1051_v53, %v16302_v10 }
 0x318   :  { %15030 = vpow2.f32 %v12633_v46  ;;  %v12634_v39 = vmul.f32 -1.442695, %v14300_v50 }
 0x319   :  { %15032 = vpow2.f32 %v12635_v58  ;;  %v12636_v36 = vmul.f32 -1.442695, %v14301_v38  ;;  %v12638_v20 = vmul.f32 -1.442695, %v14333_v1 }
 0x31a   :  { %15034 = vpow2.f32 %v12634_v39 }
 0x31b   :  { %15036 = vpow2.f32 %v12636_v36 }
 0x31c   :  { %15038 = vtanh.f32 %v14330_v0 }
 0x31d   :  { %15040 = vpow2.f32 %v12637_v48 }
 0x31e   :  { %15042 = vtanh.f32 %v14332_v6 }
 0x322   :  { %v15031_v57 = vpop.eup %15030 }
 0x323   :  { %v15033_v12 = vpop.eup %15032  ;;  %v1068_v15 = vadd.f32 1.0, %v15031_v57 }
 0x324   :  { %v1080_v21 = vadd.f32 1.0, %v15033_v12  ;;  %v15035_v46 = vpop.eup %15034 }
 0x325   :  { %15044 = vrcp.f32 %v1068_v15  ;;  %v1069_v40 = vadd.f32 1.0, %v15035_v46  ;;  %v15037_v50 = vpop.eup %15036 }
 0x326   :  { %15046 = vrcp.f32 %v1080_v21  ;;  %v1081_v7 = vadd.f32 1.0, %v15037_v50  ;;  %v15039_v51 = vpop.eup %15038 }
 0x327   :  { %15048 = vpow2.f32 %v12638_v20  ;;  %v15041_v53 = vpop.eup %15040 }
 0x328   :  { %15050 = vrcp.f32 %v1069_v40  ;;  %v15043_v22 = vpop.eup %15042  ;;  %v1094_v48 = vadd.f32 1.0, %v15041_v53  ;;  %v16410_v53 = vld [vmem:[%s20078_s1 + $0xc] ss:$16 sps:$4 sm:$0xff]  }
 0x329   :  { %15052 = vrcp.f32 %v1081_v7 }
 0x32a   :  { %15054 = vrcp.f32 %v1094_v48 }
 0x32f   :  { %v15045_v58 = vpop.eup %15044 }
 0x330   :  { %v15047_v38 = vpop.eup %15046  ;;  %v1102_v39 = vmul.f32 %v15045_v58, %v15039_v51 }
 0x331   :  { %v15049_v36 = vpop.eup %15048  ;;  %v1100_v52 = vmul.f32 %v15047_v38, %v16313_v19 }
 0x332   :  { %v15051_v0 = vpop.eup %15050  ;;  %v1095_v12 = vadd.f32 1.0, %v15049_v36 }
 0x333   :  { %v16362_v1 = vadd.f32 %v1102_v39, %v1100_v52  ;;  %v1103_v6 = vmul.f32 %v15051_v0, %v15043_v22  ;;  %v15053_v57 = vpop.eup %15052 }
 0x334   :  { %v1101_v15 = vmul.f32 %v15053_v57, %v16316_v54  ;;  %v15055_v21 = vpop.eup %15054  ;;  %v16404_v54 = vld [vmem:[%s20078_s1 + $0x4] ss:$16 sps:$4 sm:$0xff]  }
 0x335   :  { %15056 = vtanh.f32 %v16362_v1 }
 0x336   :  { %v16366_v20 = vadd.f32 %v1103_v6, %v1101_v15  ;;  %15058 = vrcp.f32 %v1095_v12 }
 0x338   :  { %15060 = vtanh.f32 %v16366_v20 }
 0x33f   :  { %v15057_v46 = vpop.eup %15056 }
 0x340   :  { %v15059_v19 = vpop.eup %15058  ;;  %v1108_v50 = vmul.f32 %v15057_v46, %v15055_v21 }
 0x342   :  { %v15061_v40 = vpop.eup %15060 }
 0x343   :  { %v1109_v7 = vmul.f32 %v15061_v40, %v15059_v19 }
 0x345   :  { %v1110_v51 = vpack.c.bf16 %v1109_v7, %v1108_v50 }
 0x347   :  { %1144 = vmatmul.mubr.bf16.vlgmr.msra.gmra.mrb[8].mxu1 %v1110_v51  ;;  %1187 = vmatmul.mubr.bf16.vlgmr.msra.gmra.mrb[24].mxu0 %v1110_v51 }
 0x348   :  { %1255 = vmatpush1.bf16.msra.mxu1 %v16010_v62  ;;  %1298 = vmatpush1.bf16.msra.mxu0 %v16015_v63 }
 0x349   :  { %1256 = vmatprep.subr.bf16.mxu1 %v16021_v2  ;;  %1299 = vmatprep.subr.bf16.mxu0 %v16026_v4 }
 0x34a   :  { %1286 = vmatprep.mubr.bf16.mxu1 %v20049_v37  ;;  %1329 = vmatprep.mubr.bf16.mxu0 %v20049_v37 }
 0x34c   :  { %1257 = vmatpush1.bf16.msra.mxu1 %v16034_v8  ;;  %1300 = vmatpush1.bf16.msra.mxu0 %v16049_v14 }
 0x34d   :  { %1258 = vmatprep.subr.bf16.mxu1 %v16042_v11  ;;  %1301 = vmatprep.subr.bf16.mxu0 %v16056_v17 }
 0x350   :  { %1259 = vmatpush1.bf16.msra.mxu1 %v16065_v25  ;;  %1302 = vmatpush1.bf16.msra.mxu0 %v16071_v26 }
 0x351   :  { %1260 = vmatprep.subr.bf16.mxu1 %v16078_v29  ;;  %1303 = vmatprep.subr.bf16.mxu0 %v16084_v30 }
 0x354   :  { %1261 = vmatpush1.bf16.msra.mxu1 %v16092_v34  ;;  %1304 = vmatpush1.bf16.msra.mxu0 %v16107_v44 }
 0x355   :  { %1262 = vmatprep.subr.bf16.mxu1 %v16100_v41  ;;  %1305 = vmatprep.subr.bf16.mxu0 %v16114_v47 }
 0x358   :  { %1263 = vmatpush1.bf16.msra.mxu1 %v16125_v55  ;;  %1306 = vmatpush1.bf16.msra.mxu0 %v16131_v56 }
 0x359   :  { %1264 = vmatprep.subr.bf16.mxu1 %v16138_v59  ;;  %1307 = vmatprep.subr.bf16.mxu0 %v16144_v60 }
 0x35c   :  { %1265 = vmatpush1.bf16.msra.mxu1 %v16152_v5  ;;  %1308 = vmatpush1.bf16.msra.mxu0 %v16160_v9 }
 0x35d   :  { %1266 = vmatprep.subr.bf16.mxu1 %v16167_v13  ;;  %1309 = vmatprep.subr.bf16.mxu0 %v16174_v16 }
 0x360   :  { %1267 = vmatpush1.bf16.msra.mxu1 %v16181_v23  ;;  %1310 = vmatpush1.bf16.msra.mxu0 %v16186_v24 }
 0x361   :  { %1268 = vmatprep.subr.bf16.mxu1 %v16193_v27  ;;  %1311 = vmatprep.subr.bf16.mxu0 %v16198_v28 }
 0x364   :  { %1269 = vmatpush1.bf16.msra.mxu1 %v16211_v31  ;;  %1312 = vmatpush1.bf16.msra.mxu0 %v16216_v32 }
 0x365   :  { %1397 = vmatprep.subr.bf16.mxu1 %v16404_v54  ;;  %1440 = vmatprep.subr.bf16.mxu0 %v16410_v53 }
 0x41a   :  { %v1145_v22 = vpop.f32.mrb[8].mxu1  ;;  %v1188_v58 = vpop.f32.mrb[24].mxu0 }
 0x41b   :  { %v14302_v38 = vadd.f32 %v1145_v22, %v16289_v43  ;;  %v1147_v39 = vpop.f32.mrb[9].mxu1  ;;  %v1190_v36 = vpop.f32.mrb[25].mxu0  ;;  %v14334_v7 = vadd.f32 %v1188_v58, %v16307_v18 }
 0x41c   :  { %v14303_v52 = vadd.f32 %v1147_v39, %v16293_v45  ;;  %v1149_v0 = vpop.f32.mrb[10].mxu1  ;;  %v1192_v48 = vpop.f32.mrb[26].mxu0  ;;  %v14335_v50 = vadd.f32 %v1190_v36, %v16302_v10 }
 0x41d   :  { %v12639_v6 = vmul.f32 -1.442695, %v14302_v38  ;;  %v14304_v57 = vadd.f32 %v1149_v0, %v16289_v43  ;;  %v1151_v12 = vpop.f32.mrb[11].mxu1  ;;  %v1194_v15 = vpop.f32.mrb[27].mxu0  ;;  %v14336_v38 = vadd.f32 %v1192_v48, %v16307_v18 }
 0x41e   :  { %v12641_v21 = vmul.f32 -1.442695, %v14303_v52  ;;  %v14305_v46 = vadd.f32 %v1151_v12, %v16293_v45  ;;  %v12643_v51 = vmul.f32 -1.442695, %v14335_v50  ;;  %v14337_v22 = vadd.f32 %v1194_v15, %v16302_v10 }
 0x41f   :  { %15062 = vpow2.f32 %v12639_v6  ;;  %v12640_v19 = vmul.f32 -1.442695, %v14304_v57 }
 0x420   :  { %15064 = vpow2.f32 %v12641_v21  ;;  %v12642_v40 = vmul.f32 -1.442695, %v14305_v46  ;;  %v12644_v6 = vmul.f32 -1.442695, %v14337_v22 }
 0x421   :  { %15066 = vpow2.f32 %v12640_v19 }
 0x422   :  { %15068 = vpow2.f32 %v12642_v40 }
 0x423   :  { %15070 = vtanh.f32 %v14334_v7 }
 0x424   :  { %15072 = vpow2.f32 %v12643_v51 }
 0x425   :  { %15074 = vtanh.f32 %v14336_v38 }
 0x429   :  { %v15063_v39 = vpop.eup %15062 }
 0x42a   :  { %v15065_v52 = vpop.eup %15064  ;;  %v1211_v0 = vadd.f32 1.0, %v15063_v39 }
 0x42b   :  { %v1223_v57 = vadd.f32 1.0, %v15065_v52  ;;  %v15067_v12 = vpop.eup %15066 }
 0x42c   :  { %15076 = vrcp.f32 %v1211_v0  ;;  %v1212_v36 = vadd.f32 1.0, %v15067_v12  ;;  %v15069_v21 = vpop.eup %15068 }
 0x42d   :  { %15078 = vrcp.f32 %v1223_v57  ;;  %v1224_v58 = vadd.f32 1.0, %v15069_v21  ;;  %v15071_v15 = vpop.eup %15070 }
 0x42e   :  { %15080 = vpow2.f32 %v12644_v6  ;;  %v15073_v46 = vpop.eup %15072 }
 0x42f   :  { %15082 = vrcp.f32 %v1212_v36  ;;  %v15075_v48 = vpop.eup %15074  ;;  %v1237_v38 = vadd.f32 1.0, %v15073_v46 }
 0x430   :  { %15084 = vrcp.f32 %v1224_v58 }
 0x431   :  { %15086 = vrcp.f32 %v1237_v38 }
 0x436   :  { %v15077_v19 = vpop.eup %15076 }
 0x437   :  { %v15079_v40 = vpop.eup %15078  ;;  %v1245_v50 = vmul.f32 %v15077_v19, %v15071_v15 }
 0x438   :  { %v15081_v7 = vpop.eup %15080  ;;  %v1243_v51 = vmul.f32 %v15079_v40, %v16362_v1 }
 0x439   :  { %v15083_v22 = vpop.eup %15082  ;;  %v1238_v57 = vadd.f32 1.0, %v15081_v7 }
 0x43a   :  { %v16422_v39 = vadd.f32 %v1245_v50, %v1243_v51  ;;  %v1246_v52 = vmul.f32 %v15083_v22, %v15075_v48  ;;  %v15085_v0 = vpop.eup %15084 }
 0x43b   :  { %v1244_v6 = vmul.f32 %v15085_v0, %v16366_v20  ;;  %v15087_v36 = vpop.eup %15086 }
 0x43c   :  { %15088 = vtanh.f32 %v16422_v39 }
 0x43d   :  { %v16426_v12 = vadd.f32 %v1246_v52, %v1244_v6  ;;  %15090 = vrcp.f32 %v1238_v57 }
 0x43f   :  { %15092 = vtanh.f32 %v16426_v12 }
 0x446   :  { %v15089_v21 = vpop.eup %15088 }
 0x447   :  { %v15091_v1 = vpop.eup %15090  ;;  %v1251_v15 = vmul.f32 %v15089_v21, %v15087_v36 }
 0x449   :  { %v15093_v58 = vpop.eup %15092 }
 0x44a   :  { %v1252_v46 = vmul.f32 %v15093_v58, %v15091_v1 }
 0x44c   :  { %v1253_v19 = vpack.c.bf16 %v1252_v46, %v1251_v15 }
 0x44e   :  { %1287 = vmatmul.mubr.bf16.vlgmr.msra.gmra.mrb[12].mxu1 %v1253_v19  ;;  %1330 = vmatmul.mubr.bf16.vlgmr.msra.gmra.mrb[28].mxu0 %v1253_v19 }
 0x44f   :  { %1398 = vmatpush1.bf16.msra.mxu1 %v16010_v62  ;;  %1441 = vmatpush1.bf16.msra.mxu0 %v16015_v63 }
 0x450   :  { %1399 = vmatprep.subr.bf16.mxu1 %v16021_v2  ;;  %1442 = vmatprep.subr.bf16.mxu0 %v16026_v4 }
 0x451   :  { %1429 = vmatprep.mubr.bf16.mxu1 %v20049_v37  ;;  %1472 = vmatprep.mubr.bf16.mxu0 %v20049_v37 }
 0x453   :  { %1400 = vmatpush1.bf16.msra.mxu1 %v16034_v8  ;;  %1443 = vmatpush1.bf16.msra.mxu0 %v16049_v14 }
 0x454   :  { %1401 = vmatprep.subr.bf16.mxu1 %v16042_v11  ;;  %1444 = vmatprep.subr.bf16.mxu0 %v16056_v17 }
 0x457   :  { %1402 = vmatpush1.bf16.msra.mxu1 %v16065_v25  ;;  %1445 = vmatpush1.bf16.msra.mxu0 %v16071_v26 }
 0x458   :  { %1403 = vmatprep.subr.bf16.mxu1 %v16078_v29  ;;  %1446 = vmatprep.subr.bf16.mxu0 %v16084_v30 }
 0x45b   :  { %1404 = vmatpush1.bf16.msra.mxu1 %v16092_v34  ;;  %1447 = vmatpush1.bf16.msra.mxu0 %v16107_v44 }
 0x45c   :  { %1405 = vmatprep.subr.bf16.mxu1 %v16100_v41  ;;  %1448 = vmatprep.subr.bf16.mxu0 %v16114_v47 }
 0x45f   :  { %1406 = vmatpush1.bf16.msra.mxu1 %v16125_v55  ;;  %1449 = vmatpush1.bf16.msra.mxu0 %v16131_v56 }
 0x460   :  { %1407 = vmatprep.subr.bf16.mxu1 %v16138_v59  ;;  %1450 = vmatprep.subr.bf16.mxu0 %v16144_v60 }
 0x463   :  { %1408 = vmatpush1.bf16.msra.mxu1 %v16152_v5  ;;  %1451 = vmatpush1.bf16.msra.mxu0 %v16160_v9 }
 0x464   :  { %1409 = vmatprep.subr.bf16.mxu1 %v16167_v13  ;;  %1452 = vmatprep.subr.bf16.mxu0 %v16174_v16 }
 0x467   :  { %1410 = vmatpush1.bf16.msra.mxu1 %v16181_v23  ;;  %1453 = vmatpush1.bf16.msra.mxu0 %v16186_v24 }
 0x468   :  { %1411 = vmatprep.subr.bf16.mxu1 %v16193_v27  ;;  %1454 = vmatprep.subr.bf16.mxu0 %v16198_v28 }
 0x46b   :  { %1412 = vmatpush1.bf16.msra.mxu1 %v16211_v31  ;;  %1455 = vmatpush1.bf16.msra.mxu0 %v16216_v32 }
 0x46c   :  { %1540 = vmatprep.subr.bf16.mxu1 %v16404_v54  ;;  %1583 = vmatprep.subr.bf16.mxu0 %v16410_v53 }
 0x521   :  { %v1288_v62 = vpop.f32.mrb[12].mxu1  ;;  %v1331_v63 = vpop.f32.mrb[28].mxu0 }
 0x522   :  { %v14306_v2 = vadd.f32 %v1288_v62, %v16289_v43  ;;  %v1290_v4 = vpop.f32.mrb[13].mxu1  ;;  %v1333_v8 = vpop.f32.mrb[29].mxu0  ;;  %v14338_v56 = vadd.f32 %v1331_v63, %v16307_v18 }
 0x523   :  { %v14307_v11 = vadd.f32 %v1290_v4, %v16293_v45  ;;  %v1292_v14 = vpop.f32.mrb[14].mxu1  ;;  %v1335_v17 = vpop.f32.mrb[30].mxu0  ;;  %v14339_v55 = vadd.f32 %v1333_v8, %v16302_v10 }
 0x524   :  { %v12645_v25 = vmul.f32 -1.442695, %v14306_v2  ;;  %v14308_v26 = vadd.f32 %v1292_v14, %v16289_v43  ;;  %v1294_v29 = vpop.f32.mrb[15].mxu1  ;;  %v1337_v30 = vpop.f32.mrb[31].mxu0  ;;  %v14340_v5 = vadd.f32 %v1335_v17, %v16307_v18 }
 0x525   :  { %v12647_v34 = vmul.f32 -1.442695, %v14307_v11  ;;  %v14309_v41 = vadd.f32 %v1294_v29, %v16293_v45  ;;  %v12649_v59 = vmul.f32 -1.442695, %v14339_v55  ;;  %v14341_v60 = vadd.f32 %v1337_v30, %v16302_v10  ;;  %v16514_v55 = vld [vmem:[%s20078_s1 + $0x28] ss:$16 sps:$4 sm:$0xff]  }
 0x526   :  { %15094 = vpow2.f32 %v12645_v25  ;;  %v12646_v44 = vmul.f32 -1.442695, %v14308_v26 }
 0x527   :  { %15096 = vpow2.f32 %v12647_v34  ;;  %v12648_v47 = vmul.f32 -1.442695, %v14309_v41  ;;  %v12650_v50 = vmul.f32 -1.442695, %v14341_v60  ;;  %v16488_v34 = vld [vmem:[%s20078_s1 + $0x8] ss:$16 sps:$4 sm:$0xff]  }
 0x528   :  { %15098 = vpow2.f32 %v12646_v44  ;;  %v16494_v41 = vld [vmem:[%s20078_s1 + $0x24] ss:$16 sps:$4 sm:$0xff]   ;;  %v16500_v44 = vld [vmem:[%s20078_s1 + $0x2c] ss:$16 sps:$4 sm:$0xff]   ;;  %v16532_v60 = vld [vmem:[%s20078_s1 + $0x40] ss:$16 sps:$4 sm:$0xff]  }
 0x529   :  { %15100 = vpow2.f32 %v12648_v47  ;;  %v16508_v47 = vld [vmem:[%s20078_s1 + $0x20] ss:$16 sps:$4 sm:$0xff]  }
 0x52a   :  { %15102 = vtanh.f32 %v14338_v56  ;;  %v16520_v56 = vld [vmem:[%s20078_s1 + $0x44] ss:$16 sps:$4 sm:$0xff]  }
 0x52b   :  { %15104 = vpow2.f32 %v12649_v59  ;;  %v16526_v59 = vld [vmem:[%s20078_s1 + $0x4c] ss:$16 sps:$4 sm:$0xff]  }
 0x52c   :  { %15106 = vtanh.f32 %v14340_v5  ;;  %v16538_v5 = vld [vmem:[%s20078_s1 + $0x48] ss:$16 sps:$4 sm:$0xff]  }
 0x530   :  { %v15095_v20 = vpop.eup %15094 }
 0x531   :  { %v15097_v48 = vpop.eup %15096  ;;  %v1354_v40 = vadd.f32 1.0, %v15095_v20  ;;  %v16544_v20 = vld [vmem:[%s20078_s1 + $0x64] ss:$16 sps:$4 sm:$0xff]  }
 0x532   :  { %v1366_v7 = vadd.f32 1.0, %v15097_v48  ;;  %v15099_v51 = vpop.eup %15098  ;;  %v16550_v48 = vld [vmem:[%s20078_s1 + $0x6c] ss:$16 sps:$4 sm:$0xff]  }
 0x533   :  { %15108 = vrcp.f32 %v1354_v40  ;;  %v1355_v22 = vadd.f32 1.0, %v15099_v51  ;;  %v15101_v38 = vpop.eup %15100  ;;  %v16556_v40 = vld [vmem:[%s20078_s1 + $0x60] ss:$16 sps:$4 sm:$0xff]   ;;  %v16574_v51 = vld [vmem:[%s20078_s1 + $0x8c] ss:$16 sps:$4 sm:$0xff]  }
 0x534   :  { %15110 = vrcp.f32 %v1366_v7  ;;  %v1367_v52 = vadd.f32 1.0, %v15101_v38  ;;  %v15103_v0 = vpop.eup %15102  ;;  %v16568_v7 = vld [vmem:[%s20078_s1 + $0x84] ss:$16 sps:$4 sm:$0xff]   ;;  %v16586_v38 = vld [vmem:[%s20078_s1 + $0x88] ss:$16 sps:$4 sm:$0xff]  }
 0x535   :  { %15112 = vpow2.f32 %v12650_v50  ;;  %v15105_v57 = vpop.eup %15104  ;;  %v16562_v50 = vld [vmem:[%s20078_s1 + $0x68] ss:$16 sps:$4 sm:$0xff]  }
 0x536   :  { %15114 = vrcp.f32 %v1355_v22  ;;  %v15107_v6 = vpop.eup %15106  ;;  %v1380_v19 = vadd.f32 1.0, %v15105_v57  ;;  %v16580_v22 = vld [vmem:[%s20078_s1 + $0x80] ss:$16 sps:$4 sm:$0xff]  }
 0x537   :  { %15116 = vrcp.f32 %v1367_v52  ;;  %v16592_v52 = vld [vmem:[%s20078_s1 + $0xa4] ss:$16 sps:$4 sm:$0xff]   ;;  %v16604_v57 = vld [vmem:[%s20078_s1 + $0xa0] ss:$16 sps:$4 sm:$0xff]  }
 0x538   :  { %15118 = vrcp.f32 %v1380_v19 }
 0x53d   :  { %v15109_v36 = vpop.eup %15108 }
 0x53e   :  { %v15111_v21 = vpop.eup %15110  ;;  %v1388_v1 = vmul.f32 %v15109_v36, %v15103_v0  ;;  %v16598_v0 = vld [vmem:[%s20078_s1 + $0xac] ss:$16 sps:$4 sm:$0xff]  }
 0x53f   :  { %v15113_v58 = vpop.eup %15112  ;;  %v1386_v15 = vmul.f32 %v15111_v21, %v16422_v39 }
 0x540   :  { %v15115_v46 = vpop.eup %15114  ;;  %v1381_v4 = vadd.f32 1.0, %v15113_v58 }
 0x541   :  { %v16472_v62 = vadd.f32 %v1388_v1, %v1386_v15  ;;  %v1389_v63 = vmul.f32 %v15115_v46, %v15107_v6  ;;  %v15117_v2 = vpop.eup %15116 }
 0x542   :  { %v1387_v8 = vmul.f32 %v15117_v2, %v16426_v12  ;;  %v15119_v14 = vpop.eup %15118  ;;  %v16482_v12 = vld [vmem:[%s20078_s1] ss:$16 sps:$4 sm:$0xff]  }
 0x543   :  { %15120 = vtanh.f32 %v16472_v62 }
 0x544   :  { %v16476_v11 = vadd.f32 %v1389_v63, %v1387_v8  ;;  %15122 = vrcp.f32 %v1381_v4 }
 0x546   :  { %15124 = vtanh.f32 %v16476_v11 }
 0x54d   :  { %v15121_v17 = vpop.eup %15120 }
 0x54e   :  { %v15123_v39 = vpop.eup %15122  ;;  %v1394_v26 = vmul.f32 %v15121_v17, %v15119_v14 }
 0x550   :  { %v15125_v25 = vpop.eup %15124 }
 0x551   :  { %v1395_v29 = vmul.f32 %v15125_v25, %v15123_v39 }
 0x553   :  { %v1396_v30 = vpack.c.bf16 %v1395_v29, %v1394_v26 }
 0x555   :  { %1430 = vmatmul.mubr.bf16.vlgmr.msra.gmra.mrb[16].mxu1 %v1396_v30  ;;  %1473 = vmatmul.mubr.bf16.vlgmr.msra.gmra.mrb[32].mxu0 %v1396_v30 }
 0x556   :  { %1541 = vmatpush1.bf16.msra.mxu1 %v16482_v12  ;;  %1584 = vmatpush1.bf16.msra.mxu0 %v16488_v34 }
 0x557   :  { %1542 = vmatprep.subr.bf16.mxu1 %v16494_v41  ;;  %1585 = vmatprep.subr.bf16.mxu0 %v16500_v44 }
 0x558   :  { %1572 = vmatprep.mubr.bf16.mxu1 %v20049_v37  ;;  %1615 = vmatprep.mubr.bf16.mxu0 %v20049_v37 }
 0x55a   :  { %1543 = vmatpush1.bf16.msra.mxu1 %v16508_v47  ;;  %1586 = vmatpush1.bf16.msra.mxu0 %v16514_v55 }
 0x55b   :  { %1544 = vmatprep.subr.bf16.mxu1 %v16520_v56  ;;  %1587 = vmatprep.subr.bf16.mxu0 %v16526_v59 }
 0x55e   :  { %1545 = vmatpush1.bf16.msra.mxu1 %v16532_v60  ;;  %1588 = vmatpush1.bf16.msra.mxu0 %v16538_v5 }
 0x55f   :  { %1546 = vmatprep.subr.bf16.mxu1 %v16544_v20  ;;  %1589 = vmatprep.subr.bf16.mxu0 %v16550_v48 }
 0x562   :  { %1547 = vmatpush1.bf16.msra.mxu1 %v16556_v40  ;;  %1590 = vmatpush1.bf16.msra.mxu0 %v16562_v50 }
 0x563   :  { %1548 = vmatprep.subr.bf16.mxu1 %v16568_v7  ;;  %1591 = vmatprep.subr.bf16.mxu0 %v16574_v51 }
 0x566   :  { %1549 = vmatpush1.bf16.msra.mxu1 %v16580_v22  ;;  %1592 = vmatpush1.bf16.msra.mxu0 %v16586_v38 }
 0x567   :  { %1550 = vmatprep.subr.bf16.mxu1 %v16592_v52  ;;  %1593 = vmatprep.subr.bf16.mxu0 %v16598_v0 }
 0x56a   :  { %1551 = vmatpush1.bf16.msra.mxu1 %v16604_v57  ;;  %1594 = vmatpush1.bf16.msra.mxu0 %v16160_v9 }
 0x56b   :  { %1552 = vmatprep.subr.bf16.mxu1 %v16167_v13  ;;  %1595 = vmatprep.subr.bf16.mxu0 %v16174_v16 }
 0x56e   :  { %1553 = vmatpush1.bf16.msra.mxu1 %v16181_v23  ;;  %1596 = vmatpush1.bf16.msra.mxu0 %v16186_v24 }
 0x56f   :  { %1554 = vmatprep.subr.bf16.mxu1 %v16193_v27  ;;  %1597 = vmatprep.subr.bf16.mxu0 %v16198_v28 }
 0x572   :  { %1555 = vmatpush1.bf16.msra.mxu1 %v16211_v31  ;;  %1598 = vmatpush1.bf16.msra.mxu0 %v16216_v32 }
 0x573   :  { %1683 = vmatprep.subr.bf16.mxu1 %v16404_v54  ;;  %1726 = vmatprep.subr.bf16.mxu0 %v16410_v53 }
 0x628   :  { %v1431_v9 = vpop.f32.mrb[16].mxu1  ;;  %v1474_v13 = vpop.f32.mrb[32].mxu0 }
 0x629   :  { %v14310_v16 = vadd.f32 %v1431_v9, %v16289_v43  ;;  %v1433_v6 = vpop.f32.mrb[17].mxu1  ;;  %v1476_v23 = vpop.f32.mrb[33].mxu0  ;;  %v14342_v63 = vadd.f32 %v1474_v13, %v16307_v18 }
 0x62a   :  { %v14311_v24 = vadd.f32 %v1433_v6, %v16293_v45  ;;  %v1435_v36 = vpop.f32.mrb[18].mxu1  ;;  %v1478_v27 = vpop.f32.mrb[34].mxu0  ;;  %v14343_v19 = vadd.f32 %v1476_v23, %v16302_v10 }
 0x62b   :  { %v12651_v21 = vmul.f32 -1.442695, %v14310_v16  ;;  %v14312_v28 = vadd.f32 %v1435_v36, %v16289_v43  ;;  %v1437_v31 = vpop.f32.mrb[19].mxu1  ;;  %v1480_v1 = vpop.f32.mrb[35].mxu0  ;;  %v14344_v8 = vadd.f32 %v1478_v27, %v16307_v18 }
 0x62c   :  { %v12653_v32 = vmul.f32 -1.442695, %v14311_v24  ;;  %v14313_v58 = vadd.f32 %v1437_v31, %v16293_v45  ;;  %v12655_v2 = vmul.f32 -1.442695, %v14343_v19  ;;  %v14345_v4 = vadd.f32 %v1480_v1, %v16302_v10 }
 0x62d   :  { %15126 = vpow2.f32 %v12651_v21  ;;  %v12652_v15 = vmul.f32 -1.442695, %v14312_v28 }
 0x62e   :  { %15128 = vpow2.f32 %v12653_v32  ;;  %v12654_v46 = vmul.f32 -1.442695, %v14313_v58  ;;  %v12656_v25 = vmul.f32 -1.442695, %v14345_v4 }
 0x62f   :  { %15130 = vpow2.f32 %v12652_v15 }
 0x630   :  { %15132 = vpow2.f32 %v12654_v46 }
 0x631   :  { %15134 = vtanh.f32 %v14342_v63 }
 0x632   :  { %15136 = vpow2.f32 %v12655_v2 }
 0x633   :  { %15138 = vtanh.f32 %v14344_v8 }
 0x637   :  { %v15127_v14 = vpop.eup %15126 }
 0x638   :  { %v15129_v17 = vpop.eup %15128  ;;  %v1497_v39 = vadd.f32 1.0, %v15127_v14 }
 0x639   :  { %v1509_v26 = vadd.f32 1.0, %v15129_v17  ;;  %v15131_v29 = vpop.eup %15130 }
 0x63a   :  { %15140 = vrcp.f32 %v1497_v39  ;;  %v1498_v30 = vadd.f32 1.0, %v15131_v29  ;;  %v15133_v9 = vpop.eup %15132  ;;  %v16678_v29 = vld [vmem:[%s20078_s1 + $0xc0] ss:$16 sps:$4 sm:$0xff]  }
 0x63b   :  { %15142 = vrcp.f32 %v1509_v26  ;;  %v1510_v13 = vadd.f32 1.0, %v15133_v9  ;;  %v15135_v16 = vpop.eup %15134  ;;  %v16672_v26 = vld [vmem:[%s20078_s1 + $0xcc] ss:$16 sps:$4 sm:$0xff]   ;;  %v16690_v9 = vld [vmem:[%s20078_s1 + $0xe4] ss:$16 sps:$4 sm:$0xff]  }
 0x63c   :  { %15144 = vpow2.f32 %v12656_v25  ;;  %v15137_v6 = vpop.eup %15136  ;;  %v16666_v25 = vld [vmem:[%s20078_s1 + $0xc4] ss:$16 sps:$4 sm:$0xff]  }
 0x63d   :  { %15146 = vrcp.f32 %v1498_v30  ;;  %v15139_v23 = vpop.eup %15138  ;;  %v1523_v1 = vadd.f32 1.0, %v15137_v6  ;;  %v16684_v30 = vld [vmem:[%s20078_s1 + $0xc8] ss:$16 sps:$4 sm:$0xff]  }
 0x63e   :  { %15148 = vrcp.f32 %v1510_v13  ;;  %v16696_v13 = vld [vmem:[%s20078_s1 + $0xec] ss:$16 sps:$4 sm:$0xff]   ;;  %v16708_v6 = vld [vmem:[%s20078_s1 + $0xe8] ss:$16 sps:$4 sm:$0xff]  }
 0x63f   :  { %15150 = vrcp.f32 %v1523_v1 }
 0x644   :  { %v15141_v24 = vpop.eup %15140 }
 0x645   :  { %v15143_v36 = vpop.eup %15142  ;;  %v1531_v27 = vmul.f32 %v15141_v24, %v15135_v16  ;;  %v16702_v16 = vld [vmem:[%s20078_s1 + $0xe0] ss:$16 sps:$4 sm:$0xff]  }
 0x646   :  { %v15145_v21 = vpop.eup %15144  ;;  %v1529_v28 = vmul.f32 %v15143_v36, %v16472_v62 }
 0x647   :  { %v15147_v31 = vpop.eup %15146  ;;  %v1524_v46 = vadd.f32 1.0, %v15145_v21 }
 0x648   :  { %v16627_v32 = vadd.f32 %v1531_v27, %v1529_v28  ;;  %v1532_v58 = vmul.f32 %v15147_v31, %v15139_v23  ;;  %v15149_v15 = vpop.eup %15148 }
 0x649   :  { %v1530_v19 = vmul.f32 %v15149_v15, %v16476_v11  ;;  %v15151_v2 = vpop.eup %15150  ;;  %v16660_v11 = vld [vmem:[%s20078_s1 + $0xa8] ss:$16 sps:$4 sm:$0xff]  }
 0x64a   :  { %15152 = vtanh.f32 %v16627_v32 }
 0x64b   :  { %v16631_v63 = vadd.f32 %v1532_v58, %v1530_v19  ;;  %15154 = vrcp.f32 %v1524_v46 }
 0x64d   :  { %15156 = vtanh.f32 %v16631_v63 }
 0x654   :  { %v15153_v4 = vpop.eup %15152 }
 0x655   :  { %v15155_v62 = vpop.eup %15154  ;;  %v1537_v14 = vmul.f32 %v15153_v4, %v15151_v2 }
 0x657   :  { %v15157_v8 = vpop.eup %15156 }
 0x658   :  { %v1538_v17 = vmul.f32 %v15157_v8, %v15155_v62 }
 0x65a   :  { %v1539_v39 = vpack.c.bf16 %v1538_v17, %v1537_v14 }
 0x65c   :  { %1573 = vmatmul.mubr.bf16.vlgmr.msra.gmra.mrb[20].mxu1 %v1539_v39  ;;  %1616 = vmatmul.mubr.bf16.vlgmr.msra.gmra.mrb[36].mxu0 %v1539_v39 }
 0x65d   :  { %1684 = vmatpush1.bf16.msra.mxu1 %v16482_v12  ;;  %1727 = vmatpush1.bf16.msra.mxu0 %v16488_v34 }
 0x65e   :  { %1685 = vmatprep.subr.bf16.mxu1 %v16494_v41  ;;  %1728 = vmatprep.subr.bf16.mxu0 %v16500_v44 }
 0x65f   :  { %1715 = vmatprep.mubr.bf16.mxu1 %v20049_v37  ;;  %1758 = vmatprep.mubr.bf16.mxu0 %v20049_v37 }
 0x661   :  { %1686 = vmatpush1.bf16.msra.mxu1 %v16508_v47  ;;  %1729 = vmatpush1.bf16.msra.mxu0 %v16514_v55 }
 0x662   :  { %1687 = vmatprep.subr.bf16.mxu1 %v16520_v56  ;;  %1730 = vmatprep.subr.bf16.mxu0 %v16526_v59 }
 0x665   :  { %1688 = vmatpush1.bf16.msra.mxu1 %v16532_v60  ;;  %1731 = vmatpush1.bf16.msra.mxu0 %v16538_v5 }
 0x666   :  { %1689 = vmatprep.subr.bf16.mxu1 %v16544_v20  ;;  %1732 = vmatprep.subr.bf16.mxu0 %v16550_v48 }
 0x669   :  { %1690 = vmatpush1.bf16.msra.mxu1 %v16556_v40  ;;  %1733 = vmatpush1.bf16.msra.mxu0 %v16562_v50 }
 0x66a   :  { %1691 = vmatprep.subr.bf16.mxu1 %v16568_v7  ;;  %1734 = vmatprep.subr.bf16.mxu0 %v16574_v51 }
 0x66d   :  { %1692 = vmatpush1.bf16.msra.mxu1 %v16580_v22  ;;  %1735 = vmatpush1.bf16.msra.mxu0 %v16586_v38 }
 0x66e   :  { %1693 = vmatprep.subr.bf16.mxu1 %v16592_v52  ;;  %1736 = vmatprep.subr.bf16.mxu0 %v16598_v0 }
 0x671   :  { %1694 = vmatpush1.bf16.msra.mxu1 %v16604_v57  ;;  %1737 = vmatpush1.bf16.msra.mxu0 %v16660_v11 }
 0x672   :  { %1695 = vmatprep.subr.bf16.mxu1 %v16666_v25  ;;  %1738 = vmatprep.subr.bf16.mxu0 %v16672_v26 }
 0x675   :  { %1696 = vmatpush1.bf16.msra.mxu1 %v16678_v29  ;;  %1739 = vmatpush1.bf16.msra.mxu0 %v16684_v30 }
 0x676   :  { %1697 = vmatprep.subr.bf16.mxu1 %v16690_v9  ;;  %1740 = vmatprep.subr.bf16.mxu0 %v16696_v13 }
 0x679   :  { %1698 = vmatpush1.bf16.msra.mxu1 %v16702_v16  ;;  %1741 = vmatpush1.bf16.msra.mxu0 %v16708_v6 }
 0x67a   :  { %1826 = vmatprep.subr.bf16.mxu1 %v16404_v54  ;;  %1869 = vmatprep.subr.bf16.mxu0 %v16410_v53 }
 0x72f   :  { %v1574_v23 = vpop.f32.mrb[20].mxu1  ;;  %v1617_v24 = vpop.f32.mrb[36].mxu0 }
 0x730   :  { %v14314_v36 = vadd.f32 %v1574_v23, %v16289_v43  ;;  %v1576_v27 = vpop.f32.mrb[21].mxu1  ;;  %v1619_v21 = vpop.f32.mrb[37].mxu0  ;;  %v14346_v8 = vadd.f32 %v1617_v24, %v16307_v18 }
 0x731   :  { %v14315_v28 = vadd.f32 %v1576_v27, %v16293_v45  ;;  %v1578_v31 = vpop.f32.mrb[22].mxu1  ;;  %v1621_v1 = vpop.f32.mrb[38].mxu0  ;;  %v14347_v62 = vadd.f32 %v1619_v21, %v16302_v10 }
 0x732   :  { %v12657_v58 = vmul.f32 -1.442695, %v14314_v36  ;;  %v14316_v15 = vadd.f32 %v1578_v31, %v16289_v43  ;;  %v1580_v46 = vpop.f32.mrb[23].mxu1  ;;  %v1623_v19 = vpop.f32.mrb[39].mxu0  ;;  %v14348_v39 = vadd.f32 %v1621_v1, %v16307_v18 }
 0x733   :  { %v12659_v2 = vmul.f32 -1.442695, %v14315_v28  ;;  %v14317_v54 = vadd.f32 %v1580_v46, %v16293_v45  ;;  %v12661_v14 = vmul.f32 -1.442695, %v14347_v62  ;;  %v14349_v17 = vadd.f32 %v1623_v19, %v16302_v10 }
 0x734   :  { %15158 = vpow2.f32 %v12657_v58  ;;  %v12658_v53 = vmul.f32 -1.442695, %v14316_v15 }
 0x735   :  { %15160 = vpow2.f32 %v12659_v2  ;;  %v12660_v4 = vmul.f32 -1.442695, %v14317_v54  ;;  %v12662_v28 = vmul.f32 -1.442695, %v14349_v17 }
 0x736   :  { %15162 = vpow2.f32 %v12658_v53 }
 0x737   :  { %15164 = vpow2.f32 %v12660_v4 }
 0x738   :  { %15166 = vtanh.f32 %v14346_v8 }
 0x739   :  { %15168 = vpow2.f32 %v12661_v14 }
 0x73a   :  { %15170 = vtanh.f32 %v14348_v39 }
 0x73e   :  { %v15159_v23 = vpop.eup %15158 }
 0x73f   :  { %v15161_v36 = vpop.eup %15160  ;;  %v1640_v27 = vadd.f32 1.0, %v15159_v23 }
 0x740   :  { %v1652_v31 = vadd.f32 1.0, %v15161_v36  ;;  %v15163_v58 = vpop.eup %15162 }
 0x741   :  { %15172 = vrcp.f32 %v1640_v27  ;;  %v1641_v21 = vadd.f32 1.0, %v15163_v58  ;;  %v15165_v15 = vpop.eup %15164 }
 0x742   :  { %15174 = vrcp.f32 %v1652_v31  ;;  %v1653_v24 = vadd.f32 1.0, %v15165_v15  ;;  %v15167_v46 = vpop.eup %15166 }
 0x743   :  { %15176 = vpow2.f32 %v12662_v28  ;;  %v15169_v19 = vpop.eup %15168 }
 0x744   :  { %15178 = vrcp.f32 %v1641_v21  ;;  %v15171_v1 = vpop.eup %15170  ;;  %v1666_v14 = vadd.f32 1.0, %v15169_v19 }
 0x745   :  { %15180 = vrcp.f32 %v1653_v24 }
 0x746   :  { %15182 = vrcp.f32 %v1666_v14 }
 0x74b   :  { %v15173_v2 = vpop.eup %15172 }
 0x74c   :  { %v15175_v54 = vpop.eup %15174  ;;  %v1674_v53 = vmul.f32 %v15173_v2, %v15167_v46 }
 0x74d   :  { %v15177_v4 = vpop.eup %15176  ;;  %v1672_v62 = vmul.f32 %v15175_v54, %v16627_v32 }
 0x74e   :  { %v15179_v8 = vpop.eup %15178  ;;  %v1667_v36 = vadd.f32 1.0, %v15177_v4 }
 0x74f   :  { %v16722_v17 = vadd.f32 %v1674_v53, %v1672_v62  ;;  %v1675_v39 = vmul.f32 %v15179_v8, %v15171_v1  ;;  %v15181_v23 = vpop.eup %15180 }
 0x750   :  { %v1673_v27 = vmul.f32 %v15181_v23, %v16631_v63  ;;  %v15183_v31 = vpop.eup %15182 }
 0x751   :  { %15184 = vtanh.f32 %v16722_v17 }
 0x752   :  { %v16726_v28 = vadd.f32 %v1675_v39, %v1673_v27  ;;  %15186 = vrcp.f32 %v1667_v36 }
 0x754   :  { %15188 = vtanh.f32 %v16726_v28 }
 0x75b   :  { %v15185_v58 = vpop.eup %15184 }
 0x75c   :  { %v15187_v32 = vpop.eup %15186  ;;  %v1680_v15 = vmul.f32 %v15185_v58, %v15183_v31 }
 0x75e   :  { %v15189_v21 = vpop.eup %15188 }
 0x75f   :  { %v1681_v24 = vmul.f32 %v15189_v21, %v15187_v32 }
 0x761   :  { %v1682_v46 = vpack.c.bf16 %v1681_v24, %v1680_v15 }
 0x763   :  { %1716 = vmatmul.mubr.bf16.vlgmr.msra.gmra.mrb[24].mxu1 %v1682_v46  ;;  %1759 = vmatmul.mubr.bf16.vlgmr.msra.gmra.mrb[40].mxu0 %v1682_v46 }
 0x764   :  { %1827 = vmatpush1.bf16.msra.mxu1 %v16482_v12  ;;  %1870 = vmatpush1.bf16.msra.mxu0 %v16488_v34 }
 0x765   :  { %1828 = vmatprep.subr.bf16.mxu1 %v16494_v41  ;;  %1871 = vmatprep.subr.bf16.mxu0 %v16500_v44 }
 0x766   :  { %1858 = vmatprep.mubr.bf16.mxu1 %v20049_v37  ;;  %1901 = vmatprep.mubr.bf16.mxu0 %v20049_v37 }
 0x768   :  { %1829 = vmatpush1.bf16.msra.mxu1 %v16508_v47  ;;  %1872 = vmatpush1.bf16.msra.mxu0 %v16514_v55 }
 0x769   :  { %1830 = vmatprep.subr.bf16.mxu1 %v16520_v56  ;;  %1873 = vmatprep.subr.bf16.mxu0 %v16526_v59 }
 0x76c   :  { %1831 = vmatpush1.bf16.msra.mxu1 %v16532_v60  ;;  %1874 = vmatpush1.bf16.msra.mxu0 %v16538_v5 }
 0x76d   :  { %1832 = vmatprep.subr.bf16.mxu1 %v16544_v20  ;;  %1875 = vmatprep.subr.bf16.mxu0 %v16550_v48 }
 0x770   :  { %1833 = vmatpush1.bf16.msra.mxu1 %v16556_v40  ;;  %1876 = vmatpush1.bf16.msra.mxu0 %v16562_v50 }
 0x771   :  { %1834 = vmatprep.subr.bf16.mxu1 %v16568_v7  ;;  %1877 = vmatprep.subr.bf16.mxu0 %v16574_v51 }
 0x774   :  { %1835 = vmatpush1.bf16.msra.mxu1 %v16580_v22  ;;  %1878 = vmatpush1.bf16.msra.mxu0 %v16586_v38 }
 0x775   :  { %1836 = vmatprep.subr.bf16.mxu1 %v16592_v52  ;;  %1879 = vmatprep.subr.bf16.mxu0 %v16598_v0 }
 0x778   :  { %1837 = vmatpush1.bf16.msra.mxu1 %v16604_v57  ;;  %1880 = vmatpush1.bf16.msra.mxu0 %v16660_v11 }
 0x779   :  { %1838 = vmatprep.subr.bf16.mxu1 %v16666_v25  ;;  %1881 = vmatprep.subr.bf16.mxu0 %v16672_v26 }
 0x77c   :  { %1839 = vmatpush1.bf16.msra.mxu1 %v16678_v29  ;;  %1882 = vmatpush1.bf16.msra.mxu0 %v16684_v30 }
 0x77d   :  { %1840 = vmatprep.subr.bf16.mxu1 %v16690_v9  ;;  %1883 = vmatprep.subr.bf16.mxu0 %v16696_v13 }
 0x780   :  { %1841 = vmatpush1.bf16.msra.mxu1 %v16702_v16  ;;  %1884 = vmatpush1.bf16.msra.mxu0 %v16708_v6 }
 0x836   :  { %v1717_v12 = vpop.f32.mrb[24].mxu1  ;;  %v1760_v34 = vpop.f32.mrb[40].mxu0 }
 0x837   :  { %v14318_v41 = vadd.f32 %v1717_v12, %v16289_v43  ;;  %v1719_v44 = vpop.f32.mrb[25].mxu1  ;;  %v1762_v47 = vpop.f32.mrb[41].mxu0  ;;  %v14350_v38 = vadd.f32 %v1760_v34, %v16307_v18  ;;  %v20047_v34 = vmov 0.0  }
 0x838   :  { %v14319_v55 = vadd.f32 %v1719_v44, %v16293_v45  ;;  %v1721_v56 = vpop.f32.mrb[26].mxu1  ;;  %v1764_v59 = vpop.f32.mrb[42].mxu0  ;;  %v14351_v22 = vadd.f32 %v1762_v47, %v16302_v10  ;;  %13972 = vmatprep.subr.bf16.mxu1 %v20047_v34  ;;  %v14512_v44 = vld [vmem:[%s20081_s3 + $0x10] sm:$0xff]   ;;  %v14513_v47 = vld [vmem:[%s20081_s3 + $0x18] sm:$0xff]  }
 0x839   :  { %v12663_v60 = vmul.f32 -1.442695, %v14318_v41  ;;  %v14320_v5 = vadd.f32 %v1721_v56, %v16289_v43  ;;  %v1723_v20 = vpop.f32.mrb[27].mxu1  ;;  %v1766_v48 = vpop.f32.mrb[43].mxu0  ;;  %v14352_v57 = vadd.f32 %v1764_v59, %v16307_v18  ;;  %v14511_v41 = vld [vmem:[%s20081_s3 + $0x8] sm:$0xff]   ;;  %v14516_v59 = vld [vmem:[%s20081_s3 + $0x30] sm:$0xff]  }
 0x83a   :  { %v12665_v40 = vmul.f32 -1.442695, %v14319_v55  ;;  %v14321_v50 = vadd.f32 %v1723_v20, %v16293_v45  ;;  %v12667_v52 = vmul.f32 -1.442695, %v14351_v22  ;;  %v14353_v0 = vadd.f32 %v1766_v48, %v16302_v10  ;;  %v14514_v55 = vld [vmem:[%s20081_s3 + $0x20] sm:$0xff]   ;;  %v14515_v56 = vld [vmem:[%s20081_s3 + $0x28] sm:$0xff]  }
 0x83b   :  { %15190 = vpow2.f32 %v12663_v60  ;;  %v12664_v7 = vmul.f32 -1.442695, %v14320_v5  ;;  %v14517_v60 = vld [vmem:[%s20081_s3 + $0x38] sm:$0xff]   ;;  %v2083_v5 = vld [vmem:[%s20082_s11] sm:$0xff] }
 0x83c   :  { %15192 = vpow2.f32 %v12665_v40  ;;  %v12666_v51 = vmul.f32 -1.442695, %v14321_v50  ;;  %v12668_v26 = vmul.f32 -1.442695, %v14353_v0 }
 0x83d   :  { %15194 = vpow2.f32 %v12664_v7 }
 0x83e   :  { %15196 = vpow2.f32 %v12666_v51 }
 0x83f   :  { %15198 = vtanh.f32 %v14350_v38 }
 0x840   :  { %15200 = vpow2.f32 %v12667_v52 }
 0x841   :  { %15202 = vtanh.f32 %v14352_v57 }
 0x845   :  { %v15191_v63 = vpop.eup %15190 }
 0x846   :  { %v15193_v11 = vpop.eup %15192  ;;  %v1783_v25 = vadd.f32 1.0, %v15191_v63 }
 0x847   :  { %v1795_v29 = vadd.f32 1.0, %v15193_v11  ;;  %v15195_v30 = vpop.eup %15194 }
 0x848   :  { %15204 = vrcp.f32 %v1783_v25  ;;  %v1784_v9 = vadd.f32 1.0, %v15195_v30  ;;  %v15197_v13 = vpop.eup %15196 }
 0x849   :  { %15206 = vrcp.f32 %v1795_v29  ;;  %v1796_v16 = vadd.f32 1.0, %v15197_v13  ;;  %v15199_v6 = vpop.eup %15198 }
 0x84a   :  { %15208 = vpow2.f32 %v12668_v26  ;;  %v15201_v19 = vpop.eup %15200 }
 0x84b   :  { %15210 = vrcp.f32 %v1784_v9  ;;  %v15203_v1 = vpop.eup %15202  ;;  %v1809_v14 = vadd.f32 1.0, %v15201_v19 }
 0x84c   :  { %15212 = vrcp.f32 %v1796_v16 }
 0x84d   :  { %15214 = vrcp.f32 %v1809_v14 }
 0x852   :  { %v15205_v2 = vpop.eup %15204 }
 0x853   :  { %v15207_v54 = vpop.eup %15206  ;;  %v1817_v53 = vmul.f32 %v15205_v2, %v15199_v6 }
 0x854   :  { %v15209_v4 = vpop.eup %15208  ;;  %v1815_v62 = vmul.f32 %v15207_v54, %v16722_v17 }
 0x855   :  { %v15211_v8 = vpop.eup %15210  ;;  %v1810_v27 = vadd.f32 1.0, %v15209_v4 }
 0x856   :  { %v16770_v39 = vadd.f32 %v1817_v53, %v1815_v62  ;;  %v1818_v23 = vmul.f32 %v15211_v8, %v15203_v1  ;;  %v15213_v36 = vpop.eup %15212 }
 0x857   :  { %v1816_v31 = vmul.f32 %v15213_v36, %v16726_v28  ;;  %v15215_v32 = vpop.eup %15214  ;;  %v14510_v28 = vld [vmem:[%s20081_s3] sm:$0xff]   ;;  %s20085_s3 = sld [smem:[#allocation22_spill]] }
 0x858   :  { %15216 = vtanh.f32 %v16770_v39 }
 0x859   :  { %v16774_v58 = vadd.f32 %v1818_v23, %v1816_v31  ;;  %15218 = vrcp.f32 %v1810_v27 }
 0x85b   :  { %15220 = vtanh.f32 %v16774_v58 }
 0x862   :  { %v15217_v21 = vpop.eup %15216 }
 0x863   :  { %v15219_v17 = vpop.eup %15218  ;;  %v1823_v24 = vmul.f32 %v15217_v21, %v15215_v32 }
 0x865   :  { %v15221_v15 = vpop.eup %15220 }
 0x866   :  { %v1824_v46 = vmul.f32 %v15221_v15, %v15219_v17 }
 0x868   :  { %v1825_v12 = vpack.c.bf16 %v1824_v46, %v1823_v24 }
 0x86a   :  { %1859 = vmatmul.mubr.bf16.vlgmr.msra.gmra.mrb[28].mxu1 %v1825_v12  ;;  %1902 = vmatmul.mubr.bf16.vlgmr.msra.gmra.mrb[44].mxu0 %v1825_v12 }
 0x86b   :  { %13973 = vmatpush3.bf16.msra.mxu1 %v14510_v28  ;;  %13988 = vmatprep.mubr.msk.bf16.mxu1 %vm15745_vm4, %v20047_v34 }
 0x86c   :  { %13974 = vmatprep.subr.bf16.mxu1 %v20047_v34  ;;  %13994 = vmatprep.mubr.msk.f32.mxu0 %vm2087_vm5, %v2083_v5  ;;  %v2086_v5 = vld [vmem:[%s20082_s11 + $0x18] sm:$0x3] }
 0x86f   :  { %13975 = vmatpush3.bf16.msra.mxu1 %v14511_v41 }
 0x870   :  { %13976 = vmatprep.subr.bf16.mxu1 %v20047_v34 }
 0x873   :  { %13977 = vmatpush3.bf16.msra.mxu1 %v14512_v44 }
 0x874   :  { %13978 = vmatprep.subr.bf16.mxu1 %v20047_v34 }
 0x877   :  { %13979 = vmatpush3.bf16.msra.mxu1 %v14513_v47 }
 0x878   :  { %13980 = vmatprep.subr.bf16.mxu1 %v20047_v34 }
 0x87b   :  { %13981 = vmatpush3.bf16.msra.mxu1 %v14514_v55 }
 0x87c   :  { %13982 = vmatprep.subr.bf16.mxu1 %v20047_v34 }
 0x87f   :  { %13983 = vmatpush3.bf16.msra.mxu1 %v14515_v56 }
 0x880   :  { %13984 = vmatprep.subr.bf16.mxu1 %v20047_v34 }
 0x883   :  { %13985 = vmatpush3.bf16.msra.mxu1 %v14516_v59 }
 0x884   :  { %13986 = vmatprep.subr.bf16.mxu1 %v20047_v34 }
 0x887   :  { %13987 = vmatpush3.bf16.msra.mxu1 %v14517_v60 }
 0x93d   :  { %v1860_v20 = vpop.f32.mrb[28].mxu1  ;;  %v1903_v48 = vpop.f32.mrb[44].mxu0 }
 0x93e   :  { %v14322_v40 = vadd.f32 %v1860_v20, %v16289_v43  ;;  %v1862_v50 = vpop.f32.mrb[29].mxu1  ;;  %v1905_v7 = vpop.f32.mrb[45].mxu0  ;;  %v14354_v9 = vadd.f32 %v1903_v48, %v16307_v18  ;;  %v12688_v20 = vld [vmem:[%s20082_s11 + $0x20] sm:$0xff]  ;;  %v12689_v48 = vld [vmem:[%s20082_s11 + $0x28] sm:$0xff] }
 0x93f   :  { %v14323_v51 = vadd.f32 %v1862_v50, %v16293_v45  ;;  %v1864_v22 = vpop.f32.mrb[30].mxu1  ;;  %v1907_v38 = vpop.f32.mrb[46].mxu0  ;;  %v14355_v30 = vadd.f32 %v1905_v7, %v16302_v10  ;;  %v12691_v50 = vld [vmem:[%s20082_s11 + $0x38] sm:$0x3]  ;;  %v12696_v7 = vld [vmem:[%s20082_s11 + $0x40] sm:$0xff] }
 0x940   :  { %v12669_v52 = vmul.f32 -1.442695, %v14322_v40  ;;  %v14324_v0 = vadd.f32 %v1864_v22, %v16289_v43  ;;  %v1866_v57 = vpop.f32.mrb[31].mxu1  ;;  %v1909_v63 = vpop.f32.mrb[47].mxu0  ;;  %v14356_v43 = vadd.f32 %v1907_v38, %v16307_v18  ;;  %v12690_v40 = vld [vmem:[%s20082_s11 + $0x30] sm:$0xff] }
 0x941   :  { %v12671_v11 = vmul.f32 -1.442695, %v14323_v51  ;;  %v14325_v25 = vadd.f32 %v1866_v57, %v16293_v45  ;;  %v12673_v13 = vmul.f32 -1.442695, %v14355_v30  ;;  %v14357_v16 = vadd.f32 %v1909_v63, %v16302_v10  ;;  %v12697_v51 = vld [vmem:[%s20082_s11 + $0x48] sm:$0xff]  ;;  %v12698_v22 = vld [vmem:[%s20082_s11 + $0x50] sm:$0xff] }
 0x942   :  { %15222 = vpow2.f32 %v12669_v52  ;;  %v12670_v26 = vmul.f32 -1.442695, %v14324_v0  ;;  %v12699_v38 = vld [vmem:[%s20082_s11 + $0x58] sm:$0x3]  ;;  %v14518_v52 = vld [vmem:[%s20023_s14] sm:$0xff]   ;;  %v14519_v0 = vld [vmem:[%s20023_s14 + $0x8] sm:$0xff]  }
 0x943   :  { %15224 = vpow2.f32 %v12671_v11  ;;  %v12672_v29 = vmul.f32 -1.442695, %v14325_v25  ;;  %v12674_v45 = vmul.f32 -1.442695, %v14357_v16  ;;  %v14520_v57 = vld [vmem:[%s20023_s14 + $0x10] sm:$0xff]   ;;  %v14521_v63 = vld [vmem:[%s20023_s14 + $0x18] sm:$0xff]  }
 0x944   :  { %15226 = vpow2.f32 %v12670_v26  ;;  %v14522_v11 = vld [vmem:[%s20023_s14 + $0x20] sm:$0xff]   ;;  %v14523_v25 = vld [vmem:[%s20023_s14 + $0x28] sm:$0xff]   ;;  %v14524_v26 = vld [vmem:[%s20023_s14 + $0x30] sm:$0xff]  }
 0x945   :  { %15228 = vpow2.f32 %v12672_v29  ;;  %v14525_v29 = vld [vmem:[%s20023_s14 + $0x38] sm:$0xff]   ;;  %v14526_v30 = vld [vmem:[%s20023_s14 + $0x40] sm:$0xff]  }
 0x946   :  { %15230 = vtanh.f32 %v14354_v9  ;;  %v14527_v9 = vld [vmem:[%s20023_s14 + $0x48] sm:$0xff]  }
 0x947   :  { %15232 = vpow2.f32 %v12673_v13  ;;  %v14528_v13 = vld [vmem:[%s20023_s14 + $0x50] sm:$0xff]  }
 0x948   :  { %15234 = vtanh.f32 %v14356_v43 }
 0x94c   :  { %v15223_v6 = vpop.eup %15222 }
 0x94d   :  { %v15225_v19 = vpop.eup %15224  ;;  %v1926_v1 = vadd.f32 1.0, %v15223_v6 }
 0x94e   :  { %v1938_v2 = vadd.f32 1.0, %v15225_v19  ;;  %v15227_v54 = vpop.eup %15226 }
 0x94f   :  { %15236 = vrcp.f32 %v1926_v1  ;;  %v1927_v53 = vadd.f32 1.0, %v15227_v54  ;;  %v15229_v4 = vpop.eup %15228 }
 0x950   :  { %15238 = vrcp.f32 %v1938_v2  ;;  %v1939_v62 = vadd.f32 1.0, %v15229_v4  ;;  %v15231_v10 = vpop.eup %15230 }
 0x951   :  { %15240 = vpow2.f32 %v12674_v45  ;;  %v15233_v8 = vpop.eup %15232  ;;  %v14529_v45 = vld [vmem:[%s20023_s14 + $0x58] sm:$0xff]  }
 0x952   :  { %15242 = vrcp.f32 %v1927_v53  ;;  %v15235_v18 = vpop.eup %15234  ;;  %v1952_v27 = vadd.f32 1.0, %v15233_v8 }
 0x953   :  { %15244 = vrcp.f32 %v1939_v62 }
 0x954   :  { %15246 = vrcp.f32 %v1952_v27 }
 0x959   :  { %v15237_v14 = vpop.eup %15236 }
 0x95a   :  { %v15239_v23 = vpop.eup %15238  ;;  %v1960_v36 = vmul.f32 %v15237_v14, %v15231_v10 }
 0x95b   :  { %v15241_v31 = vpop.eup %15240  ;;  %v1958_v32 = vmul.f32 %v15239_v23, %v16770_v39  ;;  %v2084_v39 = vld [vmem:[%s20082_s11 + $0x8] sm:$0xff] }
 0x95c   :  { %v15243_v21 = vpop.eup %15242  ;;  %v1953_v46 = vadd.f32 1.0, %v15241_v31 }
 0x95d   :  { %v1962_v17 = vadd.f32 %v1960_v36, %v1958_v32  ;;  %v1961_v15 = vmul.f32 %v15243_v21, %v15235_v18  ;;  %v15245_v24 = vpop.eup %15244 }
 0x95e   :  { %v1959_v12 = vmul.f32 %v15245_v24, %v16774_v58  ;;  %v15247_v41 = vpop.eup %15246  ;;  %v2085_v58 = vld [vmem:[%s20082_s11 + $0x10] sm:$0xff]  ;;  %s20087_s11 = sld [smem:[#allocation24_spill]] }
 0x95f   :  { %15248 = vtanh.f32 %v1962_v17 }
 0x960   :  { %v1963_v28 = vadd.f32 %v1961_v15, %v1959_v12  ;;  %15250 = vrcp.f32 %v1953_v46 }
 0x962   :  { %15252 = vtanh.f32 %v1963_v28  ;;  %v14530_v28 = vld [vmem:[%s20023_s14 + $0x60] sm:$0xff]  }
 0x969   :  { %v15249_v44 = vpop.eup %15248 }
 0x96a   :  { %v1966_v47 = vmul.f32 %v15249_v44, %v15247_v41  ;;  %v15251_v55 = vpop.eup %15250 }
 0x96c   :  { %v1984_v56 = vpack.c.bf16 %v1966_v47, %v1966_v47  ;;  %v15253_v59 = vpop.eup %15252 }
 0x96d   :  { %v1967_v60 = vmul.f32 %v15253_v59, %v15251_v55 }
 0x96e   :  { %13989 = vmatmul.mubr.bf16.vlgmr.msra.gmra.mrb[32].mxu1 %v1984_v56  ;;  %v14531_v56 = vld [vmem:[%s20023_s14 + $0x68] sm:$0xff]  }
 0x96f   :  { %14024 = vmatprep.mubr.msk.f32.mxu1 %vm15745_vm4, %v20047_v34  ;;  %13992 = vmatprep.subr.mxu0 %v1967_v60 }
 0x970   :  { %13993 = vmatpush3.msra.mxu0 %v1967_v60 }
 0x971   :  { %13995 = vmatmul.mubr.msk.f32.vlgmr.msra.gmra.mrb[48].mxu0 %vm2087_vm5, %v2084_v39  ;;  %14000 = vmatprep.subr.mxu0 %v1967_v60 }
 0x972   :  { %14001 = vmatpush3.msra.mxu0 %v1967_v60  ;;  %13997 = vmatprep.mubr.msk.f32.mxu0 %vm2087_vm5, %v2085_v58  ;;  %v14532_v58 = vld [vmem:[%s20023_s14 + $0x70] sm:$0xff]  }
 0x973   :  { %14008 = vmatprep.subr.mxu0 %v1967_v60 }
 0x975   :  { %13998 = vmatmul.mubr.msk.f32.gmra.mrb[50].mxu0 %vm2087_vm5, %v2086_v5  ;;  %v14533_v5 = vld [vmem:[%s20023_s14 + $0x78] sm:$0xff]  }
 0x976   :  { %14002 = vmatprep.mubr.msk.f32.mxu0 %vm2087_vm5, %v12688_v20  ;;  %v14534_v20 = vld [vmem:[%s20023_s14 + $0x80] sm:$0xff]  }
 0x979   :  { %14003 = vmatmul.mubr.msk.f32.vlgmr.msra.gmra.mrb[52].mxu0 %vm2087_vm5, %v12689_v48  ;;  %v14535_v48 = vld [vmem:[%s20023_s14 + $0x88] sm:$0xff]  }
 0x97a   :  { %14009 = vmatpush3.msra.mxu0 %v1967_v60  ;;  %14005 = vmatprep.mubr.msk.f32.mxu0 %vm2087_vm5, %v12690_v40  ;;  %v14536_v40 = vld [vmem:[%s20023_s14 + $0x90] sm:$0xff]  }
 0x97b   :  { %2519 = vmatprep.subr.bf16.mxu0 %v20049_v37 }
 0x97d   :  { %14006 = vmatmul.mubr.msk.f32.gmra.mrb[54].mxu0 %vm2087_vm5, %v12691_v50  ;;  %v14537_v50 = vld [vmem:[%s20023_s14 + $0x98] sm:$0xff]  }
 0x97e   :  { %14010 = vmatprep.mubr.msk.f32.mxu0 %vm2087_vm5, %v12696_v7  ;;  %v14538_v7 = vld [vmem:[%s20023_s14 + $0xa0] sm:$0xff]  }
 0x981   :  { %14011 = vmatmul.mubr.msk.f32.vlgmr.msra.gmra.mrb[56].mxu0 %vm2087_vm5, %v12697_v51  ;;  %v14539_v51 = vld [vmem:[%s20023_s14 + $0xa8] sm:$0xff]  }
 0x982   :  { %14013 = vmatprep.mubr.msk.f32.mxu0 %vm2087_vm5, %v12698_v22  ;;  %2520 = vmatpush1.bf16.msra.mxu0 %v14518_v52  ;;  %v14540_v22 = vld [vmem:[%s20023_s14 + $0xb0] sm:$0xff]   ;;  %v15747_v52 = vmov 0.0|0.0  }
 0x983   :  { %2521 = vmatprep.subr.bf16.mxu0 %v20049_v37  ;;  %14258 = vmatprep.subr.bf16.mxu1 %v15747_v52 }
 0x985   :  { %14014 = vmatmul.mubr.msk.f32.gmra.mrb[58].mxu0 %vm2087_vm5, %v12699_v38  ;;  %v14541_v38 = vld [vmem:[%s20023_s14 + $0xb8] sm:$0xff]   ;;  %vm4210_vm5 = vcmask 39936  }
 0x986   :  { %2522 = vmatpush1.bf16.msra.mxu0 %v14519_v0 }
 0x987   :  { %2523 = vmatprep.subr.bf16.mxu0 %v20049_v37 }
 0x98a   :  { %2524 = vmatpush1.bf16.msra.mxu0 %v14520_v57 }
 0x98b   :  { %2525 = vmatprep.subr.bf16.mxu0 %v20049_v37 }
 0x98e   :  { %2526 = vmatpush1.bf16.msra.mxu0 %v14521_v63 }
 0x98f   :  { %2527 = vmatprep.subr.bf16.mxu0 %v20049_v37 }
 0x992   :  { %2528 = vmatpush1.bf16.msra.mxu0 %v14522_v11 }
 0x993   :  { %2529 = vmatprep.subr.bf16.mxu0 %v20049_v37 }
 0x996   :  { %2530 = vmatpush1.bf16.msra.mxu0 %v14523_v25 }
 0x997   :  { %2531 = vmatprep.subr.bf16.mxu0 %v20049_v37 }
 0x99a   :  { %2532 = vmatpush1.bf16.msra.mxu0 %v14524_v26 }
 0x99b   :  { %2533 = vmatprep.subr.bf16.mxu0 %v20049_v37 }
 0x99e   :  { %2534 = vmatpush1.bf16.msra.mxu0 %v14525_v29 }
 0x99f   :  { %2535 = vmatprep.subr.bf16.mxu0 %v20049_v37 }
 0x9a2   :  { %2536 = vmatpush1.bf16.msra.mxu0 %v14526_v30 }
 0x9a3   :  { %2537 = vmatprep.subr.bf16.mxu0 %v20049_v37 }
 0x9a6   :  { %2538 = vmatpush1.bf16.msra.mxu0 %v14527_v9  ;;  %v12769_v9 = vld [vmem:[%s20085_s3 + $0x40] sm:$0xff] }
 0x9a7   :  { %2539 = vmatprep.subr.bf16.mxu0 %v20049_v37 }
 0x9aa   :  { %2540 = vmatpush1.bf16.msra.mxu0 %v14528_v13 }
 0x9ab   :  { %2541 = vmatprep.subr.bf16.mxu0 %v20049_v37 }
 0x9ae   :  { %2542 = vmatpush1.bf16.msra.mxu0 %v14529_v45 }
 0x9af   :  { %2669 = vmatprep.subr.bf16.mxu0 %v20049_v37 }
 0xa41   :  { %v16916_v16 = vpop.f32.mrb[32].mxu1 }
 0xa42   :  { %v13990_v43 = vpop.f32.mrb[33].mxu1 }
 0xa43   :  { %v2077_v6 = vpop.f32.mrb[34].mxu1 }
 0xa44   :  { %v13991_v19 = vpop.f32.mrb[35].mxu1  ;;  %v13996_v1 = vpop.f32.mrb[48].mxu0  ;;  %v2410_v6 = vld [vmem:[%s20085_s3] sm:$0xff] }
 0xa45   :  { %v2166_v2 = vpop.f32.mrb[49].mxu0  ;;  %v2411_v19 = vld [vmem:[%s20085_s3 + $0x8] sm:$0xff] }
 0xa48   :  { %v13999_v54 = vpop.f32.mrb[50].mxu0 }
 0xa49   :  { %v2176_v53 = vpop.f32.mrb[51].mxu0 }
 0xa4c   :  { %v14004_v4 = vpop.f32.mrb[52].mxu0 }
 0xa4d   :  { %v2268_v62 = vpop.f32.mrb[53].mxu0 }
 0xa4e   :  { %v14434_v10 = vpack.i.bf16 %v14004_v4, %v2268_v62 }
 0xa50   :  { %14435 = vrot.lane.b32.xlu0 %v14434_v10, %s15746_s7  ;;  %v14007_v8 = vpop.f32.mrb[54].mxu0 }
 0xa51   :  { %v2278_v18 = vpop.f32.mrb[55].mxu0 }
 0xa52   :  { %v14439_v14 = vpack.i.bf16 %v14007_v8, %v2278_v18 }
 0xa54   :  { %14440 = vrot.lane.b32.xlu0 %v14439_v14, %s15746_s7  ;;  %v14012_v23 = vpop.f32.mrb[56].mxu0 }
 0xa55   :  { %v2370_v36 = vpop.f32.mrb[57].mxu0 }
 0xa56   :  { %v16924_v27 = vpack.c.bf16 %v14012_v23, %v2370_v36  ;;  %v12718_v23 = vld [vmem:[%s20085_s3 + $0x18] sm:$0xff]  ;;  %v14542_v36 = vld [vmem:[%s20023_s14 + $0xc0] sm:$0xff]  }
 0xa58   :  { %12716 = vmatprep.mubr.msk.bf16.mxu0 %vm2405_vm6, %v16924_v27  ;;  %v14015_v31 = vpop.f32.mrb[58].mxu0 }
 0xa59   :  { %v2380_v32 = vpop.f32.mrb[59].mxu0 }
 0xa5a   :  { %v16928_v21 = vpack.c.bf16 %v14015_v31, %v2380_v32  ;;  %v12719_v31 = vld [vmem:[%s20085_s3 + $0x20] sm:$0xff]  ;;  %v14543_v32 = vld [vmem:[%s20023_s14 + $0xc8] sm:$0xff]  }
 0xac2   :  { %v14436_v17 = vpop.permute.xlu0 %14435 }
 0xac3   :  { %v14438_v15 = vunpack.i.h.bf16 %v14436_v17  ;;  %v14437_v24 = vunpack.i.l.bf16 %v14436_v17  ;;  %v12720_v17 = vld [vmem:[%s20085_s3 + $0x28] sm:$0xff] }
 0xac5   :  { %v2407_v46 = vsel %vm2405_vm6, %v13996_v1, %v14438_v15  ;;  %v2406_v12 = vsel %vm2405_vm6, %v2166_v2, %v14437_v24  ;;  %v2412_v1 = vld [vmem:[%s20085_s3 + $0x10] sm:$0xff]  ;;  %v14545_v24 = vld [vmem:[%s20023_s14 + $0xd8] sm:$0xff]  }
 0xac6   :  { %v16935_v41 = vpack.c.bf16 %v2407_v46, %v2406_v12  ;;  %v14441_v44 = vpop.permute.xlu0 %14440  ;;  %v14544_v15 = vld [vmem:[%s20023_s14 + $0xd0] sm:$0xff]   ;;  %v14546_v46 = vld [vmem:[%s20023_s14 + $0xe0] sm:$0xff]   ;;  %v14547_v12 = vld [vmem:[%s20023_s14 + $0xe8] sm:$0xff]  }
 0xac7   :  { %v14443_v47 = vunpack.i.h.bf16 %v14441_v44  ;;  %v14442_v55 = vunpack.i.l.bf16 %v14441_v44  ;;  %v14550_v44 = vld [vmem:[%s20023_s14 + $0x100] sm:$0xff]  }
 0xac8   :  { %2552 = vmatmul.mubr.bf16.vlgmr.msra.gmra.mrb[60].mxu0 %v16935_v41 }
 0xac9   :  { %2670 = vmatpush1.bf16.msra.mxu0 %v14530_v28  ;;  %12717 = vmatprep.mubr.msk.bf16.mxu0 %vm2405_vm6, %v16928_v21  ;;  %v2408_v59 = vsel %vm2405_vm6, %v2176_v53, %v14442_v55  ;;  %v2409_v60 = vsel %vm2405_vm6, %v13999_v54, %v14443_v47  ;;  %v14549_v28 = vld [vmem:[%s20023_s14 + $0xf8] sm:$0xff]   ;;  %v14551_v47 = vld [vmem:[%s20023_s14 + $0x108] sm:$0xff]   ;;  %v14552_v55 = vld [vmem:[%s20023_s14 + $0x110] sm:$0xff]  }
 0xaca   :  { %2671 = vmatprep.subr.bf16.mxu0 %v20049_v37  ;;  %v16946_v39 = vpack.c.bf16 %v2409_v60, %v2408_v59 }
 0xacd   :  { %2672 = vmatpush1.bf16.msra.mxu0 %v14531_v56  ;;  %v14553_v56 = vld [vmem:[%s20023_s14 + $0x118] sm:$0xff]  }
 0xace   :  { %2673 = vmatprep.subr.bf16.mxu0 %v20049_v37 }
 0xad0   :  { %2560 = vmatmul.mubr.bf16.gmra.mrb[64].mxu0 %v16946_v39 }
 0xad1   :  { %2674 = vmatpush1.bf16.msra.mxu0 %v14532_v58  ;;  %12757 = vmatprep.mubr.msk.bf16.mxu0 %vm2405_vm6, %v16924_v27 }
 0xad2   :  { %2675 = vmatprep.subr.bf16.mxu0 %v20049_v37 }
 0xad5   :  { %2676 = vmatpush1.bf16.msra.mxu0 %v14533_v5 }
 0xad6   :  { %2677 = vmatprep.subr.bf16.mxu0 %v20049_v37 }
 0xad9   :  { %2678 = vmatpush1.bf16.msra.mxu0 %v14534_v20 }
 0xada   :  { %2679 = vmatprep.subr.bf16.mxu0 %v20049_v37 }
 0xadd   :  { %2680 = vmatpush1.bf16.msra.mxu0 %v14535_v48 }
 0xade   :  { %2681 = vmatprep.subr.bf16.mxu0 %v20049_v37 }
 0xae1   :  { %2682 = vmatpush1.bf16.msra.mxu0 %v14536_v40 }
 0xae2   :  { %2683 = vmatprep.subr.bf16.mxu0 %v20049_v37 }
 0xae5   :  { %2684 = vmatpush1.bf16.msra.mxu0 %v14537_v50 }
 0xae6   :  { %2685 = vmatprep.subr.bf16.mxu0 %v20049_v37 }
 0xae9   :  { %2686 = vmatpush1.bf16.msra.mxu0 %v14538_v7 }
 0xaea   :  { %2687 = vmatprep.subr.bf16.mxu0 %v20049_v37 }
 0xaed   :  { %2688 = vmatpush1.bf16.msra.mxu0 %v14539_v51 }
 0xaee   :  { %2689 = vmatprep.subr.bf16.mxu0 %v20049_v37 }
 0xaf1   :  { %2690 = vmatpush1.bf16.msra.mxu0 %v14540_v22 }
 0xaf2   :  { %2691 = vmatprep.subr.bf16.mxu0 %v20049_v37 }
 0xaf5   :  { %2692 = vmatpush1.bf16.msra.mxu0 %v14541_v38 }
 0xaf6   :  { %14265 = vmatprep.subr.bf16.mxu0 %v15747_v52 }
 0xaf8   :  { %2702 = vmatmul.mubr.bf16.vlgmr.msra.gmra.mrb[68].mxu0 %v16935_v41 }
 0xaf9   :  { %12758 = vmatprep.mubr.msk.bf16.mxu0 %vm2405_vm6, %v16928_v21 }
 0xb00   :  { %2710 = vmatmul.mubr.bf16.gmra.mrb[72].mxu0 %v16946_v39 }
 0xb01   :  { %14041 = vmatprep.mubr.msk.f32.mxu0 %vm15745_vm4, %v20047_v34 }
 0xb9b   :  { %v2553_v0 = vpop.f32.mrb[60].mxu0 }
 0xb9c   :  { %v2555_v57 = vpop.f32.mrb[61].mxu0 }
 0xb9d   :  { %v2556_v63 = vpop.f32.mrb[62].mxu0 }
 0xb9e   :  { %v14266_v11 = vpack.c.bf16 %v2556_v63, %v2553_v0  ;;  %v2558_v25 = vpop.f32.mrb[63].mxu0 }
 0xba0   :  { %14267 = vmatpush3.bf16.msra.mxu0 %v14266_v11 }
 0xba1   :  { %14268 = vmatprep.subr.bf16.mxu0 %v15747_v52 }
 0xba3   :  { %v2561_v26 = vpop.f32.mrb[64].mxu0 }
 0xba4   :  { %v2563_v29 = vpop.f32.mrb[65].mxu0 }
 0xba5   :  { %v2564_v30 = vpop.f32.mrb[66].mxu0 }
 0xba6   :  { %v14269_v13 = vpack.c.bf16 %v2564_v30, %v2561_v26  ;;  %v2566_v43 = vpop.f32.mrb[67].mxu0 }
 0xba8   :  { %14271 = vmatpush3.bf16.msk.msra.mxu0 %vm17001_vm10, %v14269_v13 }
 0xba9   :  { %14272 = vmatprep.subr.bf16.mxu0 %v15747_v52 }
 0xbab   :  { %14042 = vmatmul.mubr.msk.f32.vlgmr.msra.gmra.mrb[76].mxu0 %vm2718_vm11, %v2410_v6  ;;  %v12767_v6 = vld [vmem:[%s20085_s3 + $0x30] sm:$0xff] }
 0xbac   :  { %14044 = vmatprep.mubr.msk.f32.mxu0 %vm15745_vm4, %v20047_v34 }
 0xbaf   :  { %14045 = vmatmul.mubr.msk.f32.gmra.mrb[78].mxu0 %vm2718_vm11, %v2411_v19  ;;  %v12768_v19 = vld [vmem:[%s20085_s3 + $0x38] sm:$0xff] }
 0xbb0   :  { %14047 = vmatprep.mubr.msk.f32.mxu0 %vm15745_vm4, %v20047_v34 }
 0xbb3   :  { %14048 = vmatmul.mubr.msk.f32.gmra.mrb[80].mxu0 %vm2718_vm11, %v2412_v1  ;;  %v14554_v1 = vld [vmem:[%s20025_s16] sm:$0xff]  }
 0xbb4   :  { %14058 = vmatprep.mubr.msk.f32.mxu0 %vm15745_vm4, %v20047_v34 }
 0xbcb   :  { %v2703_v45 = vpop.f32.mrb[68].mxu0 }
 0xbcc   :  { %v2705_v2 = vpop.f32.mrb[69].mxu0 }
 0xbcd   :  { %v2706_v54 = vpop.f32.mrb[70].mxu0  ;;  %v14556_v2 = vld [vmem:[%s20025_s16 + $0x10] sm:$0xff]  }
 0xbce   :  { %v14259_v53 = vpack.c.bf16 %v2706_v54, %v2703_v45  ;;  %v2708_v4 = vpop.f32.mrb[71].mxu0  ;;  %v14555_v45 = vld [vmem:[%s20025_s16 + $0x8] sm:$0xff]   ;;  %v14557_v54 = vld [vmem:[%s20025_s16 + $0x18] sm:$0xff]  }
 0xbd0   :  { %14260 = vmatpush3.bf16.msra.mxu1 %v14259_v53  ;;  %v14558_v53 = vld [vmem:[%s20025_s16 + $0x20] sm:$0xff]  }
 0xbd1   :  { %14261 = vmatprep.subr.bf16.mxu1 %v15747_v52 }
 0xbd3   :  { %v2711_v62 = vpop.f32.mrb[72].mxu0 }
 0xbd4   :  { %v2713_v10 = vpop.f32.mrb[73].mxu0 }
 0xbd5   :  { %v2714_v8 = vpop.f32.mrb[74].mxu0 }
 0xbd6   :  { %v14262_v18 = vpack.c.bf16 %v2714_v8, %v2711_v62  ;;  %v2716_v14 = vpop.f32.mrb[75].mxu0  ;;  %v12812_v62 = vld [vmem:[%s20024_s15] ss:$0 sm:$0xff] }
 0xbd8   :  { %14264 = vmatpush3.bf16.msk.msra.mxu1 %vm17001_vm10, %v14262_v18 }
 0xbd9   :  { %3005 = vmatprep.subr.bf16.mxu1 %v20049_v37 }
 0xbdb   :  { %14025 = vmatmul.mubr.msk.f32.vlgmr.msra.gmra.mrb[36].mxu1 %vm2718_vm11, %v12718_v23 }
 0xbdc   :  { %3006 = vmatpush1.bf16.msra.mxu1 %v14542_v36  ;;  %14027 = vmatprep.mubr.msk.f32.mxu1 %vm15745_vm4, %v20047_v34 }
 0xbdd   :  { %3007 = vmatprep.subr.bf16.mxu1 %v20049_v37 }
 0xbdf   :  { %14028 = vmatmul.mubr.msk.f32.gmra.mrb[38].mxu1 %vm2718_vm11, %v12719_v31 }
 0xbe0   :  { %3008 = vmatpush1.bf16.msra.mxu1 %v14543_v32  ;;  %14030 = vmatprep.mubr.msk.f32.mxu1 %vm15745_vm4, %v20047_v34 }
 0xbe1   :  { %3009 = vmatprep.subr.bf16.mxu1 %v20049_v37 }
 0xbe3   :  { %14031 = vmatmul.mubr.msk.f32.gmra.mrb[40].mxu1 %vm2718_vm11, %v12720_v17 }
 0xbe4   :  { %3010 = vmatpush1.bf16.msra.mxu1 %v14544_v15  ;;  %12806 = vmatprep.mubr.msk.bf16.mxu1 %vm2405_vm6, %v16924_v27  ;;  %v14548_v27 = vld [vmem:[%s20023_s14 + $0xf0] sm:$0xff]   ;;  %s20089_s14 = sld [smem:[#allocation26_spill]] }
 0xbe5   :  { %3011 = vmatprep.subr.bf16.mxu1 %v20049_v37 }
 0xbe8   :  { %3012 = vmatpush1.bf16.msra.mxu1 %v14545_v24 }
 0xbe9   :  { %3013 = vmatprep.subr.bf16.mxu1 %v20049_v37 }
 0xbec   :  { %3014 = vmatpush1.bf16.msra.mxu1 %v14546_v46 }
 0xbed   :  { %3015 = vmatprep.subr.bf16.mxu1 %v20049_v37 }
 0xbf0   :  { %3016 = vmatpush1.bf16.msra.mxu1 %v14547_v12 }
 0xbf1   :  { %3017 = vmatprep.subr.bf16.mxu1 %v20049_v37 }
 0xbf4   :  { %3018 = vmatpush1.bf16.msra.mxu1 %v14548_v27 }
 0xbf5   :  { %3019 = vmatprep.subr.bf16.mxu1 %v20049_v37 }
 0xbf8   :  { %3020 = vmatpush1.bf16.msra.mxu1 %v14549_v28 }
 0xbf9   :  { %3021 = vmatprep.subr.bf16.mxu1 %v20049_v37 }
 0xbfc   :  { %3022 = vmatpush1.bf16.msra.mxu1 %v14550_v44 }
 0xbfd   :  { %3023 = vmatprep.subr.bf16.mxu1 %v20049_v37 }
 0xc00   :  { %3024 = vmatpush1.bf16.msra.mxu1 %v14551_v47 }
 0xc01   :  { %3025 = vmatprep.subr.bf16.mxu1 %v20049_v37 }
 0xc04   :  { %3026 = vmatpush1.bf16.msra.mxu1 %v14552_v55 }
 0xc05   :  { %3027 = vmatprep.subr.bf16.mxu1 %v20049_v37 }
 0xc08   :  { %3028 = vmatpush1.bf16.msra.mxu1 %v14553_v56 }
 0xc09   :  { %14282 = vmatprep.subr.bf16.mxu1 %v15747_v52 }
 0xc0b   :  { %3038 = vmatmul.mubr.bf16.vlgmr.msra.gmra.mrb[44].mxu1 %v16935_v41 }
 0xc0c   :  { %12807 = vmatprep.mubr.msk.bf16.mxu1 %vm2405_vm6, %v16928_v21 }
 0xc13   :  { %3046 = vmatmul.mubr.bf16.gmra.mrb[48].mxu1 %v16946_v39 }
 0xc14   :  { %14112 = vmatprep.mubr.msk.f32.mxu1 %vm15745_vm4, %v20047_v34 }
 0xc7e   :  { %v2890_v59 = vpop.f32.mrb[76].mxu0 }
 0xc7f   :  { %v14043_v60 = vpop.f32.mrb[77].mxu0 }
 0xc80   :  { %v14560_v60 = vld [vmem:[%s20025_s16 + $0x30] sm:$0xff]  }
 0xc82   :  { %v2895_v58 = vpop.f32.mrb[78].mxu0 }
 0xc83   :  { %v14046_v5 = vpop.f32.mrb[79].mxu0 }
 0xc86   :  { %v2900_v20 = vpop.f32.mrb[80].mxu0 }
 0xc87   :  { %v14049_v48 = vpop.f32.mrb[81].mxu0 }
 0xcae   :  { %v2798_v40 = vpop.f32.mrb[36].mxu1 }
 0xcaf   :  { %v14026_v50 = vpop.f32.mrb[37].mxu1  ;;  %v2891_v7 = vadd.f32 %v2890_v59, %v2798_v40  ;;  %v14559_v59 = vld [vmem:[%s20025_s16 + $0x28] sm:$0xff]  }
 0xcb2   :  { %v2803_v51 = vpop.f32.mrb[38].mxu1 }
 0xcb3   :  { %v14029_v22 = vpop.f32.mrb[39].mxu1  ;;  %v2896_v41 = vadd.f32 %v2895_v58, %v2803_v51  ;;  %v14561_v58 = vld [vmem:[%s20025_s16 + $0x38] sm:$0xff]   ;;  %v3169_v51 = vld [vmem:[%s20086_s2 + $0x8] sm:$0xff] }
 0xcb6   :  { %v2808_v38 = vpop.f32.mrb[40].mxu1 }
 0xcb7   :  { %v14032_v0 = vpop.f32.mrb[41].mxu1  ;;  %v2901_v21 = vadd.f32 %v2900_v20, %v2808_v38 }
 0xcde   :  { %v3039_v57 = vpop.f32.mrb[44].mxu1 }
 0xcdf   :  { %v3041_v39 = vpop.f32.mrb[45].mxu1 }
 0xce0   :  { %v3042_v63 = vpop.f32.mrb[46].mxu1  ;;  %v14562_v39 = vld [vmem:[%s20025_s16 + $0x40] sm:$0xff]  }
 0xce1   :  { %v14273_v11 = vpack.c.bf16 %v3042_v63, %v3039_v57  ;;  %v3044_v25 = vpop.f32.mrb[47].mxu1  ;;  %v12819_v63 = vld [vmem:[%s20086_s2 + $0x18] sm:$0xff] }
 0xce2   :  { %v12820_v25 = vld [vmem:[%s20086_s2 + $0x20] sm:$0xff] }
 0xce3   :  { %14274 = vmatpush3.bf16.msra.mxu0 %v14273_v11  ;;  %v14563_v11 = vld [vmem:[%s20025_s16 + $0x48] sm:$0xff]  }
 0xce4   :  { %14275 = vmatprep.subr.bf16.mxu0 %v15747_v52 }
 0xce6   :  { %v3047_v26 = vpop.f32.mrb[48].mxu1 }
 0xce7   :  { %v3049_v29 = vpop.f32.mrb[49].mxu1 }
 0xce8   :  { %v3050_v30 = vpop.f32.mrb[50].mxu1  ;;  %v12821_v29 = vld [vmem:[%s20086_s2 + $0x28] sm:$0xff] }
 0xce9   :  { %v14276_v13 = vpack.c.bf16 %v3050_v30, %v3047_v26  ;;  %v3052_v43 = vpop.f32.mrb[51].mxu1  ;;  %v14564_v26 = vld [vmem:[%s20025_s16 + $0x50] sm:$0xff]   ;;  %v14565_v30 = vld [vmem:[%s20025_s16 + $0x58] sm:$0xff]   ;;  %s15753_s16 = smov [#allocation5]  }
 0xcea   :  { %s12547_s9 = sshll.u32 %s15753_s16, 4  ;;  %s12548_s9 = int_to_ptr.vmem [resolvable:$true] %s12547_s9 }
 0xceb   :  { %14278 = vmatpush3.bf16.msk.msra.mxu0 %vm17001_vm10, %v14276_v13  ;;  %vm4137_vm10 = vcmask 9216  }
 0xcec   :  { %14067 = vmatprep.subr.bf16.mxu0 %v14554_v1 }
 0xcee   :  { %14059 = vmatmul.mubr.msk.f32.vlgmr.msra.gmra.mrb[82].mxu0 %vm2718_vm11, %v12767_v6 }
 0xcef   :  { %14061 = vmatprep.mubr.msk.f32.mxu0 %vm15745_vm4, %v20047_v34  ;;  %14068 = vmatpush3.bf16.msra.mxu0 %v14554_v1 }
 0xcf0   :  { %14069 = vmatprep.subr.bf16.mxu0 %v14555_v45 }
 0xcf2   :  { %14062 = vmatmul.mubr.msk.f32.gmra.mrb[84].mxu0 %vm2718_vm11, %v12768_v19 }
 0xcf3   :  { %14064 = vmatprep.mubr.msk.f32.mxu0 %vm15745_vm4, %v20047_v34  ;;  %14070 = vmatpush3.bf16.msra.mxu0 %v14555_v45 }
 0xcf4   :  { %14071 = vmatprep.subr.bf16.mxu0 %v14556_v2 }
 0xcf6   :  { %14065 = vmatmul.mubr.msk.f32.gmra.mrb[86].mxu0 %vm2718_vm11, %v12769_v9 }
 0xcf7   :  { %14072 = vmatpush3.bf16.msra.mxu0 %v14556_v2 }
 0xcf8   :  { %14073 = vmatprep.subr.bf16.mxu0 %v14557_v54 }
 0xcfb   :  { %14074 = vmatpush3.bf16.msra.mxu0 %v14557_v54 }
 0xcfc   :  { %14079 = vmatprep.subr.bf16.mxu0 %v14558_v53 }
 0xdc1   :  { %v3132_v4 = vpop.f32.mrb[82].mxu0 }
 0xdc2   :  { %v3146_v10 = vadd.f32 %v3132_v4, %v2891_v7  ;;  %v14060_v8 = vpop.f32.mrb[83].mxu0  ;;  %v3168_v7 = vld [vmem:[%s20086_s2] sm:$0xff] }
 0xdc4   :  { %v3156_v18 = vadd.f32 %v12812_v62, %v3146_v10 }
 0xdc5   :  { %v3137_v14 = vpop.f32.mrb[84].mxu0 }
 0xdc6   :  { %v3147_v23 = vadd.f32 %v3137_v14, %v2896_v41  ;;  %v14063_v36 = vpop.f32.mrb[85].mxu0  ;;  %v3162_v31 = vmul.f32 0.1, %v3156_v18  ;;  %vm3159_vm12 = vcmp.ge.f32.partialorder %v3156_v18, 0.0  ;;  %v3170_v41 = vld [vmem:[%s20086_s2 + $0x10] sm:$0xff] }
 0xdc8   :  { %v3157_v32 = vadd.f32 %v12812_v62, %v3147_v23  ;;  %v3165_v12 = vsel %vm3159_vm12, %v3156_v18, %v3162_v31 }
 0xdc9   :  { %v3142_v17 = vpop.f32.mrb[86].mxu0 }
 0xdca   :  { %vm3160_vm13 = vcmp.ge.f32.partialorder %v3157_v32, 0.0  ;;  %v3163_v15 = vmul.f32 0.1, %v3157_v32  ;;  %v3148_v24 = vadd.f32 %v3142_v17, %v2901_v21  ;;  %v14066_v46 = vpop.f32.mrb[87].mxu0  ;;  %v12842_v17 = vld [vmem:[%s20086_s2 + $0x30] sm:$0xff] }
 0xdcb   :  { %v12862_v46 = vld [vmem:[%s20026_s17] ss:$0 sm:$0xff] }
 0xdcc   :  { %v3166_v27 = vsel %vm3160_vm13, %v3157_v32, %v3163_v15  ;;  %v3158_v28 = vadd.f32 %v12812_v62, %v3148_v24  ;;  %v12843_v15 = vld [vmem:[%s20086_s2 + $0x38] sm:$0xff]  ;;  %v12844_v24 = vld [vmem:[%s20086_s2 + $0x40] sm:$0xff] }
 0xdcd   :  { %v17139_v44 = vpack.c.bf16 %v3166_v27, %v3165_v12 }
 0xdce   :  { %vm3161_vm14 = vcmp.ge.f32.partialorder %v3158_v28, 0.0  ;;  %v3164_v47 = vmul.f32 0.1, %v3158_v28 }
 0xdcf   :  { %14075 = vmatprep.mubr.msk.bf16.mxu0 %vm2405_vm6, %v17139_v44 }
 0xdd0   :  { %v3167_v55 = vsel %vm3161_vm14, %v3158_v28, %v3164_v47 }
 0xdd1   :  { %v17143_v56 = vpack.c.bf16 %v3167_v55, %v3167_v55 }
 0xdd3   :  { %14076 = vmatmul.mubr.msk.bf16.vlgmr.msra.gmra.mrb[88].mxu0 %vm2405_vm6, %v17143_v56 }
 0xdd4   :  { %14080 = vmatpush3.bf16.msra.mxu0 %v14558_v53  ;;  %14087 = vmatprep.mubr.msk.bf16.mxu0 %vm2405_vm6, %v17139_v44 }
 0xdd5   :  { %14081 = vmatprep.subr.bf16.mxu0 %v14559_v59 }
 0xdd8   :  { %14082 = vmatpush3.bf16.msra.mxu0 %v14559_v59 }
 0xdd9   :  { %14083 = vmatprep.subr.bf16.mxu0 %v14560_v60 }
 0xddc   :  { %14084 = vmatpush3.bf16.msra.mxu0 %v14560_v60 }
 0xddd   :  { %14085 = vmatprep.subr.bf16.mxu0 %v14561_v58 }
 0xde0   :  { %14086 = vmatpush3.bf16.msra.mxu0 %v14561_v58 }
 0xde1   :  { %14279 = vmatprep.subr.bf16.mxu0 %v15747_v52 }
 0xde3   :  { %14088 = vmatmul.mubr.msk.bf16.vlgmr.msra.gmra.mrb[92].mxu0 %vm2405_vm6, %v17143_v56 }
 0xde4   :  { %14097 = vmatprep.mubr.msk.f32.mxu0 %vm15745_vm4, %v20047_v34 }
 0xea6   :  { %v14077_v5 = vpop.f32.mrb[88].mxu0 }
 0xea7   :  { %v3245_v20 = vpop.f32.mrb[89].mxu0 }
 0xea8   :  { %v14078_v48 = vpop.f32.mrb[90].mxu0 }
 0xea9   :  { %v3248_v40 = vpop.f32.mrb[91].mxu0 }
 0xeaa   :  { %v14283_v50 = vpack.c.bf16 %v3248_v40, %v3245_v20 }
 0xeac   :  { %14284 = vmatpush3.bf16.msra.mxu1 %v14283_v50 }
 0xead   :  { %14110 = vmatprep.subr.mxu1 %v20047_v34 }
 0xeb0   :  { %14111 = vmatpush3.msra.mxu1 %v14077_v5 }
 0xeb1   :  { %14113 = vmatmul.mubr.msk.f32.vlgmr.msra.gmra.mrb[42].mxu1 %vm3344_vm15, %v3168_v7  ;;  %14285 = vmatprep.subr.bf16.mxu1 %v15747_v52 }
 0xeb2   :  { %14115 = vmatprep.mubr.msk.f32.mxu1 %vm15745_vm4, %v20047_v34 }
 0xeb5   :  { %14116 = vmatmul.mubr.msk.f32.gmra.mrb[52].mxu1 %vm3344_vm15, %v3169_v51 }
 0xeb6   :  { %v14089_v22 = vpop.f32.mrb[92].mxu0  ;;  %14118 = vmatprep.mubr.msk.f32.mxu1 %vm15745_vm4, %v20047_v34 }
 0xeb7   :  { %v3330_v38 = vpop.f32.mrb[93].mxu0 }
 0xeb8   :  { %v14090_v0 = vpop.f32.mrb[94].mxu0 }
 0xeb9   :  { %v3333_v21 = vpop.f32.mrb[95].mxu0  ;;  %14119 = vmatmul.mubr.msk.f32.gmra.mrb[54].mxu1 %vm3344_vm15, %v3170_v41  ;;  %v3829_v41 = vld [vmem:[%s20088_s4] sm:$0xff]  ;;  %v3720_v0 = vld [vmem:[%s20087_s11 + $0x8] sm:$0xff] }
 0xeba   :  { %v14280_v57 = vpack.c.bf16 %v3333_v21, %v3330_v38  ;;  %14139 = vmatprep.mubr.msk.f32.mxu1 %vm15745_vm4, %v20047_v34  ;;  %v3830_v21 = vld [vmem:[%s20088_s4 + $0x8] sm:$0xff] }
 0xebc   :  { %14281 = vmatpush3.bf16.msra.mxu0 %v14280_v57  ;;  %v3721_v57 = vld [vmem:[%s20087_s11 + $0x10] sm:$0xff] }
 0xebd   :  { %14095 = vmatprep.subr.mxu0 %v20047_v34 }
 0xec0   :  { %14096 = vmatpush3.msra.mxu0 %v14089_v22  ;;  %v3719_v22 = vld [vmem:[%s20087_s11] sm:$0xff] }
 0xec1   :  { %14098 = vmatmul.mubr.msk.f32.vlgmr.msra.gmra.mrb[96].mxu0 %vm3344_vm15, %v12819_v63  ;;  %14121 = vmatprep.subr.bf16.mxu0 %v14562_v39  ;;  %v3722_v63 = vld [vmem:[%s20087_s11 + $0x18] sm:$0xff] }
 0xec2   :  { %14122 = vmatpush3.bf16.msra.mxu0 %v14562_v39  ;;  %14100 = vmatprep.mubr.msk.f32.mxu0 %vm15745_vm4, %v20047_v34  ;;  %v3831_v39 = vld [vmem:[%s20088_s4 + $0x10] sm:$0xff] }
 0xec3   :  { %14123 = vmatprep.subr.bf16.mxu0 %v14563_v11 }
 0xec5   :  { %14101 = vmatmul.mubr.msk.f32.gmra.mrb[98].mxu0 %vm3344_vm15, %v12820_v25  ;;  %v3723_v25 = vld [vmem:[%s20087_s11 + $0x20] sm:$0xff] }
 0xec6   :  { %14124 = vmatpush3.bf16.msra.mxu0 %v14563_v11  ;;  %14103 = vmatprep.mubr.msk.f32.mxu0 %vm15745_vm4, %v20047_v34  ;;  %v3832_v11 = vld [vmem:[%s20088_s4 + $0x18] sm:$0xff] }
 0xec7   :  { %14125 = vmatprep.subr.bf16.mxu0 %v14564_v26 }
 0xec9   :  { %14104 = vmatmul.mubr.msk.f32.gmra.mrb[100].mxu0 %vm3344_vm15, %v12821_v29  ;;  %v4215_v29 = vsel %vm2728_vm8, 4294967295, %v15742_v3 }
 0xeca   :  { %14126 = vmatpush3.bf16.msra.mxu0 %v14564_v26  ;;  %14129 = vmatprep.mubr.msk.bf16.mxu0 %vm2405_vm6, %v17139_v44  ;;  %v3833_v26 = vld [vmem:[%s20088_s4 + $0x20] sm:$0xff]  ;;  %s15752_s4 = smov [#allocation3]  }
 0xecb   :  { %14127 = vmatprep.subr.bf16.mxu0 %v14565_v30  ;;  %s12537_s5 = sshll.u32 %s15752_s4, 4  ;;  %s12538_s5 = int_to_ptr.vmem [resolvable:$true] %s12537_s5 }
 0xecc   :  { %p15699_p1 = scmp.lt.s32.totalorder %s12538_s5, %s12538_s5 }
 0xece   :  { %14128 = vmatpush3.bf16.msra.mxu0 %v14565_v30  ;;  %v4216_v30 = vsel %vm4214_vm3, %v4215_v29, 0 }
 0xecf   :  { %14288 = vmatprep.subr.bf16.mxu0 %v15747_v52 }
 0xed1   :  { %14130 = vmatmul.mubr.msk.bf16.vlgmr.msra.gmra.mrb[104].mxu0 %vm2405_vm6, %v17143_v56 }
 0xed2   :  { %14154 = vmatprep.mubr.msk.f32.mxu0 %vm15745_vm4, %v20047_v34 }
 0xf84   :  { %v3509_v13 = vpop.f32.mrb[42].mxu1 }
 0xf85   :  { %v14114_v43 = vpop.f32.mrb[43].mxu1 }
 0xf86   :  { %v4198_v43 = vld [vmem:[%s20030_s21 + $0x8] sm:$0x77] }
 0xf87   :  { %v12889_v3 = vcombine.low %v4198_v43, %v4198_v43 }
 0xf88   :  { %v3514_v6 = vpop.f32.mrb[52].mxu1 }
 0xf89   :  { %v14117_v19 = vpop.f32.mrb[53].mxu1 }
 0xf8c   :  { %v3519_v9 = vpop.f32.mrb[54].mxu1 }
 0xf8d   :  { %v14120_v1 = vpop.f32.mrb[55].mxu1 }
 0xf8e   :  { %v4196_v1 = vld [vmem:[%s20089_s14] sm:$0xff]  ;;  %s15750_s14 = smov 96  }
 0xf94   :  { %v3420_v45 = vpop.f32.mrb[96].mxu0 }
 0xf95   :  { %v14099_v2 = vpop.f32.mrb[97].mxu0  ;;  %v3510_v54 = vadd.f32 %v3509_v13, %v3420_v45  ;;  %v4197_v13 = vld [vmem:[%s20030_s21] sm:$0x77]  ;;  %v12890_v45 = vcombine.high %v4198_v43, %v4198_v43 }
 0xf96   :  { %v12888_v19 = vcombine.high %v4197_v13, %v4197_v13 }
 0xf98   :  { %v3425_v53 = vpop.f32.mrb[98].mxu0  ;;  %v4221_v2 = vand.u32 %v12888_v19, %v4216_v30 }
 0xf99   :  { %v14102_v4 = vpop.f32.mrb[99].mxu0  ;;  %v3515_v62 = vadd.f32 %v3514_v6, %v3425_v53  ;;  %v12887_v6 = vcombine.low %v4197_v13, %v4197_v13  ;;  %v14577_v53 = vld [vmem:[%s20027_s18 + $0x8] sm:$0xff]   ;;  %v17445_v13 = vld [vmem:[%s20031_s22 + $0x4] ss:$16 sps:$4 sm:$0xff]  }
 0xf9a   :  { %v4227_v4 = vand.u32 %v12890_v45, %v4216_v30 }
 0xf9c   :  { %v3430_v10 = vpop.f32.mrb[100].mxu0 }
 0xf9d   :  { %v14105_v8 = vpop.f32.mrb[101].mxu0  ;;  %v3520_v18 = vadd.f32 %v3519_v9, %v3430_v10  ;;  %v14573_v9 = vld [vmem:[%s20027_s18] sm:$0xff]   ;;  %v4224_v10 = vand.u32 %v12889_v3, %v4216_v30 }
 0xf9e   :  { %v14572_v8 = vld [vmem:[%s20029_s20 + $0x4] ss:$16 sps:$4 sm:$0xff]  }
 0xfa4   :  { %v14131_v14 = vpop.f32.mrb[104].mxu0 }
 0xfa5   :  { %v3594_v23 = vpop.f32.mrb[105].mxu0 }
 0xfa6   :  { %v14132_v36 = vpop.f32.mrb[106].mxu0 }
 0xfa7   :  { %v3597_v31 = vpop.f32.mrb[107].mxu0  ;;  %v14576_v36 = vld [vmem:[%s20029_s20 + $0x24] ss:$16 sps:$4 sm:$0xff]  }
 0xfa8   :  { %v14286_v32 = vpack.c.bf16 %v3597_v31, %v3594_v23  ;;  %v14570_v23 = vld [vmem:[%s20029_s20] ss:$16 sps:$4 sm:$0xff]  }
 0xfa9   :  { %v14589_v31 = vld [vmem:[%s20027_s18 + $0x20] sm:$0xff]  }
 0xfaa   :  { %14287 = vmatpush3.bf16.msra.mxu1 %v14286_v32  ;;  %v14574_v32 = vld [vmem:[%s20029_s20 + $0x20] ss:$16 sps:$4 sm:$0xff]  }
 0xfab   :  { %14137 = vmatprep.subr.mxu1 %v20047_v34 }
 0xfae   :  { %14138 = vmatpush3.msra.mxu1 %v14131_v14  ;;  %v14585_v14 = vld [vmem:[%s20027_s18 + $0x18] sm:$0xff]  }
 0xfaf   :  { %14140 = vmatmul.mubr.msk.f32.vlgmr.msra.gmra.mrb[56].mxu1 %vm3344_vm15, %v12842_v17  ;;  %14291 = vmatprep.subr.bf16.mxu1 %v15747_v52  ;;  %v14580_v17 = vld [vmem:[%s20029_s20 + $0x44] ss:$16 sps:$4 sm:$0xff]  }
 0xfb0   :  { %14142 = vmatprep.mubr.msk.f32.mxu1 %vm15745_vm4, %v20047_v34 }
 0xfb3   :  { %14143 = vmatmul.mubr.msk.f32.gmra.mrb[58].mxu1 %vm3344_vm15, %v12843_v15  ;;  %v14593_v15 = vld [vmem:[%s20027_s18 + $0x28] sm:$0xff]  }
 0xfb4   :  { %14145 = vmatprep.mubr.msk.f32.mxu1 %vm15745_vm4, %v20047_v34 }
 0xfb7   :  { %14146 = vmatmul.mubr.msk.f32.gmra.mrb[60].mxu1 %vm3344_vm15, %v12844_v24  ;;  %v14578_v24 = vld [vmem:[%s20029_s20 + $0x40] ss:$16 sps:$4 sm:$0xff]  }
 0xfb8   :  { %14175 = vmatprep.mubr.msk.f32.mxu1 %vm15745_vm4, %v20047_v34 }
0x1082   :  { %v3683_v52 = vpop.f32.mrb[56].mxu1 }
0x1083   :  { %v3697_v12 = vadd.f32 %v3683_v52, %v3510_v54  ;;  %v14141_v27 = vpop.f32.mrb[57].mxu1  ;;  %v4218_v54 = vand.u32 %v12887_v6, %v4216_v30  ;;  %v14584_v52 = vld [vmem:[%s20029_s20 + $0x64] ss:$16 sps:$4 sm:$0xff]   ;;  %v14620_v30 = vld [vmem:[%s20029_s20 + $0xc] ss:$16 sps:$4 sm:$0xff]  }
0x1084   :  { %v14588_v27 = vld [vmem:[%s20029_s20 + $0x84] ss:$16 sps:$4 sm:$0xff]  }
0x1085   :  { %v3707_v28 = vadd.f32 %v12862_v46, %v3697_v12  ;;  %v14582_v12 = vld [vmem:[%s20029_s20 + $0x60] ss:$16 sps:$4 sm:$0xff]  }
0x1086   :  { %v3688_v44 = vpop.f32.mrb[58].mxu1 }
0x1087   :  { %v3698_v47 = vadd.f32 %v3688_v44, %v3515_v62  ;;  %v14144_v55 = vpop.f32.mrb[59].mxu1  ;;  %v3713_v56 = vmul.f32 0.1, %v3707_v28  ;;  %vm3710_vm0 = vcmp.ge.f32.partialorder %v3707_v28, 0.0  ;;  %v4199_v62 = vpack.c.bf16 %v4196_v1, %v4196_v1  ;;  %v14586_v44 = vld [vmem:[%s20029_s20 + $0x80] ss:$16 sps:$4 sm:$0xff]  }
0x1088   :  { %v14605_v55 = vld [vmem:[%s20027_s18 + $0x40] sm:$0xff]  }
0x1089   :  { %v3708_v59 = vadd.f32 %v12862_v46, %v3698_v47  ;;  %v3716_v48 = vsel %vm3710_vm0, %v3707_v28, %v3713_v56  ;;  %v14601_v28 = vld [vmem:[%s20027_s18 + $0x38] sm:$0xff]   ;;  %v14592_v47 = vld [vmem:[%s20029_s20 + $0xa4] ss:$16 sps:$4 sm:$0xff]   ;;  %v14590_v56 = vld [vmem:[%s20029_s20 + $0xa0] ss:$16 sps:$4 sm:$0xff]  }
0x108a   :  { %v3693_v60 = vpop.f32.mrb[60].mxu1 }
0x108b   :  { %vm3711_vm1 = vcmp.ge.f32.partialorder %v3708_v59, 0.0  ;;  %v3714_v58 = vmul.f32 0.1, %v3708_v59  ;;  %v3699_v5 = vadd.f32 %v3693_v60, %v3520_v18  ;;  %v14147_v20 = vpop.f32.mrb[61].mxu1  ;;  %v14581_v18 = vld [vmem:[%s20027_s18 + $0x10] sm:$0xff]   ;;  %v14609_v60 = vld [vmem:[%s20027_s18 + $0x48] sm:$0xff]  }
0x108c   :  { %v14598_v20 = vld [vmem:[%s20029_s20 + $0xe0] ss:$16 sps:$4 sm:$0xff]  }
0x108d   :  { %v3717_v40 = vsel %vm3711_vm1, %v3708_v59, %v3714_v58  ;;  %v3709_v50 = vadd.f32 %v12862_v46, %v3699_v5  ;;  %v14597_v46 = vld [vmem:[%s20027_s18 + $0x30] sm:$0xff]  }
0x108e   :  { %v14289_v7 = vpack.c.bf16 %v3717_v40, %v3716_v48  ;;  %v14596_v59 = vld [vmem:[%s20029_s20 + $0xc4] ss:$16 sps:$4 sm:$0xff]   ;;  %v14594_v58 = vld [vmem:[%s20029_s20 + $0xc0] ss:$16 sps:$4 sm:$0xff]  }
0x108f   :  { %v3715_v51 = vmul.f32 0.1, %v3709_v50  ;;  %vm3712_vm2 = vcmp.ge.f32.partialorder %v3709_v50, 0.0  ;;  %v14600_v5 = vld [vmem:[%s20029_s20 + $0xe4] ss:$16 sps:$4 sm:$0xff]  }
0x1090   :  { %14290 = vmatpush3.bf16.msra.mxu0 %v14289_v7  ;;  %14293 = vmatpush3.bf16.msra.mxu1 %v14289_v7  ;;  %v14604_v48 = vld [vmem:[%s20029_s20 + $0x104] ss:$16 sps:$4 sm:$0xff]   ;;  %v14602_v40 = vld [vmem:[%s20029_s20 + $0x100] ss:$16 sps:$4 sm:$0xff]  }
0x1091   :  { %14152 = vmatprep.subr.mxu0 %v20047_v34  ;;  %14173 = vmatprep.subr.mxu1 %v20047_v34  ;;  %v3718_v38 = vsel %vm3712_vm2, %v3709_v50, %v3715_v51  ;;  %v14608_v50 = vld [vmem:[%s20029_s20 + $0x124] ss:$16 sps:$4 sm:$0xff]   ;;  %v14606_v7 = vld [vmem:[%s20029_s20 + $0x120] ss:$16 sps:$4 sm:$0xff]  }
0x1092   :  { %v14612_v51 = vld [vmem:[%s20029_s20 + $0x144] ss:$16 sps:$4 sm:$0xff]  }
0x1094   :  { %14153 = vmatpush3.msra.mxu0 %v3718_v38  ;;  %14174 = vmatpush3.msra.mxu1 %v3718_v38  ;;  %v14613_v38 = vld [vmem:[%s20027_s18 + $0x50] sm:$0xff]  }
0x1095   :  { %14155 = vmatmul.mubr.msk.f32.vlgmr.msra.gmra.mrb[102].mxu0 %vm3344_vm15, %v3719_v22  ;;  %14176 = vmatmul.mubr.msk.f32.vlgmr.msra.gmra.mrb[62].mxu1 %vm3344_vm15, %v3829_v41  ;;  %v12675_v22 = vld [vmem:[%s20022_s13] ss:$0 sm:$0xff] }
0x1096   :  { %14157 = vmatprep.mubr.msk.f32.mxu0 %vm15745_vm4, %v20047_v34  ;;  %14178 = vmatprep.mubr.msk.f32.mxu1 %vm15745_vm4, %v20047_v34  ;;  %v14610_v41 = vld [vmem:[%s20029_s20 + $0x140] ss:$16 sps:$4 sm:$0xff]  }
0x1097   :  { %4073 = vmatprep.subr.bf16.mxu0 %v20049_v37  ;;  %4229 = vmatprep.subr.bf16.mxu1 %v4221_v2 }
0x1098   :  { %4074 = vmatpush1.bf16.msra.mxu0 %v14573_v9  ;;  %4230 = vmatpush1.bf16.msra.mxu1 %v4218_v54 }
0x1099   :  { %14158 = vmatmul.mubr.msk.f32.gmra.mrb[108].mxu0 %vm3344_vm15, %v3720_v0  ;;  %14179 = vmatmul.mubr.msk.f32.gmra.mrb[64].mxu1 %vm3344_vm15, %v3830_v21  ;;  %v2075_v0 = vadd.f32 %v12675_v22, %v16916_v16  ;;  %v14616_v21 = vld [vmem:[%s20029_s20 + $0x164] ss:$16 sps:$4 sm:$0xff]  }
0x109a   :  { %14160 = vmatprep.mubr.msk.f32.mxu0 %vm15745_vm4, %v20047_v34  ;;  %14181 = vmatprep.mubr.msk.f32.mxu1 %vm15745_vm4, %v20047_v34 }
0x109b   :  { %4075 = vmatprep.subr.bf16.mxu0 %v20049_v37  ;;  %4270 = vmatprep.subr.bf16.mxu1 %v4227_v4  ;;  %v2081_v29 = vmul.f32 0.1, %v2075_v0  ;;  %vm2080_vm8 = vcmp.ge.f32.partialorder %v2075_v0, 0.0 }
0x109c   :  { %4076 = vmatpush1.bf16.msra.mxu0 %v14577_v53 }
0x109d   :  { %14161 = vmatmul.mubr.msk.f32.gmra.mrb[110].mxu0 %vm3344_vm15, %v3721_v57  ;;  %14182 = vmatmul.mubr.msk.f32.gmra.mrb[66].mxu1 %vm3344_vm15, %v3831_v39  ;;  %v14614_v57 = vld [vmem:[%s20029_s20 + $0x160] ss:$16 sps:$4 sm:$0xff]   ;;  %v14617_v39 = vld [vmem:[%s20027_s18 + $0x58] sm:$0xff]   ;;  %v2082_v3 = vsel %vm2080_vm8, %v2075_v0, %v2081_v29  ;;  %s15749_s18 = smov 32  }
0x109e   :  { %14163 = vmatprep.mubr.msk.f32.mxu0 %vm15745_vm4, %v20047_v34  ;;  %14184 = vmatprep.mubr.msk.f32.mxu1 %vm15745_vm4, %v20047_v34  ;;  %v14624_v0 = vld [vmem:[%s20029_s20 + $0x28] ss:$16 sps:$4 sm:$0xff]   ;;  %v17527_v29 = vld [vmem:[%s20031_s22 + $0x60] ss:$16 sps:$4 sm:$0xff]  }
0x109f   :  { %4077 = vmatprep.subr.bf16.mxu0 %v20049_v37 }
0x10a0   :  { %4078 = vmatpush1.bf16.msra.mxu0 %v14581_v18 }
0x10a1   :  { %14164 = vmatmul.mubr.msk.f32.gmra.mrb[112].mxu0 %vm3344_vm15, %v3722_v63  ;;  %14185 = vmatmul.mubr.msk.f32.gmra.mrb[68].mxu1 %vm3344_vm15, %v3832_v11 }
0x10a2   :  { %14166 = vmatprep.mubr.msk.f32.mxu0 %vm15745_vm4, %v20047_v34  ;;  %14187 = vmatprep.mubr.msk.f32.mxu1 %vm15745_vm4, %v20047_v34 }
0x10a3   :  { %4079 = vmatprep.subr.bf16.mxu0 %v20049_v37 }
0x10a4   :  { %4080 = vmatpush1.bf16.msra.mxu0 %v14585_v14 }
0x10a5   :  { %14167 = vmatmul.mubr.msk.f32.gmra.mrb[114].mxu0 %vm3344_vm15, %v3723_v25  ;;  %14188 = vmatmul.mubr.msk.f32.gmra.mrb[70].mxu1 %vm3344_vm15, %v3833_v26 }
0x10a6   :  { %4261 = vmatprep.mubr.bf16.mxu1 %v20049_v37  ;;  %4081 = vmatprep.subr.bf16.mxu0 %v20049_v37 }
0x10a8   :  { %4082 = vmatpush1.bf16.msra.mxu0 %v14589_v31 }
0x10a9   :  { %12891 = vmatmul.mubr.msk.bf16.vlgmr.msra.gmra.mrb[72].mxu1 %vm4210_vm5, %v4199_v62  ;;  %4083 = vmatprep.subr.bf16.mxu0 %v20049_v37 }
0x10aa   :  { %4271 = vmatpush1.bf16.msra.mxu1 %v4224_v10  ;;  %4302 = vmatprep.mubr.bf16.mxu1 %v20049_v37 }
0x10ab   :  { %4551 = vmatprep.subr.bf16.mxu1 %v14572_v8 }
0x10ac   :  { %4084 = vmatpush1.bf16.msra.mxu0 %v14593_v15 }
0x10ad   :  { %4085 = vmatprep.subr.bf16.mxu0 %v20049_v37 }
0x10b0   :  { %4086 = vmatpush1.bf16.msra.mxu0 %v14597_v46 }
0x10b1   :  { %12892 = vmatmul.mubr.msk.bf16.vlgmr.msra.gmra.mrb[76].mxu1 %vm4210_vm5, %v4199_v62  ;;  %4087 = vmatprep.subr.bf16.mxu0 %v20049_v37 }
0x10b2   :  { %4552 = vmatpush1.bf16.msra.mxu1 %v14570_v23 }
0x10b3   :  { %4553 = vmatprep.subr.bf16.mxu1 %v14576_v36 }
0x10b4   :  { %4088 = vmatpush1.bf16.msra.mxu0 %v14601_v28 }
0x10b5   :  { %4089 = vmatprep.subr.bf16.mxu0 %v20049_v37 }
0x10b6   :  { %4554 = vmatpush1.bf16.msra.mxu1 %v14574_v32 }
0x10b7   :  { %4555 = vmatprep.subr.bf16.mxu1 %v14580_v17 }
0x10b8   :  { %4090 = vmatpush1.bf16.msra.mxu0 %v14605_v55 }
0x10b9   :  { %4091 = vmatprep.subr.bf16.mxu0 %v20049_v37 }
0x10ba   :  { %4556 = vmatpush1.bf16.msra.mxu1 %v14578_v24 }
0x10bb   :  { %4557 = vmatprep.subr.bf16.mxu1 %v14584_v52 }
0x10bc   :  { %4092 = vmatpush1.bf16.msra.mxu0 %v14609_v60 }
0x10bd   :  { %4093 = vmatprep.subr.bf16.mxu0 %v20049_v37 }
0x10be   :  { %4558 = vmatpush1.bf16.msra.mxu1 %v14582_v12 }
0x10bf   :  { %4559 = vmatprep.subr.bf16.mxu1 %v14588_v27 }
0x10c0   :  { %4094 = vmatpush1.bf16.msra.mxu0 %v14613_v38  ;;  %v17478_v38 = vld [vmem:[%s20031_s22 + $0x24] ss:$16 sps:$4 sm:$0xff]  }
0x10c1   :  { %4095 = vmatprep.subr.bf16.mxu0 %v20049_v37 }
0x10c2   :  { %4560 = vmatpush1.bf16.msra.mxu1 %v14586_v44 }
0x10c3   :  { %4561 = vmatprep.subr.bf16.mxu1 %v14592_v47 }
0x10c4   :  { %4096 = vmatpush1.bf16.msra.mxu0 %v14617_v39  ;;  %v17498_v39 = vld [vmem:[%s20031_s22 + $0x44] ss:$16 sps:$4 sm:$0xff]  }
0x10c5   :  { %4592 = vmatprep.subr.bf16.mxu0 %v14620_v30  ;;  %v14644_v30 = vld [vmem:[%s20029_s20 + $0x8c] ss:$16 sps:$4 sm:$0xff]  }
0x10c6   :  { %4562 = vmatpush1.bf16.msra.mxu1 %v14590_v56 }
0x10c7   :  { %4563 = vmatprep.subr.bf16.mxu1 %v14596_v59 }
0x10ca   :  { %4564 = vmatpush1.bf16.msra.mxu1 %v14594_v58 }
0x10cb   :  { %4565 = vmatprep.subr.bf16.mxu1 %v14600_v5 }
0x10ce   :  { %4566 = vmatpush1.bf16.msra.mxu1 %v14598_v20 }
0x10cf   :  { %4567 = vmatprep.subr.bf16.mxu1 %v14604_v48 }
0x10d2   :  { %4568 = vmatpush1.bf16.msra.mxu1 %v14602_v40 }
0x10d3   :  { %4569 = vmatprep.subr.bf16.mxu1 %v14608_v50 }
0x10d6   :  { %4570 = vmatpush1.bf16.msra.mxu1 %v14606_v7  ;;  %v14618_v7 = vld [vmem:[%s20029_s20 + $0x8] ss:$16 sps:$4 sm:$0xff]  }
0x10d7   :  { %4571 = vmatprep.subr.bf16.mxu1 %v14612_v51  ;;  %v17468_v51 = vld [vmem:[%s20031_s22] ss:$16 sps:$4 sm:$0xff]  }
0x10da   :  { %4572 = vmatpush1.bf16.msra.mxu1 %v14610_v41  ;;  %v14626_v41 = vld [vmem:[%s20029_s20 + $0x2c] ss:$16 sps:$4 sm:$0xff]  }
0x10db   :  { %4573 = vmatprep.subr.bf16.mxu1 %v14616_v21  ;;  %v17489_v21 = vld [vmem:[%s20031_s22 + $0x20] ss:$16 sps:$4 sm:$0xff]  }
0x10de   :  { %4574 = vmatpush1.bf16.msra.mxu1 %v14614_v57  ;;  %v14632_v57 = vld [vmem:[%s20029_s20 + $0x4c] ss:$16 sps:$4 sm:$0xff]  }
0x10df   :  { %4851 = vmatprep.subr.bf16.mxu1 %v17445_v13 }
0x1168   :  { %v3805_v63 = vpop.f32.mrb[102].mxu0  ;;  %v3915_v11 = vpop.f32.mrb[62].mxu1 }
0x1169   :  { %v3939_v25 = vmax.f32 %v3805_v63, %v3915_v11  ;;  %v14156_v26 = vpop.f32.mrb[103].mxu0  ;;  %v14177_v16 = vpop.f32.mrb[63].mxu1  ;;  %v14630_v63 = vld [vmem:[%s20029_s20 + $0x48] ss:$16 sps:$4 sm:$0xff]   ;;  %v17509_v11 = vld [vmem:[%s20031_s22 + $0x40] ss:$16 sps:$4 sm:$0xff]  }
0x116a   :  { %v17518_v26 = vld [vmem:[%s20031_s22 + $0x64] ss:$16 sps:$4 sm:$0xff]   ;;  %v14636_v16 = vld [vmem:[%s20029_s20 + $0x68] ss:$16 sps:$4 sm:$0xff]  }
0x116c   :  { %v3810_v43 = vpop.f32.mrb[108].mxu0  ;;  %v3920_v6 = vpop.f32.mrb[64].mxu1 }
0x116d   :  { %v3940_v19 = vmax.f32 %v3810_v43, %v3920_v6  ;;  %v14159_v9 = vpop.f32.mrb[109].mxu0  ;;  %v14180_v1 = vpop.f32.mrb[65].mxu1  ;;  %v17536_v43 = vld [vmem:[%s20031_s22 + $0x84] ss:$16 sps:$4 sm:$0xff]   ;;  %v14642_v6 = vld [vmem:[%s20029_s20 + $0x88] ss:$16 sps:$4 sm:$0xff]  }
0x116e   :  { %v14650_v9 = vld [vmem:[%s20029_s20 + $0xac] ss:$16 sps:$4 sm:$0xff]   ;;  %v17554_v1 = vld [vmem:[%s20031_s22 + $0xa4] ss:$16 sps:$4 sm:$0xff]  }
0x116f   :  { %v14444_v45 = vpack.i.bf16 %v2082_v3, %v3940_v19  ;;  %v17545_v19 = vld [vmem:[%s20031_s22 + $0x80] ss:$16 sps:$4 sm:$0xff]   ;;  %v14648_v3 = vld [vmem:[%s20029_s20 + $0xa8] ss:$16 sps:$4 sm:$0xff]  }
0x1170   :  { %v3815_v2 = vpop.f32.mrb[110].mxu0  ;;  %v3925_v54 = vpop.f32.mrb[66].mxu1 }
0x1171   :  { %14445 = vrot.lane.b32.xlu1 %v14444_v45, %s15749_s18  ;;  %v3941_v53 = vmax.f32 %v3815_v2, %v3925_v54  ;;  %v14162_v4 = vpop.f32.mrb[111].mxu0  ;;  %v14183_v62 = vpop.f32.mrb[67].mxu1  ;;  %v17563_v45 = vld [vmem:[%s20031_s22 + $0xa0] ss:$16 sps:$4 sm:$0xff]   ;;  %v14656_v2 = vld [vmem:[%s20029_s20 + $0xcc] ss:$16 sps:$4 sm:$0xff]  }
0x1172   :  { %v17572_v54 = vld [vmem:[%s20031_s22 + $0xc4] ss:$16 sps:$4 sm:$0xff]   ;;  %v17581_v4 = vld [vmem:[%s20031_s22 + $0xc0] ss:$16 sps:$4 sm:$0xff]   ;;  %v14662_v62 = vld [vmem:[%s20029_s20 + $0xec] ss:$16 sps:$4 sm:$0xff]  }
0x1173   :  { %s15694_s18 = scalar_lea.vmem %s12538_s5, 32 }
0x1174   :  { %v3820_v10 = vpop.f32.mrb[112].mxu0  ;;  %v3930_v8 = vpop.f32.mrb[68].mxu1  ;;  %p15695_p0 = scmp.ne.s32.totalorder %s12538_s5, %s15694_s18  ;;  %p15700_p2 = scmp.lt.s32.totalorder %s15694_s18, %s15694_s18 }
0x1175   :  { %v3942_v18 = vmax.f32 %v3820_v10, %v3930_v8  ;;  %3949 = vrot.lane.b32.xlu1 %v3941_v53, %s15746_s7  ;;  %v14165_v14 = vpop.f32.mrb[113].mxu0  ;;  %v14186_v23 = vpop.f32.mrb[69].mxu1  ;;  %v14654_v53 = vld [vmem:[%s20029_s20 + $0xc8] ss:$16 sps:$4 sm:$0xff]   ;;  %v17590_v10 = vld [vmem:[%s20031_s22 + $0xe4] ss:$16 sps:$4 sm:$0xff]  }
0x1176   :  { %v14660_v8 = vld [vmem:[%s20029_s20 + $0xe8] ss:$16 sps:$4 sm:$0xff]   ;;  %v14668_v14 = vld [vmem:[%s20029_s20 + $0x10c] ss:$16 sps:$4 sm:$0xff]   ;;  %p15701_p3 = por %p15700_p2, %p15699_p1 }
0x1177   :  { %3953 = vrot.lane.b32.xlu0 %v3942_v18, %s15750_s14  ;;  %v17599_v18 = vld [vmem:[%s20031_s22 + $0xe0] ss:$16 sps:$4 sm:$0xff]   ;;  %v14666_v23 = vld [vmem:[%s20029_s20 + $0x108] ss:$16 sps:$4 sm:$0xff]  }
0x1178   :  { %v3825_v36 = vpop.f32.mrb[114].mxu0  ;;  %v3935_v31 = vpop.f32.mrb[70].mxu1  ;;  %p15702_p4 = pnand %p15701_p3, %p15695_p0 }
0x1179   :  { %v3943_v32 = vmax.f32 %v3825_v36, %v3935_v31  ;;  %v14168_v17 = vpop.f32.mrb[115].mxu0  ;;  %v14189_v15 = vpop.f32.mrb[71].mxu1  ;;  %v14671_v36 = vld [vmem:[%s20029_s20 + $0x12c] ss:$16 sps:$4 sm:$0xff]   ;;  %v14669_v31 = vld [vmem:[%s20029_s20 + $0x128] ss:$16 sps:$4 sm:$0xff]  }
0x117a   :  { %v14672_v17 = vld [vmem:[%s20029_s20 + $0x148] ss:$16 sps:$4 sm:$0xff]   ;;  %v14677_v15 = vld [vmem:[%s20029_s20 + $0x16c] ss:$16 sps:$4 sm:$0xff]  }
0x117c   :  { %v17449_v24 = vpop.f32.mrb[72].mxu1 }
0x117d   :  { %v17451_v52 = vpop.f32.mrb[73].mxu1 }
0x117e   :  { %v4267_v46 = vpop.f32.mrb[74].mxu1 }
0x117f   :  { %v4268_v12 = vpop.f32.mrb[75].mxu1  ;;  %v14675_v46 = vld [vmem:[%s20029_s20 + $0x168] ss:$16 sps:$4 sm:$0xff]  }
0x1180   :  { %v17638_v12 = vld [vmem:[%s20031_s22 + $0xc] ss:$16 sps:$4 sm:$0xff]  }
0x1184   :  { %v17453_v27 = vpop.f32.mrb[76].mxu1 }
0x1185   :  { %v17455_v28 = vpop.f32.mrb[77].mxu1 }
0x1186   :  { %v4308_v44 = vpop.f32.mrb[78].mxu1 }
0x1187   :  { %v4309_v47 = vpop.f32.mrb[79].mxu1  ;;  %v17644_v44 = vld [vmem:[%s20031_s22 + $0x8] ss:$16 sps:$4 sm:$0xff]  }
0x1188   :  { %v17651_v47 = vld [vmem:[%s20031_s22 + $0x2c] ss:$16 sps:$4 sm:$0xff]  }
0x11e3   :  { %v14446_v55 = vpop.permute.xlu1 %14445 }
0x11e4   :  { %v14448_v56 = vunpack.i.h.bf16 %v14446_v55  ;;  %v14447_v59 = vunpack.i.l.bf16 %v14446_v55  ;;  %v17659_v55 = vld [vmem:[%s20031_s22 + $0x28] ss:$16 sps:$4 sm:$0xff]  }
0x11e6   :  { %v3964_v60 = vsel %vm382_vm7, %v3943_v32, %v14448_v56  ;;  %v3960_v58 = vsel %vm382_vm7, %v3939_v25, %v14447_v59  ;;  %v14638_v25 = vld [vmem:[%s20029_s20 + $0x6c] ss:$16 sps:$4 sm:$0xff]   ;;  %v17674_v59 = vld [vmem:[%s20031_s22 + $0x48] ss:$16 sps:$4 sm:$0xff]   ;;  %vm4126_vm7 = vcmask 33816  }
0x11e7   :  { %v3990_v5 = vpack.c.bf16 %v3964_v60, %v3964_v60  ;;  %v3950_v20 = vpop.permute.xlu1 %3949  ;;  %v14674_v32 = vld [vmem:[%s20029_s20 + $0x14c] ss:$16 sps:$4 sm:$0xff]  }
0x11e8   :  { %v3961_v48 = vsel %vm2405_vm6, %v3960_v58, %v3950_v20  ;;  %v17666_v56 = vld [vmem:[%s20031_s22 + $0x4c] ss:$16 sps:$4 sm:$0xff]   ;;  %v17688_v58 = vld [vmem:[%s20031_s22 + $0x68] ss:$16 sps:$4 sm:$0xff]  }
0x11e9   :  { %v3954_v40 = vpop.permute.xlu0 %3953  ;;  %12886 = vmatprep.mubr.msk.bf16.mxu0 %vm2405_vm6, %v3990_v5  ;;  %12941 = vmatprep.mubr.msk.bf16.mxu1 %vm2405_vm6, %v3990_v5  ;;  %v17680_v60 = vld [vmem:[%s20031_s22 + $0x6c] ss:$16 sps:$4 sm:$0xff]   ;;  %v17702_v20 = vld [vmem:[%s20031_s22 + $0x88] ss:$16 sps:$4 sm:$0xff]  }
0x11ea   :  { %v3963_v50 = vsel %vm3962_vm9, %v3961_v48, %v3954_v40  ;;  %v17708_v48 = vld [vmem:[%s20031_s22 + $0xac] ss:$16 sps:$4 sm:$0xff]   ;;  %v17716_v40 = vld [vmem:[%s20031_s22 + $0xa8] ss:$16 sps:$4 sm:$0xff]  }
0x11eb   :  { %v17470_v22 = vpack.c.bf16 %v3963_v50, %v3963_v50  ;;  %v17722_v50 = vld [vmem:[%s20031_s22 + $0xcc] ss:$16 sps:$4 sm:$0xff]  }
0x11ed   :  { %4106 = vmatmul.mubr.bf16.vlgmr.msra.gmra.mrb[116].mxu0 %v17470_v22  ;;  %4584 = vmatmul.mubr.bf16.vlgmr.msra.gmra.mrb[80].mxu1 %v17470_v22 }
0x11ee   :  { %4593 = vmatpush1.bf16.msra.mxu0 %v14618_v7  ;;  %4852 = vmatpush1.bf16.msra.mxu1 %v17468_v51  ;;  %v17734_v7 = vld [vmem:[%s20031_s22 + $0xec] ss:$16 sps:$4 sm:$0xff]  }
0x11ef   :  { %12942 = vmatprep.mubr.msk.bf16.mxu0 %vm2405_vm6, %v3990_v5  ;;  %4594 = vmatprep.subr.bf16.mxu0 %v14626_v41  ;;  %v17694_v5 = vld [vmem:[%s20031_s22 + $0x8c] ss:$16 sps:$4 sm:$0xff]   ;;  %v4633_v41 = vld [vmem:[%s20032_s23] sm:$0xf]  ;;  %vm4113_vm6 = vcmask 17408  }
0x11f0   :  { %4853 = vmatprep.subr.bf16.mxu1 %v17478_v38  ;;  %4883 = vmatprep.mubr.bf16.mxu1 %v20049_v37 }
0x11f2   :  { %4595 = vmatpush1.bf16.msra.mxu0 %v14624_v0  ;;  %4854 = vmatpush1.bf16.msra.mxu1 %v17489_v21  ;;  %v12873_v0 = vld [vmem:[%s20028_s19] ss:$0 sm:$0xff]  ;;  %s15751_s19 = smov 125  }
0x11f3   :  { %4596 = vmatprep.subr.bf16.mxu0 %v14632_v57  ;;  %4855 = vmatprep.subr.bf16.mxu1 %v17498_v39  ;;  %v4642_v57 = vrot.slane %v4633_v41, %v328_v42 }
0x11f6   :  { %4597 = vmatpush1.bf16.msra.mxu0 %v14630_v63  ;;  %4856 = vmatpush1.bf16.msra.mxu1 %v17509_v11 }
0x11f7   :  { %4598 = vmatprep.subr.bf16.mxu0 %v14638_v25  ;;  %4857 = vmatprep.subr.bf16.mxu1 %v17518_v26 }
0x11fa   :  { %4599 = vmatpush1.bf16.msra.mxu0 %v14636_v16  ;;  %4858 = vmatpush1.bf16.msra.mxu1 %v17527_v29 }
0x11fb   :  { %4600 = vmatprep.subr.bf16.mxu0 %v14644_v30  ;;  %4859 = vmatprep.subr.bf16.mxu1 %v17536_v43 }
0x11fe   :  { %4601 = vmatpush1.bf16.msra.mxu0 %v14642_v6  ;;  %4860 = vmatpush1.bf16.msra.mxu1 %v17545_v19 }
0x11ff   :  { %4602 = vmatprep.subr.bf16.mxu0 %v14650_v9  ;;  %4861 = vmatprep.subr.bf16.mxu1 %v17554_v1 }
0x1202   :  { %4603 = vmatpush1.bf16.msra.mxu0 %v14648_v3  ;;  %4862 = vmatpush1.bf16.msra.mxu1 %v17563_v45 }
0x1203   :  { %4604 = vmatprep.subr.bf16.mxu0 %v14656_v2  ;;  %4863 = vmatprep.subr.bf16.mxu1 %v17572_v54 }
0x1206   :  { %4605 = vmatpush1.bf16.msra.mxu0 %v14654_v53  ;;  %4864 = vmatpush1.bf16.msra.mxu1 %v17581_v4 }
0x1207   :  { %4606 = vmatprep.subr.bf16.mxu0 %v14662_v62  ;;  %4865 = vmatprep.subr.bf16.mxu1 %v17590_v10 }
0x120a   :  { %4607 = vmatpush1.bf16.msra.mxu0 %v14660_v8  ;;  %4866 = vmatpush1.bf16.msra.mxu1 %v17599_v18 }
0x120b   :  { %4608 = vmatprep.subr.bf16.mxu0 %v14668_v14  ;;  %5155 = vmatprep.subr.bf16.mxu1 %v17445_v13 }
0x120d   :  { %4884 = vmatmul.mubr.bf16.vlgmr.msra.gmra.mrb[84].mxu1 %v20049_v37 }
0x120e   :  { %4609 = vmatpush1.bf16.msra.mxu0 %v14666_v23  ;;  %5156 = vmatpush1.bf16.msra.mxu1 %v17468_v51 }
0x120f   :  { %4610 = vmatprep.subr.bf16.mxu0 %v14671_v36  ;;  %5157 = vmatprep.subr.bf16.mxu1 %v17478_v38 }
0x1210   :  { %5187 = vmatprep.mubr.bf16.mxu1 %v20049_v37 }
0x1212   :  { %4611 = vmatpush1.bf16.msra.mxu0 %v14669_v31  ;;  %5158 = vmatpush1.bf16.msra.mxu1 %v17489_v21 }
0x1213   :  { %4612 = vmatprep.subr.bf16.mxu0 %v14674_v32  ;;  %5159 = vmatprep.subr.bf16.mxu1 %v17498_v39 }
0x1216   :  { %4613 = vmatpush1.bf16.msra.mxu0 %v14672_v17  ;;  %5160 = vmatpush1.bf16.msra.mxu1 %v17509_v11  ;;  %v4650_v17 = vrot.slane %v4633_v41, %v336_v49 }
0x1217   :  { %4614 = vmatprep.subr.bf16.mxu0 %v14677_v15  ;;  %5161 = vmatprep.subr.bf16.mxu1 %v17518_v26 }
0x121a   :  { %4615 = vmatpush1.bf16.msra.mxu0 %v14675_v46  ;;  %5162 = vmatpush1.bf16.msra.mxu1 %v17527_v29 }
0x121b   :  { %4892 = vmatprep.subr.bf16.mxu0 %v17638_v12  ;;  %5163 = vmatprep.subr.bf16.mxu1 %v17536_v43 }
0x121d   :  { %4625 = vmatmul.mubr.bf16.vlgmr.msra.gmra.mrb[120].mxu0 %v17470_v22  ;;  %v17740_v22 = vld [vmem:[%s20031_s22 + $0xe8] ss:$16 sps:$4 sm:$0xff]  }
0x121e   :  { %4893 = vmatpush1.bf16.msra.mxu0 %v17644_v44  ;;  %4924 = vmatprep.mubr.bf16.mxu0 %v20049_v37 }
0x121f   :  { %4894 = vmatprep.subr.bf16.mxu0 %v17651_v47  ;;  %5164 = vmatpush1.bf16.msra.mxu1 %v17545_v19 }
0x1220   :  { %5165 = vmatprep.subr.bf16.mxu1 %v17554_v1 }
0x1222   :  { %4895 = vmatpush1.bf16.msra.mxu0 %v17659_v55 }
0x1223   :  { %4896 = vmatprep.subr.bf16.mxu0 %v17666_v56  ;;  %5166 = vmatpush1.bf16.msra.mxu1 %v17563_v45 }
0x1224   :  { %5167 = vmatprep.subr.bf16.mxu1 %v17572_v54 }
0x1226   :  { %4897 = vmatpush1.bf16.msra.mxu0 %v17674_v59 }
0x1227   :  { %4898 = vmatprep.subr.bf16.mxu0 %v17680_v60  ;;  %5168 = vmatpush1.bf16.msra.mxu1 %v17581_v4 }
0x1228   :  { %5169 = vmatprep.subr.bf16.mxu1 %v17590_v10 }
0x122a   :  { %4899 = vmatpush1.bf16.msra.mxu0 %v17688_v58 }
0x122b   :  { %4900 = vmatprep.subr.bf16.mxu0 %v17694_v5  ;;  %5170 = vmatpush1.bf16.msra.mxu1 %v17599_v18 }
0x122c   :  { %5459 = vmatprep.subr.bf16.mxu1 %v17445_v13  ;;  %v17728_v13 = vld [vmem:[%s20031_s22 + $0xc8] ss:$16 sps:$4 sm:$0xff]  }
0x122e   :  { %4901 = vmatpush1.bf16.msra.mxu0 %v17702_v20 }
0x122f   :  { %4902 = vmatprep.subr.bf16.mxu0 %v17708_v48 }
0x1232   :  { %4903 = vmatpush1.bf16.msra.mxu0 %v17716_v40 }
0x1233   :  { %4904 = vmatprep.subr.bf16.mxu0 %v17722_v50 }
0x1236   :  { %4905 = vmatpush1.bf16.msra.mxu0 %v17728_v13 }
0x1237   :  { %4906 = vmatprep.subr.bf16.mxu0 %v17734_v7 }
0x123a   :  { %4907 = vmatpush1.bf16.msra.mxu0 %v17740_v22 }
0x123b   :  { %5196 = vmatprep.subr.bf16.mxu0 %v17638_v12 }
0x123d   :  { %4925 = vmatmul.mubr.bf16.vlgmr.msra.gmra.mrb[124].mxu0 %v20049_v37 }
0x123e   :  { %5197 = vmatpush1.bf16.msra.mxu0 %v17644_v44  ;;  %5228 = vmatprep.mubr.bf16.mxu0 %v20049_v37 }
0x123f   :  { %5198 = vmatprep.subr.bf16.mxu0 %v17651_v47 }
0x1242   :  { %5199 = vmatpush1.bf16.msra.mxu0 %v17659_v55 }
0x1243   :  { %5200 = vmatprep.subr.bf16.mxu0 %v17666_v56 }
0x1246   :  { %5201 = vmatpush1.bf16.msra.mxu0 %v17674_v59 }
0x1247   :  { %5202 = vmatprep.subr.bf16.mxu0 %v17680_v60 }
0x124a   :  { %5203 = vmatpush1.bf16.msra.mxu0 %v17688_v58 }
0x124b   :  { %5204 = vmatprep.subr.bf16.mxu0 %v17694_v5 }
0x124e   :  { %5205 = vmatpush1.bf16.msra.mxu0 %v17702_v20 }
0x124f   :  { %5206 = vmatprep.subr.bf16.mxu0 %v17708_v48 }
0x1252   :  { %5207 = vmatpush1.bf16.msra.mxu0 %v17716_v40 }
0x1253   :  { %5208 = vmatprep.subr.bf16.mxu0 %v17722_v50 }
0x1256   :  { %5209 = vmatpush1.bf16.msra.mxu0 %v17728_v13 }
0x1257   :  { %5210 = vmatprep.subr.bf16.mxu0 %v17734_v7 }
0x125a   :  { %5211 = vmatpush1.bf16.msra.mxu0 %v17740_v22 }
0x125b   :  { %5500 = vmatprep.subr.bf16.mxu0 %v17638_v12 }
0x12c0   :  { %v4107_v63 = vpop.f32.mrb[116].mxu0  ;;  %v4585_v25 = vpop.f32.mrb[80].mxu1 }
0x12c1   :  { %v17771_v16 = vadd.f32 %v12873_v0, %v4107_v63  ;;  %v4586_v30 = vadd.f32 %v4585_v25, %v17449_v24  ;;  %v4109_v6 = vpop.f32.mrb[117].mxu0  ;;  %v4587_v9 = vpop.f32.mrb[81].mxu1  ;;  %v4646_v24 = vrot.slane %v4633_v41, %v332_v61 }
0x12c2   :  { %v4588_v3 = vadd.f32 %v4587_v9, %v17451_v52  ;;  %v4110_v2 = vpop.f32.mrb[118].mxu0  ;;  %v4589_v53 = vpop.f32.mrb[82].mxu1 }
0x12c3   :  { %v4111_v62 = vpop.f32.mrb[119].mxu0  ;;  %v4590_v8 = vpop.f32.mrb[83].mxu1  ;;  %v4127_v14 = vsel %vm4126_vm7, %v17771_v16, -inf }
0x12c4   :  { %v17776_v23 = vadd.f32 %v4642_v57, %v4588_v3  ;;  %4128 = vmax.xlane.f32.xlu1 %v4127_v14  ;;  %v4638_v57 = vrot.slane %v4633_v41, %v324_v35 }
0x12c6   :  { %v17790_v3 = vadd.f32 %v4638_v57, %v4586_v30 }
0x12e0   :  { %v4885_v42 = vpop.f32.mrb[84].mxu1 }
0x12e1   :  { %v4887_v36 = vpop.f32.mrb[85].mxu1  ;;  %v4933_v49 = vadd.f32 %v4885_v42, %v17790_v3 }
0x12e2   :  { %v4889_v31 = vpop.f32.mrb[86].mxu1  ;;  %v4934_v61 = vadd.f32 %v4887_v36, %v17776_v23 }
0x12e3   :  { %v4890_v32 = vpop.f32.mrb[87].mxu1 }
0x12e4   :  { %v12976_v2 = vmul.f32 -1.442695, %v4934_v61 }
0x12e6   :  { %15254 = vpow2.f32 %v12976_v2 }
0x12f0   :  { %v4626_v52 = vpop.f32.mrb[120].mxu0 }
0x12f1   :  { %v4627_v15 = vadd.f32 %v4626_v52, %v17453_v27  ;;  %v4628_v46 = vpop.f32.mrb[121].mxu0  ;;  %v12975_v27 = vmul.f32 -1.442695, %v4933_v49 }
0x12f2   :  { %v4629_v0 = vadd.f32 %v4628_v46, %v17455_v28  ;;  %v4630_v63 = vpop.f32.mrb[122].mxu0  ;;  %v15255_v28 = vpop.eup %15254 }
0x12f3   :  { %v17786_v25 = vadd.f32 %v4646_v24, %v4627_v15  ;;  %v4631_v6 = vpop.f32.mrb[123].mxu0  ;;  %15256 = vpow2.f32 %v12975_v27  ;;  %v4946_v62 = vadd.f32 1.0, %v15255_v28 }
0x12f4   :  { %v17788_v9 = vadd.f32 %v4650_v17, %v4629_v0 }
0x12f5   :  { %15258 = vrcp.f32 %v4946_v62 }
0x12fd   :  { %v15257_v53 = vpop.eup %15256 }
0x12fe   :  { %v4940_v33 = vadd.f32 1.0, %v15257_v53 }
0x12ff   :  { %v15259_v31 = vpop.eup %15258 }
0x1300   :  { %15260 = vrcp.f32 %v4940_v33  ;;  %v4956_v17 = vmul.f32 0.0, %v15259_v31 }
0x130a   :  { %v15261_v32 = vpop.eup %15260 }
0x1310   :  { %v4926_v35 = vpop.f32.mrb[124].mxu0 }
0x1311   :  { %v4935_v41 = vadd.f32 %v4926_v35, %v17786_v25  ;;  %v4928_v8 = vpop.f32.mrb[125].mxu0 }
0x1312   :  { %v4936_v30 = vadd.f32 %v4928_v8, %v17788_v9  ;;  %v4930_v14 = vpop.f32.mrb[126].mxu0 }
0x1313   :  { %15262 = vtanh.f32 %v4935_v41  ;;  %v4931_v36 = vpop.f32.mrb[127].mxu0 }
0x1314   :  { %v12977_v42 = vmul.f32 -1.442695, %v4936_v30 }
0x1316   :  { %15264 = vpow2.f32 %v12977_v42 }
0x131d   :  { %v15263_v24 = vpop.eup %15262 }
0x131e   :  { %v4957_v52 = vmul.f32 %v15263_v24, %v15261_v32 }
0x1320   :  { %v15265_v15 = vpop.eup %15264  ;;  %v17796_v46 = vadd.f32 %v4957_v52, %v4956_v17 }
0x1321   :  { %v4953_v0 = vadd.f32 1.0, %v15265_v15 }
0x1322   :  { %15266 = vtanh.f32 %v17796_v46 }
0x1323   :  { %15268 = vrcp.f32 %v4953_v0 }
0x132c   :  { %v15267_v63 = vpop.eup %15266 }
0x132d   :  { %v15269_v57 = vpop.eup %15268 }
0x132e   :  { %v17799_v6 = vmul.f32 %v15269_v57, %v15267_v63 }
0x1330   :  { %v4994_v61 = vpack.c.bf16 %v17799_v6, %v17799_v6 }
0x1332   :  { %5188 = vmatmul.mubr.bf16.vlgmr.msra.gmra.mrb[88].mxu1 %v4994_v61  ;;  %5229 = vmatmul.mubr.bf16.vlgmr.msra.gmra.mrb[128].mxu0 %v4994_v61 }
0x1333   :  { %5460 = vmatpush1.bf16.msra.mxu1 %v17468_v51  ;;  %5501 = vmatpush1.bf16.msra.mxu0 %v17644_v44 }
0x1334   :  { %5461 = vmatprep.subr.bf16.mxu1 %v17478_v38  ;;  %5502 = vmatprep.subr.bf16.mxu0 %v17651_v47 }
0x1335   :  { %5491 = vmatprep.mubr.bf16.mxu1 %v20049_v37  ;;  %5532 = vmatprep.mubr.bf16.mxu0 %v20049_v37 }
0x1337   :  { %5462 = vmatpush1.bf16.msra.mxu1 %v17489_v21  ;;  %5503 = vmatpush1.bf16.msra.mxu0 %v17659_v55 }
0x1338   :  { %5463 = vmatprep.subr.bf16.mxu1 %v17498_v39  ;;  %5504 = vmatprep.subr.bf16.mxu0 %v17666_v56 }
0x133b   :  { %5464 = vmatpush1.bf16.msra.mxu1 %v17509_v11  ;;  %5505 = vmatpush1.bf16.msra.mxu0 %v17674_v59  ;;  %v4114_v11 = vsel %vm4113_vm6, %v17771_v16, -inf }
0x133c   :  { %5465 = vmatprep.subr.bf16.mxu1 %v17518_v26  ;;  %5506 = vmatprep.subr.bf16.mxu0 %v17680_v60 }
0x133f   :  { %5466 = vmatpush1.bf16.msra.mxu1 %v17527_v29  ;;  %5507 = vmatpush1.bf16.msra.mxu0 %v17688_v58 }
0x1340   :  { %5467 = vmatprep.subr.bf16.mxu1 %v17536_v43  ;;  %5508 = vmatprep.subr.bf16.mxu0 %v17694_v5 }
0x1343   :  { %5468 = vmatpush1.bf16.msra.mxu1 %v17545_v19  ;;  %5509 = vmatpush1.bf16.msra.mxu0 %v17702_v20 }
0x1344   :  { %5469 = vmatprep.subr.bf16.mxu1 %v17554_v1  ;;  %5510 = vmatprep.subr.bf16.mxu0 %v17708_v48 }
0x1347   :  { %5470 = vmatpush1.bf16.msra.mxu1 %v17563_v45  ;;  %5511 = vmatpush1.bf16.msra.mxu0 %v17716_v40 }
0x1348   :  { %5471 = vmatprep.subr.bf16.mxu1 %v17572_v54  ;;  %5512 = vmatprep.subr.bf16.mxu0 %v17722_v50 }
0x134b   :  { %5472 = vmatpush1.bf16.msra.mxu1 %v17581_v4  ;;  %5513 = vmatpush1.bf16.msra.mxu0 %v17728_v13 }
0x134c   :  { %5473 = vmatprep.subr.bf16.mxu1 %v17590_v10  ;;  %5514 = vmatprep.subr.bf16.mxu0 %v17734_v7 }
0x134f   :  { %5474 = vmatpush1.bf16.msra.mxu1 %v17599_v18  ;;  %5515 = vmatpush1.bf16.msra.mxu0 %v17740_v22 }
0x1350   :  { %5804 = vmatprep.subr.bf16.mxu0 %v17638_v12 }
0x1351   :  { %v4129_v51 = vpop.xlane.xlu1 %4128 }
0x1352   :  { %v4130_v38 = vsub.f32 %v17771_v16, %v4129_v51 }
0x1354   :  { %v4131_v21 = vmul.f32 1.442695, %v4130_v38 }
0x1356   :  { %15270 = vpow2.f32 %v4131_v21  ;;  %v17954_v21 = vld [vmem:[%s20031_s22 + $0xc4] ss:$16 sps:$4 sm:$0xff]  }
0x1360   :  { %v17837_v39 = vpop.eup %15270 }
0x1361   :  { %4134 = vrot.lane.b32.xlu0 %v17837_v39, %s15751_s19 }
0x1380   :  { %4115 = vmax.xlane.f32.xlu0 %v4114_v11  ;;  %v17966_v11 = vld [vmem:[%s20031_s22 + $0xe4] ss:$16 sps:$4 sm:$0xff]  }
0x13d3   :  { %v4135_v26 = vpop.permute.xlu0 %4134 }
0x13d4   :  { %v4138_v29 = vsel %vm4137_vm10, %v4135_v26, 0.0  ;;  %v17972_v26 = vld [vmem:[%s20031_s22 + $0xe0] ss:$16 sps:$4 sm:$0xff]  }
0x13d5   :  { %4139 = vadd.xlane.f32.xlu1 %v4138_v29 }
0x1405   :  { %v5189_v43 = vpop.f32.mrb[88].mxu1  ;;  %v5230_v19 = vpop.f32.mrb[128].mxu0 }
0x1406   :  { %v5237_v1 = vadd.f32 %v5189_v43, %v17790_v3  ;;  %v5191_v45 = vpop.f32.mrb[89].mxu1  ;;  %v5232_v54 = vpop.f32.mrb[129].mxu0  ;;  %v5239_v41 = vadd.f32 %v5230_v19, %v17786_v25 }
0x1407   :  { %v5238_v4 = vadd.f32 %v5191_v45, %v17776_v23  ;;  %v5193_v10 = vpop.f32.mrb[90].mxu1  ;;  %v5234_v18 = vpop.f32.mrb[130].mxu0  ;;  %v5240_v28 = vadd.f32 %v5232_v54, %v17788_v9 }
0x1408   :  { %v13010_v12 = vmul.f32 -1.442695, %v5237_v1  ;;  %v5194_v49 = vpop.f32.mrb[91].mxu1  ;;  %v5235_v2 = vpop.f32.mrb[131].mxu0 }
0x1409   :  { %v13011_v27 = vmul.f32 -1.442695, %v5238_v4  ;;  %v13012_v35 = vmul.f32 -1.442695, %v5240_v28 }
0x140a   :  { %15272 = vpow2.f32 %v13010_v12 }
0x140b   :  { %15274 = vpow2.f32 %v13011_v27 }
0x140d   :  { %v4116_v53 = vpop.xlane.xlu0 %4115 }
0x140e   :  { %v4117_v62 = vsub.f32 %v17771_v16, %v4116_v53 }
0x1410   :  { %v4118_v33 = vmul.f32 1.442695, %v4117_v62 }
0x1412   :  { %15276 = vpow2.f32 %v4118_v33 }
0x1413   :  { %15278 = vpow2.f32 %v13012_v35 }
0x1414   :  { %v15273_v8 = vpop.eup %15272  ;;  %15280 = vtanh.f32 %v5239_v41 }
0x1415   :  { %v15275_v30 = vpop.eup %15274  ;;  %v5244_v14 = vadd.f32 1.0, %v15273_v8 }
0x1416   :  { %v5250_v36 = vadd.f32 1.0, %v15275_v30 }
0x1417   :  { %15282 = vrcp.f32 %v5244_v14 }
0x1418   :  { %15284 = vrcp.f32 %v5250_v36 }
0x141c   :  { %v17849_v42 = vpop.eup %15276 }
0x141d   :  { %v4120_v31 = vsel %vm4113_vm6, %v17849_v42, 0.0  ;;  %v15279_v16 = vpop.eup %15278 }
0x141e   :  { %4121 = vadd.xlane.f32.xlu0 %v4120_v31  ;;  %v15281_v32 = vpop.eup %15280  ;;  %v5257_v15 = vadd.f32 1.0, %v15279_v16 }
0x1420   :  { %15286 = vrcp.f32 %v5257_v15 }
0x1421   :  { %v15283_v24 = vpop.eup %15282 }
0x1422   :  { %v15285_v17 = vpop.eup %15284  ;;  %v5261_v52 = vmul.f32 %v15283_v24, %v15281_v32 }
0x1423   :  { %v5260_v0 = vmul.f32 %v15285_v17, %v17796_v46  ;;  %v17948_v46 = vld [vmem:[%s20031_s22 + $0xa0] ss:$16 sps:$4 sm:$0xff]  }
0x1425   :  { %v17854_v63 = vadd.f32 %v5261_v52, %v5260_v0 }
0x1427   :  { %15288 = vtanh.f32 %v17854_v63 }
0x142a   :  { %v15287_v57 = vpop.eup %15286 }
0x1431   :  { %v15289_v61 = vpop.eup %15288 }
0x1432   :  { %v17857_v51 = vmul.f32 %v15289_v61, %v15287_v57 }
0x1434   :  { %v5298_v38 = vpack.c.bf16 %v17857_v51, %v17857_v51 }
0x1436   :  { %5492 = vmatmul.mubr.bf16.vlgmr.msra.gmra.mrb[92].mxu1 %v5298_v38  ;;  %5533 = vmatmul.mubr.bf16.vlgmr.msra.gmra.mrb[132].mxu0 %v5298_v38  ;;  %v18018_v38 = vld [vmem:[%s20031_s22 + $0x8] ss:$16 sps:$4 sm:$0xff]  }
0x1437   :  { %5805 = vmatpush1.bf16.msra.mxu0 %v17644_v44  ;;  %5795 = vmatprep.mubr.bf16.mxu1 %v20049_v37 }
0x1438   :  { %5806 = vmatprep.subr.bf16.mxu0 %v17651_v47  ;;  %5836 = vmatprep.mubr.bf16.mxu0 %v20049_v37 }
0x143b   :  { %5807 = vmatpush1.bf16.msra.mxu0 %v17659_v55 }
0x143c   :  { %5808 = vmatprep.subr.bf16.mxu0 %v17666_v56  ;;  %v17883_v56 = vld [vmem:[%s20031_s22 + $0x4] ss:$16 sps:$4 sm:$0xff]  }
0x143d   :  { %5763 = vmatprep.subr.bf16.mxu1 %v17883_v56 }
0x143f   :  { %5809 = vmatpush1.bf16.msra.mxu0 %v17674_v59  ;;  %v17888_v59 = vld [vmem:[%s20031_s22] ss:$16 sps:$4 sm:$0xff]  }
0x1440   :  { %5810 = vmatprep.subr.bf16.mxu0 %v17680_v60  ;;  %5764 = vmatpush1.bf16.msra.mxu1 %v17888_v59  ;;  %v17895_v60 = vld [vmem:[%s20031_s22 + $0x24] ss:$16 sps:$4 sm:$0xff]  }
0x1441   :  { %5765 = vmatprep.subr.bf16.mxu1 %v17895_v60 }
0x1443   :  { %5811 = vmatpush1.bf16.msra.mxu0 %v17688_v58  ;;  %v17900_v58 = vld [vmem:[%s20031_s22 + $0x20] ss:$16 sps:$4 sm:$0xff]  }
0x1444   :  { %5812 = vmatprep.subr.bf16.mxu0 %v17694_v5  ;;  %5766 = vmatpush1.bf16.msra.mxu1 %v17900_v58  ;;  %v17907_v5 = vld [vmem:[%s20031_s22 + $0x44] ss:$16 sps:$4 sm:$0xff]  }
0x1445   :  { %5767 = vmatprep.subr.bf16.mxu1 %v17907_v5 }
0x1447   :  { %5813 = vmatpush1.bf16.msra.mxu0 %v17702_v20  ;;  %v17912_v20 = vld [vmem:[%s20031_s22 + $0x40] ss:$16 sps:$4 sm:$0xff]  }
0x1448   :  { %5814 = vmatprep.subr.bf16.mxu0 %v17708_v48  ;;  %5768 = vmatpush1.bf16.msra.mxu1 %v17912_v20  ;;  %v17919_v48 = vld [vmem:[%s20031_s22 + $0x64] ss:$16 sps:$4 sm:$0xff]  }
0x1449   :  { %5769 = vmatprep.subr.bf16.mxu1 %v17919_v48 }
0x144b   :  { %5815 = vmatpush1.bf16.msra.mxu0 %v17716_v40  ;;  %v17924_v40 = vld [vmem:[%s20031_s22 + $0x60] ss:$16 sps:$4 sm:$0xff]  }
0x144c   :  { %5816 = vmatprep.subr.bf16.mxu0 %v17722_v50  ;;  %5770 = vmatpush1.bf16.msra.mxu1 %v17924_v40  ;;  %v17931_v50 = vld [vmem:[%s20031_s22 + $0x84] ss:$16 sps:$4 sm:$0xff]  }
0x144d   :  { %5771 = vmatprep.subr.bf16.mxu1 %v17931_v50 }
0x144f   :  { %5817 = vmatpush1.bf16.msra.mxu0 %v17728_v13  ;;  %v17936_v13 = vld [vmem:[%s20031_s22 + $0x80] ss:$16 sps:$4 sm:$0xff]  }
0x1450   :  { %5818 = vmatprep.subr.bf16.mxu0 %v17734_v7  ;;  %5772 = vmatpush1.bf16.msra.mxu1 %v17936_v13 }
0x1453   :  { %5819 = vmatpush1.bf16.msra.mxu0 %v17740_v22  ;;  %v17942_v22 = vld [vmem:[%s20031_s22 + $0xa4] ss:$16 sps:$4 sm:$0xff]  }
0x1454   :  { %5773 = vmatprep.subr.bf16.mxu1 %v17942_v22 }
0x1455   :  { %5774 = vmatpush1.bf16.msra.mxu1 %v17948_v46 }
0x1456   :  { %5775 = vmatprep.subr.bf16.mxu1 %v17954_v21 }
0x1462   :  { %v4140_v44 = vpop.xlane.xlu1 %4139 }
0x1463   :  { %15290 = vrcp.f32 %v4140_v44  ;;  %v18025_v44 = vld [vmem:[%s20031_s22 + $0x2c] ss:$16 sps:$4 sm:$0xff]  }
0x146d   :  { %v15291_v47 = vpop.eup %15290 }
0x146e   :  { %v4142_v55 = vmul.f32 %v15291_v47, %v17837_v39  ;;  %v17960_v39 = vld [vmem:[%s20031_s22 + $0xc0] ss:$16 sps:$4 sm:$0xff]   ;;  %v18030_v47 = vld [vmem:[%s20031_s22 + $0x28] ss:$16 sps:$4 sm:$0xff]  }
0x146f   :  { %5776 = vmatpush1.bf16.msra.mxu1 %v17960_v39 }
0x1470   :  { %4144 = vrot.lane.b32.xlu1 %v4142_v55, %s15751_s19  ;;  %5777 = vmatprep.subr.bf16.mxu1 %v17966_v11  ;;  %v18037_v55 = vld [vmem:[%s20031_s22 + $0x4c] ss:$16 sps:$4 sm:$0xff]  }
0x1473   :  { %5778 = vmatpush1.bf16.msra.mxu1 %v17972_v26 }
0x1474   :  { %6067 = vmatprep.subr.bf16.mxu1 %v17883_v56 }
0x14ab   :  { %v4122_v7 = vpop.xlane.xlu0 %4121 }
0x14ac   :  { %15292 = vrcp.f32 %v4122_v7  ;;  %v18042_v7 = vld [vmem:[%s20031_s22 + $0x48] ss:$16 sps:$4 sm:$0xff]  }
0x14b6   :  { %v15293_v29 = vpop.eup %15292 }
0x14b7   :  { %v4124_v43 = vmul.f32 %v15293_v29, %v17849_v42  ;;  %v18049_v29 = vld [vmem:[%s20031_s22 + $0x6c] ss:$16 sps:$4 sm:$0xff]  }
0x14b9   :  { %4125 = vst.msk [vmem:[#allocation3] sm:$0x3] %vm4113_vm6, %v4124_v43  ;;  %v18054_v43 = vld [vmem:[%s20031_s22 + $0x68] ss:$16 sps:$4 sm:$0xff]  }
0x14e2   :  { %v4145_v19 = vpop.permute.xlu1 %4144 }
0x14e3   :  { %4147 = vst.msk [vmem:[#allocation5] sm:$0x3] %vm4137_vm10, %v4145_v19  ;;  %v18061_v19 = vld [vmem:[%s20031_s22 + $0x8c] ss:$16 sps:$4 sm:$0xff]  }
0x1509   :  { %v5493_v1 = vpop.f32.mrb[92].mxu1  ;;  %v5534_v45 = vpop.f32.mrb[132].mxu0 }
0x150a   :  { %v5541_v54 = vadd.f32 %v5493_v1, %v17790_v3  ;;  %v5495_v4 = vpop.f32.mrb[93].mxu1  ;;  %v5536_v10 = vpop.f32.mrb[133].mxu0  ;;  %v5543_v35 = vadd.f32 %v5534_v45, %v17786_v25  ;;  %v18066_v1 = vld [vmem:[%s20031_s22 + $0x88] ss:$16 sps:$4 sm:$0xff]   ;;  %v18072_v45 = vld [vmem:[%s20031_s22 + $0xac] ss:$16 sps:$4 sm:$0xff]  }
0x150b   :  { %v5542_v18 = vadd.f32 %v5495_v4, %v17776_v23  ;;  %v5497_v12 = vpop.f32.mrb[94].mxu1  ;;  %v5538_v49 = vpop.f32.mrb[134].mxu0  ;;  %v5544_v62 = vadd.f32 %v5536_v10, %v17788_v9  ;;  %v18084_v4 = vld [vmem:[%s20031_s22 + $0xcc] ss:$16 sps:$4 sm:$0xff]   ;;  %v18090_v10 = vld [vmem:[%s20031_s22 + $0xc8] ss:$16 sps:$4 sm:$0xff]  }
0x150c   :  { %v13045_v2 = vmul.f32 -1.442695, %v5541_v54  ;;  %v5498_v27 = vpop.f32.mrb[95].mxu1  ;;  %v5539_v28 = vpop.f32.mrb[135].mxu0  ;;  %v18078_v54 = vld [vmem:[%s20031_s22 + $0xa8] ss:$16 sps:$4 sm:$0xff]  }
0x150d   :  { %v13046_v53 = vmul.f32 -1.442695, %v5542_v18  ;;  %v13047_v33 = vmul.f32 -1.442695, %v5544_v62  ;;  %v18096_v18 = vld [vmem:[%s20031_s22 + $0xec] ss:$16 sps:$4 sm:$0xff]  }
0x150e   :  { %15294 = vpow2.f32 %v13045_v2  ;;  %v18102_v12 = vld [vmem:[%s20031_s22 + $0xe8] ss:$16 sps:$4 sm:$0xff]  }
0x150f   :  { %15296 = vpow2.f32 %v13046_v53 }
0x1510   :  { %15298 = vpow2.f32 %v13047_v33 }
0x1511   :  { %15300 = vtanh.f32 %v5543_v35 }
0x1518   :  { %v15295_v41 = vpop.eup %15294 }
0x1519   :  { %v15297_v8 = vpop.eup %15296  ;;  %v5548_v30 = vadd.f32 1.0, %v15295_v41 }
0x151a   :  { %v5554_v14 = vadd.f32 1.0, %v15297_v8  ;;  %v15299_v36 = vpop.eup %15298 }
0x151b   :  { %15302 = vrcp.f32 %v5548_v30  ;;  %v15301_v42 = vpop.eup %15300  ;;  %v5561_v24 = vadd.f32 1.0, %v15299_v36 }
0x151c   :  { %15304 = vrcp.f32 %v5554_v14 }
0x151d   :  { %15306 = vrcp.f32 %v5561_v24 }
0x1525   :  { %v15303_v31 = vpop.eup %15302 }
0x1526   :  { %v15305_v16 = vpop.eup %15304  ;;  %v5565_v32 = vmul.f32 %v15303_v31, %v15301_v42 }
0x1527   :  { %v5564_v17 = vmul.f32 %v15305_v16, %v17854_v63  ;;  %v15307_v15 = vpop.eup %15306  ;;  %v18013_v63 = vld [vmem:[%s20031_s22 + $0xc] ss:$16 sps:$4 sm:$0xff]  }
0x1528   :  { %6108 = vmatprep.subr.bf16.mxu0 %v18013_v63 }
0x1529   :  { %v17985_v52 = vadd.f32 %v5565_v32, %v5564_v17 }
0x152b   :  { %15308 = vtanh.f32 %v17985_v52 }
0x1535   :  { %v15309_v0 = vpop.eup %15308 }
0x1536   :  { %v17988_v57 = vmul.f32 %v15309_v0, %v15307_v15 }
0x1538   :  { %v5602_v61 = vpack.c.bf16 %v17988_v57, %v17988_v57 }
0x153a   :  { %5796 = vmatmul.mubr.bf16.vlgmr.msra.gmra.mrb[96].mxu1 %v5602_v61  ;;  %5837 = vmatmul.mubr.bf16.vlgmr.msra.gmra.mrb[136].mxu0 %v5602_v61 }
0x153b   :  { %6068 = vmatpush1.bf16.msra.mxu1 %v17888_v59  ;;  %6099 = vmatprep.mubr.bf16.mxu1 %v20049_v37 }
0x153c   :  { %6069 = vmatprep.subr.bf16.mxu1 %v17895_v60  ;;  %6140 = vmatprep.mubr.bf16.mxu0 %v20049_v37 }
0x153d   :  { %6109 = vmatpush1.bf16.msra.mxu0 %v18018_v38 }
0x153e   :  { %6110 = vmatprep.subr.bf16.mxu0 %v18025_v44 }
0x153f   :  { %6070 = vmatpush1.bf16.msra.mxu1 %v17900_v58 }
0x1540   :  { %6071 = vmatprep.subr.bf16.mxu1 %v17907_v5 }
0x1541   :  { %6111 = vmatpush1.bf16.msra.mxu0 %v18030_v47 }
0x1542   :  { %6112 = vmatprep.subr.bf16.mxu0 %v18037_v55 }
0x1543   :  { %6072 = vmatpush1.bf16.msra.mxu1 %v17912_v20 }
0x1544   :  { %6073 = vmatprep.subr.bf16.mxu1 %v17919_v48 }
0x1545   :  { %6113 = vmatpush1.bf16.msra.mxu0 %v18042_v7 }
0x1546   :  { %6114 = vmatprep.subr.bf16.mxu0 %v18049_v29 }
0x1547   :  { %6074 = vmatpush1.bf16.msra.mxu1 %v17924_v40 }
0x1548   :  { %6075 = vmatprep.subr.bf16.mxu1 %v17931_v50 }
0x1549   :  { %6115 = vmatpush1.bf16.msra.mxu0 %v18054_v43 }
0x154a   :  { %6116 = vmatprep.subr.bf16.mxu0 %v18061_v19 }
0x154b   :  { %6076 = vmatpush1.bf16.msra.mxu1 %v17936_v13 }
0x154c   :  { %6077 = vmatprep.subr.bf16.mxu1 %v17942_v22 }
0x154d   :  { %6117 = vmatpush1.bf16.msra.mxu0 %v18066_v1 }
0x154e   :  { %6118 = vmatprep.subr.bf16.mxu0 %v18072_v45 }
0x154f   :  { %6078 = vmatpush1.bf16.msra.mxu1 %v17948_v46 }
0x1550   :  { %6079 = vmatprep.subr.bf16.mxu1 %v17954_v21 }
0x1551   :  { %6119 = vmatpush1.bf16.msra.mxu0 %v18078_v54 }
0x1552   :  { %6120 = vmatprep.subr.bf16.mxu0 %v18084_v4 }
0x1553   :  { %6080 = vmatpush1.bf16.msra.mxu1 %v17960_v39 }
0x1554   :  { %6081 = vmatprep.subr.bf16.mxu1 %v17966_v11 }
0x1555   :  { %6121 = vmatpush1.bf16.msra.mxu0 %v18090_v10 }
0x1556   :  { %6122 = vmatprep.subr.bf16.mxu0 %v18096_v18 }
0x1557   :  { %6082 = vmatpush1.bf16.msra.mxu1 %v17972_v26 }
0x1558   :  { %6371 = vmatprep.subr.bf16.mxu1 %v17883_v56 }
0x1559   :  { %6123 = vmatpush1.bf16.msra.mxu0 %v18102_v12 }
0x155a   :  { %6412 = vmatprep.subr.bf16.mxu0 %v18013_v63 }
0x160d   :  { %v5797_v49 = vpop.f32.mrb[96].mxu1  ;;  %v5838_v2 = vpop.f32.mrb[136].mxu0 }
0x160e   :  { %v5845_v27 = vadd.f32 %v5797_v49, %v17790_v3  ;;  %v5799_v28 = vpop.f32.mrb[97].mxu1  ;;  %v5840_v53 = vpop.f32.mrb[137].mxu0  ;;  %v5847_v31 = vadd.f32 %v5838_v2, %v17786_v25 }
0x160f   :  { %v5846_v62 = vadd.f32 %v5799_v28, %v17776_v23  ;;  %v5801_v33 = vpop.f32.mrb[98].mxu1  ;;  %v5842_v35 = vpop.f32.mrb[138].mxu0  ;;  %v5848_v36 = vadd.f32 %v5840_v53, %v17788_v9 }
0x1610   :  { %v13080_v41 = vmul.f32 -1.442695, %v5845_v27  ;;  %v5802_v8 = vpop.f32.mrb[99].mxu1  ;;  %v5843_v30 = vpop.f32.mrb[139].mxu0 }
0x1611   :  { %v13081_v14 = vmul.f32 -1.442695, %v5846_v62  ;;  %v13082_v42 = vmul.f32 -1.442695, %v5848_v36 }
0x1612   :  { %15310 = vpow2.f32 %v13080_v41 }
0x1613   :  { %15312 = vpow2.f32 %v13081_v14 }
0x1614   :  { %15314 = vpow2.f32 %v13082_v42 }
0x1615   :  { %15316 = vtanh.f32 %v5847_v31 }
0x161c   :  { %v15311_v16 = vpop.eup %15310 }
0x161d   :  { %v15313_v32 = vpop.eup %15312  ;;  %v5852_v24 = vadd.f32 1.0, %v15311_v16 }
0x161e   :  { %v5858_v17 = vadd.f32 1.0, %v15313_v32  ;;  %v15315_v15 = vpop.eup %15314 }
0x161f   :  { %15318 = vrcp.f32 %v5852_v24  ;;  %v15317_v0 = vpop.eup %15316  ;;  %v5865_v28 = vadd.f32 1.0, %v15315_v15 }
0x1620   :  { %15320 = vrcp.f32 %v5858_v17 }
0x1621   :  { %15322 = vrcp.f32 %v5865_v28 }
0x1629   :  { %v15319_v61 = vpop.eup %15318 }
0x162a   :  { %v15321_v49 = vpop.eup %15320  ;;  %v5869_v27 = vmul.f32 %v15319_v61, %v15317_v0 }
0x162b   :  { %v5868_v62 = vmul.f32 %v15321_v49, %v17985_v52  ;;  %v15323_v2 = vpop.eup %15322 }
0x162d   :  { %v18112_v53 = vadd.f32 %v5869_v27, %v5868_v62 }
0x162f   :  { %15324 = vtanh.f32 %v18112_v53 }
0x1639   :  { %v15325_v33 = vpop.eup %15324 }
0x163a   :  { %v18115_v35 = vmul.f32 %v15325_v33, %v15323_v2 }
0x163c   :  { %v5906_v41 = vpack.c.bf16 %v18115_v35, %v18115_v35 }
0x163e   :  { %6100 = vmatmul.mubr.bf16.vlgmr.msra.gmra.mrb[100].mxu1 %v5906_v41  ;;  %6141 = vmatmul.mubr.bf16.vlgmr.msra.gmra.mrb[140].mxu0 %v5906_v41 }
0x163f   :  { %6372 = vmatpush1.bf16.msra.mxu1 %v17888_v59  ;;  %6413 = vmatpush1.bf16.msra.mxu0 %v18018_v38 }
0x1640   :  { %6373 = vmatprep.subr.bf16.mxu1 %v17895_v60  ;;  %6414 = vmatprep.subr.bf16.mxu0 %v18025_v44 }
0x1641   :  { %6403 = vmatprep.mubr.bf16.mxu1 %v20049_v37  ;;  %6444 = vmatprep.mubr.bf16.mxu0 %v20049_v37 }
0x1643   :  { %6374 = vmatpush1.bf16.msra.mxu1 %v17900_v58  ;;  %6415 = vmatpush1.bf16.msra.mxu0 %v18030_v47 }
0x1644   :  { %6375 = vmatprep.subr.bf16.mxu1 %v17907_v5  ;;  %6416 = vmatprep.subr.bf16.mxu0 %v18037_v55 }
0x1647   :  { %6376 = vmatpush1.bf16.msra.mxu1 %v17912_v20  ;;  %6417 = vmatpush1.bf16.msra.mxu0 %v18042_v7 }
0x1648   :  { %6377 = vmatprep.subr.bf16.mxu1 %v17919_v48  ;;  %6418 = vmatprep.subr.bf16.mxu0 %v18049_v29 }
0x164b   :  { %6378 = vmatpush1.bf16.msra.mxu1 %v17924_v40  ;;  %6419 = vmatpush1.bf16.msra.mxu0 %v18054_v43 }
0x164c   :  { %6379 = vmatprep.subr.bf16.mxu1 %v17931_v50  ;;  %6420 = vmatprep.subr.bf16.mxu0 %v18061_v19 }
0x164f   :  { %6380 = vmatpush1.bf16.msra.mxu1 %v17936_v13  ;;  %6421 = vmatpush1.bf16.msra.mxu0 %v18066_v1 }
0x1650   :  { %6381 = vmatprep.subr.bf16.mxu1 %v17942_v22  ;;  %6422 = vmatprep.subr.bf16.mxu0 %v18072_v45 }
0x1653   :  { %6382 = vmatpush1.bf16.msra.mxu1 %v17948_v46  ;;  %6423 = vmatpush1.bf16.msra.mxu0 %v18078_v54 }
0x1654   :  { %6383 = vmatprep.subr.bf16.mxu1 %v17954_v21  ;;  %6424 = vmatprep.subr.bf16.mxu0 %v18084_v4 }
0x1657   :  { %6384 = vmatpush1.bf16.msra.mxu1 %v17960_v39  ;;  %6425 = vmatpush1.bf16.msra.mxu0 %v18090_v10 }
0x1658   :  { %6385 = vmatprep.subr.bf16.mxu1 %v17966_v11  ;;  %6426 = vmatprep.subr.bf16.mxu0 %v18096_v18 }
0x165b   :  { %6386 = vmatpush1.bf16.msra.mxu1 %v17972_v26  ;;  %6427 = vmatpush1.bf16.msra.mxu0 %v18102_v12 }
0x165c   :  { %6675 = vmatprep.subr.bf16.mxu1 %v17883_v56  ;;  %6716 = vmatprep.subr.bf16.mxu0 %v18013_v63 }
0x1711   :  { %v6101_v52 = vpop.f32.mrb[100].mxu1  ;;  %v6142_v8 = vpop.f32.mrb[140].mxu0 }
0x1712   :  { %v6149_v30 = vadd.f32 %v6101_v52, %v17790_v3  ;;  %v6103_v14 = vpop.f32.mrb[101].mxu1  ;;  %v6144_v36 = vpop.f32.mrb[141].mxu0  ;;  %v6151_v61 = vadd.f32 %v6142_v8, %v17786_v25 }
0x1713   :  { %v6150_v42 = vadd.f32 %v6103_v14, %v17776_v23  ;;  %v6105_v31 = vpop.f32.mrb[102].mxu1  ;;  %v6146_v16 = vpop.f32.mrb[142].mxu0  ;;  %v6152_v56 = vadd.f32 %v6144_v36, %v17788_v9 }
0x1714   :  { %v13115_v32 = vmul.f32 -1.442695, %v6149_v30  ;;  %v6106_v24 = vpop.f32.mrb[103].mxu1  ;;  %v6147_v17 = vpop.f32.mrb[143].mxu0 }
0x1715   :  { %v13116_v15 = vmul.f32 -1.442695, %v6150_v42  ;;  %v13117_v0 = vmul.f32 -1.442695, %v6152_v56 }
0x1716   :  { %15326 = vpow2.f32 %v13115_v32 }
0x1717   :  { %15328 = vpow2.f32 %v13116_v15 }
0x1718   :  { %15330 = vpow2.f32 %v13117_v0 }
0x1719   :  { %15332 = vtanh.f32 %v6151_v61 }
0x1720   :  { %v15327_v49 = vpop.eup %15326 }
0x1721   :  { %v15329_v27 = vpop.eup %15328  ;;  %v6156_v28 = vadd.f32 1.0, %v15327_v49 }
0x1722   :  { %v6162_v62 = vadd.f32 1.0, %v15329_v27  ;;  %v15331_v2 = vpop.eup %15330 }
0x1723   :  { %15334 = vrcp.f32 %v6156_v28  ;;  %v15333_v33 = vpop.eup %15332  ;;  %v6169_v14 = vadd.f32 1.0, %v15331_v2 }
0x1724   :  { %15336 = vrcp.f32 %v6162_v62 }
0x1725   :  { %15338 = vrcp.f32 %v6169_v14 }
0x172d   :  { %v15335_v41 = vpop.eup %15334 }
0x172e   :  { %v15337_v52 = vpop.eup %15336  ;;  %v6173_v30 = vmul.f32 %v15335_v41, %v15333_v33 }
0x172f   :  { %v6172_v42 = vmul.f32 %v15337_v52, %v18112_v53  ;;  %v15339_v8 = vpop.eup %15338 }
0x1731   :  { %v18158_v36 = vadd.f32 %v6173_v30, %v6172_v42  ;;  %v18319_v30 = vld [vmem:[%s20031_s22 + $0xe0] ss:$16 sps:$4 sm:$0xff]  }
0x1733   :  { %15340 = vtanh.f32 %v18158_v36 }
0x173d   :  { %v15341_v31 = vpop.eup %15340 }
0x173e   :  { %v18161_v16 = vmul.f32 %v15341_v31, %v15339_v8 }
0x1740   :  { %v6210_v32 = vpack.c.bf16 %v18161_v16, %v18161_v16 }
0x1742   :  { %6404 = vmatmul.mubr.bf16.vlgmr.msra.gmra.mrb[104].mxu1 %v6210_v32  ;;  %6445 = vmatmul.mubr.bf16.vlgmr.msra.gmra.mrb[144].mxu0 %v6210_v32 }
0x1743   :  { %6676 = vmatpush1.bf16.msra.mxu1 %v17888_v59  ;;  %6717 = vmatpush1.bf16.msra.mxu0 %v18018_v38 }
0x1744   :  { %6677 = vmatprep.subr.bf16.mxu1 %v17895_v60  ;;  %6718 = vmatprep.subr.bf16.mxu0 %v18025_v44 }
0x1745   :  { %6707 = vmatprep.mubr.bf16.mxu1 %v20049_v37  ;;  %6748 = vmatprep.mubr.bf16.mxu0 %v20049_v37 }
0x1747   :  { %6678 = vmatpush1.bf16.msra.mxu1 %v17900_v58  ;;  %6719 = vmatpush1.bf16.msra.mxu0 %v18030_v47 }
0x1748   :  { %6679 = vmatprep.subr.bf16.mxu1 %v17907_v5  ;;  %6720 = vmatprep.subr.bf16.mxu0 %v18037_v55 }
0x174b   :  { %6680 = vmatpush1.bf16.msra.mxu1 %v17912_v20  ;;  %6721 = vmatpush1.bf16.msra.mxu0 %v18042_v7 }
0x174c   :  { %6681 = vmatprep.subr.bf16.mxu1 %v17919_v48  ;;  %6722 = vmatprep.subr.bf16.mxu0 %v18049_v29 }
0x174f   :  { %6682 = vmatpush1.bf16.msra.mxu1 %v17924_v40  ;;  %6723 = vmatpush1.bf16.msra.mxu0 %v18054_v43 }
0x1750   :  { %6683 = vmatprep.subr.bf16.mxu1 %v17931_v50  ;;  %6724 = vmatprep.subr.bf16.mxu0 %v18061_v19 }
0x1753   :  { %6684 = vmatpush1.bf16.msra.mxu1 %v17936_v13  ;;  %6725 = vmatpush1.bf16.msra.mxu0 %v18066_v1 }
0x1754   :  { %6685 = vmatprep.subr.bf16.mxu1 %v17942_v22  ;;  %6726 = vmatprep.subr.bf16.mxu0 %v18072_v45 }
0x1757   :  { %6686 = vmatpush1.bf16.msra.mxu1 %v17948_v46  ;;  %6727 = vmatpush1.bf16.msra.mxu0 %v18078_v54 }
0x1758   :  { %6687 = vmatprep.subr.bf16.mxu1 %v17954_v21  ;;  %6728 = vmatprep.subr.bf16.mxu0 %v18084_v4 }
0x175b   :  { %6688 = vmatpush1.bf16.msra.mxu1 %v17960_v39  ;;  %6729 = vmatpush1.bf16.msra.mxu0 %v18090_v10 }
0x175c   :  { %6689 = vmatprep.subr.bf16.mxu1 %v17966_v11  ;;  %6730 = vmatprep.subr.bf16.mxu0 %v18096_v18 }
0x175f   :  { %6690 = vmatpush1.bf16.msra.mxu1 %v17972_v26  ;;  %6731 = vmatpush1.bf16.msra.mxu0 %v18102_v12 }
0x1760   :  { %7020 = vmatprep.subr.bf16.mxu0 %v18013_v63 }
0x1815   :  { %v6405_v59 = vpop.f32.mrb[104].mxu1  ;;  %v6446_v60 = vpop.f32.mrb[144].mxu0 }
0x1816   :  { %v6453_v58 = vadd.f32 %v6405_v59, %v17790_v3  ;;  %v6407_v5 = vpop.f32.mrb[105].mxu1  ;;  %v6448_v20 = vpop.f32.mrb[145].mxu0  ;;  %v6455_v26 = vadd.f32 %v6446_v60, %v17786_v25 }
0x1817   :  { %v6454_v48 = vadd.f32 %v6407_v5, %v17776_v23  ;;  %v6409_v40 = vpop.f32.mrb[106].mxu1  ;;  %v6450_v50 = vpop.f32.mrb[146].mxu0  ;;  %v6456_v39 = vadd.f32 %v6448_v20, %v17788_v9 }
0x1818   :  { %v13150_v13 = vmul.f32 -1.442695, %v6453_v58  ;;  %v6410_v22 = vpop.f32.mrb[107].mxu1  ;;  %v6451_v46 = vpop.f32.mrb[147].mxu0 }
0x1819   :  { %v13151_v21 = vmul.f32 -1.442695, %v6454_v48  ;;  %v13152_v11 = vmul.f32 -1.442695, %v6456_v39 }
0x181a   :  { %15342 = vpow2.f32 %v13150_v13 }
0x181b   :  { %15344 = vpow2.f32 %v13151_v21 }
0x181c   :  { %15346 = vpow2.f32 %v13152_v11 }
0x181d   :  { %15348 = vtanh.f32 %v6455_v26 }
0x1824   :  { %v15343_v63 = vpop.eup %15342 }
0x1825   :  { %v15345_v53 = vpop.eup %15344  ;;  %v6460_v24 = vadd.f32 1.0, %v15343_v63 }
0x1826   :  { %v6466_v17 = vadd.f32 1.0, %v15345_v53  ;;  %v15347_v15 = vpop.eup %15346 }
0x1827   :  { %15350 = vrcp.f32 %v6460_v24  ;;  %v15349_v56 = vpop.eup %15348  ;;  %v6473_v27 = vadd.f32 1.0, %v15347_v15 }
0x1828   :  { %15352 = vrcp.f32 %v6466_v17 }
0x1829   :  { %15354 = vrcp.f32 %v6473_v27 }
0x1831   :  { %v15351_v0 = vpop.eup %15350 }
0x1832   :  { %v15353_v61 = vpop.eup %15352  ;;  %v6477_v49 = vmul.f32 %v15351_v0, %v15349_v56 }
0x1833   :  { %v6476_v28 = vmul.f32 %v15353_v61, %v18158_v36  ;;  %v15355_v2 = vpop.eup %15354 }
0x1835   :  { %v18203_v62 = vadd.f32 %v6477_v49, %v6476_v28  ;;  %v18357_v28 = vld [vmem:[%s20031_s22 + $0xc] ss:$16 sps:$4 sm:$0xff]  }
0x1837   :  { %15356 = vtanh.f32 %v18203_v62 }
0x1841   :  { %v15357_v33 = vpop.eup %15356 }
0x1842   :  { %v18206_v41 = vmul.f32 %v15357_v33, %v15355_v2  ;;  %v18369_v2 = vld [vmem:[%s20031_s22 + $0x2c] ss:$16 sps:$4 sm:$0xff]   ;;  %v18374_v33 = vld [vmem:[%s20031_s22 + $0x28] ss:$16 sps:$4 sm:$0xff]  }
0x1844   :  { %v6514_v52 = vpack.c.bf16 %v18206_v41, %v18206_v41 }
0x1846   :  { %6708 = vmatmul.mubr.bf16.vlgmr.msra.gmra.mrb[108].mxu1 %v6514_v52  ;;  %6749 = vmatmul.mubr.bf16.vlgmr.msra.gmra.mrb[148].mxu0 %v6514_v52  ;;  %v18381_v52 = vld [vmem:[%s20031_s22 + $0x4c] ss:$16 sps:$4 sm:$0xff]  }
0x1847   :  { %7021 = vmatpush1.bf16.msra.mxu0 %v18018_v38  ;;  %7011 = vmatprep.mubr.bf16.mxu1 %v20049_v37  ;;  %v18230_v38 = vld [vmem:[%s20031_s22 + $0x4] ss:$16 sps:$4 sm:$0xff]  }
0x1848   :  { %7022 = vmatprep.subr.bf16.mxu0 %v18025_v44  ;;  %7052 = vmatprep.mubr.bf16.mxu0 %v20049_v37  ;;  %v18235_v44 = vld [vmem:[%s20031_s22] ss:$16 sps:$4 sm:$0xff]  }
0x1849   :  { %6979 = vmatprep.subr.bf16.mxu1 %v18230_v38 }
0x184a   :  { %6980 = vmatpush1.bf16.msra.mxu1 %v18235_v44 }
0x184b   :  { %7023 = vmatpush1.bf16.msra.mxu0 %v18030_v47  ;;  %v18242_v47 = vld [vmem:[%s20031_s22 + $0x24] ss:$16 sps:$4 sm:$0xff]  }
0x184c   :  { %7024 = vmatprep.subr.bf16.mxu0 %v18037_v55  ;;  %v18247_v55 = vld [vmem:[%s20031_s22 + $0x20] ss:$16 sps:$4 sm:$0xff]   ;;  %6981 = vmatprep.subr.bf16.mxu1 %v18242_v47 }
0x184e   :  { %6982 = vmatpush1.bf16.msra.mxu1 %v18247_v55 }
0x184f   :  { %7025 = vmatpush1.bf16.msra.mxu0 %v18042_v7  ;;  %v18254_v7 = vld [vmem:[%s20031_s22 + $0x44] ss:$16 sps:$4 sm:$0xff]  }
0x1850   :  { %7026 = vmatprep.subr.bf16.mxu0 %v18049_v29  ;;  %v18259_v29 = vld [vmem:[%s20031_s22 + $0x40] ss:$16 sps:$4 sm:$0xff]   ;;  %6983 = vmatprep.subr.bf16.mxu1 %v18254_v7 }
0x1852   :  { %6984 = vmatpush1.bf16.msra.mxu1 %v18259_v29 }
0x1853   :  { %7027 = vmatpush1.bf16.msra.mxu0 %v18054_v43  ;;  %v18266_v43 = vld [vmem:[%s20031_s22 + $0x64] ss:$16 sps:$4 sm:$0xff]  }
0x1854   :  { %7028 = vmatprep.subr.bf16.mxu0 %v18061_v19  ;;  %v18271_v19 = vld [vmem:[%s20031_s22 + $0x60] ss:$16 sps:$4 sm:$0xff]   ;;  %6985 = vmatprep.subr.bf16.mxu1 %v18266_v43 }
0x1856   :  { %6986 = vmatpush1.bf16.msra.mxu1 %v18271_v19 }
0x1857   :  { %7029 = vmatpush1.bf16.msra.mxu0 %v18066_v1  ;;  %v18278_v1 = vld [vmem:[%s20031_s22 + $0x84] ss:$16 sps:$4 sm:$0xff]  }
0x1858   :  { %7030 = vmatprep.subr.bf16.mxu0 %v18072_v45  ;;  %v18283_v45 = vld [vmem:[%s20031_s22 + $0x80] ss:$16 sps:$4 sm:$0xff]   ;;  %6987 = vmatprep.subr.bf16.mxu1 %v18278_v1 }
0x185a   :  { %6988 = vmatpush1.bf16.msra.mxu1 %v18283_v45 }
0x185b   :  { %7031 = vmatpush1.bf16.msra.mxu0 %v18078_v54  ;;  %v18289_v54 = vld [vmem:[%s20031_s22 + $0xa4] ss:$16 sps:$4 sm:$0xff]  }
0x185c   :  { %7032 = vmatprep.subr.bf16.mxu0 %v18084_v4  ;;  %v18295_v4 = vld [vmem:[%s20031_s22 + $0xa0] ss:$16 sps:$4 sm:$0xff]   ;;  %6989 = vmatprep.subr.bf16.mxu1 %v18289_v54 }
0x185e   :  { %6990 = vmatpush1.bf16.msra.mxu1 %v18295_v4 }
0x185f   :  { %7033 = vmatpush1.bf16.msra.mxu0 %v18090_v10  ;;  %v18301_v10 = vld [vmem:[%s20031_s22 + $0xc4] ss:$16 sps:$4 sm:$0xff]  }
0x1860   :  { %7034 = vmatprep.subr.bf16.mxu0 %v18096_v18  ;;  %v18307_v18 = vld [vmem:[%s20031_s22 + $0xc0] ss:$16 sps:$4 sm:$0xff]   ;;  %6991 = vmatprep.subr.bf16.mxu1 %v18301_v10 }
0x1862   :  { %6992 = vmatpush1.bf16.msra.mxu1 %v18307_v18 }
0x1863   :  { %7035 = vmatpush1.bf16.msra.mxu0 %v18102_v12  ;;  %v18313_v12 = vld [vmem:[%s20031_s22 + $0xe4] ss:$16 sps:$4 sm:$0xff]  }
0x1864   :  { %6993 = vmatprep.subr.bf16.mxu1 %v18313_v12  ;;  %7324 = vmatprep.subr.bf16.mxu0 %v18357_v28 }
0x1866   :  { %6994 = vmatpush1.bf16.msra.mxu1 %v18319_v30 }
0x1867   :  { %7283 = vmatprep.subr.bf16.mxu1 %v18230_v38 }
0x1919   :  { %v6709_v14 = vpop.f32.mrb[108].mxu1  ;;  %v6750_v42 = vpop.f32.mrb[148].mxu0 }
0x191a   :  { %v6757_v36 = vadd.f32 %v6709_v14, %v17790_v3  ;;  %v6711_v8 = vpop.f32.mrb[109].mxu1  ;;  %v6752_v31 = vpop.f32.mrb[149].mxu0  ;;  %v6759_v13 = vadd.f32 %v6750_v42, %v17786_v25  ;;  %v18386_v14 = vld [vmem:[%s20031_s22 + $0x48] ss:$16 sps:$4 sm:$0xff]   ;;  %v18393_v42 = vld [vmem:[%s20031_s22 + $0x6c] ss:$16 sps:$4 sm:$0xff]  }
0x191b   :  { %v6758_v32 = vadd.f32 %v6711_v8, %v17776_v23  ;;  %v6713_v59 = vpop.f32.mrb[110].mxu1  ;;  %v6754_v60 = vpop.f32.mrb[150].mxu0  ;;  %v6760_v40 = vadd.f32 %v6752_v31, %v17788_v9  ;;  %v18405_v8 = vld [vmem:[%s20031_s22 + $0x8c] ss:$16 sps:$4 sm:$0xff]   ;;  %v18410_v31 = vld [vmem:[%s20031_s22 + $0x88] ss:$16 sps:$4 sm:$0xff]  }
0x191c   :  { %v13185_v58 = vmul.f32 -1.442695, %v6757_v36  ;;  %v6714_v5 = vpop.f32.mrb[111].mxu1  ;;  %v6755_v20 = vpop.f32.mrb[151].mxu0  ;;  %v18398_v36 = vld [vmem:[%s20031_s22 + $0x68] ss:$16 sps:$4 sm:$0xff]  }
0x191d   :  { %v13186_v48 = vmul.f32 -1.442695, %v6758_v32  ;;  %v13187_v50 = vmul.f32 -1.442695, %v6760_v40  ;;  %v18416_v32 = vld [vmem:[%s20031_s22 + $0xac] ss:$16 sps:$4 sm:$0xff]  }
0x191e   :  { %15358 = vpow2.f32 %v13185_v58  ;;  %v18422_v59 = vld [vmem:[%s20031_s22 + $0xa8] ss:$16 sps:$4 sm:$0xff]   ;;  %v18428_v60 = vld [vmem:[%s20031_s22 + $0xcc] ss:$16 sps:$4 sm:$0xff]  }
0x191f   :  { %15360 = vpow2.f32 %v13186_v48  ;;  %v18434_v58 = vld [vmem:[%s20031_s22 + $0xc8] ss:$16 sps:$4 sm:$0xff]   ;;  %v18440_v5 = vld [vmem:[%s20031_s22 + $0xec] ss:$16 sps:$4 sm:$0xff]  }
0x1920   :  { %15362 = vpow2.f32 %v13187_v50  ;;  %v18446_v20 = vld [vmem:[%s20031_s22 + $0xe8] ss:$16 sps:$4 sm:$0xff]  }
0x1921   :  { %15364 = vtanh.f32 %v6759_v13 }
0x1928   :  { %v15359_v22 = vpop.eup %15358 }
0x1929   :  { %v15361_v46 = vpop.eup %15360  ;;  %v6764_v21 = vadd.f32 1.0, %v15359_v22 }
0x192a   :  { %v6770_v39 = vadd.f32 1.0, %v15361_v46  ;;  %v15363_v11 = vpop.eup %15362 }
0x192b   :  { %15366 = vrcp.f32 %v6764_v21  ;;  %v15365_v26 = vpop.eup %15364  ;;  %v6777_v17 = vadd.f32 1.0, %v15363_v11 }
0x192c   :  { %15368 = vrcp.f32 %v6770_v39 }
0x192d   :  { %15370 = vrcp.f32 %v6777_v17 }
0x1935   :  { %v15367_v63 = vpop.eup %15366 }
0x1936   :  { %v15369_v53 = vpop.eup %15368  ;;  %v6781_v24 = vmul.f32 %v15367_v63, %v15365_v26 }
0x1937   :  { %v6780_v15 = vmul.f32 %v15369_v53, %v18203_v62  ;;  %v15371_v0 = vpop.eup %15370  ;;  %v18362_v62 = vld [vmem:[%s20031_s22 + $0x8] ss:$16 sps:$4 sm:$0xff]  }
0x1939   :  { %v18329_v56 = vadd.f32 %v6781_v24, %v6780_v15 }
0x193b   :  { %15372 = vtanh.f32 %v18329_v56 }
0x1945   :  { %v15373_v61 = vpop.eup %15372 }
0x1946   :  { %v18332_v49 = vmul.f32 %v15373_v61, %v15371_v0 }
0x1948   :  { %v6818_v27 = vpack.c.bf16 %v18332_v49, %v18332_v49 }
0x194a   :  { %7012 = vmatmul.mubr.bf16.vlgmr.msra.gmra.mrb[112].mxu1 %v6818_v27  ;;  %7053 = vmatmul.mubr.bf16.vlgmr.msra.gmra.mrb[152].mxu0 %v6818_v27 }
0x194b   :  { %7284 = vmatpush1.bf16.msra.mxu1 %v18235_v44  ;;  %7315 = vmatprep.mubr.bf16.mxu1 %v20049_v37 }
0x194c   :  { %7285 = vmatprep.subr.bf16.mxu1 %v18242_v47  ;;  %7356 = vmatprep.mubr.bf16.mxu0 %v20049_v37 }
0x194d   :  { %7325 = vmatpush1.bf16.msra.mxu0 %v18362_v62 }
0x194e   :  { %7326 = vmatprep.subr.bf16.mxu0 %v18369_v2 }
0x194f   :  { %7286 = vmatpush1.bf16.msra.mxu1 %v18247_v55 }
0x1950   :  { %7287 = vmatprep.subr.bf16.mxu1 %v18254_v7 }
0x1951   :  { %7327 = vmatpush1.bf16.msra.mxu0 %v18374_v33 }
0x1952   :  { %7328 = vmatprep.subr.bf16.mxu0 %v18381_v52 }
0x1953   :  { %7288 = vmatpush1.bf16.msra.mxu1 %v18259_v29 }
0x1954   :  { %7289 = vmatprep.subr.bf16.mxu1 %v18266_v43 }
0x1955   :  { %7329 = vmatpush1.bf16.msra.mxu0 %v18386_v14 }
0x1956   :  { %7330 = vmatprep.subr.bf16.mxu0 %v18393_v42 }
0x1957   :  { %7290 = vmatpush1.bf16.msra.mxu1 %v18271_v19 }
0x1958   :  { %7291 = vmatprep.subr.bf16.mxu1 %v18278_v1 }
0x1959   :  { %7331 = vmatpush1.bf16.msra.mxu0 %v18398_v36 }
0x195a   :  { %7332 = vmatprep.subr.bf16.mxu0 %v18405_v8 }
0x195b   :  { %7292 = vmatpush1.bf16.msra.mxu1 %v18283_v45 }
0x195c   :  { %7293 = vmatprep.subr.bf16.mxu1 %v18289_v54 }
0x195d   :  { %7333 = vmatpush1.bf16.msra.mxu0 %v18410_v31 }
0x195e   :  { %7334 = vmatprep.subr.bf16.mxu0 %v18416_v32 }
0x195f   :  { %7294 = vmatpush1.bf16.msra.mxu1 %v18295_v4 }
0x1960   :  { %7295 = vmatprep.subr.bf16.mxu1 %v18301_v10 }
0x1961   :  { %7335 = vmatpush1.bf16.msra.mxu0 %v18422_v59 }
0x1962   :  { %7336 = vmatprep.subr.bf16.mxu0 %v18428_v60 }
0x1963   :  { %7296 = vmatpush1.bf16.msra.mxu1 %v18307_v18 }
0x1964   :  { %7297 = vmatprep.subr.bf16.mxu1 %v18313_v12 }
0x1965   :  { %7337 = vmatpush1.bf16.msra.mxu0 %v18434_v58 }
0x1966   :  { %7338 = vmatprep.subr.bf16.mxu0 %v18440_v5 }
0x1967   :  { %7298 = vmatpush1.bf16.msra.mxu1 %v18319_v30 }
0x1968   :  { %7587 = vmatprep.subr.bf16.mxu1 %v18230_v38 }
0x1969   :  { %7339 = vmatpush1.bf16.msra.mxu0 %v18446_v20 }
0x196a   :  { %7628 = vmatprep.subr.bf16.mxu0 %v18357_v28 }
0x1a1d   :  { %v7013_v48 = vpop.f32.mrb[112].mxu1  ;;  %v7054_v40 = vpop.f32.mrb[152].mxu0 }
0x1a1e   :  { %v7061_v50 = vadd.f32 %v7013_v48, %v17790_v3  ;;  %v7015_v13 = vpop.f32.mrb[113].mxu1  ;;  %v7056_v22 = vpop.f32.mrb[153].mxu0  ;;  %v7063_v15 = vadd.f32 %v7054_v40, %v17786_v25 }
0x1a1f   :  { %v7062_v46 = vadd.f32 %v7015_v13, %v17776_v23  ;;  %v7017_v21 = vpop.f32.mrb[114].mxu1  ;;  %v7058_v39 = vpop.f32.mrb[154].mxu0  ;;  %v7064_v24 = vadd.f32 %v7056_v22, %v17788_v9 }
0x1a20   :  { %v13220_v11 = vmul.f32 -1.442695, %v7061_v50  ;;  %v7018_v26 = vpop.f32.mrb[115].mxu1  ;;  %v7059_v63 = vpop.f32.mrb[155].mxu0 }
0x1a21   :  { %v13221_v53 = vmul.f32 -1.442695, %v7062_v46  ;;  %v13222_v17 = vmul.f32 -1.442695, %v7064_v24 }
0x1a22   :  { %15374 = vpow2.f32 %v13220_v11 }
0x1a23   :  { %15376 = vpow2.f32 %v13221_v53 }
0x1a24   :  { %15378 = vpow2.f32 %v13222_v17 }
0x1a25   :  { %15380 = vtanh.f32 %v7063_v15 }
0x1a2c   :  { %v15375_v0 = vpop.eup %15374 }
0x1a2d   :  { %v15377_v61 = vpop.eup %15376  ;;  %v7068_v27 = vadd.f32 1.0, %v15375_v0 }
0x1a2e   :  { %v7074_v48 = vadd.f32 1.0, %v15377_v61  ;;  %v15379_v13 = vpop.eup %15378 }
0x1a2f   :  { %15382 = vrcp.f32 %v7068_v27  ;;  %v15381_v50 = vpop.eup %15380  ;;  %v7081_v11 = vadd.f32 1.0, %v15379_v13 }
0x1a30   :  { %15384 = vrcp.f32 %v7074_v48 }
0x1a31   :  { %15386 = vrcp.f32 %v7081_v11 }
0x1a39   :  { %v15383_v21 = vpop.eup %15382 }
0x1a3a   :  { %v15385_v39 = vpop.eup %15384  ;;  %v7085_v46 = vmul.f32 %v15383_v21, %v15381_v50 }
0x1a3b   :  { %v7084_v26 = vmul.f32 %v15385_v39, %v18329_v56  ;;  %v15387_v40 = vpop.eup %15386 }
0x1a3d   :  { %v18456_v22 = vadd.f32 %v7085_v46, %v7084_v26 }
0x1a3f   :  { %15388 = vtanh.f32 %v18456_v22 }
0x1a49   :  { %v15389_v63 = vpop.eup %15388 }
0x1a4a   :  { %v18459_v53 = vmul.f32 %v15389_v63, %v15387_v40 }
0x1a4c   :  { %v7122_v24 = vpack.c.bf16 %v18459_v53, %v18459_v53 }
0x1a4e   :  { %7316 = vmatmul.mubr.bf16.vlgmr.msra.gmra.mrb[116].mxu1 %v7122_v24  ;;  %7357 = vmatmul.mubr.bf16.vlgmr.msra.gmra.mrb[156].mxu0 %v7122_v24 }
0x1a4f   :  { %7588 = vmatpush1.bf16.msra.mxu1 %v18235_v44  ;;  %7629 = vmatpush1.bf16.msra.mxu0 %v18362_v62 }
0x1a50   :  { %7589 = vmatprep.subr.bf16.mxu1 %v18242_v47  ;;  %7630 = vmatprep.subr.bf16.mxu0 %v18369_v2 }
0x1a51   :  { %7619 = vmatprep.mubr.bf16.mxu1 %v20049_v37  ;;  %7660 = vmatprep.mubr.bf16.mxu0 %v20049_v37 }
0x1a53   :  { %7590 = vmatpush1.bf16.msra.mxu1 %v18247_v55  ;;  %7631 = vmatpush1.bf16.msra.mxu0 %v18374_v33 }
0x1a54   :  { %7591 = vmatprep.subr.bf16.mxu1 %v18254_v7  ;;  %7632 = vmatprep.subr.bf16.mxu0 %v18381_v52 }
0x1a57   :  { %7592 = vmatpush1.bf16.msra.mxu1 %v18259_v29  ;;  %7633 = vmatpush1.bf16.msra.mxu0 %v18386_v14 }
0x1a58   :  { %7593 = vmatprep.subr.bf16.mxu1 %v18266_v43  ;;  %7634 = vmatprep.subr.bf16.mxu0 %v18393_v42 }
0x1a5b   :  { %7594 = vmatpush1.bf16.msra.mxu1 %v18271_v19  ;;  %7635 = vmatpush1.bf16.msra.mxu0 %v18398_v36 }
0x1a5c   :  { %7595 = vmatprep.subr.bf16.mxu1 %v18278_v1  ;;  %7636 = vmatprep.subr.bf16.mxu0 %v18405_v8 }
0x1a5f   :  { %7596 = vmatpush1.bf16.msra.mxu1 %v18283_v45  ;;  %7637 = vmatpush1.bf16.msra.mxu0 %v18410_v31 }
0x1a60   :  { %7597 = vmatprep.subr.bf16.mxu1 %v18289_v54  ;;  %7638 = vmatprep.subr.bf16.mxu0 %v18416_v32 }
0x1a63   :  { %7598 = vmatpush1.bf16.msra.mxu1 %v18295_v4  ;;  %7639 = vmatpush1.bf16.msra.mxu0 %v18422_v59 }
0x1a64   :  { %7599 = vmatprep.subr.bf16.mxu1 %v18301_v10  ;;  %7640 = vmatprep.subr.bf16.mxu0 %v18428_v60 }
0x1a67   :  { %7600 = vmatpush1.bf16.msra.mxu1 %v18307_v18  ;;  %7641 = vmatpush1.bf16.msra.mxu0 %v18434_v58 }
0x1a68   :  { %7601 = vmatprep.subr.bf16.mxu1 %v18313_v12  ;;  %7642 = vmatprep.subr.bf16.mxu0 %v18440_v5 }
0x1a6b   :  { %7602 = vmatpush1.bf16.msra.mxu1 %v18319_v30  ;;  %7643 = vmatpush1.bf16.msra.mxu0 %v18446_v20 }
0x1a6c   :  { %7891 = vmatprep.subr.bf16.mxu1 %v18230_v38  ;;  %7932 = vmatprep.subr.bf16.mxu0 %v18357_v28 }
0x1b21   :  { %v7317_v56 = vpop.f32.mrb[116].mxu1  ;;  %v7358_v17 = vpop.f32.mrb[156].mxu0 }
0x1b22   :  { %v7365_v15 = vadd.f32 %v7317_v56, %v17790_v3  ;;  %v7319_v0 = vpop.f32.mrb[117].mxu1  ;;  %v7360_v61 = vpop.f32.mrb[157].mxu0  ;;  %v7367_v26 = vadd.f32 %v7358_v17, %v17786_v25 }
0x1b23   :  { %v7366_v27 = vadd.f32 %v7319_v0, %v17776_v23  ;;  %v7321_v48 = vpop.f32.mrb[118].mxu1  ;;  %v7362_v13 = vpop.f32.mrb[158].mxu0  ;;  %v7368_v38 = vadd.f32 %v7360_v61, %v17788_v9 }
0x1b24   :  { %v13255_v50 = vmul.f32 -1.442695, %v7365_v15  ;;  %v7322_v21 = vpop.f32.mrb[119].mxu1  ;;  %v7363_v39 = vpop.f32.mrb[159].mxu0 }
0x1b25   :  { %v13256_v46 = vmul.f32 -1.442695, %v7366_v27  ;;  %v13257_v11 = vmul.f32 -1.442695, %v7368_v38 }
0x1b26   :  { %15390 = vpow2.f32 %v13255_v50 }
0x1b27   :  { %15392 = vpow2.f32 %v13256_v46 }
0x1b28   :  { %15394 = vpow2.f32 %v13257_v11 }
0x1b29   :  { %15396 = vtanh.f32 %v7367_v26 }
0x1b30   :  { %v15391_v40 = vpop.eup %15390 }
0x1b31   :  { %v15393_v63 = vpop.eup %15392  ;;  %v7372_v24 = vadd.f32 1.0, %v15391_v40 }
0x1b32   :  { %v7378_v56 = vadd.f32 1.0, %v15393_v63  ;;  %v15395_v0 = vpop.eup %15394 }
0x1b33   :  { %15398 = vrcp.f32 %v7372_v24  ;;  %v15397_v15 = vpop.eup %15396  ;;  %v7385_v50 = vadd.f32 1.0, %v15395_v0 }
0x1b34   :  { %15400 = vrcp.f32 %v7378_v56 }
0x1b35   :  { %15402 = vrcp.f32 %v7385_v50 }
0x1b3d   :  { %v15399_v48 = vpop.eup %15398 }
0x1b3e   :  { %v15401_v13 = vpop.eup %15400  ;;  %v7389_v27 = vmul.f32 %v15399_v48, %v15397_v15 }
0x1b3f   :  { %v7388_v21 = vmul.f32 %v15401_v13, %v18456_v22  ;;  %v15403_v17 = vpop.eup %15402 }
0x1b41   :  { %v18502_v61 = vadd.f32 %v7389_v27, %v7388_v21 }
0x1b43   :  { %15404 = vtanh.f32 %v18502_v61 }
0x1b4d   :  { %v15405_v39 = vpop.eup %15404 }
0x1b4e   :  { %v18505_v46 = vmul.f32 %v15405_v39, %v15403_v17 }
0x1b50   :  { %20090 = vst [vmem:[#allocation9_spill] sm:$0xff] %v18505_v46  ;;  %v7426_v38 = vpack.c.bf16 %v18505_v46, %v18505_v46 }
0x1b52   :  { %7620 = vmatmul.mubr.bf16.vlgmr.msra.gmra.mrb[120].mxu1 %v7426_v38  ;;  %7661 = vmatmul.mubr.bf16.vlgmr.msra.gmra.mrb[160].mxu0 %v7426_v38 }
0x1b53   :  { %7892 = vmatpush1.bf16.msra.mxu1 %v18235_v44  ;;  %7933 = vmatpush1.bf16.msra.mxu0 %v18362_v62 }
0x1b54   :  { %7893 = vmatprep.subr.bf16.mxu1 %v18242_v47  ;;  %7934 = vmatprep.subr.bf16.mxu0 %v18369_v2 }
0x1b55   :  { %7923 = vmatprep.mubr.bf16.mxu1 %v20049_v37  ;;  %7964 = vmatprep.mubr.bf16.mxu0 %v20049_v37 }
0x1b57   :  { %7894 = vmatpush1.bf16.msra.mxu1 %v18247_v55  ;;  %7935 = vmatpush1.bf16.msra.mxu0 %v18374_v33 }
0x1b58   :  { %7895 = vmatprep.subr.bf16.mxu1 %v18254_v7  ;;  %7936 = vmatprep.subr.bf16.mxu0 %v18381_v52 }
0x1b5b   :  { %7896 = vmatpush1.bf16.msra.mxu1 %v18259_v29  ;;  %7937 = vmatpush1.bf16.msra.mxu0 %v18386_v14 }
0x1b5c   :  { %7897 = vmatprep.subr.bf16.mxu1 %v18266_v43  ;;  %7938 = vmatprep.subr.bf16.mxu0 %v18393_v42 }
0x1b5f   :  { %7898 = vmatpush1.bf16.msra.mxu1 %v18271_v19  ;;  %7939 = vmatpush1.bf16.msra.mxu0 %v18398_v36 }
0x1b60   :  { %7899 = vmatprep.subr.bf16.mxu1 %v18278_v1  ;;  %7940 = vmatprep.subr.bf16.mxu0 %v18405_v8 }
0x1b63   :  { %7900 = vmatpush1.bf16.msra.mxu1 %v18283_v45  ;;  %7941 = vmatpush1.bf16.msra.mxu0 %v18410_v31 }
0x1b64   :  { %7901 = vmatprep.subr.bf16.mxu1 %v18289_v54  ;;  %7942 = vmatprep.subr.bf16.mxu0 %v18416_v32 }
0x1b67   :  { %7902 = vmatpush1.bf16.msra.mxu1 %v18295_v4  ;;  %7943 = vmatpush1.bf16.msra.mxu0 %v18422_v59 }
0x1b68   :  { %7903 = vmatprep.subr.bf16.mxu1 %v18301_v10  ;;  %7944 = vmatprep.subr.bf16.mxu0 %v18428_v60 }
0x1b6b   :  { %7904 = vmatpush1.bf16.msra.mxu1 %v18307_v18  ;;  %7945 = vmatpush1.bf16.msra.mxu0 %v18434_v58 }
0x1b6c   :  { %7905 = vmatprep.subr.bf16.mxu1 %v18313_v12  ;;  %7946 = vmatprep.subr.bf16.mxu0 %v18440_v5 }
0x1b6f   :  { %7906 = vmatpush1.bf16.msra.mxu1 %v18319_v30  ;;  %7947 = vmatpush1.bf16.msra.mxu0 %v18446_v20 }
0x1b70   :  { %8236 = vmatprep.subr.bf16.mxu0 %v18357_v28 }
0x1c25   :  { %v7621_v44 = vpop.f32.mrb[120].mxu1  ;;  %v7662_v47 = vpop.f32.mrb[160].mxu0 }
0x1c26   :  { %v7669_v55 = vadd.f32 %v7621_v44, %v17790_v3  ;;  %v7623_v7 = vpop.f32.mrb[121].mxu1  ;;  %v7664_v29 = vpop.f32.mrb[161].mxu0  ;;  %v7671_v30 = vadd.f32 %v7662_v47, %v17786_v25 }
0x1c27   :  { %v7670_v43 = vadd.f32 %v7623_v7, %v17776_v23  ;;  %v7625_v19 = vpop.f32.mrb[122].mxu1  ;;  %v7666_v1 = vpop.f32.mrb[162].mxu0  ;;  %v7672_v18 = vadd.f32 %v7664_v29, %v17788_v9 }
0x1c28   :  { %v13290_v45 = vmul.f32 -1.442695, %v7669_v55  ;;  %v7626_v54 = vpop.f32.mrb[123].mxu1  ;;  %v7667_v4 = vpop.f32.mrb[163].mxu0 }
0x1c29   :  { %v13291_v10 = vmul.f32 -1.442695, %v7670_v43  ;;  %v13292_v12 = vmul.f32 -1.442695, %v7672_v18 }
0x1c2a   :  { %15406 = vpow2.f32 %v13290_v45 }
0x1c2b   :  { %15408 = vpow2.f32 %v13291_v10 }
0x1c2c   :  { %15410 = vpow2.f32 %v13292_v12 }
0x1c2d   :  { %15412 = vtanh.f32 %v7671_v30 }
0x1c34   :  { %v15407_v28 = vpop.eup %15406 }
0x1c35   :  { %v15409_v22 = vpop.eup %15408  ;;  %v7676_v11 = vadd.f32 1.0, %v15407_v28 }
0x1c36   :  { %v7682_v26 = vadd.f32 1.0, %v15409_v22  ;;  %v15411_v40 = vpop.eup %15410 }
0x1c37   :  { %15414 = vrcp.f32 %v7676_v11  ;;  %v15413_v63 = vpop.eup %15412  ;;  %v7689_v15 = vadd.f32 1.0, %v15411_v40 }
0x1c38   :  { %15416 = vrcp.f32 %v7682_v26 }
0x1c39   :  { %15418 = vrcp.f32 %v7689_v15 }
0x1c41   :  { %v15415_v24 = vpop.eup %15414 }
0x1c42   :  { %v15417_v56 = vpop.eup %15416  ;;  %v7693_v0 = vmul.f32 %v15415_v24, %v15413_v63 }
0x1c43   :  { %v7692_v48 = vmul.f32 %v15417_v56, %v18502_v61  ;;  %v15419_v27 = vpop.eup %15418  ;;  %v18663_v61 = vld [vmem:[%s20031_s22 + $0xe0] ss:$16 sps:$4 sm:$0xff]  }
0x1c45   :  { %v18547_v13 = vadd.f32 %v7693_v0, %v7692_v48 }
0x1c47   :  { %15420 = vtanh.f32 %v18547_v13 }
0x1c51   :  { %v15421_v50 = vpop.eup %15420 }
0x1c52   :  { %v18550_v21 = vmul.f32 %v15421_v50, %v15419_v27 }
0x1c54   :  { %20091 = vst [vmem:[#allocation10_spill] sm:$0xff] %v18550_v21  ;;  %v7730_v17 = vpack.c.bf16 %v18550_v21, %v18550_v21 }
0x1c56   :  { %7924 = vmatmul.mubr.bf16.vlgmr.msra.gmra.mrb[124].mxu1 %v7730_v17  ;;  %7965 = vmatmul.mubr.bf16.vlgmr.msra.gmra.mrb[164].mxu0 %v7730_v17 }
0x1c57   :  { %8237 = vmatpush1.bf16.msra.mxu0 %v18362_v62  ;;  %8227 = vmatprep.mubr.bf16.mxu1 %v20049_v37  ;;  %v18574_v62 = vld [vmem:[%s20031_s22 + $0x4] ss:$16 sps:$4 sm:$0xff]  }
0x1c58   :  { %8238 = vmatprep.subr.bf16.mxu0 %v18369_v2  ;;  %8268 = vmatprep.mubr.bf16.mxu0 %v20049_v37  ;;  %v18579_v2 = vld [vmem:[%s20031_s22] ss:$16 sps:$4 sm:$0xff]  }
0x1c59   :  { %8195 = vmatprep.subr.bf16.mxu1 %v18574_v62 }
0x1c5a   :  { %8196 = vmatpush1.bf16.msra.mxu1 %v18579_v2 }
0x1c5b   :  { %8239 = vmatpush1.bf16.msra.mxu0 %v18374_v33  ;;  %v18586_v33 = vld [vmem:[%s20031_s22 + $0x24] ss:$16 sps:$4 sm:$0xff]  }
0x1c5c   :  { %8240 = vmatprep.subr.bf16.mxu0 %v18381_v52  ;;  %v18591_v52 = vld [vmem:[%s20031_s22 + $0x20] ss:$16 sps:$4 sm:$0xff]   ;;  %8197 = vmatprep.subr.bf16.mxu1 %v18586_v33 }
0x1c5e   :  { %8198 = vmatpush1.bf16.msra.mxu1 %v18591_v52 }
0x1c5f   :  { %8241 = vmatpush1.bf16.msra.mxu0 %v18386_v14  ;;  %v18598_v14 = vld [vmem:[%s20031_s22 + $0x44] ss:$16 sps:$4 sm:$0xff]  }
0x1c60   :  { %8242 = vmatprep.subr.bf16.mxu0 %v18393_v42  ;;  %v18603_v42 = vld [vmem:[%s20031_s22 + $0x40] ss:$16 sps:$4 sm:$0xff]   ;;  %8199 = vmatprep.subr.bf16.mxu1 %v18598_v14 }
0x1c62   :  { %8200 = vmatpush1.bf16.msra.mxu1 %v18603_v42 }
0x1c63   :  { %8243 = vmatpush1.bf16.msra.mxu0 %v18398_v36  ;;  %v18610_v36 = vld [vmem:[%s20031_s22 + $0x64] ss:$16 sps:$4 sm:$0xff]  }
0x1c64   :  { %8244 = vmatprep.subr.bf16.mxu0 %v18405_v8  ;;  %v18615_v8 = vld [vmem:[%s20031_s22 + $0x60] ss:$16 sps:$4 sm:$0xff]   ;;  %8201 = vmatprep.subr.bf16.mxu1 %v18610_v36 }
0x1c66   :  { %8202 = vmatpush1.bf16.msra.mxu1 %v18615_v8 }
0x1c67   :  { %8245 = vmatpush1.bf16.msra.mxu0 %v18410_v31  ;;  %v18622_v31 = vld [vmem:[%s20031_s22 + $0x84] ss:$16 sps:$4 sm:$0xff]  }
0x1c68   :  { %8246 = vmatprep.subr.bf16.mxu0 %v18416_v32  ;;  %v18627_v32 = vld [vmem:[%s20031_s22 + $0x80] ss:$16 sps:$4 sm:$0xff]   ;;  %8203 = vmatprep.subr.bf16.mxu1 %v18622_v31 }
0x1c6a   :  { %8204 = vmatpush1.bf16.msra.mxu1 %v18627_v32 }
0x1c6b   :  { %8247 = vmatpush1.bf16.msra.mxu0 %v18422_v59  ;;  %v18633_v59 = vld [vmem:[%s20031_s22 + $0xa4] ss:$16 sps:$4 sm:$0xff]  }
0x1c6c   :  { %8248 = vmatprep.subr.bf16.mxu0 %v18428_v60  ;;  %v18639_v60 = vld [vmem:[%s20031_s22 + $0xa0] ss:$16 sps:$4 sm:$0xff]   ;;  %8205 = vmatprep.subr.bf16.mxu1 %v18633_v59 }
0x1c6e   :  { %8206 = vmatpush1.bf16.msra.mxu1 %v18639_v60 }
0x1c6f   :  { %8249 = vmatpush1.bf16.msra.mxu0 %v18434_v58  ;;  %v18645_v58 = vld [vmem:[%s20031_s22 + $0xc4] ss:$16 sps:$4 sm:$0xff]  }
0x1c70   :  { %8250 = vmatprep.subr.bf16.mxu0 %v18440_v5  ;;  %v18651_v5 = vld [vmem:[%s20031_s22 + $0xc0] ss:$16 sps:$4 sm:$0xff]   ;;  %8207 = vmatprep.subr.bf16.mxu1 %v18645_v58 }
0x1c72   :  { %8208 = vmatpush1.bf16.msra.mxu1 %v18651_v5 }
0x1c73   :  { %8251 = vmatpush1.bf16.msra.mxu0 %v18446_v20  ;;  %v18657_v20 = vld [vmem:[%s20031_s22 + $0xe4] ss:$16 sps:$4 sm:$0xff]  }
0x1c74   :  { %8209 = vmatprep.subr.bf16.mxu1 %v18657_v20 }
0x1c76   :  { %8210 = vmatpush1.bf16.msra.mxu1 %v18663_v61 }
0x1c77   :  { %8499 = vmatprep.subr.bf16.mxu1 %v18574_v62 }
0x1d29   :  { %v7925_v39 = vpop.f32.mrb[124].mxu1  ;;  %v7966_v38 = vpop.f32.mrb[164].mxu0 }
0x1d2a   :  { %v7973_v44 = vadd.f32 %v7925_v39, %v17790_v3  ;;  %v7927_v47 = vpop.f32.mrb[125].mxu1  ;;  %v7968_v55 = vpop.f32.mrb[165].mxu0  ;;  %v7975_v18 = vadd.f32 %v7966_v38, %v17786_v25  ;;  %v18706_v39 = vld [vmem:[%s20031_s22 + $0x8] ss:$16 sps:$4 sm:$0xff]   ;;  %v18713_v38 = vld [vmem:[%s20031_s22 + $0x2c] ss:$16 sps:$4 sm:$0xff]  }
0x1d2b   :  { %v7974_v7 = vadd.f32 %v7927_v47, %v17776_v23  ;;  %v7929_v29 = vpop.f32.mrb[126].mxu1  ;;  %v7970_v43 = vpop.f32.mrb[166].mxu0  ;;  %v7976_v4 = vadd.f32 %v7968_v55, %v17788_v9  ;;  %v18725_v47 = vld [vmem:[%s20031_s22 + $0x4c] ss:$16 sps:$4 sm:$0xff]   ;;  %v18730_v55 = vld [vmem:[%s20031_s22 + $0x48] ss:$16 sps:$4 sm:$0xff]  }
0x1d2c   :  { %v13325_v19 = vmul.f32 -1.442695, %v7973_v44  ;;  %v7930_v1 = vpop.f32.mrb[127].mxu1  ;;  %v7971_v45 = vpop.f32.mrb[167].mxu0  ;;  %v18718_v44 = vld [vmem:[%s20031_s22 + $0x28] ss:$16 sps:$4 sm:$0xff]  }
0x1d2d   :  { %v13326_v54 = vmul.f32 -1.442695, %v7974_v7  ;;  %v13327_v10 = vmul.f32 -1.442695, %v7976_v4  ;;  %v18737_v7 = vld [vmem:[%s20031_s22 + $0x6c] ss:$16 sps:$4 sm:$0xff]  }
0x1d2e   :  { %15422 = vpow2.f32 %v13325_v19  ;;  %v18742_v29 = vld [vmem:[%s20031_s22 + $0x68] ss:$16 sps:$4 sm:$0xff]   ;;  %v18749_v43 = vld [vmem:[%s20031_s22 + $0x8c] ss:$16 sps:$4 sm:$0xff]  }
0x1d2f   :  { %15424 = vpow2.f32 %v13326_v54  ;;  %v18754_v19 = vld [vmem:[%s20031_s22 + $0x88] ss:$16 sps:$4 sm:$0xff]   ;;  %v18760_v1 = vld [vmem:[%s20031_s22 + $0xac] ss:$16 sps:$4 sm:$0xff]  }
0x1d30   :  { %15426 = vpow2.f32 %v13327_v10  ;;  %v18766_v45 = vld [vmem:[%s20031_s22 + $0xa8] ss:$16 sps:$4 sm:$0xff]   ;;  %v18772_v54 = vld [vmem:[%s20031_s22 + $0xcc] ss:$16 sps:$4 sm:$0xff]  }
0x1d31   :  { %15428 = vtanh.f32 %v7975_v18  ;;  %v18778_v4 = vld [vmem:[%s20031_s22 + $0xc8] ss:$16 sps:$4 sm:$0xff]   ;;  %v18784_v10 = vld [vmem:[%s20031_s22 + $0xec] ss:$16 sps:$4 sm:$0xff]  }
0x1d32   :  { %v18790_v18 = vld [vmem:[%s20031_s22 + $0xe8] ss:$16 sps:$4 sm:$0xff]  }
0x1d38   :  { %v15423_v12 = vpop.eup %15422 }
0x1d39   :  { %v15425_v30 = vpop.eup %15424  ;;  %v7980_v28 = vadd.f32 1.0, %v15423_v12 }
0x1d3a   :  { %v7986_v22 = vadd.f32 1.0, %v15425_v30  ;;  %v15427_v11 = vpop.eup %15426 }
0x1d3b   :  { %15430 = vrcp.f32 %v7980_v28  ;;  %v15429_v26 = vpop.eup %15428  ;;  %v7993_v56 = vadd.f32 1.0, %v15427_v11 }
0x1d3c   :  { %15432 = vrcp.f32 %v7986_v22 }
0x1d3d   :  { %15434 = vrcp.f32 %v7993_v56 }
0x1d45   :  { %v15431_v40 = vpop.eup %15430 }
0x1d46   :  { %v15433_v63 = vpop.eup %15432  ;;  %v7997_v24 = vmul.f32 %v15431_v40, %v15429_v26 }
0x1d47   :  { %v7996_v0 = vmul.f32 %v15433_v63, %v18547_v13  ;;  %v15435_v48 = vpop.eup %15434  ;;  %v18701_v13 = vld [vmem:[%s20031_s22 + $0xc] ss:$16 sps:$4 sm:$0xff]  }
0x1d48   :  { %8540 = vmatprep.subr.bf16.mxu0 %v18701_v13 }
0x1d49   :  { %v18673_v15 = vadd.f32 %v7997_v24, %v7996_v0 }
0x1d4b   :  { %15436 = vtanh.f32 %v18673_v15 }
0x1d55   :  { %v15437_v27 = vpop.eup %15436 }
0x1d56   :  { %v18676_v50 = vmul.f32 %v15437_v27, %v15435_v48 }
0x1d58   :  { %20092 = vst [vmem:[#allocation11_spill] sm:$0xff] %v18676_v50  ;;  %v8034_v17 = vpack.c.bf16 %v18676_v50, %v18676_v50 }
0x1d5a   :  { %8228 = vmatmul.mubr.bf16.vlgmr.msra.gmra.mrb[128].mxu1 %v8034_v17  ;;  %8269 = vmatmul.mubr.bf16.vlgmr.msra.gmra.mrb[168].mxu0 %v8034_v17 }
0x1d5b   :  { %8500 = vmatpush1.bf16.msra.mxu1 %v18579_v2  ;;  %8531 = vmatprep.mubr.bf16.mxu1 %v20049_v37 }
0x1d5c   :  { %8501 = vmatprep.subr.bf16.mxu1 %v18586_v33  ;;  %8572 = vmatprep.mubr.bf16.mxu0 %v20049_v37 }
0x1d5d   :  { %8541 = vmatpush1.bf16.msra.mxu0 %v18706_v39 }
0x1d5e   :  { %8542 = vmatprep.subr.bf16.mxu0 %v18713_v38 }
0x1d5f   :  { %8502 = vmatpush1.bf16.msra.mxu1 %v18591_v52 }
0x1d60   :  { %8503 = vmatprep.subr.bf16.mxu1 %v18598_v14 }
0x1d61   :  { %8543 = vmatpush1.bf16.msra.mxu0 %v18718_v44 }
0x1d62   :  { %8544 = vmatprep.subr.bf16.mxu0 %v18725_v47 }
0x1d63   :  { %8504 = vmatpush1.bf16.msra.mxu1 %v18603_v42 }
0x1d64   :  { %8505 = vmatprep.subr.bf16.mxu1 %v18610_v36 }
0x1d65   :  { %8545 = vmatpush1.bf16.msra.mxu0 %v18730_v55 }
0x1d66   :  { %8546 = vmatprep.subr.bf16.mxu0 %v18737_v7 }
0x1d67   :  { %8506 = vmatpush1.bf16.msra.mxu1 %v18615_v8 }
0x1d68   :  { %8507 = vmatprep.subr.bf16.mxu1 %v18622_v31 }
0x1d69   :  { %8547 = vmatpush1.bf16.msra.mxu0 %v18742_v29 }
0x1d6a   :  { %8548 = vmatprep.subr.bf16.mxu0 %v18749_v43 }
0x1d6b   :  { %8508 = vmatpush1.bf16.msra.mxu1 %v18627_v32 }
0x1d6c   :  { %8509 = vmatprep.subr.bf16.mxu1 %v18633_v59 }
0x1d6d   :  { %8549 = vmatpush1.bf16.msra.mxu0 %v18754_v19 }
0x1d6e   :  { %8550 = vmatprep.subr.bf16.mxu0 %v18760_v1 }
0x1d6f   :  { %8510 = vmatpush1.bf16.msra.mxu1 %v18639_v60 }
0x1d70   :  { %8511 = vmatprep.subr.bf16.mxu1 %v18645_v58 }
0x1d71   :  { %8551 = vmatpush1.bf16.msra.mxu0 %v18766_v45 }
0x1d72   :  { %8552 = vmatprep.subr.bf16.mxu0 %v18772_v54 }
0x1d73   :  { %8512 = vmatpush1.bf16.msra.mxu1 %v18651_v5 }
0x1d74   :  { %8513 = vmatprep.subr.bf16.mxu1 %v18657_v20 }
0x1d75   :  { %8553 = vmatpush1.bf16.msra.mxu0 %v18778_v4 }
0x1d76   :  { %8554 = vmatprep.subr.bf16.mxu0 %v18784_v10 }
0x1d77   :  { %8514 = vmatpush1.bf16.msra.mxu1 %v18663_v61 }
0x1d78   :  { %8803 = vmatprep.subr.bf16.mxu1 %v18574_v62 }
0x1d79   :  { %8555 = vmatpush1.bf16.msra.mxu0 %v18790_v18 }
0x1d7a   :  { %8844 = vmatprep.subr.bf16.mxu0 %v18701_v13 }
0x1e2d   :  { %v8229_v12 = vpop.f32.mrb[128].mxu1  ;;  %v8270_v30 = vpop.f32.mrb[168].mxu0 }
0x1e2e   :  { %v8277_v28 = vadd.f32 %v8229_v12, %v17790_v3  ;;  %v8231_v22 = vpop.f32.mrb[129].mxu1  ;;  %v8272_v11 = vpop.f32.mrb[169].mxu0  ;;  %v8279_v34 = vadd.f32 %v8270_v30, %v17786_v25 }
0x1e2f   :  { %v8278_v26 = vadd.f32 %v8231_v22, %v17776_v23  ;;  %v8233_v40 = vpop.f32.mrb[130].mxu1  ;;  %v8274_v63 = vpop.f32.mrb[170].mxu0  ;;  %v8280_v27 = vadd.f32 %v8272_v11, %v17788_v9 }
0x1e30   :  { %v13360_v24 = vmul.f32 -1.442695, %v8277_v28  ;;  %v8234_v56 = vpop.f32.mrb[131].mxu1  ;;  %v8275_v0 = vpop.f32.mrb[171].mxu0 }
0x1e31   :  { %v13361_v48 = vmul.f32 -1.442695, %v8278_v26  ;;  %v13362_v17 = vmul.f32 -1.442695, %v8280_v27 }
0x1e32   :  { %15438 = vpow2.f32 %v13360_v24 }
0x1e33   :  { %15440 = vpow2.f32 %v13361_v48 }
0x1e34   :  { %15442 = vpow2.f32 %v13362_v17 }
0x1e35   :  { %15444 = vtanh.f32 %v8279_v34 }
0x1e3c   :  { %v15439_v37 = vpop.eup %15438 }
0x1e3d   :  { %v15441_v50 = vpop.eup %15440  ;;  %v8284_v12 = vadd.f32 1.0, %v15439_v37 }
0x1e3e   :  { %v8290_v21 = vadd.f32 1.0, %v15441_v50  ;;  %v15443_v22 = vpop.eup %15442 }
0x1e3f   :  { %15446 = vrcp.f32 %v8284_v12  ;;  %v15445_v28 = vpop.eup %15444  ;;  %v8297_v24 = vadd.f32 1.0, %v15443_v22 }
0x1e40   :  { %15448 = vrcp.f32 %v8290_v21  ;;  %v20094_v21 = vmov 0  }
0x1e41   :  { %15450 = vrcp.f32 %v8297_v24 }
0x1e49   :  { %v15447_v40 = vpop.eup %15446 }
0x1e4a   :  { %v15449_v63 = vpop.eup %15448  ;;  %v8301_v26 = vmul.f32 %v15447_v40, %v15445_v28 }
0x1e4b   :  { %v8300_v56 = vmul.f32 %v15449_v63, %v18673_v15  ;;  %v15451_v30 = vpop.eup %15450 }
0x1e4d   :  { %v18800_v11 = vadd.f32 %v8301_v26, %v8300_v56 }
0x1e4f   :  { %15452 = vtanh.f32 %v18800_v11 }
0x1e59   :  { %v15453_v37 = vpop.eup %15452 }
0x1e5a   :  { %v18803_v0 = vmul.f32 %v15453_v37, %v15451_v30 }
0x1e5c   :  { %20093 = vst [vmem:[#allocation12_spill] sm:$0xff] %v18803_v0  ;;  %v8338_v34 = vpack.c.bf16 %v18803_v0, %v18803_v0 }
0x1e5e   :  { %8532 = vmatmul.mubr.bf16.vlgmr.msra.gmra.mrb[132].mxu1 %v8338_v34  ;;  %8573 = vmatmul.mubr.bf16.vlgmr.msra.gmra.mrb[172].mxu0 %v8338_v34 }
0x1e5f   :  { %8804 = vmatpush1.bf16.msra.mxu1 %v18579_v2  ;;  %8845 = vmatpush1.bf16.msra.mxu0 %v18706_v39 }
0x1e60   :  { %8805 = vmatprep.subr.bf16.mxu1 %v18586_v33  ;;  %8846 = vmatprep.subr.bf16.mxu0 %v18713_v38 }
0x1e61   :  { %8835 = vmatprep.mubr.bf16.mxu1 %v20094_v21  ;;  %8876 = vmatprep.mubr.bf16.mxu0 %v20094_v21 }
0x1e63   :  { %8806 = vmatpush1.bf16.msra.mxu1 %v18591_v52  ;;  %8847 = vmatpush1.bf16.msra.mxu0 %v18718_v44 }
0x1e64   :  { %8807 = vmatprep.subr.bf16.mxu1 %v18598_v14  ;;  %8848 = vmatprep.subr.bf16.mxu0 %v18725_v47 }
0x1e67   :  { %8808 = vmatpush1.bf16.msra.mxu1 %v18603_v42  ;;  %8849 = vmatpush1.bf16.msra.mxu0 %v18730_v55 }
0x1e68   :  { %8809 = vmatprep.subr.bf16.mxu1 %v18610_v36  ;;  %8850 = vmatprep.subr.bf16.mxu0 %v18737_v7 }
0x1e6b   :  { %8810 = vmatpush1.bf16.msra.mxu1 %v18615_v8  ;;  %8851 = vmatpush1.bf16.msra.mxu0 %v18742_v29 }
0x1e6c   :  { %8811 = vmatprep.subr.bf16.mxu1 %v18622_v31  ;;  %8852 = vmatprep.subr.bf16.mxu0 %v18749_v43 }
0x1e6f   :  { %8812 = vmatpush1.bf16.msra.mxu1 %v18627_v32  ;;  %8853 = vmatpush1.bf16.msra.mxu0 %v18754_v19 }
0x1e70   :  { %8813 = vmatprep.subr.bf16.mxu1 %v18633_v59  ;;  %8854 = vmatprep.subr.bf16.mxu0 %v18760_v1 }
0x1e73   :  { %8814 = vmatpush1.bf16.msra.mxu1 %v18639_v60  ;;  %8855 = vmatpush1.bf16.msra.mxu0 %v18766_v45 }
0x1e74   :  { %8815 = vmatprep.subr.bf16.mxu1 %v18645_v58  ;;  %8856 = vmatprep.subr.bf16.mxu0 %v18772_v54 }
0x1e77   :  { %8816 = vmatpush1.bf16.msra.mxu1 %v18651_v5  ;;  %8857 = vmatpush1.bf16.msra.mxu0 %v18778_v4 }
0x1e78   :  { %8817 = vmatprep.subr.bf16.mxu1 %v18657_v20  ;;  %8858 = vmatprep.subr.bf16.mxu0 %v18784_v10 }
0x1e7b   :  { %8818 = vmatpush1.bf16.msra.mxu1 %v18663_v61  ;;  %8859 = vmatpush1.bf16.msra.mxu0 %v18790_v18 }
0x1e7c   :  { %9107 = vmatprep.subr.bf16.mxu1 %v18574_v62  ;;  %9148 = vmatprep.subr.bf16.mxu0 %v18701_v13 }
0x1f31   :  { %v8533_v15 = vpop.f32.mrb[132].mxu1  ;;  %v8574_v50 = vpop.f32.mrb[172].mxu0 }
0x1f32   :  { %v8581_v48 = vadd.f32 %v8533_v15, %v17790_v3  ;;  %v8535_v27 = vpop.f32.mrb[133].mxu1  ;;  %v8576_v17 = vpop.f32.mrb[173].mxu0  ;;  %v8583_v30 = vadd.f32 %v8574_v50, %v17786_v25 }
0x1f33   :  { %v8582_v12 = vadd.f32 %v8535_v27, %v17776_v23  ;;  %v8537_v22 = vpop.f32.mrb[134].mxu1  ;;  %v8578_v28 = vpop.f32.mrb[174].mxu0  ;;  %v8584_v62 = vadd.f32 %v8576_v17, %v17788_v9 }
0x1f34   :  { %v13395_v40 = vmul.f32 -1.442695, %v8581_v48  ;;  %v8538_v63 = vpop.f32.mrb[135].mxu1  ;;  %v8579_v26 = vpop.f32.mrb[175].mxu0 }
0x1f35   :  { %v13396_v24 = vmul.f32 -1.442695, %v8582_v12  ;;  %v13397_v56 = vmul.f32 -1.442695, %v8584_v62 }
0x1f36   :  { %15454 = vpow2.f32 %v13395_v40 }
0x1f37   :  { %15456 = vpow2.f32 %v13396_v24 }
0x1f38   :  { %15458 = vpow2.f32 %v13397_v56 }
0x1f39   :  { %15460 = vtanh.f32 %v8583_v30 }
0x1f40   :  { %v15455_v37 = vpop.eup %15454 }
0x1f41   :  { %v15457_v34 = vpop.eup %15456  ;;  %v8588_v15 = vadd.f32 1.0, %v15455_v37 }
0x1f42   :  { %v8594_v0 = vadd.f32 1.0, %v15457_v34  ;;  %v15459_v27 = vpop.eup %15458 }
0x1f43   :  { %15462 = vrcp.f32 %v8588_v15  ;;  %v15461_v48 = vpop.eup %15460  ;;  %v8601_v40 = vadd.f32 1.0, %v15459_v27 }
0x1f44   :  { %15464 = vrcp.f32 %v8594_v0 }
0x1f45   :  { %15466 = vrcp.f32 %v8601_v40 }
0x1f4d   :  { %v15463_v22 = vpop.eup %15462 }
0x1f4e   :  { %v15465_v28 = vpop.eup %15464  ;;  %v8605_v12 = vmul.f32 %v15463_v22, %v15461_v48 }
0x1f4f   :  { %v8604_v63 = vmul.f32 %v15465_v28, %v18800_v11  ;;  %v15467_v50 = vpop.eup %15466 }
0x1f51   :  { %v18846_v17 = vadd.f32 %v8605_v12, %v8604_v63 }
0x1f53   :  { %15468 = vtanh.f32 %v18846_v17 }
0x1f5d   :  { %v15469_v26 = vpop.eup %15468 }
0x1f5e   :  { %v18849_v24 = vmul.f32 %v15469_v26, %v15467_v50 }
0x1f60   :  { %20095 = vst [vmem:[#allocation13_spill] sm:$0xff] %v18849_v24  ;;  %v8642_v0 = vpack.c.bf16 %v18849_v24, %v18849_v24 }
0x1f62   :  { %8836 = vmatmul.mubr.bf16.vlgmr.msra.gmra.mrb[136].mxu1 %v8642_v0  ;;  %8877 = vmatmul.mubr.bf16.vlgmr.msra.gmra.mrb[176].mxu0 %v8642_v0 }
0x1f63   :  { %9108 = vmatpush1.bf16.msra.mxu1 %v18579_v2  ;;  %9149 = vmatpush1.bf16.msra.mxu0 %v18706_v39 }
0x1f64   :  { %9109 = vmatprep.subr.bf16.mxu1 %v18586_v33  ;;  %9150 = vmatprep.subr.bf16.mxu0 %v18713_v38 }
0x1f65   :  { %9139 = vmatprep.mubr.bf16.mxu1 %v20094_v21  ;;  %9180 = vmatprep.mubr.bf16.mxu0 %v20094_v21 }
0x1f67   :  { %9110 = vmatpush1.bf16.msra.mxu1 %v18591_v52  ;;  %9151 = vmatpush1.bf16.msra.mxu0 %v18718_v44 }
0x1f68   :  { %9111 = vmatprep.subr.bf16.mxu1 %v18598_v14  ;;  %9152 = vmatprep.subr.bf16.mxu0 %v18725_v47 }
0x1f6b   :  { %9112 = vmatpush1.bf16.msra.mxu1 %v18603_v42  ;;  %9153 = vmatpush1.bf16.msra.mxu0 %v18730_v55 }
0x1f6c   :  { %9113 = vmatprep.subr.bf16.mxu1 %v18610_v36  ;;  %9154 = vmatprep.subr.bf16.mxu0 %v18737_v7 }
0x1f6f   :  { %9114 = vmatpush1.bf16.msra.mxu1 %v18615_v8  ;;  %9155 = vmatpush1.bf16.msra.mxu0 %v18742_v29 }
0x1f70   :  { %9115 = vmatprep.subr.bf16.mxu1 %v18622_v31  ;;  %9156 = vmatprep.subr.bf16.mxu0 %v18749_v43 }
0x1f73   :  { %9116 = vmatpush1.bf16.msra.mxu1 %v18627_v32  ;;  %9157 = vmatpush1.bf16.msra.mxu0 %v18754_v19 }
0x1f74   :  { %9117 = vmatprep.subr.bf16.mxu1 %v18633_v59  ;;  %9158 = vmatprep.subr.bf16.mxu0 %v18760_v1 }
0x1f77   :  { %9118 = vmatpush1.bf16.msra.mxu1 %v18639_v60  ;;  %9159 = vmatpush1.bf16.msra.mxu0 %v18766_v45 }
0x1f78   :  { %9119 = vmatprep.subr.bf16.mxu1 %v18645_v58  ;;  %9160 = vmatprep.subr.bf16.mxu0 %v18772_v54 }
0x1f7b   :  { %9120 = vmatpush1.bf16.msra.mxu1 %v18651_v5  ;;  %9161 = vmatpush1.bf16.msra.mxu0 %v18778_v4 }
0x1f7c   :  { %9121 = vmatprep.subr.bf16.mxu1 %v18657_v20  ;;  %9162 = vmatprep.subr.bf16.mxu0 %v18784_v10 }
0x1f7f   :  { %9122 = vmatpush1.bf16.msra.mxu1 %v18663_v61  ;;  %9163 = vmatpush1.bf16.msra.mxu0 %v18790_v18 }
0x1f80   :  { %9452 = vmatprep.subr.bf16.mxu0 %v18701_v13 }
0x2035   :  { %v8837_v2 = vpop.f32.mrb[136].mxu1  ;;  %v8878_v33 = vpop.f32.mrb[176].mxu0 }
0x2036   :  { %v8885_v52 = vadd.f32 %v8837_v2, %v17790_v3  ;;  %v8839_v14 = vpop.f32.mrb[137].mxu1  ;;  %v8880_v42 = vpop.f32.mrb[177].mxu0  ;;  %v8887_v61 = vadd.f32 %v8878_v33, %v17786_v25 }
0x2037   :  { %v8886_v36 = vadd.f32 %v8839_v14, %v17776_v23  ;;  %v8841_v8 = vpop.f32.mrb[138].mxu1  ;;  %v8882_v31 = vpop.f32.mrb[178].mxu0  ;;  %v8888_v5 = vadd.f32 %v8880_v42, %v17788_v9 }
0x2038   :  { %v13430_v32 = vmul.f32 -1.442695, %v8885_v52  ;;  %v8842_v59 = vpop.f32.mrb[139].mxu1  ;;  %v8883_v60 = vpop.f32.mrb[179].mxu0 }
0x2039   :  { %v13431_v58 = vmul.f32 -1.442695, %v8886_v36  ;;  %v13432_v20 = vmul.f32 -1.442695, %v8888_v5 }
0x203a   :  { %15470 = vpow2.f32 %v13430_v32 }
0x203b   :  { %15472 = vpow2.f32 %v13431_v58 }
0x203c   :  { %15474 = vpow2.f32 %v13432_v20 }
0x203d   :  { %15476 = vtanh.f32 %v8887_v61 }
0x2044   :  { %v15471_v13 = vpop.eup %15470 }
0x2045   :  { %v15473_v11 = vpop.eup %15472  ;;  %v8892_v62 = vadd.f32 1.0, %v15471_v13 }
0x2046   :  { %v8898_v56 = vadd.f32 1.0, %v15473_v11  ;;  %v15475_v30 = vpop.eup %15474 }
0x2047   :  { %15478 = vrcp.f32 %v8892_v62  ;;  %v15477_v37 = vpop.eup %15476  ;;  %v8905_v48 = vadd.f32 1.0, %v15475_v30 }
0x2048   :  { %15480 = vrcp.f32 %v8898_v56 }
0x2049   :  { %15482 = vrcp.f32 %v8905_v48 }
0x2051   :  { %v15479_v34 = vpop.eup %15478 }
0x2052   :  { %v15481_v15 = vpop.eup %15480  ;;  %v8909_v27 = vmul.f32 %v15479_v34, %v15477_v37 }
0x2053   :  { %v8908_v22 = vmul.f32 %v15481_v15, %v18846_v17  ;;  %v15483_v12 = vpop.eup %15482  ;;  %v19007_v17 = vld [vmem:[%s20031_s22 + $0xe0] ss:$16 sps:$4 sm:$0xff]  }
0x2055   :  { %v18891_v28 = vadd.f32 %v8909_v27, %v8908_v22 }
0x2057   :  { %15484 = vtanh.f32 %v18891_v28 }
0x2061   :  { %v15485_v40 = vpop.eup %15484 }
0x2062   :  { %v18894_v63 = vmul.f32 %v15485_v40, %v15483_v12 }
0x2064   :  { %20096 = vst [vmem:[#allocation14_spill] sm:$0xff] %v18894_v63  ;;  %v8946_v50 = vpack.c.bf16 %v18894_v63, %v18894_v63 }
0x2066   :  { %9140 = vmatmul.mubr.bf16.vlgmr.msra.gmra.mrb[140].mxu1 %v8946_v50  ;;  %9181 = vmatmul.mubr.bf16.vlgmr.msra.gmra.mrb[180].mxu0 %v8946_v50 }
0x2067   :  { %9453 = vmatpush1.bf16.msra.mxu0 %v18706_v39  ;;  %9443 = vmatprep.mubr.bf16.mxu1 %v20094_v21  ;;  %v18918_v39 = vld [vmem:[%s20031_s22 + $0x4] ss:$16 sps:$4 sm:$0xff]  }
0x2068   :  { %9454 = vmatprep.subr.bf16.mxu0 %v18713_v38  ;;  %9484 = vmatprep.mubr.bf16.mxu0 %v20094_v21  ;;  %v18923_v38 = vld [vmem:[%s20031_s22] ss:$16 sps:$4 sm:$0xff]  }
0x2069   :  { %9411 = vmatprep.subr.bf16.mxu1 %v18918_v39 }
0x206a   :  { %9412 = vmatpush1.bf16.msra.mxu1 %v18923_v38 }
0x206b   :  { %9455 = vmatpush1.bf16.msra.mxu0 %v18718_v44  ;;  %v18930_v44 = vld [vmem:[%s20031_s22 + $0x24] ss:$16 sps:$4 sm:$0xff]  }
0x206c   :  { %9456 = vmatprep.subr.bf16.mxu0 %v18725_v47  ;;  %v18935_v47 = vld [vmem:[%s20031_s22 + $0x20] ss:$16 sps:$4 sm:$0xff]   ;;  %9413 = vmatprep.subr.bf16.mxu1 %v18930_v44 }
0x206e   :  { %9414 = vmatpush1.bf16.msra.mxu1 %v18935_v47 }
0x206f   :  { %9457 = vmatpush1.bf16.msra.mxu0 %v18730_v55  ;;  %v18942_v55 = vld [vmem:[%s20031_s22 + $0x44] ss:$16 sps:$4 sm:$0xff]  }
0x2070   :  { %9458 = vmatprep.subr.bf16.mxu0 %v18737_v7  ;;  %v18947_v7 = vld [vmem:[%s20031_s22 + $0x40] ss:$16 sps:$4 sm:$0xff]   ;;  %9415 = vmatprep.subr.bf16.mxu1 %v18942_v55 }
0x2072   :  { %9416 = vmatpush1.bf16.msra.mxu1 %v18947_v7 }
0x2073   :  { %9459 = vmatpush1.bf16.msra.mxu0 %v18742_v29  ;;  %v18954_v29 = vld [vmem:[%s20031_s22 + $0x64] ss:$16 sps:$4 sm:$0xff]  }
0x2074   :  { %9460 = vmatprep.subr.bf16.mxu0 %v18749_v43  ;;  %v18959_v43 = vld [vmem:[%s20031_s22 + $0x60] ss:$16 sps:$4 sm:$0xff]   ;;  %9417 = vmatprep.subr.bf16.mxu1 %v18954_v29 }
0x2076   :  { %9418 = vmatpush1.bf16.msra.mxu1 %v18959_v43 }
0x2077   :  { %9461 = vmatpush1.bf16.msra.mxu0 %v18754_v19  ;;  %v18966_v19 = vld [vmem:[%s20031_s22 + $0x84] ss:$16 sps:$4 sm:$0xff]  }
0x2078   :  { %9462 = vmatprep.subr.bf16.mxu0 %v18760_v1  ;;  %v18971_v1 = vld [vmem:[%s20031_s22 + $0x80] ss:$16 sps:$4 sm:$0xff]   ;;  %9419 = vmatprep.subr.bf16.mxu1 %v18966_v19 }
0x207a   :  { %9420 = vmatpush1.bf16.msra.mxu1 %v18971_v1 }
0x207b   :  { %9463 = vmatpush1.bf16.msra.mxu0 %v18766_v45  ;;  %v18977_v45 = vld [vmem:[%s20031_s22 + $0xa4] ss:$16 sps:$4 sm:$0xff]  }
0x207c   :  { %9464 = vmatprep.subr.bf16.mxu0 %v18772_v54  ;;  %v18983_v54 = vld [vmem:[%s20031_s22 + $0xa0] ss:$16 sps:$4 sm:$0xff]   ;;  %9421 = vmatprep.subr.bf16.mxu1 %v18977_v45 }
0x207e   :  { %9422 = vmatpush1.bf16.msra.mxu1 %v18983_v54 }
0x207f   :  { %9465 = vmatpush1.bf16.msra.mxu0 %v18778_v4  ;;  %v18989_v4 = vld [vmem:[%s20031_s22 + $0xc4] ss:$16 sps:$4 sm:$0xff]  }
0x2080   :  { %9466 = vmatprep.subr.bf16.mxu0 %v18784_v10  ;;  %v18995_v10 = vld [vmem:[%s20031_s22 + $0xc0] ss:$16 sps:$4 sm:$0xff]   ;;  %9423 = vmatprep.subr.bf16.mxu1 %v18989_v4 }
0x2082   :  { %9424 = vmatpush1.bf16.msra.mxu1 %v18995_v10 }
0x2083   :  { %9467 = vmatpush1.bf16.msra.mxu0 %v18790_v18  ;;  %v19001_v18 = vld [vmem:[%s20031_s22 + $0xe4] ss:$16 sps:$4 sm:$0xff]  }
0x2084   :  { %9425 = vmatprep.subr.bf16.mxu1 %v19001_v18 }
0x2086   :  { %9426 = vmatpush1.bf16.msra.mxu1 %v19007_v17 }
0x2087   :  { %9715 = vmatprep.subr.bf16.mxu1 %v18918_v39 }
0x2139   :  { %v9141_v26 = vpop.f32.mrb[140].mxu1  ;;  %v9182_v0 = vpop.f32.mrb[180].mxu0 }
0x213a   :  { %v9189_v2 = vadd.f32 %v9141_v26, %v17790_v3  ;;  %v9143_v33 = vpop.f32.mrb[141].mxu1  ;;  %v9184_v52 = vpop.f32.mrb[181].mxu0  ;;  %v9191_v5 = vadd.f32 %v9182_v0, %v17786_v25  ;;  %v19050_v26 = vld [vmem:[%s20031_s22 + $0x8] ss:$16 sps:$4 sm:$0xff]   ;;  %v19057_v0 = vld [vmem:[%s20031_s22 + $0x2c] ss:$16 sps:$4 sm:$0xff]  }
0x213b   :  { %v9190_v14 = vadd.f32 %v9143_v33, %v17776_v23  ;;  %v9145_v42 = vpop.f32.mrb[142].mxu1  ;;  %v9186_v36 = vpop.f32.mrb[182].mxu0  ;;  %v9192_v60 = vadd.f32 %v9184_v52, %v17788_v9  ;;  %v19069_v33 = vld [vmem:[%s20031_s22 + $0x4c] ss:$16 sps:$4 sm:$0xff]   ;;  %v19074_v52 = vld [vmem:[%s20031_s22 + $0x48] ss:$16 sps:$4 sm:$0xff]  }
0x213c   :  { %v13465_v8 = vmul.f32 -1.442695, %v9189_v2  ;;  %v9146_v31 = vpop.f32.mrb[143].mxu1  ;;  %v9187_v32 = vpop.f32.mrb[183].mxu0  ;;  %v19062_v2 = vld [vmem:[%s20031_s22 + $0x28] ss:$16 sps:$4 sm:$0xff]  }
0x213d   :  { %v13466_v59 = vmul.f32 -1.442695, %v9190_v14  ;;  %v13467_v58 = vmul.f32 -1.442695, %v9192_v60  ;;  %v19081_v14 = vld [vmem:[%s20031_s22 + $0x6c] ss:$16 sps:$4 sm:$0xff]  }
0x213e   :  { %15486 = vpow2.f32 %v13465_v8  ;;  %v19086_v42 = vld [vmem:[%s20031_s22 + $0x68] ss:$16 sps:$4 sm:$0xff]   ;;  %v19093_v36 = vld [vmem:[%s20031_s22 + $0x8c] ss:$16 sps:$4 sm:$0xff]  }
0x213f   :  { %15488 = vpow2.f32 %v13466_v59  ;;  %v19098_v8 = vld [vmem:[%s20031_s22 + $0x88] ss:$16 sps:$4 sm:$0xff]   ;;  %v19104_v31 = vld [vmem:[%s20031_s22 + $0xac] ss:$16 sps:$4 sm:$0xff]  }
0x2140   :  { %15490 = vpow2.f32 %v13467_v58  ;;  %v19110_v32 = vld [vmem:[%s20031_s22 + $0xa8] ss:$16 sps:$4 sm:$0xff]   ;;  %v19116_v59 = vld [vmem:[%s20031_s22 + $0xcc] ss:$16 sps:$4 sm:$0xff]  }
0x2141   :  { %15492 = vtanh.f32 %v9191_v5  ;;  %v19122_v60 = vld [vmem:[%s20031_s22 + $0xc8] ss:$16 sps:$4 sm:$0xff]   ;;  %v19128_v58 = vld [vmem:[%s20031_s22 + $0xec] ss:$16 sps:$4 sm:$0xff]  }
0x2142   :  { %v19134_v5 = vld [vmem:[%s20031_s22 + $0xe8] ss:$16 sps:$4 sm:$0xff]  }
0x2148   :  { %v15487_v20 = vpop.eup %15486 }
0x2149   :  { %v15489_v61 = vpop.eup %15488  ;;  %v9196_v13 = vadd.f32 1.0, %v15487_v20 }
0x214a   :  { %v9202_v11 = vadd.f32 1.0, %v15489_v61  ;;  %v15491_v62 = vpop.eup %15490 }
0x214b   :  { %15494 = vrcp.f32 %v9196_v13  ;;  %v15493_v56 = vpop.eup %15492  ;;  %v9209_v15 = vadd.f32 1.0, %v15491_v62 }
0x214c   :  { %15496 = vrcp.f32 %v9202_v11 }
0x214d   :  { %15498 = vrcp.f32 %v9209_v15 }
0x2155   :  { %v15495_v30 = vpop.eup %15494 }
0x2156   :  { %v15497_v37 = vpop.eup %15496  ;;  %v9213_v34 = vmul.f32 %v15495_v30, %v15493_v56 }
0x2157   :  { %v9212_v27 = vmul.f32 %v15497_v37, %v18891_v28  ;;  %v15499_v22 = vpop.eup %15498  ;;  %v19045_v28 = vld [vmem:[%s20031_s22 + $0xc] ss:$16 sps:$4 sm:$0xff]  }
0x2158   :  { %9756 = vmatprep.subr.bf16.mxu0 %v19045_v28 }
0x2159   :  { %v19017_v48 = vadd.f32 %v9213_v34, %v9212_v27 }
0x215b   :  { %15500 = vtanh.f32 %v19017_v48 }
0x2165   :  { %v15501_v12 = vpop.eup %15500 }
0x2166   :  { %v19020_v40 = vmul.f32 %v15501_v12, %v15499_v22 }
0x2168   :  { %20097 = vst [vmem:[#allocation15_spill] sm:$0xff] %v19020_v40  ;;  %v9250_v50 = vpack.c.bf16 %v19020_v40, %v19020_v40 }
0x216a   :  { %9444 = vmatmul.mubr.bf16.vlgmr.msra.gmra.mrb[144].mxu1 %v9250_v50  ;;  %9485 = vmatmul.mubr.bf16.vlgmr.msra.gmra.mrb[184].mxu0 %v9250_v50 }
0x216b   :  { %9716 = vmatpush1.bf16.msra.mxu1 %v18923_v38  ;;  %9747 = vmatprep.mubr.bf16.mxu1 %v20094_v21 }
0x216c   :  { %9717 = vmatprep.subr.bf16.mxu1 %v18930_v44  ;;  %9788 = vmatprep.mubr.bf16.mxu0 %v20094_v21 }
0x216d   :  { %9757 = vmatpush1.bf16.msra.mxu0 %v19050_v26 }
0x216e   :  { %9758 = vmatprep.subr.bf16.mxu0 %v19057_v0 }
0x216f   :  { %9718 = vmatpush1.bf16.msra.mxu1 %v18935_v47 }
0x2170   :  { %9719 = vmatprep.subr.bf16.mxu1 %v18942_v55 }
0x2171   :  { %9759 = vmatpush1.bf16.msra.mxu0 %v19062_v2 }
0x2172   :  { %9760 = vmatprep.subr.bf16.mxu0 %v19069_v33 }
0x2173   :  { %9720 = vmatpush1.bf16.msra.mxu1 %v18947_v7 }
0x2174   :  { %9721 = vmatprep.subr.bf16.mxu1 %v18954_v29 }
0x2175   :  { %9761 = vmatpush1.bf16.msra.mxu0 %v19074_v52 }
0x2176   :  { %9762 = vmatprep.subr.bf16.mxu0 %v19081_v14 }
0x2177   :  { %9722 = vmatpush1.bf16.msra.mxu1 %v18959_v43 }
0x2178   :  { %9723 = vmatprep.subr.bf16.mxu1 %v18966_v19 }
0x2179   :  { %9763 = vmatpush1.bf16.msra.mxu0 %v19086_v42 }
0x217a   :  { %9764 = vmatprep.subr.bf16.mxu0 %v19093_v36 }
0x217b   :  { %9724 = vmatpush1.bf16.msra.mxu1 %v18971_v1 }
0x217c   :  { %9725 = vmatprep.subr.bf16.mxu1 %v18977_v45 }
0x217d   :  { %9765 = vmatpush1.bf16.msra.mxu0 %v19098_v8 }
0x217e   :  { %9766 = vmatprep.subr.bf16.mxu0 %v19104_v31 }
0x217f   :  { %9726 = vmatpush1.bf16.msra.mxu1 %v18983_v54 }
0x2180   :  { %9727 = vmatprep.subr.bf16.mxu1 %v18989_v4 }
0x2181   :  { %9767 = vmatpush1.bf16.msra.mxu0 %v19110_v32 }
0x2182   :  { %9768 = vmatprep.subr.bf16.mxu0 %v19116_v59 }
0x2183   :  { %9728 = vmatpush1.bf16.msra.mxu1 %v18995_v10 }
0x2184   :  { %9729 = vmatprep.subr.bf16.mxu1 %v19001_v18 }
0x2185   :  { %9769 = vmatpush1.bf16.msra.mxu0 %v19122_v60 }
0x2186   :  { %9770 = vmatprep.subr.bf16.mxu0 %v19128_v58 }
0x2187   :  { %9730 = vmatpush1.bf16.msra.mxu1 %v19007_v17 }
0x2188   :  { %10019 = vmatprep.subr.bf16.mxu1 %v18918_v39 }
0x2189   :  { %9771 = vmatpush1.bf16.msra.mxu0 %v19134_v5 }
0x218a   :  { %10060 = vmatprep.subr.bf16.mxu0 %v19045_v28 }
0x223d   :  { %v9445_v20 = vpop.f32.mrb[144].mxu1  ;;  %v9486_v61 = vpop.f32.mrb[184].mxu0 }
0x223e   :  { %v9493_v13 = vadd.f32 %v9445_v20, %v17790_v3  ;;  %v9447_v11 = vpop.f32.mrb[145].mxu1  ;;  %v9488_v62 = vpop.f32.mrb[185].mxu0  ;;  %v9495_v40 = vadd.f32 %v9486_v61, %v17786_v25 }
0x223f   :  { %v9494_v56 = vadd.f32 %v9447_v11, %v17776_v23  ;;  %v9449_v30 = vpop.f32.mrb[146].mxu1  ;;  %v9490_v37 = vpop.f32.mrb[186].mxu0  ;;  %v9496_v12 = vadd.f32 %v9488_v62, %v17788_v9 }
0x2240   :  { %v13500_v34 = vmul.f32 -1.442695, %v9493_v13  ;;  %v9450_v15 = vpop.f32.mrb[147].mxu1  ;;  %v9491_v27 = vpop.f32.mrb[187].mxu0 }
0x2241   :  { %v13501_v22 = vmul.f32 -1.442695, %v9494_v56  ;;  %v13502_v50 = vmul.f32 -1.442695, %v9496_v12 }
0x2242   :  { %15502 = vpow2.f32 %v13500_v34 }
0x2243   :  { %15504 = vpow2.f32 %v13501_v22 }
0x2244   :  { %15506 = vpow2.f32 %v13502_v50 }
0x2245   :  { %15508 = vtanh.f32 %v9495_v40 }
0x224c   :  { %v15503_v63 = vpop.eup %15502 }
0x224d   :  { %v15505_v24 = vpop.eup %15504  ;;  %v9500_v20 = vadd.f32 1.0, %v15503_v63 }
0x224e   :  { %v9506_v46 = vadd.f32 1.0, %v15505_v24  ;;  %v15507_v11 = vpop.eup %15506 }
0x224f   :  { %15510 = vrcp.f32 %v9500_v20  ;;  %v15509_v13 = vpop.eup %15508  ;;  %v9513_v34 = vadd.f32 1.0, %v15507_v11 }
0x2250   :  { %15512 = vrcp.f32 %v9506_v46 }
0x2251   :  { %15514 = vrcp.f32 %v9513_v34 }
0x2259   :  { %v15511_v30 = vpop.eup %15510 }
0x225a   :  { %v15513_v37 = vpop.eup %15512  ;;  %v9517_v56 = vmul.f32 %v15511_v30, %v15509_v13 }
0x225b   :  { %v9516_v15 = vmul.f32 %v15513_v37, %v19017_v48  ;;  %v15515_v61 = vpop.eup %15514 }
0x225d   :  { %v19144_v62 = vadd.f32 %v9517_v56, %v9516_v15 }
0x225f   :  { %15516 = vtanh.f32 %v19144_v62 }
0x2269   :  { %v15517_v63 = vpop.eup %15516 }
0x226a   :  { %v19147_v27 = vmul.f32 %v15517_v63, %v15515_v61 }
0x226c   :  { %20098 = vst [vmem:[#allocation16_spill] sm:$0xff] %v19147_v27  ;;  %v9554_v46 = vpack.c.bf16 %v19147_v27, %v19147_v27 }
0x226e   :  { %9748 = vmatmul.mubr.bf16.vlgmr.msra.gmra.mrb[148].mxu1 %v9554_v46  ;;  %9789 = vmatmul.mubr.bf16.vlgmr.msra.gmra.mrb[188].mxu0 %v9554_v46 }
0x226f   :  { %10020 = vmatpush1.bf16.msra.mxu1 %v18923_v38  ;;  %10061 = vmatpush1.bf16.msra.mxu0 %v19050_v26 }
0x2270   :  { %10021 = vmatprep.subr.bf16.mxu1 %v18930_v44  ;;  %10062 = vmatprep.subr.bf16.mxu0 %v19057_v0 }
0x2271   :  { %10051 = vmatprep.mubr.bf16.mxu1 %v20094_v21  ;;  %10092 = vmatprep.mubr.bf16.mxu0 %v20094_v21 }
0x2273   :  { %10022 = vmatpush1.bf16.msra.mxu1 %v18935_v47  ;;  %10063 = vmatpush1.bf16.msra.mxu0 %v19062_v2 }
0x2274   :  { %10023 = vmatprep.subr.bf16.mxu1 %v18942_v55  ;;  %10064 = vmatprep.subr.bf16.mxu0 %v19069_v33 }
0x2277   :  { %10024 = vmatpush1.bf16.msra.mxu1 %v18947_v7  ;;  %10065 = vmatpush1.bf16.msra.mxu0 %v19074_v52 }
0x2278   :  { %10025 = vmatprep.subr.bf16.mxu1 %v18954_v29  ;;  %10066 = vmatprep.subr.bf16.mxu0 %v19081_v14 }
0x227b   :  { %10026 = vmatpush1.bf16.msra.mxu1 %v18959_v43  ;;  %10067 = vmatpush1.bf16.msra.mxu0 %v19086_v42 }
0x227c   :  { %10027 = vmatprep.subr.bf16.mxu1 %v18966_v19  ;;  %10068 = vmatprep.subr.bf16.mxu0 %v19093_v36 }
0x227f   :  { %10028 = vmatpush1.bf16.msra.mxu1 %v18971_v1  ;;  %10069 = vmatpush1.bf16.msra.mxu0 %v19098_v8 }
0x2280   :  { %10029 = vmatprep.subr.bf16.mxu1 %v18977_v45  ;;  %10070 = vmatprep.subr.bf16.mxu0 %v19104_v31 }
0x2283   :  { %10030 = vmatpush1.bf16.msra.mxu1 %v18983_v54  ;;  %10071 = vmatpush1.bf16.msra.mxu0 %v19110_v32 }
0x2284   :  { %10031 = vmatprep.subr.bf16.mxu1 %v18989_v4  ;;  %10072 = vmatprep.subr.bf16.mxu0 %v19116_v59 }
0x2287   :  { %10032 = vmatpush1.bf16.msra.mxu1 %v18995_v10  ;;  %10073 = vmatpush1.bf16.msra.mxu0 %v19122_v60 }
0x2288   :  { %10033 = vmatprep.subr.bf16.mxu1 %v19001_v18  ;;  %10074 = vmatprep.subr.bf16.mxu0 %v19128_v58 }
0x228b   :  { %10034 = vmatpush1.bf16.msra.mxu1 %v19007_v17  ;;  %10075 = vmatpush1.bf16.msra.mxu0 %v19134_v5 }
0x228c   :  { %10323 = vmatprep.subr.bf16.mxu1 %v18918_v39  ;;  %10364 = vmatprep.subr.bf16.mxu0 %v19045_v28 }
0x2341   :  { %v9749_v24 = vpop.f32.mrb[148].mxu1  ;;  %v9790_v48 = vpop.f32.mrb[188].mxu0 }
0x2342   :  { %v9797_v40 = vadd.f32 %v9749_v24, %v17790_v3  ;;  %v9751_v22 = vpop.f32.mrb[149].mxu1  ;;  %v9792_v12 = vpop.f32.mrb[189].mxu0  ;;  %v9799_v15 = vadd.f32 %v9790_v48, %v17786_v25 }
0x2343   :  { %v9798_v50 = vadd.f32 %v9751_v22, %v17776_v23  ;;  %v9753_v20 = vpop.f32.mrb[150].mxu1  ;;  %v9794_v11 = vpop.f32.mrb[190].mxu0  ;;  %v9800_v39 = vadd.f32 %v9792_v12, %v17788_v9 }
0x2344   :  { %v13535_v13 = vmul.f32 -1.442695, %v9797_v40  ;;  %v9754_v30 = vpop.f32.mrb[151].mxu1  ;;  %v9795_v37 = vpop.f32.mrb[191].mxu0 }
0x2345   :  { %v13536_v56 = vmul.f32 -1.442695, %v9798_v50  ;;  %v13537_v34 = vmul.f32 -1.442695, %v9800_v39 }
0x2346   :  { %15518 = vpow2.f32 %v13535_v13 }
0x2347   :  { %15520 = vpow2.f32 %v13536_v56 }
0x2348   :  { %15522 = vpow2.f32 %v13537_v34 }
0x2349   :  { %15524 = vtanh.f32 %v9799_v15 }
0x2350   :  { %v15519_v61 = vpop.eup %15518 }
0x2351   :  { %v15521_v63 = vpop.eup %15520  ;;  %v9804_v46 = vadd.f32 1.0, %v15519_v61 }
0x2352   :  { %v9810_v24 = vadd.f32 1.0, %v15521_v63  ;;  %v15523_v22 = vpop.eup %15522 }
0x2353   :  { %15526 = vrcp.f32 %v9804_v46  ;;  %v15525_v40 = vpop.eup %15524  ;;  %v9817_v13 = vadd.f32 1.0, %v15523_v22 }
0x2354   :  { %15528 = vrcp.f32 %v9810_v24 }
0x2355   :  { %15530 = vrcp.f32 %v9817_v13 }
0x235d   :  { %v15527_v20 = vpop.eup %15526 }
0x235e   :  { %v15529_v11 = vpop.eup %15528  ;;  %v9821_v50 = vmul.f32 %v15527_v20, %v15525_v40 }
0x235f   :  { %v9820_v30 = vmul.f32 %v15529_v11, %v19144_v62  ;;  %v15531_v48 = vpop.eup %15530 }
0x2361   :  { %v19190_v12 = vadd.f32 %v9821_v50, %v9820_v30 }
0x2363   :  { %15532 = vtanh.f32 %v19190_v12 }
0x236d   :  { %v15533_v37 = vpop.eup %15532 }
0x236e   :  { %v19193_v56 = vmul.f32 %v15533_v37, %v15531_v48 }
0x2370   :  { %20099 = vst [vmem:[#allocation17_spill] sm:$0xff] %v19193_v56  ;;  %v9858_v39 = vpack.c.bf16 %v19193_v56, %v19193_v56 }
0x2372   :  { %10052 = vmatmul.mubr.bf16.vlgmr.msra.gmra.mrb[152].mxu1 %v9858_v39  ;;  %10093 = vmatmul.mubr.bf16.vlgmr.msra.gmra.mrb[192].mxu0 %v9858_v39 }
0x2373   :  { %10324 = vmatpush1.bf16.msra.mxu1 %v18923_v38  ;;  %10365 = vmatpush1.bf16.msra.mxu0 %v19050_v26 }
0x2374   :  { %10325 = vmatprep.subr.bf16.mxu1 %v18930_v44  ;;  %10366 = vmatprep.subr.bf16.mxu0 %v19057_v0 }
0x2375   :  { %10355 = vmatprep.mubr.bf16.mxu1 %v20094_v21  ;;  %10396 = vmatprep.mubr.bf16.mxu0 %v20094_v21 }
0x2377   :  { %10326 = vmatpush1.bf16.msra.mxu1 %v18935_v47  ;;  %10367 = vmatpush1.bf16.msra.mxu0 %v19062_v2 }
0x2378   :  { %10327 = vmatprep.subr.bf16.mxu1 %v18942_v55  ;;  %10368 = vmatprep.subr.bf16.mxu0 %v19069_v33 }
0x237b   :  { %10328 = vmatpush1.bf16.msra.mxu1 %v18947_v7  ;;  %10369 = vmatpush1.bf16.msra.mxu0 %v19074_v52 }
0x237c   :  { %10329 = vmatprep.subr.bf16.mxu1 %v18954_v29  ;;  %10370 = vmatprep.subr.bf16.mxu0 %v19081_v14 }
0x237f   :  { %10330 = vmatpush1.bf16.msra.mxu1 %v18959_v43  ;;  %10371 = vmatpush1.bf16.msra.mxu0 %v19086_v42 }
0x2380   :  { %10331 = vmatprep.subr.bf16.mxu1 %v18966_v19  ;;  %10372 = vmatprep.subr.bf16.mxu0 %v19093_v36 }
0x2383   :  { %10332 = vmatpush1.bf16.msra.mxu1 %v18971_v1  ;;  %10373 = vmatpush1.bf16.msra.mxu0 %v19098_v8 }
0x2384   :  { %10333 = vmatprep.subr.bf16.mxu1 %v18977_v45  ;;  %10374 = vmatprep.subr.bf16.mxu0 %v19104_v31 }
0x2387   :  { %10334 = vmatpush1.bf16.msra.mxu1 %v18983_v54  ;;  %10375 = vmatpush1.bf16.msra.mxu0 %v19110_v32 }
0x2388   :  { %10335 = vmatprep.subr.bf16.mxu1 %v18989_v4  ;;  %10376 = vmatprep.subr.bf16.mxu0 %v19116_v59 }
0x238b   :  { %10336 = vmatpush1.bf16.msra.mxu1 %v18995_v10  ;;  %10377 = vmatpush1.bf16.msra.mxu0 %v19122_v60 }
0x238c   :  { %10337 = vmatprep.subr.bf16.mxu1 %v19001_v18  ;;  %10378 = vmatprep.subr.bf16.mxu0 %v19128_v58 }
0x238f   :  { %10338 = vmatpush1.bf16.msra.mxu1 %v19007_v17  ;;  %10379 = vmatpush1.bf16.msra.mxu0 %v19134_v5 }
0x2390   :  { %10668 = vmatprep.subr.bf16.mxu0 %v19045_v28 }
0x2445   :  { %v10053_v38 = vpop.f32.mrb[152].mxu1  ;;  %v10094_v44 = vpop.f32.mrb[192].mxu0 }
0x2446   :  { %v10101_v47 = vadd.f32 %v10053_v38, %v17790_v3  ;;  %v10055_v55 = vpop.f32.mrb[153].mxu1  ;;  %v10096_v7 = vpop.f32.mrb[193].mxu0  ;;  %v10103_v17 = vadd.f32 %v10094_v44, %v17786_v25 }
0x2447   :  { %v10102_v29 = vadd.f32 %v10055_v55, %v17776_v23  ;;  %v10057_v43 = vpop.f32.mrb[154].mxu1  ;;  %v10098_v19 = vpop.f32.mrb[194].mxu0  ;;  %v10104_v10 = vadd.f32 %v10096_v7, %v17788_v9 }
0x2448   :  { %v13570_v1 = vmul.f32 -1.442695, %v10101_v47  ;;  %v10058_v45 = vpop.f32.mrb[155].mxu1  ;;  %v10099_v54 = vpop.f32.mrb[195].mxu0 }
0x2449   :  { %v13571_v4 = vmul.f32 -1.442695, %v10102_v29  ;;  %v13572_v18 = vmul.f32 -1.442695, %v10104_v10 }
0x244a   :  { %15534 = vpow2.f32 %v13570_v1 }
0x244b   :  { %15536 = vpow2.f32 %v13571_v4 }
0x244c   :  { %15538 = vpow2.f32 %v13572_v18 }
0x244d   :  { %15540 = vtanh.f32 %v10103_v17 }
0x2454   :  { %v15535_v28 = vpop.eup %15534 }
0x2455   :  { %v15537_v62 = vpop.eup %15536  ;;  %v10108_v34 = vadd.f32 1.0, %v15535_v28 }
0x2456   :  { %v10114_v15 = vadd.f32 1.0, %v15537_v62  ;;  %v15539_v61 = vpop.eup %15538 }
0x2457   :  { %15542 = vrcp.f32 %v10108_v34  ;;  %v15541_v63 = vpop.eup %15540  ;;  %v10121_v40 = vadd.f32 1.0, %v15539_v61 }
0x2458   :  { %15544 = vrcp.f32 %v10114_v15 }
0x2459   :  { %15546 = vrcp.f32 %v10121_v40 }
0x2461   :  { %v15543_v46 = vpop.eup %15542 }
0x2462   :  { %v15545_v24 = vpop.eup %15544  ;;  %v10125_v22 = vmul.f32 %v15543_v46, %v15541_v63 }
0x2463   :  { %v10124_v20 = vmul.f32 %v15545_v24, %v19190_v12  ;;  %v15547_v50 = vpop.eup %15546  ;;  %v19351_v12 = vld [vmem:[%s20031_s22 + $0xe0] ss:$16 sps:$4 sm:$0xff]  }
0x2465   :  { %v19235_v11 = vadd.f32 %v10125_v22, %v10124_v20 }
0x2467   :  { %15548 = vtanh.f32 %v19235_v11 }
0x2471   :  { %v15549_v13 = vpop.eup %15548 }
0x2472   :  { %v19238_v30 = vmul.f32 %v15549_v13, %v15547_v50 }
0x2474   :  { %20100 = vst [vmem:[#allocation18_spill] sm:$0xff] %v19238_v30  ;;  %v10162_v48 = vpack.c.bf16 %v19238_v30, %v19238_v30 }
0x2476   :  { %10356 = vmatmul.mubr.bf16.vlgmr.msra.gmra.mrb[156].mxu1 %v10162_v48  ;;  %10397 = vmatmul.mubr.bf16.vlgmr.msra.gmra.mrb[196].mxu0 %v10162_v48 }
0x2477   :  { %10669 = vmatpush1.bf16.msra.mxu0 %v19050_v26  ;;  %10659 = vmatprep.mubr.bf16.mxu1 %v20094_v21  ;;  %v19262_v26 = vld [vmem:[%s20031_s22 + $0x4] ss:$16 sps:$4 sm:$0xff]  }
0x2478   :  { %10670 = vmatprep.subr.bf16.mxu0 %v19057_v0  ;;  %10700 = vmatprep.mubr.bf16.mxu0 %v20094_v21  ;;  %v19267_v0 = vld [vmem:[%s20031_s22] ss:$16 sps:$4 sm:$0xff]  }
0x2479   :  { %10627 = vmatprep.subr.bf16.mxu1 %v19262_v26 }
0x247a   :  { %10628 = vmatpush1.bf16.msra.mxu1 %v19267_v0 }
0x247b   :  { %10671 = vmatpush1.bf16.msra.mxu0 %v19062_v2  ;;  %v19274_v2 = vld [vmem:[%s20031_s22 + $0x24] ss:$16 sps:$4 sm:$0xff]  }
0x247c   :  { %10672 = vmatprep.subr.bf16.mxu0 %v19069_v33  ;;  %v19279_v33 = vld [vmem:[%s20031_s22 + $0x20] ss:$16 sps:$4 sm:$0xff]   ;;  %10629 = vmatprep.subr.bf16.mxu1 %v19274_v2 }
0x247e   :  { %10630 = vmatpush1.bf16.msra.mxu1 %v19279_v33 }
0x247f   :  { %10673 = vmatpush1.bf16.msra.mxu0 %v19074_v52  ;;  %v19286_v52 = vld [vmem:[%s20031_s22 + $0x44] ss:$16 sps:$4 sm:$0xff]  }
0x2480   :  { %10674 = vmatprep.subr.bf16.mxu0 %v19081_v14  ;;  %v19291_v14 = vld [vmem:[%s20031_s22 + $0x40] ss:$16 sps:$4 sm:$0xff]   ;;  %10631 = vmatprep.subr.bf16.mxu1 %v19286_v52 }
0x2482   :  { %10632 = vmatpush1.bf16.msra.mxu1 %v19291_v14 }
0x2483   :  { %10675 = vmatpush1.bf16.msra.mxu0 %v19086_v42  ;;  %v19298_v42 = vld [vmem:[%s20031_s22 + $0x64] ss:$16 sps:$4 sm:$0xff]  }
0x2484   :  { %10676 = vmatprep.subr.bf16.mxu0 %v19093_v36  ;;  %v19303_v36 = vld [vmem:[%s20031_s22 + $0x60] ss:$16 sps:$4 sm:$0xff]   ;;  %10633 = vmatprep.subr.bf16.mxu1 %v19298_v42 }
0x2486   :  { %10634 = vmatpush1.bf16.msra.mxu1 %v19303_v36 }
0x2487   :  { %10677 = vmatpush1.bf16.msra.mxu0 %v19098_v8  ;;  %v19310_v8 = vld [vmem:[%s20031_s22 + $0x84] ss:$16 sps:$4 sm:$0xff]  }
0x2488   :  { %10678 = vmatprep.subr.bf16.mxu0 %v19104_v31  ;;  %v19315_v31 = vld [vmem:[%s20031_s22 + $0x80] ss:$16 sps:$4 sm:$0xff]   ;;  %10635 = vmatprep.subr.bf16.mxu1 %v19310_v8 }
0x248a   :  { %10636 = vmatpush1.bf16.msra.mxu1 %v19315_v31 }
0x248b   :  { %10679 = vmatpush1.bf16.msra.mxu0 %v19110_v32  ;;  %v19321_v32 = vld [vmem:[%s20031_s22 + $0xa4] ss:$16 sps:$4 sm:$0xff]  }
0x248c   :  { %10680 = vmatprep.subr.bf16.mxu0 %v19116_v59  ;;  %v19327_v59 = vld [vmem:[%s20031_s22 + $0xa0] ss:$16 sps:$4 sm:$0xff]   ;;  %10637 = vmatprep.subr.bf16.mxu1 %v19321_v32 }
0x248e   :  { %10638 = vmatpush1.bf16.msra.mxu1 %v19327_v59 }
0x248f   :  { %10681 = vmatpush1.bf16.msra.mxu0 %v19122_v60  ;;  %v19333_v60 = vld [vmem:[%s20031_s22 + $0xc4] ss:$16 sps:$4 sm:$0xff]  }
0x2490   :  { %10682 = vmatprep.subr.bf16.mxu0 %v19128_v58  ;;  %v19339_v58 = vld [vmem:[%s20031_s22 + $0xc0] ss:$16 sps:$4 sm:$0xff]   ;;  %10639 = vmatprep.subr.bf16.mxu1 %v19333_v60 }
0x2492   :  { %10640 = vmatpush1.bf16.msra.mxu1 %v19339_v58 }
0x2493   :  { %10683 = vmatpush1.bf16.msra.mxu0 %v19134_v5  ;;  %v19345_v5 = vld [vmem:[%s20031_s22 + $0xe4] ss:$16 sps:$4 sm:$0xff]  }
0x2494   :  { %10641 = vmatprep.subr.bf16.mxu1 %v19345_v5 }
0x2496   :  { %10642 = vmatpush1.bf16.msra.mxu1 %v19351_v12 }
0x2497   :  { %10931 = vmatprep.subr.bf16.mxu1 %v19262_v26 }
0x2549   :  { %v10357_v37 = vpop.f32.mrb[156].mxu1  ;;  %v10398_v39 = vpop.f32.mrb[196].mxu0 }
0x254a   :  { %v10405_v38 = vadd.f32 %v10357_v37, %v17790_v3  ;;  %v10359_v44 = vpop.f32.mrb[157].mxu1  ;;  %v10400_v47 = vpop.f32.mrb[197].mxu0  ;;  %v10407_v10 = vadd.f32 %v10398_v39, %v17786_v25  ;;  %v19394_v37 = vld [vmem:[%s20031_s22 + $0x8] ss:$16 sps:$4 sm:$0xff]   ;;  %v19401_v39 = vld [vmem:[%s20031_s22 + $0x2c] ss:$16 sps:$4 sm:$0xff]  }
0x254b   :  { %v10406_v55 = vadd.f32 %v10359_v44, %v17776_v23  ;;  %v10361_v7 = vpop.f32.mrb[158].mxu1  ;;  %v10402_v29 = vpop.f32.mrb[198].mxu0  ;;  %v10408_v54 = vadd.f32 %v10400_v47, %v17788_v9  ;;  %v19413_v44 = vld [vmem:[%s20031_s22 + $0x4c] ss:$16 sps:$4 sm:$0xff]   ;;  %v19418_v47 = vld [vmem:[%s20031_s22 + $0x48] ss:$16 sps:$4 sm:$0xff]  }
0x254c   :  { %v13605_v43 = vmul.f32 -1.442695, %v10405_v38  ;;  %v10362_v19 = vpop.f32.mrb[159].mxu1  ;;  %v10403_v1 = vpop.f32.mrb[199].mxu0  ;;  %v19406_v38 = vld [vmem:[%s20031_s22 + $0x28] ss:$16 sps:$4 sm:$0xff]  }
0x254d   :  { %v13606_v45 = vmul.f32 -1.442695, %v10406_v55  ;;  %v13607_v4 = vmul.f32 -1.442695, %v10408_v54  ;;  %v19425_v55 = vld [vmem:[%s20031_s22 + $0x6c] ss:$16 sps:$4 sm:$0xff]  }
0x254e   :  { %15550 = vpow2.f32 %v13605_v43  ;;  %v19430_v7 = vld [vmem:[%s20031_s22 + $0x68] ss:$16 sps:$4 sm:$0xff]   ;;  %v19437_v29 = vld [vmem:[%s20031_s22 + $0x8c] ss:$16 sps:$4 sm:$0xff]  }
0x254f   :  { %15552 = vpow2.f32 %v13606_v45  ;;  %v19442_v43 = vld [vmem:[%s20031_s22 + $0x88] ss:$16 sps:$4 sm:$0xff]   ;;  %v19448_v19 = vld [vmem:[%s20031_s22 + $0xac] ss:$16 sps:$4 sm:$0xff]  }
0x2550   :  { %15554 = vpow2.f32 %v13607_v4  ;;  %v19454_v1 = vld [vmem:[%s20031_s22 + $0xa8] ss:$16 sps:$4 sm:$0xff]   ;;  %v19460_v45 = vld [vmem:[%s20031_s22 + $0xcc] ss:$16 sps:$4 sm:$0xff]  }
0x2551   :  { %15556 = vtanh.f32 %v10407_v10  ;;  %v19466_v54 = vld [vmem:[%s20031_s22 + $0xc8] ss:$16 sps:$4 sm:$0xff]   ;;  %v19472_v4 = vld [vmem:[%s20031_s22 + $0xec] ss:$16 sps:$4 sm:$0xff]  }
0x2552   :  { %v19478_v10 = vld [vmem:[%s20031_s22 + $0xe8] ss:$16 sps:$4 sm:$0xff]  }
0x2558   :  { %v15551_v18 = vpop.eup %15550 }
0x2559   :  { %v15553_v17 = vpop.eup %15552  ;;  %v10412_v28 = vadd.f32 1.0, %v15551_v18 }
0x255a   :  { %v10418_v62 = vadd.f32 1.0, %v15553_v17  ;;  %v15555_v34 = vpop.eup %15554 }
0x255b   :  { %15558 = vrcp.f32 %v10412_v28  ;;  %v15557_v15 = vpop.eup %15556  ;;  %v10425_v24 = vadd.f32 1.0, %v15555_v34 }
0x255c   :  { %15560 = vrcp.f32 %v10418_v62 }
0x255d   :  { %15562 = vrcp.f32 %v10425_v24 }
0x2565   :  { %v15559_v61 = vpop.eup %15558 }
0x2566   :  { %v15561_v63 = vpop.eup %15560  ;;  %v10429_v46 = vmul.f32 %v15559_v61, %v15557_v15 }
0x2567   :  { %v10428_v22 = vmul.f32 %v15561_v63, %v19235_v11  ;;  %v15563_v20 = vpop.eup %15562  ;;  %v19389_v11 = vld [vmem:[%s20031_s22 + $0xc] ss:$16 sps:$4 sm:$0xff]  }
0x2568   :  { %10972 = vmatprep.subr.bf16.mxu0 %v19389_v11 }
0x2569   :  { %v19361_v40 = vadd.f32 %v10429_v46, %v10428_v22 }
0x256b   :  { %15564 = vtanh.f32 %v19361_v40 }
0x2575   :  { %v15565_v50 = vpop.eup %15564 }
0x2576   :  { %v19364_v13 = vmul.f32 %v15565_v50, %v15563_v20 }
0x2578   :  { %20101 = vst [vmem:[#allocation19_spill] sm:$0xff] %v19364_v13  ;;  %v10466_v48 = vpack.c.bf16 %v19364_v13, %v19364_v13 }
0x257a   :  { %10660 = vmatmul.mubr.bf16.vlgmr.msra.gmra.mrb[160].mxu1 %v10466_v48  ;;  %10701 = vmatmul.mubr.bf16.vlgmr.msra.gmra.mrb[200].mxu0 %v10466_v48 }
0x257b   :  { %10932 = vmatpush1.bf16.msra.mxu1 %v19267_v0  ;;  %10963 = vmatprep.mubr.bf16.mxu1 %v20094_v21 }
0x257c   :  { %10933 = vmatprep.subr.bf16.mxu1 %v19274_v2  ;;  %11004 = vmatprep.mubr.bf16.mxu0 %v20094_v21 }
0x257d   :  { %10973 = vmatpush1.bf16.msra.mxu0 %v19394_v37 }
0x257e   :  { %10974 = vmatprep.subr.bf16.mxu0 %v19401_v39 }
0x257f   :  { %10934 = vmatpush1.bf16.msra.mxu1 %v19279_v33 }
0x2580   :  { %10935 = vmatprep.subr.bf16.mxu1 %v19286_v52 }
0x2581   :  { %10975 = vmatpush1.bf16.msra.mxu0 %v19406_v38 }
0x2582   :  { %10976 = vmatprep.subr.bf16.mxu0 %v19413_v44 }
0x2583   :  { %10936 = vmatpush1.bf16.msra.mxu1 %v19291_v14 }
0x2584   :  { %10937 = vmatprep.subr.bf16.mxu1 %v19298_v42 }
0x2585   :  { %10977 = vmatpush1.bf16.msra.mxu0 %v19418_v47 }
0x2586   :  { %10978 = vmatprep.subr.bf16.mxu0 %v19425_v55 }
0x2587   :  { %10938 = vmatpush1.bf16.msra.mxu1 %v19303_v36 }
0x2588   :  { %10939 = vmatprep.subr.bf16.mxu1 %v19310_v8 }
0x2589   :  { %10979 = vmatpush1.bf16.msra.mxu0 %v19430_v7 }
0x258a   :  { %10980 = vmatprep.subr.bf16.mxu0 %v19437_v29 }
0x258b   :  { %10940 = vmatpush1.bf16.msra.mxu1 %v19315_v31 }
0x258c   :  { %10941 = vmatprep.subr.bf16.mxu1 %v19321_v32 }
0x258d   :  { %10981 = vmatpush1.bf16.msra.mxu0 %v19442_v43 }
0x258e   :  { %10982 = vmatprep.subr.bf16.mxu0 %v19448_v19 }
0x258f   :  { %10942 = vmatpush1.bf16.msra.mxu1 %v19327_v59 }
0x2590   :  { %10943 = vmatprep.subr.bf16.mxu1 %v19333_v60 }
0x2591   :  { %10983 = vmatpush1.bf16.msra.mxu0 %v19454_v1 }
0x2592   :  { %10984 = vmatprep.subr.bf16.mxu0 %v19460_v45 }
0x2593   :  { %10944 = vmatpush1.bf16.msra.mxu1 %v19339_v58 }
0x2594   :  { %10945 = vmatprep.subr.bf16.mxu1 %v19345_v5 }
0x2595   :  { %10985 = vmatpush1.bf16.msra.mxu0 %v19466_v54 }
0x2596   :  { %10986 = vmatprep.subr.bf16.mxu0 %v19472_v4 }
0x2597   :  { %10946 = vmatpush1.bf16.msra.mxu1 %v19351_v12 }
0x2598   :  { %11235 = vmatprep.subr.bf16.mxu1 %v19262_v26 }
0x2599   :  { %10987 = vmatpush1.bf16.msra.mxu0 %v19478_v10 }
0x259a   :  { %11276 = vmatprep.subr.bf16.mxu0 %v19389_v11 }
0x264d   :  { %v10661_v18 = vpop.f32.mrb[160].mxu1  ;;  %v10702_v17 = vpop.f32.mrb[200].mxu0 }
0x264e   :  { %v10709_v28 = vadd.f32 %v10661_v18, %v17790_v3  ;;  %v10663_v62 = vpop.f32.mrb[161].mxu1  ;;  %v10704_v34 = vpop.f32.mrb[201].mxu0  ;;  %v10711_v13 = vadd.f32 %v10702_v17, %v17786_v25 }
0x264f   :  { %v10710_v15 = vadd.f32 %v10663_v62, %v17776_v23  ;;  %v10665_v61 = vpop.f32.mrb[162].mxu1  ;;  %v10706_v63 = vpop.f32.mrb[202].mxu0  ;;  %v10712_v50 = vadd.f32 %v10704_v34, %v17788_v9 }
0x2650   :  { %v13640_v46 = vmul.f32 -1.442695, %v10709_v28  ;;  %v10666_v24 = vpop.f32.mrb[163].mxu1  ;;  %v10707_v22 = vpop.f32.mrb[203].mxu0 }
0x2651   :  { %v13641_v20 = vmul.f32 -1.442695, %v10710_v15  ;;  %v13642_v48 = vmul.f32 -1.442695, %v10712_v50 }
0x2652   :  { %15566 = vpow2.f32 %v13640_v46 }
0x2653   :  { %15568 = vpow2.f32 %v13641_v20 }
0x2654   :  { %15570 = vpow2.f32 %v13642_v48 }
0x2655   :  { %15572 = vtanh.f32 %v10711_v13 }
0x265c   :  { %v15567_v30 = vpop.eup %15566 }
0x265d   :  { %v15569_v56 = vpop.eup %15568  ;;  %v10716_v18 = vadd.f32 1.0, %v15567_v30 }
0x265e   :  { %v10722_v27 = vadd.f32 1.0, %v15569_v56  ;;  %v15571_v62 = vpop.eup %15570 }
0x265f   :  { %15574 = vrcp.f32 %v10716_v18  ;;  %v15573_v28 = vpop.eup %15572  ;;  %v10729_v46 = vadd.f32 1.0, %v15571_v62 }
0x2660   :  { %15576 = vrcp.f32 %v10722_v27 }
0x2661   :  { %15578 = vrcp.f32 %v10729_v46 }
0x2669   :  { %v15575_v61 = vpop.eup %15574 }
0x266a   :  { %v15577_v63 = vpop.eup %15576  ;;  %v10733_v15 = vmul.f32 %v15575_v61, %v15573_v28 }
0x266b   :  { %v10732_v24 = vmul.f32 %v15577_v63, %v19361_v40  ;;  %v15579_v17 = vpop.eup %15578 }
0x266d   :  { %v19488_v34 = vadd.f32 %v10733_v15, %v10732_v24 }
0x266f   :  { %15580 = vtanh.f32 %v19488_v34 }
0x2679   :  { %v15581_v30 = vpop.eup %15580 }
0x267a   :  { %v19491_v22 = vmul.f32 %v15581_v30, %v15579_v17 }
0x267c   :  { %v10770_v27 = vpack.c.bf16 %v19491_v22, %v19491_v22 }
0x267e   :  { %10964 = vmatmul.mubr.bf16.vlgmr.msra.gmra.mrb[164].mxu1 %v10770_v27  ;;  %11005 = vmatmul.mubr.bf16.vlgmr.msra.gmra.mrb[204].mxu0 %v10770_v27 }
0x267f   :  { %11236 = vmatpush1.bf16.msra.mxu1 %v19267_v0  ;;  %11277 = vmatpush1.bf16.msra.mxu0 %v19394_v37 }
0x2680   :  { %11237 = vmatprep.subr.bf16.mxu1 %v19274_v2  ;;  %11278 = vmatprep.subr.bf16.mxu0 %v19401_v39 }
0x2681   :  { %11267 = vmatprep.mubr.bf16.mxu1 %v20094_v21  ;;  %11308 = vmatprep.mubr.bf16.mxu0 %v20094_v21 }
0x2683   :  { %11238 = vmatpush1.bf16.msra.mxu1 %v19279_v33  ;;  %11279 = vmatpush1.bf16.msra.mxu0 %v19406_v38 }
0x2684   :  { %11239 = vmatprep.subr.bf16.mxu1 %v19286_v52  ;;  %11280 = vmatprep.subr.bf16.mxu0 %v19413_v44 }
0x2687   :  { %11240 = vmatpush1.bf16.msra.mxu1 %v19291_v14  ;;  %11281 = vmatpush1.bf16.msra.mxu0 %v19418_v47 }
0x2688   :  { %11241 = vmatprep.subr.bf16.mxu1 %v19298_v42  ;;  %11282 = vmatprep.subr.bf16.mxu0 %v19425_v55 }
0x268b   :  { %11242 = vmatpush1.bf16.msra.mxu1 %v19303_v36  ;;  %11283 = vmatpush1.bf16.msra.mxu0 %v19430_v7 }
0x268c   :  { %11243 = vmatprep.subr.bf16.mxu1 %v19310_v8  ;;  %11284 = vmatprep.subr.bf16.mxu0 %v19437_v29 }
0x268f   :  { %11244 = vmatpush1.bf16.msra.mxu1 %v19315_v31  ;;  %11285 = vmatpush1.bf16.msra.mxu0 %v19442_v43 }
0x2690   :  { %11245 = vmatprep.subr.bf16.mxu1 %v19321_v32  ;;  %11286 = vmatprep.subr.bf16.mxu0 %v19448_v19 }
0x2693   :  { %11246 = vmatpush1.bf16.msra.mxu1 %v19327_v59  ;;  %11287 = vmatpush1.bf16.msra.mxu0 %v19454_v1 }
0x2694   :  { %11247 = vmatprep.subr.bf16.mxu1 %v19333_v60  ;;  %11288 = vmatprep.subr.bf16.mxu0 %v19460_v45 }
0x2697   :  { %11248 = vmatpush1.bf16.msra.mxu1 %v19339_v58  ;;  %11289 = vmatpush1.bf16.msra.mxu0 %v19466_v54 }
0x2698   :  { %11249 = vmatprep.subr.bf16.mxu1 %v19345_v5  ;;  %11290 = vmatprep.subr.bf16.mxu0 %v19472_v4 }
0x269b   :  { %11250 = vmatpush1.bf16.msra.mxu1 %v19351_v12  ;;  %11291 = vmatpush1.bf16.msra.mxu0 %v19478_v10 }
0x269c   :  { %11539 = vmatprep.subr.bf16.mxu1 %v19262_v26  ;;  %11580 = vmatprep.subr.bf16.mxu0 %v19389_v11 }
0x2751   :  { %v10965_v56 = vpop.f32.mrb[164].mxu1  ;;  %v11006_v40 = vpop.f32.mrb[204].mxu0 }
0x2752   :  { %v11013_v13 = vadd.f32 %v10965_v56, %v17790_v3  ;;  %v10967_v20 = vpop.f32.mrb[165].mxu1  ;;  %v11008_v50 = vpop.f32.mrb[205].mxu0  ;;  %v11015_v24 = vadd.f32 %v11006_v40, %v17786_v25 }
0x2753   :  { %v11014_v48 = vadd.f32 %v10967_v20, %v17776_v23  ;;  %v10969_v18 = vpop.f32.mrb[166].mxu1  ;;  %v11010_v62 = vpop.f32.mrb[206].mxu0  ;;  %v11016_v26 = vadd.f32 %v11008_v50, %v17788_v9 }
0x2754   :  { %v13675_v28 = vmul.f32 -1.442695, %v11013_v13  ;;  %v10970_v61 = vpop.f32.mrb[167].mxu1  ;;  %v11011_v63 = vpop.f32.mrb[207].mxu0 }
0x2755   :  { %v13676_v15 = vmul.f32 -1.442695, %v11014_v48  ;;  %v13677_v46 = vmul.f32 -1.442695, %v11016_v26 }
0x2756   :  { %15582 = vpow2.f32 %v13675_v28 }
0x2757   :  { %15584 = vpow2.f32 %v13676_v15 }
0x2758   :  { %15586 = vpow2.f32 %v13677_v46 }
0x2759   :  { %15588 = vtanh.f32 %v11015_v24 }
0x2760   :  { %v15583_v17 = vpop.eup %15582 }
0x2761   :  { %v15585_v30 = vpop.eup %15584  ;;  %v11020_v27 = vadd.f32 1.0, %v15583_v17 }
0x2762   :  { %v11026_v56 = vadd.f32 1.0, %v15585_v30  ;;  %v15587_v20 = vpop.eup %15586 }
0x2763   :  { %15590 = vrcp.f32 %v11020_v27  ;;  %v15589_v13 = vpop.eup %15588  ;;  %v11033_v28 = vadd.f32 1.0, %v15587_v20 }
0x2764   :  { %15592 = vrcp.f32 %v11026_v56 }
0x2765   :  { %15594 = vrcp.f32 %v11033_v28 }
0x276d   :  { %v15591_v18 = vpop.eup %15590 }
0x276e   :  { %v15593_v62 = vpop.eup %15592  ;;  %v11037_v48 = vmul.f32 %v15591_v18, %v15589_v13 }
0x276f   :  { %v11036_v61 = vmul.f32 %v15593_v62, %v19488_v34  ;;  %v15595_v40 = vpop.eup %15594 }
0x2771   :  { %v19534_v50 = vadd.f32 %v11037_v48, %v11036_v61 }
0x2773   :  { %15596 = vtanh.f32 %v19534_v50 }
0x277d   :  { %v15597_v63 = vpop.eup %15596 }
0x277e   :  { %v19537_v15 = vmul.f32 %v15597_v63, %v15595_v40 }
0x2780   :  { %v11074_v26 = vpack.c.bf16 %v19537_v15, %v19537_v15 }
0x2782   :  { %11268 = vmatmul.mubr.bf16.vlgmr.msra.gmra.mrb[168].mxu1 %v11074_v26  ;;  %11309 = vmatmul.mubr.bf16.vlgmr.msra.gmra.mrb[208].mxu0 %v11074_v26 }
0x2783   :  { %11540 = vmatpush1.bf16.msra.mxu1 %v19267_v0  ;;  %11581 = vmatpush1.bf16.msra.mxu0 %v19394_v37 }
0x2784   :  { %11541 = vmatprep.subr.bf16.mxu1 %v19274_v2  ;;  %11582 = vmatprep.subr.bf16.mxu0 %v19401_v39 }
0x2785   :  { %11571 = vmatprep.mubr.bf16.mxu1 %v20094_v21  ;;  %11612 = vmatprep.mubr.bf16.mxu0 %v20094_v21 }
0x2787   :  { %11542 = vmatpush1.bf16.msra.mxu1 %v19279_v33  ;;  %11583 = vmatpush1.bf16.msra.mxu0 %v19406_v38 }
0x2788   :  { %11543 = vmatprep.subr.bf16.mxu1 %v19286_v52  ;;  %11584 = vmatprep.subr.bf16.mxu0 %v19413_v44 }
0x278b   :  { %11544 = vmatpush1.bf16.msra.mxu1 %v19291_v14  ;;  %11585 = vmatpush1.bf16.msra.mxu0 %v19418_v47 }
0x278c   :  { %11545 = vmatprep.subr.bf16.mxu1 %v19298_v42  ;;  %11586 = vmatprep.subr.bf16.mxu0 %v19425_v55 }
0x278f   :  { %11546 = vmatpush1.bf16.msra.mxu1 %v19303_v36  ;;  %11587 = vmatpush1.bf16.msra.mxu0 %v19430_v7 }
0x2790   :  { %11547 = vmatprep.subr.bf16.mxu1 %v19310_v8  ;;  %11588 = vmatprep.subr.bf16.mxu0 %v19437_v29 }
0x2793   :  { %11548 = vmatpush1.bf16.msra.mxu1 %v19315_v31  ;;  %11589 = vmatpush1.bf16.msra.mxu0 %v19442_v43 }
0x2794   :  { %11549 = vmatprep.subr.bf16.mxu1 %v19321_v32  ;;  %11590 = vmatprep.subr.bf16.mxu0 %v19448_v19 }
0x2797   :  { %11550 = vmatpush1.bf16.msra.mxu1 %v19327_v59  ;;  %11591 = vmatpush1.bf16.msra.mxu0 %v19454_v1 }
0x2798   :  { %11551 = vmatprep.subr.bf16.mxu1 %v19333_v60  ;;  %11592 = vmatprep.subr.bf16.mxu0 %v19460_v45 }
0x279b   :  { %11552 = vmatpush1.bf16.msra.mxu1 %v19339_v58  ;;  %11593 = vmatpush1.bf16.msra.mxu0 %v19466_v54 }
0x279c   :  { %11553 = vmatprep.subr.bf16.mxu1 %v19345_v5  ;;  %11594 = vmatprep.subr.bf16.mxu0 %v19472_v4 }
0x279f   :  { %11554 = vmatpush1.bf16.msra.mxu1 %v19351_v12  ;;  %11595 = vmatpush1.bf16.msra.mxu0 %v19478_v10 }
0x27a0   :  { %11884 = vmatprep.subr.bf16.mxu0 %v19389_v11 }
0x2855   :  { %v11269_v0 = vpop.f32.mrb[168].mxu1  ;;  %v11310_v2 = vpop.f32.mrb[208].mxu0 }
0x2856   :  { %v11317_v33 = vadd.f32 %v11269_v0, %v17790_v3  ;;  %v11271_v52 = vpop.f32.mrb[169].mxu1  ;;  %v11312_v14 = vpop.f32.mrb[209].mxu0  ;;  %v11319_v12 = vadd.f32 %v11310_v2, %v17786_v25 }
0x2857   :  { %v11318_v42 = vadd.f32 %v11271_v52, %v17776_v23  ;;  %v11273_v36 = vpop.f32.mrb[170].mxu1  ;;  %v11314_v8 = vpop.f32.mrb[210].mxu0  ;;  %v11320_v58 = vadd.f32 %v11312_v14, %v17788_v9 }
0x2858   :  { %v13710_v31 = vmul.f32 -1.442695, %v11317_v33  ;;  %v11274_v32 = vpop.f32.mrb[171].mxu1  ;;  %v11315_v59 = vpop.f32.mrb[211].mxu0 }
0x2859   :  { %v13711_v60 = vmul.f32 -1.442695, %v11318_v42  ;;  %v13712_v5 = vmul.f32 -1.442695, %v11320_v58 }
0x285a   :  { %15598 = vpow2.f32 %v13710_v31 }
0x285b   :  { %15600 = vpow2.f32 %v13711_v60 }
0x285c   :  { %15602 = vpow2.f32 %v13712_v5 }
0x285d   :  { %15604 = vtanh.f32 %v11319_v12 }
0x2864   :  { %v15599_v11 = vpop.eup %15598 }
0x2865   :  { %v15601_v34 = vpop.eup %15600  ;;  %v11324_v46 = vadd.f32 1.0, %v15599_v11 }
0x2866   :  { %v11330_v24 = vadd.f32 1.0, %v15601_v34  ;;  %v15603_v17 = vpop.eup %15602 }
0x2867   :  { %15606 = vrcp.f32 %v11324_v46  ;;  %v15605_v30 = vpop.eup %15604  ;;  %v11337_v13 = vadd.f32 1.0, %v15603_v17 }
0x2868   :  { %15608 = vrcp.f32 %v11330_v24 }
0x2869   :  { %15610 = vrcp.f32 %v11337_v13 }
0x2871   :  { %v15607_v27 = vpop.eup %15606 }
0x2872   :  { %v15609_v56 = vpop.eup %15608  ;;  %v11341_v20 = vmul.f32 %v15607_v27, %v15605_v30 }
0x2873   :  { %v11340_v18 = vmul.f32 %v15609_v56, %v19534_v50  ;;  %v15611_v48 = vpop.eup %15610  ;;  %v14963_v50 = vld [vmem:[%s20031_s22 + $0xe0] ss:$16 sps:$4 sm:$0xff]  }
0x2875   :  { %v19579_v62 = vadd.f32 %v11341_v20, %v11340_v18 }
0x2877   :  { %15612 = vtanh.f32 %v19579_v62 }
0x2881   :  { %v15613_v28 = vpop.eup %15612 }
0x2882   :  { %v19582_v61 = vmul.f32 %v15613_v28, %v15611_v48 }
0x2884   :  { %v11378_v40 = vpack.c.bf16 %v19582_v61, %v19582_v61 }
0x2886   :  { %11572 = vmatmul.mubr.bf16.vlgmr.msra.gmra.mrb[172].mxu1 %v11378_v40  ;;  %11613 = vmatmul.mubr.bf16.vlgmr.msra.gmra.mrb[212].mxu0 %v11378_v40 }
0x2887   :  { %11885 = vmatpush1.bf16.msra.mxu0 %v19394_v37  ;;  %11875 = vmatprep.mubr.bf16.mxu1 %v20094_v21  ;;  %v14944_v37 = vld [vmem:[%s20031_s22 + $0x4] ss:$16 sps:$4 sm:$0xff]  }
0x2888   :  { %11886 = vmatprep.subr.bf16.mxu0 %v19401_v39  ;;  %11916 = vmatprep.mubr.bf16.mxu0 %v20094_v21  ;;  %v19609_v39 = vld [vmem:[%s20031_s22] ss:$16 sps:$4 sm:$0xff]  }
0x2889   :  { %11843 = vmatprep.subr.bf16.mxu1 %v14944_v37 }
0x288a   :  { %11844 = vmatpush1.bf16.msra.mxu1 %v19609_v39 }
0x288b   :  { %11887 = vmatpush1.bf16.msra.mxu0 %v19406_v38  ;;  %v19615_v38 = vld [vmem:[%s20031_s22 + $0x24] ss:$16 sps:$4 sm:$0xff]  }
0x288c   :  { %11888 = vmatprep.subr.bf16.mxu0 %v19413_v44  ;;  %v19620_v44 = vld [vmem:[%s20031_s22 + $0x20] ss:$16 sps:$4 sm:$0xff]   ;;  %11845 = vmatprep.subr.bf16.mxu1 %v19615_v38 }
0x288e   :  { %11846 = vmatpush1.bf16.msra.mxu1 %v19620_v44 }
0x288f   :  { %11889 = vmatpush1.bf16.msra.mxu0 %v19418_v47  ;;  %v19627_v47 = vld [vmem:[%s20031_s22 + $0x44] ss:$16 sps:$4 sm:$0xff]  }
0x2890   :  { %11890 = vmatprep.subr.bf16.mxu0 %v19425_v55  ;;  %v19632_v55 = vld [vmem:[%s20031_s22 + $0x40] ss:$16 sps:$4 sm:$0xff]   ;;  %11847 = vmatprep.subr.bf16.mxu1 %v19627_v47 }
0x2892   :  { %11848 = vmatpush1.bf16.msra.mxu1 %v19632_v55 }
0x2893   :  { %11891 = vmatpush1.bf16.msra.mxu0 %v19430_v7  ;;  %v19639_v7 = vld [vmem:[%s20031_s22 + $0x64] ss:$16 sps:$4 sm:$0xff]  }
0x2894   :  { %11892 = vmatprep.subr.bf16.mxu0 %v19437_v29  ;;  %v19644_v29 = vld [vmem:[%s20031_s22 + $0x60] ss:$16 sps:$4 sm:$0xff]   ;;  %11849 = vmatprep.subr.bf16.mxu1 %v19639_v7 }
0x2896   :  { %11850 = vmatpush1.bf16.msra.mxu1 %v19644_v29 }
0x2897   :  { %11893 = vmatpush1.bf16.msra.mxu0 %v19442_v43  ;;  %v19651_v43 = vld [vmem:[%s20031_s22 + $0x84] ss:$16 sps:$4 sm:$0xff]  }
0x2898   :  { %11894 = vmatprep.subr.bf16.mxu0 %v19448_v19  ;;  %v19656_v19 = vld [vmem:[%s20031_s22 + $0x80] ss:$16 sps:$4 sm:$0xff]   ;;  %11851 = vmatprep.subr.bf16.mxu1 %v19651_v43 }
0x289a   :  { %11852 = vmatpush1.bf16.msra.mxu1 %v19656_v19 }
0x289b   :  { %11895 = vmatpush1.bf16.msra.mxu0 %v19454_v1  ;;  %v19662_v1 = vld [vmem:[%s20031_s22 + $0xa4] ss:$16 sps:$4 sm:$0xff]  }
0x289c   :  { %11896 = vmatprep.subr.bf16.mxu0 %v19460_v45  ;;  %v19668_v45 = vld [vmem:[%s20031_s22 + $0xa0] ss:$16 sps:$4 sm:$0xff]   ;;  %11853 = vmatprep.subr.bf16.mxu1 %v19662_v1 }
0x289e   :  { %11854 = vmatpush1.bf16.msra.mxu1 %v19668_v45 }
0x289f   :  { %11897 = vmatpush1.bf16.msra.mxu0 %v19466_v54  ;;  %v19674_v54 = vld [vmem:[%s20031_s22 + $0xc4] ss:$16 sps:$4 sm:$0xff]  }
0x28a0   :  { %11898 = vmatprep.subr.bf16.mxu0 %v19472_v4  ;;  %v14960_v4 = vld [vmem:[%s20031_s22 + $0xc0] ss:$16 sps:$4 sm:$0xff]   ;;  %11855 = vmatprep.subr.bf16.mxu1 %v19674_v54 }
0x28a2   :  { %11856 = vmatpush1.bf16.msra.mxu1 %v14960_v4 }
0x28a3   :  { %11899 = vmatpush1.bf16.msra.mxu0 %v19478_v10  ;;  %v14965_v10 = vld [vmem:[%s20031_s22 + $0xe4] ss:$16 sps:$4 sm:$0xff]  }
0x28a4   :  { %11857 = vmatprep.subr.bf16.mxu1 %v14965_v10 }
0x28a6   :  { %11858 = vmatpush1.bf16.msra.mxu1 %v14963_v50 }
0x28a7   :  { %12147 = vmatprep.subr.bf16.mxu1 %v14944_v37  ;;  %v14966_v37 = vld [vmem:[%s20031_s22 + $0x8] ss:$16 sps:$4 sm:$0xff]  }
0x2959   :  { %v11573_v63 = vpop.f32.mrb[172].mxu1  ;;  %v11614_v26 = vpop.f32.mrb[212].mxu0 }
0x295a   :  { %v11621_v0 = vadd.f32 %v11573_v63, %v17790_v3  ;;  %v11575_v2 = vpop.f32.mrb[173].mxu1  ;;  %v11616_v33 = vpop.f32.mrb[213].mxu0  ;;  %v11623_v58 = vadd.f32 %v11614_v26, %v17786_v25 }
0x295b   :  { %v11622_v52 = vadd.f32 %v11575_v2, %v17776_v23  ;;  %v11577_v14 = vpop.f32.mrb[174].mxu1  ;;  %v11618_v42 = vpop.f32.mrb[214].mxu0  ;;  %v11624_v59 = vadd.f32 %v11616_v33, %v17788_v9 }
0x295c   :  { %v13745_v36 = vmul.f32 -1.442695, %v11621_v0  ;;  %v11578_v8 = vpop.f32.mrb[175].mxu1  ;;  %v11619_v31 = vpop.f32.mrb[215].mxu0 }
0x295d   :  { %v13746_v32 = vmul.f32 -1.442695, %v11622_v52  ;;  %v13747_v60 = vmul.f32 -1.442695, %v11624_v59 }
0x295e   :  { %15614 = vpow2.f32 %v13745_v36 }
0x295f   :  { %15616 = vpow2.f32 %v13746_v32 }
0x2960   :  { %15618 = vpow2.f32 %v13747_v60 }
0x2961   :  { %15620 = vtanh.f32 %v11623_v58 }
0x2968   :  { %v15615_v5 = vpop.eup %15614 }
0x2969   :  { %v15617_v12 = vpop.eup %15616  ;;  %v11628_v11 = vadd.f32 1.0, %v15615_v5 }
0x296a   :  { %v11634_v34 = vadd.f32 1.0, %v15617_v12  ;;  %v15619_v46 = vpop.eup %15618 }
0x296b   :  { %15622 = vrcp.f32 %v11628_v11  ;;  %v15621_v24 = vpop.eup %15620  ;;  %v11641_v56 = vadd.f32 1.0, %v15619_v46 }
0x296c   :  { %15624 = vrcp.f32 %v11634_v34 }
0x296d   :  { %15626 = vrcp.f32 %v11641_v56 }
0x2975   :  { %v15623_v17 = vpop.eup %15622 }
0x2976   :  { %v15625_v30 = vpop.eup %15624  ;;  %v11645_v27 = vmul.f32 %v15623_v17, %v15621_v24 }
0x2977   :  { %v11644_v20 = vmul.f32 %v15625_v30, %v19579_v62  ;;  %v15627_v18 = vpop.eup %15626  ;;  %v14968_v62 = vld [vmem:[%s20031_s22 + $0xc] ss:$16 sps:$4 sm:$0xff]  }
0x2978   :  { %12188 = vmatprep.subr.bf16.mxu0 %v14968_v62  ;;  %v14990_v62 = vld [vmem:[%s20033_s24] sm:$0xff]  }
0x2979   :  { %v19692_v13 = vadd.f32 %v11645_v27, %v11644_v20 }
0x297b   :  { %15628 = vtanh.f32 %v19692_v13 }
0x2985   :  { %v15629_v48 = vpop.eup %15628 }
0x2986   :  { %v19695_v28 = vmul.f32 %v15629_v48, %v15627_v18 }
0x2988   :  { %v11682_v40 = vpack.c.bf16 %v19695_v28, %v19695_v28 }
0x298a   :  { %11876 = vmatmul.mubr.bf16.vlgmr.msra.gmra.mrb[176].mxu1 %v11682_v40  ;;  %11917 = vmatmul.mubr.bf16.vlgmr.msra.gmra.mrb[216].mxu0 %v11682_v40 }
0x298b   :  { %12148 = vmatpush1.bf16.msra.mxu1 %v19609_v39  ;;  %12179 = vmatprep.mubr.bf16.mxu1 %v20094_v21  ;;  %v14971_v39 = vld [vmem:[%s20031_s22 + $0x2c] ss:$16 sps:$4 sm:$0xff]  }
0x298c   :  { %12149 = vmatprep.subr.bf16.mxu1 %v19615_v38  ;;  %12220 = vmatprep.mubr.bf16.mxu0 %v20094_v21  ;;  %v20102_v21 = vmov 0.0   ;;  %v14969_v38 = vld [vmem:[%s20031_s22 + $0x28] ss:$16 sps:$4 sm:$0xff]  }
0x298d   :  { %12189 = vmatpush1.bf16.msra.mxu0 %v14966_v37 }
0x298e   :  { %12190 = vmatprep.subr.bf16.mxu0 %v14971_v39  ;;  %v14992_v39 = vld [vmem:[%s20033_s24 + $0x10] sm:$0xff]  }
0x298f   :  { %12150 = vmatpush1.bf16.msra.mxu1 %v19620_v44  ;;  %v14974_v44 = vld [vmem:[%s20031_s22 + $0x4c] ss:$16 sps:$4 sm:$0xff]  }
0x2990   :  { %12151 = vmatprep.subr.bf16.mxu1 %v19627_v47  ;;  %v14972_v47 = vld [vmem:[%s20031_s22 + $0x48] ss:$16 sps:$4 sm:$0xff]  }
0x2991   :  { %12191 = vmatpush1.bf16.msra.mxu0 %v14969_v38  ;;  %v14993_v38 = vld [vmem:[%s20033_s24 + $0x18] sm:$0xff]  }
0x2992   :  { %12192 = vmatprep.subr.bf16.mxu0 %v14974_v44  ;;  %v14994_v44 = vld [vmem:[%s20033_s24 + $0x20] sm:$0xff]  }
0x2993   :  { %12152 = vmatpush1.bf16.msra.mxu1 %v19632_v55  ;;  %v14977_v55 = vld [vmem:[%s20031_s22 + $0x6c] ss:$16 sps:$4 sm:$0xff]  }
0x2994   :  { %12153 = vmatprep.subr.bf16.mxu1 %v19639_v7  ;;  %v14975_v7 = vld [vmem:[%s20031_s22 + $0x68] ss:$16 sps:$4 sm:$0xff]  }
0x2995   :  { %12193 = vmatpush1.bf16.msra.mxu0 %v14972_v47  ;;  %v14995_v47 = vld [vmem:[%s20033_s24 + $0x28] sm:$0xff]  }
0x2996   :  { %12194 = vmatprep.subr.bf16.mxu0 %v14977_v55  ;;  %v14996_v55 = vld [vmem:[%s20033_s24 + $0x30] sm:$0xff]  }
0x2997   :  { %12154 = vmatpush1.bf16.msra.mxu1 %v19644_v29  ;;  %v14980_v29 = vld [vmem:[%s20031_s22 + $0x8c] ss:$16 sps:$4 sm:$0xff]  }
0x2998   :  { %12155 = vmatprep.subr.bf16.mxu1 %v19651_v43  ;;  %v14978_v43 = vld [vmem:[%s20031_s22 + $0x88] ss:$16 sps:$4 sm:$0xff]  }
0x2999   :  { %12195 = vmatpush1.bf16.msra.mxu0 %v14975_v7  ;;  %v14997_v7 = vld [vmem:[%s20033_s24 + $0x38] sm:$0xff]  }
0x299a   :  { %12196 = vmatprep.subr.bf16.mxu0 %v14980_v29  ;;  %v12299_v29 = vpack.c.bf16 %v17857_v51, %v17799_v6  ;;  %v12302_v6 = vpack.c.bf16 %v18459_v53, %v18332_v49  ;;  %v20103_v51 = vld [vmem:[#allocation9_spill] sm:$0xff]  ;;  %v20108_v49 = vld [vmem:[#allocation14_spill] sm:$0xff] }
0x299b   :  { %12156 = vmatpush1.bf16.msra.mxu1 %v19656_v19  ;;  %v14983_v19 = vld [vmem:[%s20031_s22 + $0xac] ss:$16 sps:$4 sm:$0xff]  }
0x299c   :  { %12157 = vmatprep.subr.bf16.mxu1 %v19662_v1  ;;  %v14981_v1 = vld [vmem:[%s20031_s22 + $0xa8] ss:$16 sps:$4 sm:$0xff]  }
0x299d   :  { %12197 = vmatpush1.bf16.msra.mxu0 %v14978_v43  ;;  %v12300_v43 = vpack.c.bf16 %v18115_v35, %v17988_v57  ;;  %v20104_v57 = vld [vmem:[#allocation10_spill] sm:$0xff] }
0x299e   :  { %12198 = vmatprep.subr.bf16.mxu0 %v14983_v19  ;;  %v12301_v19 = vpack.c.bf16 %v18206_v41, %v18161_v16  ;;  %v12303_v35 = vpack.c.bf16 %v20104_v57, %v20103_v51  ;;  %v20106_v16 = vld [vmem:[#allocation12_spill] sm:$0xff] }
0x299f   :  { %12158 = vmatpush1.bf16.msra.mxu1 %v19668_v45  ;;  %v14986_v45 = vld [vmem:[%s20031_s22 + $0xcc] ss:$16 sps:$4 sm:$0xff]  }
0x29a0   :  { %12159 = vmatprep.subr.bf16.mxu1 %v19674_v54  ;;  %v14984_v54 = vld [vmem:[%s20031_s22 + $0xc8] ss:$16 sps:$4 sm:$0xff]  }
0x29a1   :  { %12199 = vmatpush1.bf16.msra.mxu0 %v14981_v1  ;;  %v20105_v1 = vld [vmem:[#allocation11_spill] sm:$0xff] }
0x29a2   :  { %12200 = vmatprep.subr.bf16.mxu0 %v14986_v45  ;;  %v12304_v41 = vpack.c.bf16 %v20106_v16, %v20105_v1  ;;  %v20107_v45 = vld [vmem:[#allocation13_spill] sm:$0xff] }
0x29a3   :  { %12160 = vmatpush1.bf16.msra.mxu1 %v14960_v4  ;;  %v14989_v4 = vld [vmem:[%s20031_s22 + $0xec] ss:$16 sps:$4 sm:$0xff]   ;;  %v12305_v53 = vpack.c.bf16 %v20108_v49, %v20107_v45 }
0x29a4   :  { %12161 = vmatprep.subr.bf16.mxu1 %v14965_v10  ;;  %v14987_v10 = vld [vmem:[%s20031_s22 + $0xe8] ss:$16 sps:$4 sm:$0xff]  }
0x29a5   :  { %12201 = vmatpush1.bf16.msra.mxu0 %v14984_v54  ;;  %v20109_v54 = vld [vmem:[#allocation15_spill] sm:$0xff] }
0x29a6   :  { %12202 = vmatprep.subr.bf16.mxu0 %v14989_v4  ;;  %v20110_v4 = vld [vmem:[#allocation16_spill] sm:$0xff] }
0x29a7   :  { %12162 = vmatpush1.bf16.msra.mxu1 %v14963_v50 }
0x29a8   :  { %14190 = vmatprep.subr.bf16.mxu1 %v20102_v21 }
0x29a9   :  { %12203 = vmatpush1.bf16.msra.mxu0 %v14987_v10  ;;  %v12306_v10 = vpack.c.bf16 %v20110_v4, %v20109_v54 }
0x2a5d   :  { %v11877_v50 = vpop.f32.mrb[176].mxu1  ;;  %v11918_v63 = vpop.f32.mrb[216].mxu0 }
0x2a5e   :  { %v11925_v26 = vadd.f32 %v11877_v50, %v17790_v3  ;;  %v11879_v0 = vpop.f32.mrb[177].mxu1  ;;  %v11920_v2 = vpop.f32.mrb[217].mxu0  ;;  %v11927_v60 = vadd.f32 %v11918_v63, %v17786_v25  ;;  %v20111_v50 = vld [vmem:[#allocation17_spill] sm:$0xff]  ;;  %v20112_v63 = vld [vmem:[#allocation18_spill] sm:$0xff] }
0x2a5f   :  { %v11926_v33 = vadd.f32 %v11879_v0, %v17776_v23  ;;  %v11881_v52 = vpop.f32.mrb[178].mxu1  ;;  %v11922_v14 = vpop.f32.mrb[218].mxu0  ;;  %v11928_v32 = vadd.f32 %v11920_v2, %v17788_v9  ;;  %v20113_v0 = vld [vmem:[#allocation19_spill] sm:$0xff] }
0x2a60   :  { %v13780_v42 = vmul.f32 -1.442695, %v11925_v26  ;;  %v11882_v36 = vpop.f32.mrb[179].mxu1  ;;  %v11923_v8 = vpop.f32.mrb[219].mxu0  ;;  %v12307_v26 = vpack.c.bf16 %v20112_v63, %v20111_v50  ;;  %v12308_v2 = vpack.c.bf16 %v19491_v22, %v20113_v0 }
0x2a61   :  { %v13781_v31 = vmul.f32 -1.442695, %v11926_v33  ;;  %v13782_v59 = vmul.f32 -1.442695, %v11928_v32  ;;  %v12309_v33 = vpack.c.bf16 %v19582_v61, %v19537_v15 }
0x2a62   :  { %15630 = vpow2.f32 %v13780_v42 }
0x2a63   :  { %15632 = vpow2.f32 %v13781_v31 }
0x2a64   :  { %15634 = vpow2.f32 %v13782_v59 }
0x2a65   :  { %15636 = vtanh.f32 %v11927_v60 }
0x2a6c   :  { %v15631_v58 = vpop.eup %15630 }
0x2a6d   :  { %v15633_v5 = vpop.eup %15632  ;;  %v11932_v12 = vadd.f32 1.0, %v15631_v58 }
0x2a6e   :  { %v11938_v11 = vadd.f32 1.0, %v15633_v5  ;;  %v15635_v34 = vpop.eup %15634 }
0x2a6f   :  { %15638 = vrcp.f32 %v11932_v12  ;;  %v15637_v46 = vpop.eup %15636  ;;  %v11945_v27 = vadd.f32 1.0, %v15635_v34 }
0x2a70   :  { %15640 = vrcp.f32 %v11938_v11 }
0x2a71   :  { %15642 = vrcp.f32 %v11945_v27 }
0x2a79   :  { %v15639_v24 = vpop.eup %15638 }
0x2a7a   :  { %v15641_v17 = vpop.eup %15640  ;;  %v11949_v30 = vmul.f32 %v15639_v24, %v15637_v46 }
0x2a7b   :  { %v11948_v56 = vmul.f32 %v15641_v17, %v19692_v13  ;;  %v15643_v18 = vpop.eup %15642  ;;  %v14991_v13 = vld [vmem:[%s20033_s24 + $0x8] sm:$0xff]  }
0x2a7d   :  { %v19767_v20 = vadd.f32 %v11949_v30, %v11948_v56 }
0x2a7f   :  { %15644 = vtanh.f32 %v19767_v20 }
0x2a89   :  { %v15645_v48 = vpop.eup %15644 }
0x2a8a   :  { %v11952_v40 = vmul.f32 %v15645_v48, %v15643_v18 }
0x2a8c   :  { %v11986_v37 = vpack.c.bf16 %v11952_v40, %v11952_v40  ;;  %v12310_v52 = vpack.c.bf16 %v11952_v40, %v19695_v28 }
0x2a8e   :  { %12180 = vmatmul.mubr.bf16.vlgmr.msra.gmra.mrb[180].mxu1 %v11986_v37  ;;  %12221 = vmatmul.mubr.bf16.vlgmr.msra.gmra.mrb[220].mxu0 %v11986_v37 }
0x2a8f   :  { %14191 = vmatpush3.bf16.msra.mxu1 %v14990_v62  ;;  %14206 = vmatprep.mubr.msk.bf16.mxu1 %vm15745_vm4, %v20102_v21 }
0x2a90   :  { %14192 = vmatprep.subr.bf16.mxu1 %v20102_v21 }
0x2a93   :  { %14193 = vmatpush3.bf16.msra.mxu1 %v14991_v13 }
0x2a94   :  { %14194 = vmatprep.subr.bf16.mxu1 %v20102_v21 }
0x2a97   :  { %14195 = vmatpush3.bf16.msra.mxu1 %v14992_v39 }
0x2a98   :  { %14196 = vmatprep.subr.bf16.mxu1 %v20102_v21 }
0x2a9b   :  { %14197 = vmatpush3.bf16.msra.mxu1 %v14993_v38 }
0x2a9c   :  { %14198 = vmatprep.subr.bf16.mxu1 %v20102_v21 }
0x2a9f   :  { %14199 = vmatpush3.bf16.msra.mxu1 %v14994_v44 }
0x2aa0   :  { %14200 = vmatprep.subr.bf16.mxu1 %v20102_v21 }
0x2aa3   :  { %14201 = vmatpush3.bf16.msra.mxu1 %v14995_v47 }
0x2aa4   :  { %14202 = vmatprep.subr.bf16.mxu1 %v20102_v21 }
0x2aa7   :  { %14203 = vmatpush3.bf16.msra.mxu1 %v14996_v55 }
0x2aa8   :  { %14204 = vmatprep.subr.bf16.mxu1 %v20102_v21 }
0x2aab   :  { %14205 = vmatpush3.bf16.msra.mxu1 %v14997_v7 }
0x2aae   :  { %14207 = vmatmul.mubr.bf16.vlgmr.msra.gmra.mrb[184].mxu1 %v12299_v29 }
0x2aaf   :  { %14210 = vmatprep.mubr.msk.bf16.mxu1 %vm15745_vm4, %v20102_v21 }
0x2ab6   :  { %14211 = vmatmul.mubr.bf16.gmra.mrb[188].mxu1 %v12300_v43 }
0x2ab7   :  { %14214 = vmatprep.mubr.msk.bf16.mxu1 %vm15745_vm4, %v20102_v21 }
0x2abe   :  { %14215 = vmatmul.mubr.bf16.gmra.mrb[192].mxu1 %v12301_v19 }
0x2abf   :  { %14218 = vmatprep.mubr.msk.bf16.mxu1 %vm15745_vm4, %v20102_v21 }
0x2ac6   :  { %14219 = vmatmul.mubr.bf16.gmra.mrb[196].mxu1 %v12302_v6 }
0x2ac7   :  { %14222 = vmatprep.mubr.msk.bf16.mxu1 %vm15745_vm4, %v20102_v21 }
0x2ace   :  { %14223 = vmatmul.mubr.bf16.gmra.mrb[200].mxu1 %v12303_v35 }
0x2acf   :  { %14226 = vmatprep.mubr.msk.bf16.mxu1 %vm15745_vm4, %v20102_v21 }
0x2ad6   :  { %14227 = vmatmul.mubr.bf16.gmra.mrb[204].mxu1 %v12304_v41 }
0x2ad7   :  { %14230 = vmatprep.mubr.msk.bf16.mxu1 %vm15745_vm4, %v20102_v21 }
0x2ade   :  { %14231 = vmatmul.mubr.bf16.gmra.mrb[208].mxu1 %v12305_v53 }
0x2adf   :  { %14234 = vmatprep.mubr.msk.bf16.mxu1 %vm15745_vm4, %v20102_v21 }
0x2ae6   :  { %14235 = vmatmul.mubr.bf16.gmra.mrb[212].mxu1 %v12306_v10 }
0x2ae7   :  { %14238 = vmatprep.mubr.msk.bf16.mxu1 %vm15745_vm4, %v20102_v21 }
0x2aee   :  { %14239 = vmatmul.mubr.bf16.gmra.mrb[216].mxu1 %v12307_v26 }
0x2aef   :  { %14242 = vmatprep.mubr.msk.bf16.mxu1 %vm15745_vm4, %v20102_v21 }
0x2af6   :  { %14243 = vmatmul.mubr.bf16.gmra.mrb[220].mxu1 %v12308_v2 }
0x2af7   :  { %14246 = vmatprep.mubr.msk.bf16.mxu1 %vm15745_vm4, %v20102_v21 }
0x2afe   :  { %14247 = vmatmul.mubr.bf16.gmra.mrb[224].mxu1 %v12309_v33 }
0x2aff   :  { %14250 = vmatprep.mubr.msk.bf16.mxu1 %vm15745_vm4, %v20102_v21 }
0x2b06   :  { %14251 = vmatmul.mubr.bf16.gmra.mrb[228].mxu1 %v12310_v52 }
0x2b07   :  { %14254 = vmatprep.mubr.msk.bf16.mxu1 %vm15745_vm4, %v20102_v21  ;;  %vm12503_vm4 = vcmask 15360  }
0x2b61   :  { %v12181_v14 = vpop.f32.mrb[180].mxu1  ;;  %v12222_v42 = vpop.f32.mrb[220].mxu0 }
0x2b62   :  { %v12229_v22 = vadd.f32 %v12181_v14, %v17790_v3  ;;  %v12183_v36 = vpop.f32.mrb[181].mxu1  ;;  %v12224_v8 = vpop.f32.mrb[221].mxu0  ;;  %v12231_v21 = vadd.f32 %v12222_v42, %v17786_v25  ;;  %v19858_v25 = vld [vmem:[%s20034_s25] ss:$0 sm:$0xff] }
0x2b63   :  { %v12230_v31 = vadd.f32 %v12183_v36, %v17776_v23  ;;  %v12185_v32 = vpop.f32.mrb[182].mxu1  ;;  %v12226_v15 = vpop.f32.mrb[222].mxu0  ;;  %v12232_v28 = vadd.f32 %v12224_v8, %v17788_v9 }
0x2b64   :  { %v13815_v61 = vmul.f32 -1.442695, %v12229_v22  ;;  %v12186_v59 = vpop.f32.mrb[183].mxu1  ;;  %v12227_v60 = vpop.f32.mrb[223].mxu0 }
0x2b65   :  { %v13816_v58 = vmul.f32 -1.442695, %v12230_v31  ;;  %v13817_v5 = vmul.f32 -1.442695, %v12232_v28 }
0x2b66   :  { %15646 = vpow2.f32 %v13815_v61 }
0x2b67   :  { %15648 = vpow2.f32 %v13816_v58 }
0x2b68   :  { %15650 = vpow2.f32 %v13817_v5 }
0x2b69   :  { %15652 = vtanh.f32 %v12231_v21 }
0x2b70   :  { %v15647_v12 = vpop.eup %15646 }
0x2b71   :  { %v15649_v11 = vpop.eup %15648  ;;  %v12236_v3 = vadd.f32 1.0, %v15647_v12 }
0x2b72   :  { %v12242_v34 = vadd.f32 1.0, %v15649_v11  ;;  %v15651_v23 = vpop.eup %15650 }
0x2b73   :  { %15654 = vrcp.f32 %v12236_v3  ;;  %v15653_v46 = vpop.eup %15652  ;;  %v12249_v27 = vadd.f32 1.0, %v15651_v23 }
0x2b74   :  { %15656 = vrcp.f32 %v12242_v34 }
0x2b75   :  { %15658 = vrcp.f32 %v12249_v27 }
0x2b7d   :  { %v15655_v24 = vpop.eup %15654 }
0x2b7e   :  { %v15657_v17 = vpop.eup %15656  ;;  %v12253_v30 = vmul.f32 %v15655_v24, %v15653_v46 }
0x2b7f   :  { %v12252_v56 = vmul.f32 %v15657_v17, %v19767_v20  ;;  %v15659_v47 = vpop.eup %15658 }
0x2b81   :  { %v12401_v9 = vpop.f32.mrb[184].mxu1  ;;  %v12254_v18 = vadd.f32 %v12253_v30, %v12252_v56 }
0x2b82   :  { %v12402_v48 = vadd.f32 %v19858_v25, %v12401_v9  ;;  %v14208_v40 = vpop.f32.mrb[185].mxu1 }
0x2b83   :  { %v12404_v62 = vpop.f32.mrb[186].mxu1  ;;  %15660 = vtanh.f32 %v12254_v18 }
0x2b84   :  { %12504 = vst.msk [vmem:[%s20035_s26] sm:$0xff] %vm12503_vm4, %v12402_v48  ;;  %v12405_v20 = vadd.f32 %v19858_v25, %v12404_v62  ;;  %v14209_v37 = vpop.f32.mrb[187].mxu1 }
0x2b86   :  { %12505 = vst.msk [vmem:[%s20035_s26 + $0x8] sm:$0xff] %vm12503_vm4, %v12405_v20 }
0x2b89   :  { %v12409_v13 = vpop.f32.mrb[188].mxu1 }
0x2b8a   :  { %v12410_v39 = vadd.f32 %v19858_v25, %v12409_v13  ;;  %v14212_v38 = vpop.f32.mrb[189].mxu1 }
0x2b8b   :  { %v12412_v44 = vpop.f32.mrb[190].mxu1 }
0x2b8c   :  { %12506 = vst.msk [vmem:[%s20035_s26 + $0x10] sm:$0xff] %vm12503_vm4, %v12410_v39  ;;  %v12413_v55 = vadd.f32 %v19858_v25, %v12412_v44  ;;  %v14213_v7 = vpop.f32.mrb[191].mxu1 }
0x2b8d   :  { %v15661_v29 = vpop.eup %15660 }
0x2b8e   :  { %12507 = vst.msk [vmem:[%s20035_s26 + $0x18] sm:$0xff] %vm12503_vm4, %v12413_v55  ;;  %v12256_v43 = vmul.f32 %v15661_v29, %v15659_v47 }
0x2b90   :  { %v12311_v19 = vpack.c.bf16 %v12256_v43, %v12256_v43 }
0x2b91   :  { %v12417_v6 = vpop.f32.mrb[192].mxu1 }
0x2b92   :  { %v12418_v51 = vadd.f32 %v19858_v25, %v12417_v6  ;;  %v14216_v57 = vpop.f32.mrb[193].mxu1  ;;  %14255 = vmatmul.mubr.bf16.gmra.mrb[232].mxu1 %v12311_v19 }
0x2b93   :  { %v12420_v35 = vpop.f32.mrb[194].mxu1 }
0x2b94   :  { %12508 = vst.msk [vmem:[%s20035_s26 + $0x20] sm:$0xff] %vm12503_vm4, %v12418_v51  ;;  %v12421_v1 = vadd.f32 %v19858_v25, %v12420_v35  ;;  %v14217_v16 = vpop.f32.mrb[195].mxu1 }
0x2b96   :  { %12509 = vst.msk [vmem:[%s20035_s26 + $0x28] sm:$0xff] %vm12503_vm4, %v12421_v1 }
0x2b99   :  { %v12425_v41 = vpop.f32.mrb[196].mxu1 }
0x2b9a   :  { %v12426_v45 = vadd.f32 %v19858_v25, %v12425_v41  ;;  %v14220_v49 = vpop.f32.mrb[197].mxu1 }
0x2b9b   :  { %v12428_v53 = vpop.f32.mrb[198].mxu1 }
0x2b9c   :  { %12510 = vst.msk [vmem:[%s20035_s26 + $0x30] sm:$0xff] %vm12503_vm4, %v12426_v45  ;;  %v12429_v54 = vadd.f32 %v19858_v25, %v12428_v53  ;;  %v14221_v4 = vpop.f32.mrb[199].mxu1 }
0x2b9e   :  { %12511 = vst.msk [vmem:[%s20035_s26 + $0x38] sm:$0xff] %vm12503_vm4, %v12429_v54 }
0x2ba1   :  { %v12433_v10 = vpop.f32.mrb[200].mxu1 }
0x2ba2   :  { %v12434_v50 = vadd.f32 %v19858_v25, %v12433_v10  ;;  %v14224_v63 = vpop.f32.mrb[201].mxu1 }
0x2ba3   :  { %v12436_v26 = vpop.f32.mrb[202].mxu1 }
0x2ba4   :  { %12512 = vst.msk [vmem:[%s20035_s26 + $0x40] sm:$0xff] %vm12503_vm4, %v12434_v50  ;;  %v12437_v0 = vadd.f32 %v19858_v25, %v12436_v26  ;;  %v14225_v2 = vpop.f32.mrb[203].mxu1 }
0x2ba6   :  { %12513 = vst.msk [vmem:[%s20035_s26 + $0x48] sm:$0xff] %vm12503_vm4, %v12437_v0 }
0x2ba9   :  { %v12441_v33 = vpop.f32.mrb[204].mxu1 }
0x2baa   :  { %v12442_v52 = vadd.f32 %v19858_v25, %v12441_v33  ;;  %v14228_v14 = vpop.f32.mrb[205].mxu1 }
0x2bab   :  { %v12444_v42 = vpop.f32.mrb[206].mxu1 }
0x2bac   :  { %12514 = vst.msk [vmem:[%s20035_s26 + $0x50] sm:$0xff] %vm12503_vm4, %v12442_v52  ;;  %v12445_v22 = vadd.f32 %v19858_v25, %v12444_v42  ;;  %v14229_v36 = vpop.f32.mrb[207].mxu1 }
0x2bae   :  { %12515 = vst.msk [vmem:[%s20035_s26 + $0x58] sm:$0xff] %vm12503_vm4, %v12445_v22 }
0x2bb1   :  { %v12449_v8 = vpop.f32.mrb[208].mxu1 }
0x2bb2   :  { %v12450_v31 = vadd.f32 %v19858_v25, %v12449_v8  ;;  %v14232_v32 = vpop.f32.mrb[209].mxu1 }
0x2bb3   :  { %v12452_v15 = vpop.f32.mrb[210].mxu1 }
0x2bb4   :  { %12516 = vst.msk [vmem:[%s20035_s26 + $0x60] sm:$0xff] %vm12503_vm4, %v12450_v31  ;;  %v12453_v61 = vadd.f32 %v19858_v25, %v12452_v15  ;;  %v14233_v59 = vpop.f32.mrb[211].mxu1 }
0x2bb6   :  { %12517 = vst.msk [vmem:[%s20035_s26 + $0x68] sm:$0xff] %vm12503_vm4, %v12453_v61 }
0x2bb9   :  { %v12457_v60 = vpop.f32.mrb[212].mxu1 }
0x2bba   :  { %v12458_v58 = vadd.f32 %v19858_v25, %v12457_v60  ;;  %v14236_v28 = vpop.f32.mrb[213].mxu1 }
0x2bbb   :  { %v12460_v5 = vpop.f32.mrb[214].mxu1 }
0x2bbc   :  { %12518 = vst.msk [vmem:[%s20035_s26 + $0x70] sm:$0xff] %vm12503_vm4, %v12458_v58  ;;  %v12461_v21 = vadd.f32 %v19858_v25, %v12460_v5  ;;  %v14237_v12 = vpop.f32.mrb[215].mxu1 }
0x2bbe   :  { %12519 = vst.msk [vmem:[%s20035_s26 + $0x78] sm:$0xff] %vm12503_vm4, %v12461_v21 }
0x2bc1   :  { %v12465_v11 = vpop.f32.mrb[216].mxu1 }
0x2bc2   :  { %v12466_v3 = vadd.f32 %v19858_v25, %v12465_v11  ;;  %v14240_v34 = vpop.f32.mrb[217].mxu1 }
0x2bc3   :  { %v12468_v23 = vpop.f32.mrb[218].mxu1 }
0x2bc4   :  { %12520 = vst.msk [vmem:[%s20035_s26 + $0x80] sm:$0xff] %vm12503_vm4, %v12466_v3  ;;  %v12469_v46 = vadd.f32 %v19858_v25, %v12468_v23  ;;  %v14241_v24 = vpop.f32.mrb[219].mxu1 }
0x2bc6   :  { %12521 = vst.msk [vmem:[%s20035_s26 + $0x88] sm:$0xff] %vm12503_vm4, %v12469_v46 }
0x2bc9   :  { %v12473_v17 = vpop.f32.mrb[220].mxu1 }
0x2bca   :  { %v12474_v30 = vadd.f32 %v19858_v25, %v12473_v17  ;;  %v14244_v27 = vpop.f32.mrb[221].mxu1 }
0x2bcb   :  { %v12476_v56 = vpop.f32.mrb[222].mxu1 }
0x2bcc   :  { %12522 = vst.msk [vmem:[%s20035_s26 + $0x90] sm:$0xff] %vm12503_vm4, %v12474_v30  ;;  %v12477_v9 = vadd.f32 %v19858_v25, %v12476_v56  ;;  %v14245_v18 = vpop.f32.mrb[223].mxu1 }
0x2bce   :  { %12523 = vst.msk [vmem:[%s20035_s26 + $0x98] sm:$0xff] %vm12503_vm4, %v12477_v9 }
0x2bd1   :  { %v12481_v48 = vpop.f32.mrb[224].mxu1 }
0x2bd2   :  { %v12482_v40 = vadd.f32 %v19858_v25, %v12481_v48  ;;  %v14248_v62 = vpop.f32.mrb[225].mxu1 }
0x2bd3   :  { %v12484_v20 = vpop.f32.mrb[226].mxu1 }
0x2bd4   :  { %12524 = vst.msk [vmem:[%s20035_s26 + $0xa0] sm:$0xff] %vm12503_vm4, %v12482_v40  ;;  %v12485_v37 = vadd.f32 %v19858_v25, %v12484_v20  ;;  %v14249_v13 = vpop.f32.mrb[227].mxu1 }
0x2bd6   :  { %12525 = vst.msk [vmem:[%s20035_s26 + $0xa8] sm:$0xff] %vm12503_vm4, %v12485_v37 }
0x2bd9   :  { %v12489_v39 = vpop.f32.mrb[228].mxu1 }
0x2bda   :  { %v12490_v38 = vadd.f32 %v19858_v25, %v12489_v39  ;;  %v14252_v44 = vpop.f32.mrb[229].mxu1 }
0x2bdb   :  { %v12492_v47 = vpop.f32.mrb[230].mxu1 }
0x2bdc   :  { %12526 = vst.msk [vmem:[%s20035_s26 + $0xb0] sm:$0xff] %vm12503_vm4, %v12490_v38  ;;  %v12493_v55 = vadd.f32 %v19858_v25, %v12492_v47  ;;  %v14253_v7 = vpop.f32.mrb[231].mxu1 }
0x2bde   :  { %12527 = vst.msk [vmem:[%s20035_s26 + $0xb8] sm:$0xff] %vm12503_vm4, %v12493_v55 }
0x2bdf   :  { %15705 = shalt.err (!%p15702_p4)
}
0x2be0   :  { %s15706_s19 = scalar_lea.hbm %s20036_s27, 32 }
0x2be1   :  { %p15707_p5 = scmp.ne.s32.totalorder %s20036_s27, %s15706_s19  ;;  %p15710_p6 = scmp.lt.u32.totalorder %s15706_s19, %s20036_s27 }
0x2be3   :  { %p15712_p7 = pnand %p15710_p6, %p15707_p5 }
0x2be5   :  { %15715 = shalt.err (!%p15712_p7)
}
0x2be6   :  { %12540 = dma.vmem_to_hbm [thread:$0]  %s12538_s5, 32, %s20036_s27, [#allocation4]  }
0x2be7   :  { %s15716_s15 = scalar_lea.vmem %s12548_s9, 32  ;;  %p15721_p9 = scmp.lt.s32.totalorder %s12548_s9, %s12548_s9 }
0x2be8   :  { %p15717_p8 = scmp.ne.s32.totalorder %s12548_s9, %s15716_s15  ;;  %p15722_p10 = scmp.lt.s32.totalorder %s15716_s15, %s15716_s15 }
0x2bea   :  { %p15723_p11 = por %p15722_p10, %p15721_p9 }
0x2bec   :  { %p15724_p12 = pnand %p15723_p11, %p15717_p8 }
0x2bee   :  { %15727 = shalt.err (!%p15724_p12)
}
0x2bef   :  { %s15728_s17 = scalar_lea.hbm %s20037_s28, 32 }
0x2bf0   :  { %p15729_p13 = scmp.ne.s32.totalorder %s20037_s28, %s15728_s17  ;;  %p15732_p0 = scmp.lt.u32.totalorder %s15728_s17, %s20037_s28 }
0x2bf2   :  { %p15734_p1 = pnand %p15732_p0, %p15729_p13 }
0x2bf4   :  { %15737 = shalt.err (!%p15734_p1)
}
0x2bf5   :  { %12550 = dma.vmem_to_hbm [thread:$0]  %s12548_s9, 32, %s20037_s28, [#allocation6]  }
0x2c65   :  { %v12497_v29 = vpop.f32.mrb[232].mxu1 }
0x2c66   :  { %v12498_v43 = vadd.f32 %v19858_v25, %v12497_v29  ;;  %v14256_v19 = vpop.f32.mrb[233].mxu1 }
0x2c67   :  { %v12500_v6 = vpop.f32.mrb[234].mxu1 }
0x2c68   :  { %12528 = vst.msk [vmem:[%s20035_s26 + $0xc0] sm:$0xff] %vm12503_vm4, %v12498_v43  ;;  %v14257_v51 = vpop.f32.mrb[235].mxu1 }
0x2c69   :  { %15738 = dma.done.wait [#allocation4], 32  }
0x2c6a   :  { %15739 = vsyncadd [#allocation4], 4294967264 }
0x2c6b   :  { %15740 = dma.done.wait [#allocation6], 32  }
0x2c6c   :  { %15741 = vsyncadd [#allocation6], 4294967264 }
0x2c6d   :  { %12559 = vsyncpa [#allocation4], 1 }
0x2c6e   :  { %12560 = vsyncpa [#allocation6], 1 }

</bundles_post_ra>
